<compile_context>
chip_gen: v7x
topology: tpu7x:2x2x1
jax: 0.10.0
libtpu: 0.0.40
codegen_flags: <defaults>
</compile_context>

<pallas_src>
import functools
import math

import jax
import jax.numpy as jnp
from jax import lax
from jax.experimental import pallas as pl
from jax.experimental.pallas import tpu as pltpu


# ---------------------------------------------------------------------------
# Blocked linear layer: y = x @ W + b   (W already stored as (in, out))
# ---------------------------------------------------------------------------
def _linear_kernel(x_ref, w_ref, b_ref, o_ref):
    # Weight was pre-transposed host-side to (in, out): no in-kernel `.T`.
    o_ref[...] = (
        jnp.dot(x_ref[...], w_ref[...], preferred_element_type=jnp.float32)
        + b_ref[...]
    ).astype(o_ref.dtype)


def _linear(x, w_t, b, *, out_dtype=None, block_rows=256, block_cols=256):
    """y = x @ w_t + b.  x: (N, Din), w_t: (Din, Dout) pre-transposed,
    b: (1, Dout) float32.  Operands may be f32 or bf16; accumulation is f32."""
    n, d_in = x.shape
    d_out = w_t.shape[1]
    out_dtype = x.dtype if out_dtype is None else out_dtype
    tm = min(block_rows, n)
    tn = min(block_cols, d_out)
    # Output-column axis OUTER, row axis INNER: the (Din, tn) weight stripe and
    # the bias block keep the same block index across the whole inner row
    # sweep, so they are staged into VMEM once per column stripe instead of
    # being re-DMA'd every (row, col) step.
    grid = (pl.cdiv(d_out, tn), pl.cdiv(n, tm))
    # Ragged edge tiles are safe without masking: the contraction (Din) axis is
    # never tiled, so out-of-bounds rows/cols only produce garbage output
    # elements, and those writes are discarded by Pallas.
    # TODO(synk): tile the contraction (Din) axis with an accumulator for very
    # large d_model so the (Din, tn) weight stripe stays inside VMEM (matters
    # first on v7x, which has 64 MiB of VMEM).
    return pl.pallas_call(
        _linear_kernel,
        out_shape=jax.ShapeDtypeStruct((n, d_out), out_dtype),
        grid_spec=pltpu.PrefetchScalarGridSpec(
            num_scalar_prefetch=0,
            grid=grid,
            in_specs=[
                pl.BlockSpec((tm, d_in), lambda j, i: (i, 0)),
                pl.BlockSpec((d_in, tn), lambda j, i: (0, j)),
                pl.BlockSpec((1, tn), lambda j, i: (0, j)),
            ],
            out_specs=pl.BlockSpec((tm, tn), lambda j, i: (i, j)),
        ),
        compiler_params=pltpu.CompilerParams(
            dimension_semantics=("parallel", "parallel"),
            vmem_limit_bytes=32 * 1024 * 1024,
        ),
    )(x, w_t, b)


# ---------------------------------------------------------------------------
# Flash-style multi-head attention core (weight-free, heads via BlockSpec)
# ---------------------------------------------------------------------------
def _flash_mha_kernel(q_ref, k_ref, v_ref, o_ref, m_sc, l_sc, acc_sc,
                      *, scale, kv_len, block_kv):
    kv_idx = pl.program_id(3)

    @pl.when(kv_idx == 0)
    def _():
        m_sc[...] = jnp.full_like(m_sc, -jnp.inf)
        l_sc[...] = jnp.zeros_like(l_sc)
        acc_sc[...] = jnp.zeros_like(acc_sc)

    q = q_ref[...]          # (tq, d_k)  f32
    k = k_ref[...]          # (tk, d_k)  f32
    v = v_ref[...]          # (tk, d_k)  bf16

    # q @ k^T as a contraction over the trailing dims of both operands: no XLU
    # transpose of K is ever materialized.
    s = lax.dot_general(
        q, k, (((1,), (1,)), ((), ())), preferred_element_type=jnp.float32
    )  # (tq, tk)
    # PyTorch: attention_score = matmul(q, k^T) // sqrt(d_k)  (floor division).
    s = jnp.floor(s * scale)

    if kv_len % block_kv != 0:  # static: only traced for ragged KV tilings
        # Kill padded KV columns before the row reductions and zero padded V
        # rows so that 0 * (uninitialized padding) can never inject inf/NaN.
        kv_pos = kv_idx * block_kv + lax.broadcasted_iota(jnp.int32, s.shape, 1)
        s = jnp.where(kv_pos < kv_len, s, -jnp.inf)
        v_pos = kv_idx * block_kv + lax.broadcasted_iota(jnp.int32, v.shape, 0)
        v = jnp.where(v_pos < kv_len, v, jnp.zeros_like(v))

    m_prev = m_sc[...]
    m_new = jnp.maximum(m_prev, jnp.max(s, axis=-1, keepdims=True))
    alpha = jnp.exp(m_prev - m_new)
    p = jnp.exp(s - m_new)  # (tq, tk)
    l_sc[...] = alpha * l_sc[...] + jnp.sum(p, axis=-1, keepdims=True)
    # Post-floor matmul: bf16 operands, f32 accumulation (MXU-native).
    acc_sc[...] = alpha * acc_sc[...] + jnp.dot(
        p.astype(jnp.bfloat16), v.astype(jnp.bfloat16),
        preferred_element_type=jnp.float32,
    )
    m_sc[...] = m_new

    @pl.when(kv_idx == pl.num_programs(3) - 1)
    def _():
        inv_l = pl.reciprocal(l_sc[...], approx=True)   # EUP fast path
        o_ref[...] = (acc_sc[...] * inv_l).astype(o_ref.dtype)


def _flash_mha(q_p, k_p, v_p, *, num_head, d_k, scale,
               block_q=256, block_kv=256, out_dtype=jnp.bfloat16):
    """q_p/k_p/v_p: (B, S, H*d_k) with heads MERGED in the last dim.
    Returns the attention output in the same merged (B, S, H*d_k) layout,
    so no head split/merge transposes are needed on either side."""
    b, s, d = q_p.shape
    assert d == num_head * d_k
    # TODO(synk): d_k that is not a multiple of 128 (and != d) would need a
    # different head-slicing strategy to stay lane-aligned.
    tq = min(block_q, s)
    tk = min(block_kv, s)
    grid = (b, num_head, pl.cdiv(s, tq), pl.cdiv(s, tk))

    # Head hi is the lane-aligned column block [hi*d_k, (hi+1)*d_k) of the
    # merged projection output.
    q_spec = pl.BlockSpec((None, tq, d_k), lambda bi, hi, qi, ki: (bi, qi, hi))
    kv_spec = pl.BlockSpec((None, tk, d_k), lambda bi, hi, qi, ki: (bi, ki, hi))
    o_spec = pl.BlockSpec((None, tq, d_k), lambda bi, hi, qi, ki: (bi, qi, hi))

    kernel = functools.partial(
        _flash_mha_kernel, scale=scale, kv_len=s, block_kv=tk
    )
    return pl.pallas_call(
        kernel,
        out_shape=jax.ShapeDtypeStruct((b, s, d), out_dtype),
        grid_spec=pltpu.PrefetchScalarGridSpec(
            num_scalar_prefetch=0,
            grid=grid,
            in_specs=[q_spec, kv_spec, kv_spec],
            out_specs=o_spec,
            scratch_shapes=[
                pltpu.VMEM((tq, 1), jnp.float32),    # running max
                pltpu.VMEM((tq, 1), jnp.float32),    # running denominator
                pltpu.VMEM((tq, d_k), jnp.float32),  # output accumulator
            ],
        ),
        compiler_params=pltpu.CompilerParams(
            # B x H x Sq parallel (megacore-friendly), KV reduction axis last.
            dimension_semantics=("parallel", "parallel", "parallel", "arbitrary"),
            vmem_limit_bytes=32 * 1024 * 1024,
        ),
    )(q_p, k_p, v_p)


# ---------------------------------------------------------------------------
# Full module forward
# ---------------------------------------------------------------------------
@functools.partial(jax.jit, static_argnames=("num_head",))
def multi_head_attention(q, k, v, params, *, num_head):
    """q, k, v: (B, S, D) f32.  params follow the nn.Linear convention:
    W has shape (out_features, in_features), b has shape (1, out_features)."""
    B, S, D = q.shape
    assert D % num_head == 0
    d_k = D // num_head
    scale = 1.0 / math.sqrt(d_k)

    # One-time XLA-side weight transposes to (in, out) so kernels never hit the
    # XLU.  Q/K stay f32 (they feed the floored logits and must match the f32
    # reference exactly); V and the output projection use bf16 operands.
    wq_t = params["wq"].T
    wk_t = params["wk"].T
    wv_t = params["wv"].T.astype(jnp.bfloat16)
    wo_t = params["wo"].T.astype(jnp.bfloat16)

    q2, k2, v2 = (t.reshape(B * S, D) for t in (q, k, v))

    q_p = _linear(q2, wq_t, params["bq"])                              # f32
    k_p = _linear(k2, wk_t, params["bk"])                              # f32
    v_p = _linear(v2.astype(jnp.bfloat16), wv_t, params["bv"],
                  out_dtype=jnp.bfloat16)                              # bf16

    # Heads are addressed directly by the attention BlockSpecs; no
    # (B,S,H,dk) <-> (B,H,S,dk) transposes through HBM.
    attn = _flash_mha(
        q_p.reshape(B, S, D), k_p.reshape(B, S, D), v_p.reshape(B, S, D),
        num_head=num_head, d_k=d_k, scale=scale,
    )  # (B, S, D) bf16, heads already merged

    out = _linear(attn.reshape(B * S, D), wo_t, params["bo"],
                  out_dtype=jnp.float32)
    return out.reshape(B, S, D)


# ---------------------------------------------------------------------------
# Pure-JAX f32 reference (mirrors the PyTorch forward, eval mode, mask=None)
# ---------------------------------------------------------------------------
def _reference(q, k, v, params, *, num_head):
    B, S, D = q.shape
    d_k = D // num_head
    scale = 1.0 / math.sqrt(d_k)

    def lin(x, w, b):
        return jnp.dot(x, w.T) + b

    def split_heads(x):
        return x.reshape(B, S, num_head, d_k).transpose(0, 2, 1, 3)

    qh = split_heads(lin(q, params["wq"], params["bq"]))
    kh = split_heads(lin(k, params["wk"], params["bk"]))
    vh = split_heads(lin(v, params["wv"], params["bv"]))

    scores = jnp.floor(jnp.einsum("bhsd,bhtd->bhst", qh, kh) * scale)
    probs = jax.nn.softmax(scores, axis=-1)
    attn = jnp.einsum("bhst,bhtd->bhsd", probs, vh)
    attn = attn.transpose(0, 2, 1, 3).reshape(B, S, D)
    return lin(attn, params["wo"], params["bo"])


if __name__ == "__main__":
    # d_model=256, num_head=2 -> d_k=128: every per-head block is lane-dense.
    # S=512 with 256-wide tiles exercises multi-step KV accumulation.
    B, S, d_model, num_head = 2, 512, 256, 2

    key = jax.random.PRNGKey(0)
    ks = jax.random.split(key, 11)

    # Discretized test data: inputs are small integers, weights/biases are
    # multiples of 1/8.  Every pre-floor logit is then computed EXACTLY (and
    # identically) by the Pallas kernels and the XLA reference, so the
    # `// sqrt(d_k)` floor is deterministic instead of flaky at integer
    # boundaries under differing matmul accumulation orders.
    def rand_q(rng, shape, scale=1.0):
        return jax.random.randint(rng, shape, -2, 3).astype(jnp.float32) * scale

    params = dict(
        wq=rand_q(ks[0], (d_model, d_model), 0.125),
        bq=rand_q(ks[1], (1, d_model), 0.125),
        wk=rand_q(ks[2], (d_model, d_model), 0.125),
        bk=rand_q(ks[3], (1, d_model), 0.125),
        wv=rand_q(ks[4], (d_model, d_model), 0.125),
        bv=rand_q(ks[5], (1, d_model), 0.125),
        wo=rand_q(ks[6], (d_model, d_model), 0.125),
        bo=rand_q(ks[7], (1, d_model), 0.125),
    )
    q = rand_q(ks[8], (B, S, d_model))
    k = rand_q(ks[9], (B, S, d_model))
    v = rand_q(ks[10], (B, S, d_model))

    out = multi_head_attention(q, k, v, params, num_head=num_head)
    out = jax.block_until_ready(out)
    assert out.shape == (B, S, d_model)

    ref = _reference(q, k, v, params, num_head=num_head)
    # The floored logits (and hence the softmax structure) match the f32
    # reference exactly; the remaining tolerance covers the intentional bf16
    # operands in the V-projection / P@V / output-projection matmuls and the
    # approx reciprocal used in the softmax finalize.
    err = jnp.max(jnp.abs(out - ref))
    assert jnp.allclose(out, ref, atol=0.5, rtol=0.02), (
        f"mismatch vs reference: max abs err = {err}"
    )

    print("KERNEL_OK")
</pallas_src>

<mosaic_0001>
module attributes {stable_mosaic.version = 11 : i64} {
  func.func @_linear_kernel(%arg0: i32, %arg1: i32, %arg2: memref<256x256xbf16, #tpu.memory_space<vmem>>, %arg3: memref<256x256xbf16, #tpu.memory_space<vmem>>, %arg4: memref<1x256xf32, #tpu.memory_space<vmem>>, %arg5: memref<256x256xbf16, #tpu.memory_space<vmem>>) attributes {dimension_semantics = [#tpu.dimension_semantics<parallel>, #tpu.dimension_semantics<parallel>], iteration_bounds = array<i64: 1, 4>, scalar_prefetch = 0 : i64, scratch_operands = 0 : i64, tpu.core_type = #tpu.core_type<tc>, window_params = [{transform_indices = @transform_0, window_bounds = array<i64: 256, 256>}, {transform_indices = @transform_1, window_bounds = array<i64: 256, 256>}, {transform_indices = @transform_2, window_bounds = array<i64: 1, 256>}, {transform_indices = @transform_3, window_bounds = array<i64: 256, 256>}]} {
    %c0 = arith.constant 0 : index
    %c0_0 = arith.constant 0 : index
    %0 = vector.load %arg2[%c0, %c0_0] : memref<256x256xbf16, #tpu.memory_space<vmem>>, vector<256x256xbf16>
    %c0_1 = arith.constant 0 : index
    %c0_2 = arith.constant 0 : index
    %1 = vector.load %arg3[%c0_1, %c0_2] : memref<256x256xbf16, #tpu.memory_space<vmem>>, vector<256x256xbf16>
    %cst = arith.constant dense<0.000000e+00> : vector<256x256xf32>
    %2 = tpu.matmul %0, %1, %cst {dimension_numbers = #tpu.dot_dimension_numbers<[1], [0], [0], [1], [0, 0, 1, 1], [], []>} : vector<256x256xbf16>, vector<256x256xbf16>, vector<256x256xf32> -> vector<256x256xf32>
    %c0_3 = arith.constant 0 : index
    %c0_4 = arith.constant 0 : index
    %3 = vector.load %arg4[%c0_3, %c0_4] : memref<1x256xf32, #tpu.memory_space<vmem>>, vector<1x256xf32>
    %4 = vector.broadcast %3 : vector<1x256xf32> to vector<256x256xf32>
    %5 = arith.addf %2, %4 : vector<256x256xf32>
    %6 = arith.truncf %5 : vector<256x256xf32> to vector<256x256xbf16>
    %c0_5 = arith.constant 0 : index
    %c0_6 = arith.constant 0 : index
    %7 = vector.load %arg5[%c0_5, %c0_6] : memref<256x256xbf16, #tpu.memory_space<vmem>>, vector<256x256xbf16>
    tpu.vector_store %arg5[%c0_5, %c0_6], %6 {strides = array<i32>} : memref<256x256xbf16, #tpu.memory_space<vmem>>, vector<256x256xbf16>,
    return
  }
  func.func @transform_0(%arg0: i32, %arg1: i32) -> (i32, i32) {
    %c0_i32 = arith.constant 0 : i32
    %c0_i32_0 = arith.constant 0 : i32
    return %arg1, %c0_i32 : i32, i32
  }
  func.func @transform_1(%arg0: i32, %arg1: i32) -> (i32, i32) {
    %c0_i32 = arith.constant 0 : i32
    %c0_i32_0 = arith.constant 0 : i32
    return %c0_i32, %arg0 : i32, i32
  }
  func.func @transform_2(%arg0: i32, %arg1: i32) -> (i32, i32) {
    %c0_i32 = arith.constant 0 : i32
    %c0_i32_0 = arith.constant 0 : i32
    return %c0_i32, %arg0 : i32, i32
  }
  func.func @transform_3(%arg0: i32, %arg1: i32) -> (i32, i32) {
    %c0_i32 = arith.constant 0 : i32
    return %arg1, %arg0 : i32, i32
  }
}

module attributes {stable_mosaic.version = 11 : i64} {
  func.func @_linear_kernel(%arg0: i32, %arg1: i32, %arg2: memref<256x256xf32, #tpu.memory_space<vmem>>, %arg3: memref<256x256xf32, #tpu.memory_space<vmem>>, %arg4: memref<1x256xf32, #tpu.memory_space<vmem>>, %arg5: memref<256x256xf32, #tpu.memory_space<vmem>>) attributes {dimension_semantics = [#tpu.dimension_semantics<parallel>, #tpu.dimension_semantics<parallel>], iteration_bounds = array<i64: 1, 4>, scalar_prefetch = 0 : i64, scratch_operands = 0 : i64, tpu.core_type = #tpu.core_type<tc>, window_params = [{transform_indices = @transform_0, window_bounds = array<i64: 256, 256>}, {transform_indices = @transform_1, window_bounds = array<i64: 256, 256>}, {transform_indices = @transform_2, window_bounds = array<i64: 1, 256>}, {transform_indices = @transform_3, window_bounds = array<i64: 256, 256>}]} {
    %c0 = arith.constant 0 : index
    %c0_0 = arith.constant 0 : index
    %0 = vector.load %arg2[%c0, %c0_0] : memref<256x256xf32, #tpu.memory_space<vmem>>, vector<256x256xf32>
    %c0_1 = arith.constant 0 : index
    %c0_2 = arith.constant 0 : index
    %1 = vector.load %arg3[%c0_1, %c0_2] : memref<256x256xf32, #tpu.memory_space<vmem>>, vector<256x256xf32>
    %cst = arith.constant dense<0.000000e+00> : vector<256x256xf32>
    %2 = tpu.matmul %0, %1, %cst {dimension_numbers = #tpu.dot_dimension_numbers<[1], [0], [0], [1], [0, 0, 1, 1], [], []>} : vector<256x256xf32>, vector<256x256xf32>, vector<256x256xf32> -> vector<256x256xf32>
    %c0_3 = arith.constant 0 : index
    %c0_4 = arith.constant 0 : index
    %3 = vector.load %arg4[%c0_3, %c0_4] : memref<1x256xf32, #tpu.memory_space<vmem>>, vector<1x256xf32>
    %4 = vector.broadcast %3 : vector<1x256xf32> to vector<256x256xf32>
    %5 = arith.addf %2, %4 : vector<256x256xf32>
    %c0_5 = arith.constant 0 : index
    %c0_6 = arith.constant 0 : index
    %6 = vector.load %arg5[%c0_5, %c0_6] : memref<256x256xf32, #tpu.memory_space<vmem>>, vector<256x256xf32>
    tpu.vector_store %arg5[%c0_5, %c0_6], %5 {strides = array<i32>} : memref<256x256xf32, #tpu.memory_space<vmem>>, vector<256x256xf32>,
    return
  }
  func.func @transform_0(%arg0: i32, %arg1: i32) -> (i32, i32) {
    %c0_i32 = arith.constant 0 : i32
    %c0_i32_0 = arith.constant 0 : i32
    return %arg1, %c0_i32 : i32, i32
  }
  func.func @transform_1(%arg0: i32, %arg1: i32) -> (i32, i32) {
    %c0_i32 = arith.constant 0 : i32
    %c0_i32_0 = arith.constant 0 : i32
    return %c0_i32, %arg0 : i32, i32
  }
  func.func @transform_2(%arg0: i32, %arg1: i32) -> (i32, i32) {
    %c0_i32 = arith.constant 0 : i32
    %c0_i32_0 = arith.constant 0 : i32
    return %c0_i32, %arg0 : i32, i32
  }
  func.func @transform_3(%arg0: i32, %arg1: i32) -> (i32, i32) {
    %c0_i32 = arith.constant 0 : i32
    return %arg1, %arg0 : i32, i32
  }
}

module attributes {stable_mosaic.version = 11 : i64} {
  func.func @_flash_mha_kernel(%arg0: i32, %arg1: i32, %arg2: i32, %arg3: i32, %arg4: memref<1x256x128xf32, #tpu.memory_space<vmem>>, %arg5: memref<1x256x128xf32, #tpu.memory_space<vmem>>, %arg6: memref<1x256x128xbf16, #tpu.memory_space<vmem>>, %arg7: memref<1x256x128xbf16, #tpu.memory_space<vmem>>, %arg8: memref<256x1xf32, #tpu.memory_space<vmem>>, %arg9: memref<256x1xf32, #tpu.memory_space<vmem>>, %arg10: memref<256x128xf32, #tpu.memory_space<vmem>>) attributes {dimension_semantics = [#tpu.dimension_semantics<parallel>, #tpu.dimension_semantics<parallel>, #tpu.dimension_semantics<parallel>, #tpu.dimension_semantics<arbitrary>], iteration_bounds = array<i64: 2, 2, 2, 2>, scalar_prefetch = 0 : i64, scratch_operands = 3 : i64, tpu.core_type = #tpu.core_type<tc>, window_params = [{transform_indices = @transform_0, window_bounds = array<i64: 1, 256, 128>}, {transform_indices = @transform_1, window_bounds = array<i64: 1, 256, 128>}, {transform_indices = @transform_2, window_bounds = array<i64: 1, 256, 128>}, {transform_indices = @transform_3, window_bounds = array<i64: 1, 256, 128>}]} {
    %c0_i32 = arith.constant 0 : i32
    %0 = arith.cmpi eq, %arg3, %c0_i32 : i32
    %1 = arith.extui %0 : i1 to i32
    %c0_i32_0 = arith.constant 0 : i32
    %2 = arith.cmpi ne, %1, %c0_i32_0 : i32
    scf.if %2 {
      %cst_26 = arith.constant 0xFF800000 : f32
      %39 = vector.broadcast %cst_26 : f32 to vector<256x1xf32>
      %c0_27 = arith.constant 0 : index
      %c0_28 = arith.constant 0 : index
      %40 = vector.load %arg8[%c0_27, %c0_28] : memref<256x1xf32, #tpu.memory_space<vmem>>, vector<256x1xf32>
      tpu.vector_store %arg8[%c0_27, %c0_28], %39 {strides = array<i32>} : memref<256x1xf32, #tpu.memory_space<vmem>>, vector<256x1xf32>,
      %cst_29 = arith.constant 0.000000e+00 : f32
      %41 = vector.broadcast %cst_29 : f32 to vector<256x1xf32>
      %c0_30 = arith.constant 0 : index
      %c0_31 = arith.constant 0 : index
      %42 = vector.load %arg9[%c0_30, %c0_31] : memref<256x1xf32, #tpu.memory_space<vmem>>, vector<256x1xf32>
      tpu.vector_store %arg9[%c0_30, %c0_31], %41 {strides = array<i32>} : memref<256x1xf32, #tpu.memory_space<vmem>>, vector<256x1xf32>,
      %cst_32 = arith.constant 0.000000e+00 : f32
      %43 = vector.broadcast %cst_32 : f32 to vector<256x128xf32>
      %c0_33 = arith.constant 0 : index
      %c0_34 = arith.constant 0 : index
      %44 = vector.load %arg10[%c0_33, %c0_34] : memref<256x128xf32, #tpu.memory_space<vmem>>, vector<256x128xf32>
      tpu.vector_store %arg10[%c0_33, %c0_34], %43 {strides = array<i32>} : memref<256x128xf32, #tpu.memory_space<vmem>>, vector<256x128xf32>,
    } else {
    }
    %c0 = arith.constant 0 : index
    %c0_1 = arith.constant 0 : index
    %c0_2 = arith.constant 0 : index
    %3 = vector.load %arg4[%c0, %c0_1, %c0_2] : memref<1x256x128xf32, #tpu.memory_space<vmem>>, vector<1x256x128xf32>
    %4 = vector.shape_cast %3 : vector<1x256x128xf32> to vector<256x128xf32>
    %c0_3 = arith.constant 0 : index
    %c0_4 = arith.constant 0 : index
    %c0_5 = arith.constant 0 : index
    %5 = vector.load %arg5[%c0_3, %c0_4, %c0_5] : memref<1x256x128xf32, #tpu.memory_space<vmem>>, vector<1x256x128xf32>
    %6 = vector.shape_cast %5 : vector<1x256x128xf32> to vector<256x128xf32>
    %c0_6 = arith.constant 0 : index
    %c0_7 = arith.constant 0 : index
    %c0_8 = arith.constant 0 : index
    %7 = vector.load %arg6[%c0_6, %c0_7, %c0_8] : memref<1x256x128xbf16, #tpu.memory_space<vmem>>, vector<1x256x128xbf16>
    %8 = vector.shape_cast %7 : vector<1x256x128xbf16> to vector<256x128xbf16>
    %cst = arith.constant dense<0.000000e+00> : vector<256x256xf32>
    %9 = tpu.matmul %4, %6, %cst {dimension_numbers = #tpu.dot_dimension_numbers<[1], [1], [0], [0], [0, 0, 1, 0], [], []>} : vector<256x128xf32>, vector<256x128xf32>, vector<256x256xf32> -> vector<256x256xf32>
    %cst_9 = arith.constant 0.0883883461 : f32
    %10 = vector.broadcast %cst_9 : f32 to vector<256x256xf32>
    %11 = arith.mulf %9, %10 : vector<256x256xf32>
    %12 = math.floor %11 : vector<256x256xf32>
    %c0_10 = arith.constant 0 : index
    %c0_11 = arith.constant 0 : index
    %13 = vector.load %arg8[%c0_10, %c0_11] : memref<256x1xf32, #tpu.memory_space<vmem>>, vector<256x1xf32>
    %cst_12 = arith.constant dense<0xFF800000> : vector<256xf32>
    %14 = vector.multi_reduction <maximumf>, %12, %cst_12 [1] : vector<256x256xf32> to vector<256xf32>
    %15 = vector.shape_cast %14 : vector<256xf32> to vector<256x1xf32>
    %16 = arith.maximumf %13, %15 : vector<256x1xf32>
    %17 = arith.subf %13, %16 : vector<256x1xf32>
    %18 = math.exp %17 : vector<256x1xf32>
    %19 = vector.broadcast %16 : vector<256x1xf32> to vector<256x256xf32>
    %20 = arith.subf %12, %19 : vector<256x256xf32>
    %21 = math.exp %20 : vector<256x256xf32>
    %c0_13 = arith.constant 0 : index
    %c0_14 = arith.constant 0 : index
    %22 = vector.load %arg9[%c0_13, %c0_14] : memref<256x1xf32, #tpu.memory_space<vmem>>, vector<256x1xf32>
    %23 = arith.mulf %18, %22 : vector<256x1xf32>
    %cst_15 = arith.constant dense<0.000000e+00> : vector<256xf32>
    %24 = vector.multi_reduction <add>, %21, %cst_15 [1] : vector<256x256xf32> to vector<256xf32>
    %25 = vector.shape_cast %24 : vector<256xf32> to vector<256x1xf32>
    %26 = arith.addf %23, %25 : vector<256x1xf32>
    %c0_16 = arith.constant 0 : index
    %c0_17 = arith.constant 0 : index
    %27 = vector.load %arg9[%c0_16, %c0_17] : memref<256x1xf32, #tpu.memory_space<vmem>>, vector<256x1xf32>
    tpu.vector_store %arg9[%c0_16, %c0_17], %26 {strides = array<i32>} : memref<256x1xf32, #tpu.memory_space<vmem>>, vector<256x1xf32>,
    %c0_18 = arith.constant 0 : index
    %c0_19 = arith.constant 0 : index
    %28 = vector.load %arg10[%c0_18, %c0_19] : memref<256x128xf32, #tpu.memory_space<vmem>>, vector<256x128xf32>
    %29 = vector.broadcast %18 : vector<256x1xf32> to vector<256x128xf32>
    %30 = arith.mulf %29, %28 : vector<256x128xf32>
    %31 = arith.truncf %21 : vector<256x256xf32> to vector<256x256xbf16>
    %cst_20 = arith.constant dense<0.000000e+00> : vector<256x128xf32>
    %32 = tpu.matmul %31, %8, %cst_20 {dimension_numbers = #tpu.dot_dimension_numbers<[1], [0], [0], [1], [0, 0, 1, 1], [], []>} : vector<256x256xbf16>, vector<256x128xbf16>, vector<256x128xf32> -> vector<256x128xf32>
    %33 = arith.addf %30, %32 : vector<256x128xf32>
    %c0_21 = arith.constant 0 : index
    %c0_22 = arith.constant 0 : index
    %34 = vector.load %arg10[%c0_21, %c0_22] : memref<256x128xf32, #tpu.memory_space<vmem>>, vector<256x128xf32>
    tpu.vector_store %arg10[%c0_21, %c0_22], %33 {strides = array<i32>} : memref<256x128xf32, #tpu.memory_space<vmem>>, vector<256x128xf32>,
    %c0_23 = arith.constant 0 : index
    %c0_24 = arith.constant 0 : index
    %35 = vector.load %arg8[%c0_23, %c0_24] : memref<256x1xf32, #tpu.memory_space<vmem>>, vector<256x1xf32>
    tpu.vector_store %arg8[%c0_23, %c0_24], %16 {strides = array<i32>} : memref<256x1xf32, #tpu.memory_space<vmem>>, vector<256x1xf32>,
    %c1_i32 = arith.constant 1 : i32
    %36 = arith.cmpi eq, %arg3, %c1_i32 : i32
    %37 = arith.extui %36 : i1 to i32
    %c0_i32_25 = arith.constant 0 : i32
    %38 = arith.cmpi ne, %37, %c0_i32_25 : i32
    scf.if %38 {
      %c0_26 = arith.constant 0 : index
      %c0_27 = arith.constant 0 : index
      %39 = vector.load %arg9[%c0_26, %c0_27] : memref<256x1xf32, #tpu.memory_space<vmem>>, vector<256x1xf32>
      %40 = tpu.reciprocal %39 {approx = true} : vector<256x1xf32> -> vector<256x1xf32>
      %c0_28 = arith.constant 0 : index
      %c0_29 = arith.constant 0 : index
      %41 = vector.load %arg10[%c0_28, %c0_29] : memref<256x128xf32, #tpu.memory_space<vmem>>, vector<256x128xf32>
      %42 = vector.broadcast %40 : vector<256x1xf32> to vector<256x128xf32>
      %43 = arith.mulf %41, %42 : vector<256x128xf32>
      %44 = arith.truncf %43 : vector<256x128xf32> to vector<256x128xbf16>
      %c0_30 = arith.constant 0 : index
      %c0_31 = arith.constant 0 : index
      %c0_32 = arith.constant 0 : index
      %45 = vector.load %arg7[%c0_30, %c0_31, %c0_32] : memref<1x256x128xbf16, #tpu.memory_space<vmem>>, vector<1x256x128xbf16>
      %46 = vector.shape_cast %45 : vector<1x256x128xbf16> to vector<256x128xbf16>
      %47 = vector.shape_cast %44 : vector<256x128xbf16> to vector<1x256x128xbf16>
      tpu.vector_store %arg7[%c0_30, %c0_31, %c0_32], %47 {strides = array<i32>} : memref<1x256x128xbf16, #tpu.memory_space<vmem>>, vector<1x256x128xbf16>,
    } else {
    }
    return
  }
  func.func @transform_0(%arg0: i32, %arg1: i32, %arg2: i32, %arg3: i32) -> (i32, i32, i32) {
    %c0_i32 = arith.constant 0 : i32
    return %arg0, %arg2, %arg1 : i32, i32, i32
  }
  func.func @transform_1(%arg0: i32, %arg1: i32, %arg2: i32, %arg3: i32) -> (i32, i32, i32) {
    %c0_i32 = arith.constant 0 : i32
    return %arg0, %arg3, %arg1 : i32, i32, i32
  }
  func.func @transform_2(%arg0: i32, %arg1: i32, %arg2: i32, %arg3: i32) -> (i32, i32, i32) {
    %c0_i32 = arith.constant 0 : i32
    return %arg0, %arg3, %arg1 : i32, i32, i32
  }
  func.func @transform_3(%arg0: i32, %arg1: i32, %arg2: i32, %arg3: i32) -> (i32, i32, i32) {
    %c0_i32 = arith.constant 0 : i32
    return %arg0, %arg2, %arg1 : i32, i32, i32
  }
}

module attributes {stable_mosaic.version = 11 : i64} {
  func.func @_linear_kernel(%arg0: i32, %arg1: i32, %arg2: memref<256x256xbf16, #tpu.memory_space<vmem>>, %arg3: memref<256x256xbf16, #tpu.memory_space<vmem>>, %arg4: memref<1x256xf32, #tpu.memory_space<vmem>>, %arg5: memref<256x256xf32, #tpu.memory_space<vmem>>) attributes {dimension_semantics = [#tpu.dimension_semantics<parallel>, #tpu.dimension_semantics<parallel>], iteration_bounds = array<i64: 1, 4>, scalar_prefetch = 0 : i64, scratch_operands = 0 : i64, tpu.core_type = #tpu.core_type<tc>, window_params = [{transform_indices = @transform_0, window_bounds = array<i64: 256, 256>}, {transform_indices = @transform_1, window_bounds = array<i64: 256, 256>}, {transform_indices = @transform_2, window_bounds = array<i64: 1, 256>}, {transform_indices = @transform_3, window_bounds = array<i64: 256, 256>}]} {
    %c0 = arith.constant 0 : index
    %c0_0 = arith.constant 0 : index
    %0 = vector.load %arg2[%c0, %c0_0] : memref<256x256xbf16, #tpu.memory_space<vmem>>, vector<256x256xbf16>
    %c0_1 = arith.constant 0 : index
    %c0_2 = arith.constant 0 : index
    %1 = vector.load %arg3[%c0_1, %c0_2] : memref<256x256xbf16, #tpu.memory_space<vmem>>, vector<256x256xbf16>
    %cst = arith.constant dense<0.000000e+00> : vector<256x256xf32>
    %2 = tpu.matmul %0, %1, %cst {dimension_numbers = #tpu.dot_dimension_numbers<[1], [0], [0], [1], [0, 0, 1, 1], [], []>} : vector<256x256xbf16>, vector<256x256xbf16>, vector<256x256xf32> -> vector<256x256xf32>
    %c0_3 = arith.constant 0 : index
    %c0_4 = arith.constant 0 : index
    %3 = vector.load %arg4[%c0_3, %c0_4] : memref<1x256xf32, #tpu.memory_space<vmem>>, vector<1x256xf32>
    %4 = vector.broadcast %3 : vector<1x256xf32> to vector<256x256xf32>
    %5 = arith.addf %2, %4 : vector<256x256xf32>
    %c0_5 = arith.constant 0 : index
    %c0_6 = arith.constant 0 : index
    %6 = vector.load %arg5[%c0_5, %c0_6] : memref<256x256xf32, #tpu.memory_space<vmem>>, vector<256x256xf32>
    tpu.vector_store %arg5[%c0_5, %c0_6], %5 {strides = array<i32>} : memref<256x256xf32, #tpu.memory_space<vmem>>, vector<256x256xf32>,
    return
  }
  func.func @transform_0(%arg0: i32, %arg1: i32) -> (i32, i32) {
    %c0_i32 = arith.constant 0 : i32
    %c0_i32_0 = arith.constant 0 : i32
    return %arg1, %c0_i32 : i32, i32
  }
  func.func @transform_1(%arg0: i32, %arg1: i32) -> (i32, i32) {
    %c0_i32 = arith.constant 0 : i32
    %c0_i32_0 = arith.constant 0 : i32
    return %c0_i32, %arg0 : i32, i32
  }
  func.func @transform_2(%arg0: i32, %arg1: i32) -> (i32, i32) {
    %c0_i32 = arith.constant 0 : i32
    %c0_i32_0 = arith.constant 0 : i32
    return %c0_i32, %arg0 : i32, i32
  }
  func.func @transform_3(%arg0: i32, %arg1: i32) -> (i32, i32) {
    %c0_i32 = arith.constant 0 : i32
    return %arg1, %arg0 : i32, i32
  }
}

</mosaic_0001>

<bundles_post_ra>
// kernel: multi_head_attention.7
= control target key start
LH: loop header
LB: loop body
LE: loop exit
PB: predicated region body
PF: predicated region fallthrough
CT: control target
= control target key end

     0   :  { %s1508_s12 = smov 0   ;;  %s1510_s13 = smov 0   ;;  %s1786_s0 = inlined_call_operand.vmem [shape: bf16[1024,256], index: 0, kind: input, shape index: {}]   ;;  %s1787_s1 = inlined_call_operand.vmem [shape: bf16[256,256], index: 1, kind: input, shape index: {}]   ;;  %s1788_s2 = inlined_call_operand.vmem [shape: f32[1,256], index: 2, kind: input, shape index: {}]   ;;  %s1789_s3 = inlined_call_operand.vmem [shape: bf16[1024,256], index: 3, kind: output, shape index: {}]  }
   0x1   :  { %s1512_s14 = smov 0  }
   0x2 LB: > { %s22_s15 = sadd.s32 1, %s1482_s13  ;;  %p1173_p0 = scmp.ge.s32.totalorder %s1486_s14, 1  ;;  %s1486_s14 = sphi %s1512_s14, %s13_s14   ;;  %s1482_s13 = sphi %s1510_s13, %s1791_s13   ;;  %s1478_s12 = sphi %s1508_s12, %s1790_s12  }
   0x3   : > { %p23_p1 = scmp.ge.s32.totalorder %s22_s15, 4  ;;  %p174_p2 = scmp.lt.s32.totalorder %s1486_s14, 5 }
   0x5   : > { %s1793_s15 = smov (%p23_p1, %s22_s15), 0  ;;  %p175_p3 = pnand %p1173_p0, %p174_p2 }
   0x6   : > { %v1368_v0 = vld [vmem:[%s1787_s1 + $0x4] ss:$8 sps:$4 sm:$0xff] (!%p175_p3)   ;;  %v1370_v1 = vld [vmem:[%s1787_s1] ss:$8 sps:$4 sm:$0xff] (!%p175_p3)   ;;  %v1371_v2 = vld [vmem:[%s1787_s1 + $0x14] ss:$8 sps:$4 sm:$0xff] (!%p175_p3)  }
   0x7   : > { %178 = sbr.rel (%p175_p3) target bundleno = 347 (0x15b), region = 32  ;;  %639 = vmatprep.subr.bf16.mxu0 (!%p175_p3), %v1368_v0  ;;  %1312 = vmatprep.subr.bf16.mxu1 (!%p175_p3), %v1368_v0  ;;  %v1373_v3 = vld [vmem:[%s1787_s1 + $0x10] ss:$8 sps:$4 sm:$0xff] (!%p175_p3)   ;;  %v1374_v4 = vld [vmem:[%s1787_s1 + $0x24] ss:$8 sps:$4 sm:$0xff] (!%p175_p3)   ;;  %s1174_s26 = sshll.u32 (!%p175_p3), %s1478_s12, 5  ;;  %v309_v0 = vlaneseq (!%p175_p3) }
   0x8   : > { %640 = vmatpush1.bf16.msra.mxu0 (!%p175_p3), %v1370_v1  ;;  %1328 = vmatpush1.bf16.msra.mxu1 (!%p175_p3), %v1370_v1  ;;  %v1376_v5 = vld [vmem:[%s1787_s1 + $0x20] ss:$8 sps:$4 sm:$0xff] (!%p175_p3)   ;;  %v1377_v6 = vld [vmem:[%s1787_s1 + $0x34] ss:$8 sps:$4 sm:$0xff] (!%p175_p3)   ;;  %p214_p4 = scmp.lt.s32.totalorder (!%p175_p3), %s1174_s26, 127 }
   0x9   : > { %641 = vmatprep.subr.bf16.mxu0 (!%p175_p3), %v1371_v2  ;;  %1313 = vmatprep.subr.bf16.mxu1 (!%p175_p3), %v1371_v2  ;;  %v1379_v7 = vld [vmem:[%s1787_s1 + $0x30] ss:$8 sps:$4 sm:$0xff] (!%p175_p3)   ;;  %v1380_v8 = vld [vmem:[%s1787_s1 + $0x44] ss:$8 sps:$4 sm:$0xff] (!%p175_p3)   ;;  %v1382_v9 = vld [vmem:[%s1787_s1 + $0x40] ss:$8 sps:$4 sm:$0xff] (!%p175_p3)  }
   0xa   : > { %v1383_v10 = vld [vmem:[%s1787_s1 + $0x54] ss:$8 sps:$4 sm:$0xff] (!%p175_p3)   ;;  %v1385_v11 = vld [vmem:[%s1787_s1 + $0x50] ss:$8 sps:$4 sm:$0xff] (!%p175_p3)   ;;  %v1386_v12 = vld [vmem:[%s1787_s1 + $0x64] ss:$8 sps:$4 sm:$0xff] (!%p175_p3)  }
   0xb   : > { %v1388_v14 = vld [vmem:[%s1787_s1 + $0x60] ss:$8 sps:$4 sm:$0xff] (!%p175_p3)   ;;  %v1389_v16 = vld [vmem:[%s1787_s1 + $0x74] ss:$8 sps:$4 sm:$0xff] (!%p175_p3)   ;;  %v1391_v17 = vld [vmem:[%s1787_s1 + $0x70] ss:$8 sps:$4 sm:$0xff] (!%p175_p3)  }
   0xc   : > { %642 = vmatpush1.bf16.msra.mxu0 (!%p175_p3), %v1373_v3  ;;  %1329 = vmatpush1.bf16.msra.mxu1 (!%p175_p3), %v1373_v3  ;;  %v1392_v18 = vld [vmem:[%s1787_s1 + $0x84] ss:$8 sps:$4 sm:$0xff] (!%p175_p3)   ;;  %v1394_v19 = vld [vmem:[%s1787_s1 + $0x80] ss:$8 sps:$4 sm:$0xff] (!%p175_p3)   ;;  %v1395_v20 = vld [vmem:[%s1787_s1 + $0x94] ss:$8 sps:$4 sm:$0xff] (!%p175_p3)  }
   0xd   : > { %643 = vmatprep.subr.bf16.mxu0 (!%p175_p3), %v1374_v4  ;;  %1314 = vmatprep.subr.bf16.mxu1 (!%p175_p3), %v1374_v4  ;;  %v1397_v21 = vld [vmem:[%s1787_s1 + $0x90] ss:$8 sps:$4 sm:$0xff] (!%p175_p3)   ;;  %v1398_v22 = vld [vmem:[%s1787_s1 + $0xa4] ss:$8 sps:$4 sm:$0xff] (!%p175_p3)   ;;  %v1400_v23 = vld [vmem:[%s1787_s1 + $0xa0] ss:$8 sps:$4 sm:$0xff] (!%p175_p3)  }
   0xe   : > { %s1795_s26 = smov (!%p214_p4, %s1174_s26), 127  ;;  %v1401_v24 = vld [vmem:[%s1787_s1 + $0xb4] ss:$8 sps:$4 sm:$0xff]   ;;  %v1403_v25 = vld [vmem:[%s1787_s1 + $0xb0] ss:$8 sps:$4 sm:$0xff]   ;;  %v310_v1 = vshrl.u32 %v309_v0, 7 }
   0xf   : > { %s1278_s12 = sshll.u32 %s1795_s26, 3  ;;  %v1404_v26 = vld [vmem:[%s1787_s1 + $0xc4] ss:$8 sps:$4 sm:$0xff]   ;;  %v1406_v27 = vld [vmem:[%s1787_s1 + $0xc0] ss:$8 sps:$4 sm:$0xff]  }
  0x10   : > { %644 = vmatpush1.bf16.msra.mxu0 %v1376_v5  ;;  %1330 = vmatpush1.bf16.msra.mxu1 %v1376_v5  ;;  %s1573_s20 = scalar_lea.vmem %s1786_s0, %s1278_s12  ;;  %v1407_v28 = vld [vmem:[%s1787_s1 + $0xd4] ss:$8 sps:$4 sm:$0xff]   ;;  %v1409_v29 = vld [vmem:[%s1787_s1 + $0xd0] ss:$8 sps:$4 sm:$0xff]   ;;  %v1410_v30 = vld [vmem:[%s1787_s1 + $0xe4] ss:$8 sps:$4 sm:$0xff]   ;;  %s1683_s22 = scalar_lea.vmem %s1789_s3, %s1278_s12 }
  0x11   : > { %645 = vmatprep.subr.bf16.mxu0 %v1377_v6  ;;  %1315 = vmatprep.subr.bf16.mxu1 %v1377_v6  ;;  %v1418_v13 = vld [vmem:[%s1573_s20 + $0x4] ss:$8 sps:$4 sm:$0xff]   ;;  %v1412_v31 = vld [vmem:[%s1787_s1 + $0xe0] ss:$8 sps:$4 sm:$0xff]   ;;  %v1413_v32 = vld [vmem:[%s1787_s1 + $0xf4] ss:$8 sps:$4 sm:$0xff]  }
  0x12   : > { %v1421_v15 = vld [vmem:[%s1573_s20 + $0x84] ss:$8 sps:$4 sm:$0xff]   ;;  %671 = vmatprep.mubr.bf16.mxu0 %v1418_v13  ;;  %v1415_v33 = vld [vmem:[%s1787_s1 + $0xf0] ss:$8 sps:$4 sm:$0xff]   ;;  %v1416_v34 = vld [vmem:[%s1573_s20] ss:$8 sps:$4 sm:$0xff]  }
  0x13   : > { %751 = vmatprep.mubr.bf16.mxu1 %v1421_v15  ;;  %v1419_v35 = vld [vmem:[%s1573_s20 + $0x80] ss:$8 sps:$4 sm:$0xff]   ;;  %v1422_v36 = vld [vmem:[%s1573_s20 + $0x14] ss:$8 sps:$4 sm:$0xff]   ;;  %v1426_v38 = vld [vmem:[%s1573_s20 + $0x10] ss:$8 sps:$4 sm:$0xff]  }
  0x14   : > { %646 = vmatpush1.bf16.msra.mxu0 %v1379_v7  ;;  %1331 = vmatpush1.bf16.msra.mxu1 %v1379_v7  ;;  %v1424_v37 = vld [vmem:[%s1573_s20 + $0x94] ss:$8 sps:$4 sm:$0xff]   ;;  %v1427_v39 = vld [vmem:[%s1573_s20 + $0x90] ss:$8 sps:$4 sm:$0xff]   ;;  %v1428_v40 = vld [vmem:[%s1573_s20 + $0x24] ss:$8 sps:$4 sm:$0xff]  }
  0x15   : > { %647 = vmatprep.subr.bf16.mxu0 %v1380_v8  ;;  %1316 = vmatprep.subr.bf16.mxu1 %v1380_v8  ;;  %v1430_v41 = vld [vmem:[%s1573_s20 + $0xa4] ss:$8 sps:$4 sm:$0xff]   ;;  %v1432_v42 = vld [vmem:[%s1573_s20 + $0x20] ss:$8 sps:$4 sm:$0xff]   ;;  %v1434_v44 = vld [vmem:[%s1573_s20 + $0x34] ss:$8 sps:$4 sm:$0xff]  }
  0x16   : > { %v1433_v43 = vld [vmem:[%s1573_s20 + $0xa0] ss:$8 sps:$4 sm:$0xff]   ;;  %v1436_v45 = vld [vmem:[%s1573_s20 + $0xb4] ss:$8 sps:$4 sm:$0xff]   ;;  %v1438_v46 = vld [vmem:[%s1573_s20 + $0x30] ss:$8 sps:$4 sm:$0xff]  }
  0x17   : > { %v1439_v47 = vld [vmem:[%s1573_s20 + $0xb0] ss:$8 sps:$4 sm:$0xff]   ;;  %v1440_v48 = vld [vmem:[%s1573_s20 + $0x44] ss:$8 sps:$4 sm:$0xff]   ;;  %v1444_v50 = vld [vmem:[%s1573_s20 + $0x40] ss:$8 sps:$4 sm:$0xff]  }
  0x18   : > { %648 = vmatpush1.bf16.msra.mxu0 %v1382_v9  ;;  %1332 = vmatpush1.bf16.msra.mxu1 %v1382_v9  ;;  %v1442_v49 = vld [vmem:[%s1573_s20 + $0xc4] ss:$8 sps:$4 sm:$0xff]   ;;  %v1445_v51 = vld [vmem:[%s1573_s20 + $0xc0] ss:$8 sps:$4 sm:$0xff]   ;;  %v1446_v52 = vld [vmem:[%s1573_s20 + $0x54] ss:$8 sps:$4 sm:$0xff]  }
  0x19   : > { %649 = vmatprep.subr.bf16.mxu0 %v1383_v10  ;;  %1317 = vmatprep.subr.bf16.mxu1 %v1383_v10  ;;  %v1448_v53 = vld [vmem:[%s1573_s20 + $0xd4] ss:$8 sps:$4 sm:$0xff]   ;;  %v1450_v54 = vld [vmem:[%s1573_s20 + $0x50] ss:$8 sps:$4 sm:$0xff]   ;;  %v1452_v56 = vld [vmem:[%s1573_s20 + $0x64] ss:$8 sps:$4 sm:$0xff]  }
  0x1a   : > { %v1451_v55 = vld [vmem:[%s1573_s20 + $0xd0] ss:$8 sps:$4 sm:$0xff]   ;;  %v1454_v57 = vld [vmem:[%s1573_s20 + $0xe4] ss:$8 sps:$4 sm:$0xff]   ;;  %v1456_v58 = vld [vmem:[%s1573_s20 + $0x60] ss:$8 sps:$4 sm:$0xff]  }
  0x1b   : > { %v1457_v59 = vld [vmem:[%s1573_s20 + $0xe0] ss:$8 sps:$4 sm:$0xff]   ;;  %v1458_v60 = vld [vmem:[%s1573_s20 + $0x74] ss:$8 sps:$4 sm:$0xff]   ;;  %v1462_v62 = vld [vmem:[%s1573_s20 + $0x70] ss:$8 sps:$4 sm:$0xff]  }
  0x1c   : > { %650 = vmatpush1.bf16.msra.mxu0 %v1385_v11  ;;  %1333 = vmatpush1.bf16.msra.mxu1 %v1385_v11  ;;  %v1460_v61 = vld [vmem:[%s1573_s20 + $0xf4] ss:$8 sps:$4 sm:$0xff]   ;;  %v1463_v63 = vld [vmem:[%s1573_s20 + $0xf0] ss:$8 sps:$4 sm:$0xff]   ;;  %v311_v2 = vsub.s32 0, %v310_v1  ;;  %v315_v4 = vsub.s32 1, %v310_v1 }
  0x1d   : > { %651 = vmatprep.subr.bf16.mxu0 %v1386_v12  ;;  %1318 = vmatprep.subr.bf16.mxu1 %v1386_v12  ;;  %v307_v3 = vld [vmem:[%s1788_s2] sm:$0x3] }
  0x1e   : > { %v1670_v5 = vrot.slane %v307_v3, %v311_v2  ;;  %v1672_v6 = vrot.slane %v307_v3, %v315_v4 }
  0x20   : > { %652 = vmatpush1.bf16.msra.mxu0 %v1388_v14  ;;  %1334 = vmatpush1.bf16.msra.mxu1 %v1388_v14 }
  0x21   : > { %653 = vmatprep.subr.bf16.mxu0 %v1389_v16  ;;  %1319 = vmatprep.subr.bf16.mxu1 %v1389_v16 }
  0x24   : > { %654 = vmatpush1.bf16.msra.mxu0 %v1391_v17  ;;  %1335 = vmatpush1.bf16.msra.mxu1 %v1391_v17 }
  0x25   : > { %655 = vmatprep.subr.bf16.mxu0 %v1392_v18  ;;  %1320 = vmatprep.subr.bf16.mxu1 %v1392_v18 }
  0x28   : > { %656 = vmatpush1.bf16.msra.mxu0 %v1394_v19  ;;  %1336 = vmatpush1.bf16.msra.mxu1 %v1394_v19 }
  0x29   : > { %657 = vmatprep.subr.bf16.mxu0 %v1395_v20  ;;  %1321 = vmatprep.subr.bf16.mxu1 %v1395_v20 }
  0x2c   : > { %658 = vmatpush1.bf16.msra.mxu0 %v1397_v21  ;;  %1337 = vmatpush1.bf16.msra.mxu1 %v1397_v21 }
  0x2d   : > { %659 = vmatprep.subr.bf16.mxu0 %v1398_v22  ;;  %1322 = vmatprep.subr.bf16.mxu1 %v1398_v22 }
  0x30   : > { %660 = vmatpush1.bf16.msra.mxu0 %v1400_v23  ;;  %1338 = vmatpush1.bf16.msra.mxu1 %v1400_v23 }
  0x31   : > { %661 = vmatprep.subr.bf16.mxu0 %v1401_v24  ;;  %1323 = vmatprep.subr.bf16.mxu1 %v1401_v24 }
  0x34   : > { %662 = vmatpush1.bf16.msra.mxu0 %v1403_v25  ;;  %1339 = vmatpush1.bf16.msra.mxu1 %v1403_v25 }
  0x35   : > { %663 = vmatprep.subr.bf16.mxu0 %v1404_v26  ;;  %1324 = vmatprep.subr.bf16.mxu1 %v1404_v26 }
  0x38   : > { %664 = vmatpush1.bf16.msra.mxu0 %v1406_v27  ;;  %1340 = vmatpush1.bf16.msra.mxu1 %v1406_v27 }
  0x39   : > { %665 = vmatprep.subr.bf16.mxu0 %v1407_v28  ;;  %1325 = vmatprep.subr.bf16.mxu1 %v1407_v28 }
  0x3c   : > { %666 = vmatpush1.bf16.msra.mxu0 %v1409_v29  ;;  %1341 = vmatpush1.bf16.msra.mxu1 %v1409_v29 }
  0x3d   : > { %667 = vmatprep.subr.bf16.mxu0 %v1410_v30  ;;  %1326 = vmatprep.subr.bf16.mxu1 %v1410_v30 }
  0x40   : > { %668 = vmatpush1.bf16.msra.mxu0 %v1412_v31  ;;  %1342 = vmatpush1.bf16.msra.mxu1 %v1412_v31 }
  0x41   : > { %669 = vmatprep.subr.bf16.mxu0 %v1413_v32  ;;  %1327 = vmatprep.subr.bf16.mxu1 %v1413_v32 }
  0x44   : > { %670 = vmatpush1.bf16.msra.mxu0 %v1415_v33  ;;  %1343 = vmatpush1.bf16.msra.mxu1 %v1415_v33 }
  0x47   : > { %672 = vmatmul.mubr.bf16.vlgmr.msra.gmra.mrb[0].mxu0 %v1416_v34  ;;  %752 = vmatmul.mubr.bf16.vlgmr.msra.gmra.mrb[0].mxu1 %v1419_v35 }
  0x48   : > { %681 = vmatprep.mubr.bf16.mxu0 %v1422_v36  ;;  %761 = vmatprep.mubr.bf16.mxu1 %v1424_v37 }
  0x4f   : > { %682 = vmatmul.mubr.bf16.gmra.mrb[4].mxu0 %v1426_v38  ;;  %762 = vmatmul.mubr.bf16.gmra.mrb[4].mxu1 %v1427_v39 }
  0x50   : > { %691 = vmatprep.mubr.bf16.mxu0 %v1428_v40  ;;  %771 = vmatprep.mubr.bf16.mxu1 %v1430_v41 }
  0x57   : > { %692 = vmatmul.mubr.bf16.gmra.mrb[8].mxu0 %v1432_v42  ;;  %772 = vmatmul.mubr.bf16.gmra.mrb[8].mxu1 %v1433_v43 }
  0x58   : > { %701 = vmatprep.mubr.bf16.mxu0 %v1434_v44  ;;  %781 = vmatprep.mubr.bf16.mxu1 %v1436_v45 }
  0x5f   : > { %702 = vmatmul.mubr.bf16.gmra.mrb[12].mxu0 %v1438_v46  ;;  %782 = vmatmul.mubr.bf16.gmra.mrb[12].mxu1 %v1439_v47 }
  0x60   : > { %711 = vmatprep.mubr.bf16.mxu0 %v1440_v48  ;;  %791 = vmatprep.mubr.bf16.mxu1 %v1442_v49 }
  0x67   : > { %712 = vmatmul.mubr.bf16.gmra.mrb[16].mxu0 %v1444_v50  ;;  %792 = vmatmul.mubr.bf16.gmra.mrb[16].mxu1 %v1445_v51 }
  0x68   : > { %721 = vmatprep.mubr.bf16.mxu0 %v1446_v52  ;;  %801 = vmatprep.mubr.bf16.mxu1 %v1448_v53 }
  0x6f   : > { %722 = vmatmul.mubr.bf16.gmra.mrb[20].mxu0 %v1450_v54  ;;  %802 = vmatmul.mubr.bf16.gmra.mrb[20].mxu1 %v1451_v55 }
  0x70   : > { %731 = vmatprep.mubr.bf16.mxu0 %v1452_v56  ;;  %811 = vmatprep.mubr.bf16.mxu1 %v1454_v57 }
  0x77   : > { %732 = vmatmul.mubr.bf16.gmra.mrb[24].mxu0 %v1456_v58  ;;  %812 = vmatmul.mubr.bf16.gmra.mrb[24].mxu1 %v1457_v59 }
  0x78   : > { %741 = vmatprep.mubr.bf16.mxu0 %v1458_v60  ;;  %821 = vmatprep.mubr.bf16.mxu1 %v1460_v61 }
  0x7f   : > { %742 = vmatmul.mubr.bf16.gmra.mrb[28].mxu0 %v1462_v62  ;;  %822 = vmatmul.mubr.bf16.gmra.mrb[28].mxu1 %v1463_v63 }
 0x11a   : > { %v673_v7 = vpop.f32.mrb[0].mxu0  ;;  %v753_v8 = vpop.f32.mrb[0].mxu1 }
 0x11b   : > { %v674_v9 = vadd.f32 %v673_v7, %v1670_v5  ;;  %v754_v10 = vadd.f32 %v753_v8, %v1670_v5  ;;  %v675_v11 = vpop.f32.mrb[1].mxu0  ;;  %v755_v12 = vpop.f32.mrb[1].mxu1 }
 0x11c   : > { %v676_v13 = vadd.f32 %v675_v11, %v1672_v6  ;;  %v756_v14 = vadd.f32 %v755_v12, %v1672_v6  ;;  %v677_v15 = vpop.f32.mrb[2].mxu0  ;;  %v757_v16 = vpop.f32.mrb[2].mxu1 }
 0x11d   : > { %v678_v17 = vadd.f32 %v677_v15, %v1670_v5  ;;  %v758_v18 = vadd.f32 %v757_v16, %v1670_v5  ;;  %v679_v19 = vpop.f32.mrb[3].mxu0  ;;  %v759_v20 = vpop.f32.mrb[3].mxu1 }
 0x11e   : > { %v1280_v21 = vpack.c.bf16 %v676_v13, %v674_v9  ;;  %v1296_v22 = vpack.c.bf16 %v756_v14, %v754_v10  ;;  %v680_v23 = vadd.f32 %v679_v19, %v1672_v6  ;;  %v760_v24 = vadd.f32 %v759_v20, %v1672_v6 }
 0x120   : > { %1024 = vst [vmem:[%s1683_s22] sm:$0xff] %v1280_v21  ;;  %1040 = vst [vmem:[%s1683_s22 + $0x80] sm:$0xff] %v1296_v22  ;;  %v1281_v25 = vpack.c.bf16 %v680_v23, %v678_v17  ;;  %v1297_v26 = vpack.c.bf16 %v760_v24, %v758_v18 }
 0x122   : > { %1025 = vst [vmem:[%s1683_s22 + $0x8] sm:$0xff] %v1281_v25  ;;  %1041 = vst [vmem:[%s1683_s22 + $0x88] sm:$0xff] %v1297_v26  ;;  %v683_v27 = vpop.f32.mrb[4].mxu0  ;;  %v763_v28 = vpop.f32.mrb[4].mxu1 }
 0x123   : > { %v684_v29 = vadd.f32 %v683_v27, %v1670_v5  ;;  %v764_v30 = vadd.f32 %v763_v28, %v1670_v5  ;;  %v685_v31 = vpop.f32.mrb[5].mxu0  ;;  %v765_v32 = vpop.f32.mrb[5].mxu1 }
 0x124   : > { %v686_v33 = vadd.f32 %v685_v31, %v1672_v6  ;;  %v766_v34 = vadd.f32 %v765_v32, %v1672_v6  ;;  %v687_v35 = vpop.f32.mrb[6].mxu0  ;;  %v767_v36 = vpop.f32.mrb[6].mxu1 }
 0x125   : > { %v688_v37 = vadd.f32 %v687_v35, %v1670_v5  ;;  %v768_v38 = vadd.f32 %v767_v36, %v1670_v5  ;;  %v689_v39 = vpop.f32.mrb[7].mxu0  ;;  %v769_v40 = vpop.f32.mrb[7].mxu1 }
 0x126   : > { %v1282_v41 = vpack.c.bf16 %v686_v33, %v684_v29  ;;  %v1298_v42 = vpack.c.bf16 %v766_v34, %v764_v30  ;;  %v690_v43 = vadd.f32 %v689_v39, %v1672_v6  ;;  %v770_v44 = vadd.f32 %v769_v40, %v1672_v6 }
 0x128   : > { %1026 = vst [vmem:[%s1683_s22 + $0x10] sm:$0xff] %v1282_v41  ;;  %1042 = vst [vmem:[%s1683_s22 + $0x90] sm:$0xff] %v1298_v42  ;;  %v1283_v45 = vpack.c.bf16 %v690_v43, %v688_v37  ;;  %v1299_v46 = vpack.c.bf16 %v770_v44, %v768_v38 }
 0x12a   : > { %1027 = vst [vmem:[%s1683_s22 + $0x18] sm:$0xff] %v1283_v45  ;;  %1043 = vst [vmem:[%s1683_s22 + $0x98] sm:$0xff] %v1299_v46  ;;  %v693_v47 = vpop.f32.mrb[8].mxu0  ;;  %v773_v48 = vpop.f32.mrb[8].mxu1 }
 0x12b   : > { %v694_v49 = vadd.f32 %v693_v47, %v1670_v5  ;;  %v774_v50 = vadd.f32 %v773_v48, %v1670_v5  ;;  %v695_v51 = vpop.f32.mrb[9].mxu0  ;;  %v775_v52 = vpop.f32.mrb[9].mxu1 }
 0x12c   : > { %v696_v53 = vadd.f32 %v695_v51, %v1672_v6  ;;  %v776_v54 = vadd.f32 %v775_v52, %v1672_v6  ;;  %v697_v55 = vpop.f32.mrb[10].mxu0  ;;  %v777_v56 = vpop.f32.mrb[10].mxu1 }
 0x12d   : > { %v698_v57 = vadd.f32 %v697_v55, %v1670_v5  ;;  %v778_v58 = vadd.f32 %v777_v56, %v1670_v5  ;;  %v699_v59 = vpop.f32.mrb[11].mxu0  ;;  %v779_v60 = vpop.f32.mrb[11].mxu1 }
 0x12e   : > { %v1284_v61 = vpack.c.bf16 %v696_v53, %v694_v49  ;;  %v1300_v62 = vpack.c.bf16 %v776_v54, %v774_v50  ;;  %v700_v63 = vadd.f32 %v699_v59, %v1672_v6  ;;  %v780_v0 = vadd.f32 %v779_v60, %v1672_v6 }
 0x130   : > { %1028 = vst [vmem:[%s1683_s22 + $0x20] sm:$0xff] %v1284_v61  ;;  %1044 = vst [vmem:[%s1683_s22 + $0xa0] sm:$0xff] %v1300_v62  ;;  %v1285_v1 = vpack.c.bf16 %v700_v63, %v698_v57  ;;  %v1301_v2 = vpack.c.bf16 %v780_v0, %v778_v58 }
 0x132   : > { %1029 = vst [vmem:[%s1683_s22 + $0x28] sm:$0xff] %v1285_v1  ;;  %1045 = vst [vmem:[%s1683_s22 + $0xa8] sm:$0xff] %v1301_v2  ;;  %v703_v3 = vpop.f32.mrb[12].mxu0  ;;  %v783_v4 = vpop.f32.mrb[12].mxu1 }
 0x133   : > { %v704_v7 = vadd.f32 %v703_v3, %v1670_v5  ;;  %v784_v8 = vadd.f32 %v783_v4, %v1670_v5  ;;  %v705_v9 = vpop.f32.mrb[13].mxu0  ;;  %v785_v10 = vpop.f32.mrb[13].mxu1 }
 0x134   : > { %v706_v11 = vadd.f32 %v705_v9, %v1672_v6  ;;  %v786_v12 = vadd.f32 %v785_v10, %v1672_v6  ;;  %v707_v13 = vpop.f32.mrb[14].mxu0  ;;  %v787_v14 = vpop.f32.mrb[14].mxu1 }
 0x135   : > { %v708_v15 = vadd.f32 %v707_v13, %v1670_v5  ;;  %v788_v16 = vadd.f32 %v787_v14, %v1670_v5  ;;  %v709_v17 = vpop.f32.mrb[15].mxu0  ;;  %v789_v18 = vpop.f32.mrb[15].mxu1 }
 0x136   : > { %v1286_v19 = vpack.c.bf16 %v706_v11, %v704_v7  ;;  %v1302_v20 = vpack.c.bf16 %v786_v12, %v784_v8  ;;  %v710_v21 = vadd.f32 %v709_v17, %v1672_v6  ;;  %v790_v22 = vadd.f32 %v789_v18, %v1672_v6 }
 0x138   : > { %1030 = vst [vmem:[%s1683_s22 + $0x30] sm:$0xff] %v1286_v19  ;;  %1046 = vst [vmem:[%s1683_s22 + $0xb0] sm:$0xff] %v1302_v20  ;;  %v1287_v23 = vpack.c.bf16 %v710_v21, %v708_v15  ;;  %v1303_v24 = vpack.c.bf16 %v790_v22, %v788_v16 }
 0x13a   : > { %1031 = vst [vmem:[%s1683_s22 + $0x38] sm:$0xff] %v1287_v23  ;;  %1047 = vst [vmem:[%s1683_s22 + $0xb8] sm:$0xff] %v1303_v24  ;;  %v713_v25 = vpop.f32.mrb[16].mxu0  ;;  %v793_v26 = vpop.f32.mrb[16].mxu1 }
 0x13b   : > { %v714_v27 = vadd.f32 %v713_v25, %v1670_v5  ;;  %v794_v28 = vadd.f32 %v793_v26, %v1670_v5  ;;  %v715_v29 = vpop.f32.mrb[17].mxu0  ;;  %v795_v30 = vpop.f32.mrb[17].mxu1 }
 0x13c   : > { %v716_v31 = vadd.f32 %v715_v29, %v1672_v6  ;;  %v796_v32 = vadd.f32 %v795_v30, %v1672_v6  ;;  %v717_v33 = vpop.f32.mrb[18].mxu0  ;;  %v797_v34 = vpop.f32.mrb[18].mxu1 }
 0x13d   : > { %v718_v35 = vadd.f32 %v717_v33, %v1670_v5  ;;  %v798_v36 = vadd.f32 %v797_v34, %v1670_v5  ;;  %v719_v37 = vpop.f32.mrb[19].mxu0  ;;  %v799_v38 = vpop.f32.mrb[19].mxu1 }
 0x13e   : > { %v1288_v39 = vpack.c.bf16 %v716_v31, %v714_v27  ;;  %v1304_v40 = vpack.c.bf16 %v796_v32, %v794_v28  ;;  %v720_v41 = vadd.f32 %v719_v37, %v1672_v6  ;;  %v800_v42 = vadd.f32 %v799_v38, %v1672_v6 }
 0x140   : > { %1032 = vst [vmem:[%s1683_s22 + $0x40] sm:$0xff] %v1288_v39  ;;  %1048 = vst [vmem:[%s1683_s22 + $0xc0] sm:$0xff] %v1304_v40  ;;  %v1289_v43 = vpack.c.bf16 %v720_v41, %v718_v35  ;;  %v1305_v44 = vpack.c.bf16 %v800_v42, %v798_v36 }
 0x142   : > { %1033 = vst [vmem:[%s1683_s22 + $0x48] sm:$0xff] %v1289_v43  ;;  %1049 = vst [vmem:[%s1683_s22 + $0xc8] sm:$0xff] %v1305_v44  ;;  %v723_v45 = vpop.f32.mrb[20].mxu0  ;;  %v803_v46 = vpop.f32.mrb[20].mxu1 }
 0x143   : > { %v724_v47 = vadd.f32 %v723_v45, %v1670_v5  ;;  %v804_v48 = vadd.f32 %v803_v46, %v1670_v5  ;;  %v725_v49 = vpop.f32.mrb[21].mxu0  ;;  %v805_v50 = vpop.f32.mrb[21].mxu1 }
 0x144   : > { %v726_v51 = vadd.f32 %v725_v49, %v1672_v6  ;;  %v806_v52 = vadd.f32 %v805_v50, %v1672_v6  ;;  %v727_v53 = vpop.f32.mrb[22].mxu0  ;;  %v807_v54 = vpop.f32.mrb[22].mxu1 }
 0x145   : > { %v728_v55 = vadd.f32 %v727_v53, %v1670_v5  ;;  %v808_v56 = vadd.f32 %v807_v54, %v1670_v5  ;;  %v729_v57 = vpop.f32.mrb[23].mxu0  ;;  %v809_v58 = vpop.f32.mrb[23].mxu1 }
 0x146   : > { %v1290_v59 = vpack.c.bf16 %v726_v51, %v724_v47  ;;  %v1306_v60 = vpack.c.bf16 %v806_v52, %v804_v48  ;;  %v730_v61 = vadd.f32 %v729_v57, %v1672_v6  ;;  %v810_v62 = vadd.f32 %v809_v58, %v1672_v6 }
 0x148   : > { %1034 = vst [vmem:[%s1683_s22 + $0x50] sm:$0xff] %v1290_v59  ;;  %1050 = vst [vmem:[%s1683_s22 + $0xd0] sm:$0xff] %v1306_v60  ;;  %v1291_v63 = vpack.c.bf16 %v730_v61, %v728_v55  ;;  %v1307_v0 = vpack.c.bf16 %v810_v62, %v808_v56 }
 0x14a   : > { %1035 = vst [vmem:[%s1683_s22 + $0x58] sm:$0xff] %v1291_v63  ;;  %1051 = vst [vmem:[%s1683_s22 + $0xd8] sm:$0xff] %v1307_v0  ;;  %v733_v1 = vpop.f32.mrb[24].mxu0  ;;  %v813_v2 = vpop.f32.mrb[24].mxu1 }
 0x14b   : > { %v734_v3 = vadd.f32 %v733_v1, %v1670_v5  ;;  %v814_v4 = vadd.f32 %v813_v2, %v1670_v5  ;;  %v735_v7 = vpop.f32.mrb[25].mxu0  ;;  %v815_v8 = vpop.f32.mrb[25].mxu1 }
 0x14c   : > { %v736_v9 = vadd.f32 %v735_v7, %v1672_v6  ;;  %v816_v10 = vadd.f32 %v815_v8, %v1672_v6  ;;  %v737_v11 = vpop.f32.mrb[26].mxu0  ;;  %v817_v12 = vpop.f32.mrb[26].mxu1 }
 0x14d   : > { %v738_v13 = vadd.f32 %v737_v11, %v1670_v5  ;;  %v818_v14 = vadd.f32 %v817_v12, %v1670_v5  ;;  %v739_v15 = vpop.f32.mrb[27].mxu0  ;;  %v819_v16 = vpop.f32.mrb[27].mxu1 }
 0x14e   : > { %v1292_v17 = vpack.c.bf16 %v736_v9, %v734_v3  ;;  %v1308_v18 = vpack.c.bf16 %v816_v10, %v814_v4  ;;  %v740_v19 = vadd.f32 %v739_v15, %v1672_v6  ;;  %v820_v20 = vadd.f32 %v819_v16, %v1672_v6 }
 0x150   : > { %1036 = vst [vmem:[%s1683_s22 + $0x60] sm:$0xff] %v1292_v17  ;;  %1052 = vst [vmem:[%s1683_s22 + $0xe0] sm:$0xff] %v1308_v18  ;;  %v1293_v21 = vpack.c.bf16 %v740_v19, %v738_v13  ;;  %v1309_v22 = vpack.c.bf16 %v820_v20, %v818_v14 }
 0x152   : > { %1037 = vst [vmem:[%s1683_s22 + $0x68] sm:$0xff] %v1293_v21  ;;  %1053 = vst [vmem:[%s1683_s22 + $0xe8] sm:$0xff] %v1309_v22  ;;  %v743_v23 = vpop.f32.mrb[28].mxu0  ;;  %v823_v24 = vpop.f32.mrb[28].mxu1 }
 0x153   : > { %v744_v25 = vadd.f32 %v743_v23, %v1670_v5  ;;  %v824_v26 = vadd.f32 %v823_v24, %v1670_v5  ;;  %v745_v27 = vpop.f32.mrb[29].mxu0  ;;  %v825_v28 = vpop.f32.mrb[29].mxu1 }
 0x154   : > { %v746_v29 = vadd.f32 %v745_v27, %v1672_v6  ;;  %v826_v30 = vadd.f32 %v825_v28, %v1672_v6  ;;  %v747_v31 = vpop.f32.mrb[30].mxu0  ;;  %v827_v32 = vpop.f32.mrb[30].mxu1 }
 0x155   : > { %v748_v33 = vadd.f32 %v747_v31, %v1670_v5  ;;  %v828_v34 = vadd.f32 %v827_v32, %v1670_v5  ;;  %v749_v35 = vpop.f32.mrb[31].mxu0  ;;  %v829_v36 = vpop.f32.mrb[31].mxu1 }
 0x156   : > { %v1294_v37 = vpack.c.bf16 %v746_v29, %v744_v25  ;;  %v1310_v38 = vpack.c.bf16 %v826_v30, %v824_v26  ;;  %v750_v39 = vadd.f32 %v749_v35, %v1672_v6  ;;  %v830_v40 = vadd.f32 %v829_v36, %v1672_v6 }
 0x158   : > { %1038 = vst [vmem:[%s1683_s22 + $0x70] sm:$0xff] %v1294_v37  ;;  %1054 = vst [vmem:[%s1683_s22 + $0xf0] sm:$0xff] %v1310_v38  ;;  %v1295_v41 = vpack.c.bf16 %v750_v39, %v748_v33  ;;  %v1311_v42 = vpack.c.bf16 %v830_v40, %v828_v34 }
 0x15a   : > { %1039 = vst [vmem:[%s1683_s22 + $0x78] sm:$0xff] %v1295_v41  ;;  %1055 = vst [vmem:[%s1683_s22 + $0xf8] sm:$0xff] %v1311_v42 }
 0x15b PF: > { %s13_s14 = sadd.s32 1, %s1486_s14   ;;  %s1790_s12 = smov %s1482_s13 }
 0x15c   : > { %p10_p5 = scmp.ge.s32.totalorder %s13_s14, 6   ;;  %s1791_s13 = smov %s1793_s15 }
 0x15e   :  { %12 = sbr.rel (!%p10_p5) target bundleno = 2 (0x2), region = 68 }

// kernel: multi_head_attention.5
= control target key start
LH: loop header
LB: loop body
LE: loop exit
PB: predicated region body
PF: predicated region fallthrough
CT: control target
= control target key end

     0   :  { %s996_s12 = smov 0   ;;  %s998_s13 = smov 0   ;;  %s1434_s0 = inlined_call_operand.vmem [shape: f32[1024,256], index: 0, kind: input, shape index: {}]   ;;  %s1435_s1 = inlined_call_operand.vmem [shape: f32[256,256], index: 1, kind: input, shape index: {}]   ;;  %s1436_s2 = inlined_call_operand.vmem [shape: f32[1,256], index: 2, kind: input, shape index: {}]   ;;  %s1437_s3 = inlined_call_operand.vmem [shape: f32[1024,256], index: 3, kind: output, shape index: {}]  }
   0x1   :  { %s1000_s14 = smov 0  }
   0x2 LB: > { %s22_s15 = sadd.s32 1, %s970_s13  ;;  %p821_p0 = scmp.ge.s32.totalorder %s974_s14, 1  ;;  %s974_s14 = sphi %s1000_s14, %s13_s14   ;;  %s970_s13 = sphi %s998_s13, %s1439_s13   ;;  %s966_s12 = sphi %s996_s12, %s1438_s12  }
   0x3   : > { %p23_p1 = scmp.ge.s32.totalorder %s22_s15, 4  ;;  %p174_p2 = scmp.lt.s32.totalorder %s974_s14, 5 }
   0x5   : > { %s1441_s15 = smov (%p23_p1, %s22_s15), 0  ;;  %p175_p3 = pnand %p821_p0, %p174_p2 }
   0x6   : > { %v308_v0 = vld [vmem:[%s1435_s1 + $0x8] sm:$0xff] (!%p175_p3)  ;;  %v310_v1 = vld [vmem:[%s1435_s1 + $0x18] sm:$0xff] (!%p175_p3)  ;;  %v307_v2 = vld [vmem:[%s1435_s1] sm:$0xff] (!%p175_p3)  ;;  %s822_s9 = sshll.u32 (!%p175_p3), %s966_s12, 5 }
   0x7   : > { %178 = sbr.rel (%p175_p3) target bundleno = 349 (0x15d), region = 32  ;;  %v832_v3 = vpack.c.bf16 (!%p175_p3), %v310_v1, %v308_v0  ;;  %v309_v4 = vld [vmem:[%s1435_s1 + $0x10] sm:$0xff] (!%p175_p3)  ;;  %v312_v5 = vld [vmem:[%s1435_s1 + $0x28] sm:$0xff] (!%p175_p3)  ;;  %v314_v6 = vld [vmem:[%s1435_s1 + $0x38] sm:$0xff] (!%p175_p3)  ;;  %p214_p4 = scmp.lt.s32.totalorder (!%p175_p3), %s822_s9, 127 }
   0x8   : > { %v834_v7 = vpack.c.bf16 (!%p175_p3), %v309_v4, %v307_v2  ;;  %v836_v8 = vpack.c.bf16 (!%p175_p3), %v314_v6, %v312_v5  ;;  %v311_v9 = vld [vmem:[%s1435_s1 + $0x20] sm:$0xff] (!%p175_p3)  ;;  %v313_v10 = vld [vmem:[%s1435_s1 + $0x30] sm:$0xff] (!%p175_p3)  ;;  %v316_v11 = vld [vmem:[%s1435_s1 + $0x48] sm:$0xff] (!%p175_p3) }
   0x9   : > { %833 = vmatprep.subr.bf16.mxu0 (!%p175_p3), %v832_v3  ;;  %896 = vmatprep.subr.bf16.mxu1 (!%p175_p3), %v832_v3  ;;  %v318_v12 = vld [vmem:[%s1435_s1 + $0x58] sm:$0xff] (!%p175_p3)  ;;  %v838_v13 = vpack.c.bf16 (!%p175_p3), %v313_v10, %v311_v9  ;;  %v315_v15 = vld [vmem:[%s1435_s1 + $0x40] sm:$0xff] (!%p175_p3)  ;;  %v317_v16 = vld [vmem:[%s1435_s1 + $0x50] sm:$0xff] (!%p175_p3) }
   0xa   : > { %835 = vmatpush1.bf16.msra.mxu0 (!%p175_p3), %v834_v7  ;;  %912 = vmatpush1.bf16.msra.mxu1 (!%p175_p3), %v834_v7  ;;  %v840_v14 = vpack.c.bf16 (!%p175_p3), %v318_v12, %v316_v11  ;;  %v320_v17 = vld [vmem:[%s1435_s1 + $0x68] sm:$0xff] (!%p175_p3)  ;;  %v322_v18 = vld [vmem:[%s1435_s1 + $0x78] sm:$0xff] (!%p175_p3)  ;;  %v842_v19 = vpack.c.bf16 (!%p175_p3), %v317_v16, %v315_v15  ;;  %v319_v21 = vld [vmem:[%s1435_s1 + $0x60] sm:$0xff] (!%p175_p3) }
   0xb   : > { %837 = vmatprep.subr.bf16.mxu0 (!%p175_p3), %v836_v8  ;;  %897 = vmatprep.subr.bf16.mxu1 (!%p175_p3), %v836_v8  ;;  %v844_v20 = vpack.c.bf16 (!%p175_p3), %v322_v18, %v320_v17  ;;  %v321_v22 = vld [vmem:[%s1435_s1 + $0x70] sm:$0xff] (!%p175_p3)  ;;  %v324_v23 = vld [vmem:[%s1435_s1 + $0x88] sm:$0xff] (!%p175_p3)  ;;  %v326_v24 = vld [vmem:[%s1435_s1 + $0x98] sm:$0xff] (!%p175_p3) }
   0xc   : > { %v846_v25 = vpack.c.bf16 (!%p175_p3), %v321_v22, %v319_v21  ;;  %v848_v26 = vpack.c.bf16 (!%p175_p3), %v326_v24, %v324_v23  ;;  %v323_v27 = vld [vmem:[%s1435_s1 + $0x80] sm:$0xff] (!%p175_p3)  ;;  %v325_v28 = vld [vmem:[%s1435_s1 + $0x90] sm:$0xff] (!%p175_p3)  ;;  %v328_v29 = vld [vmem:[%s1435_s1 + $0xa8] sm:$0xff] (!%p175_p3) }
   0xd   : > { %v330_v30 = vld [vmem:[%s1435_s1 + $0xb8] sm:$0xff] (!%p175_p3)  ;;  %v850_v31 = vpack.c.bf16 (!%p175_p3), %v325_v28, %v323_v27  ;;  %v327_v33 = vld [vmem:[%s1435_s1 + $0xa0] sm:$0xff] (!%p175_p3)  ;;  %v329_v34 = vld [vmem:[%s1435_s1 + $0xb0] sm:$0xff] (!%p175_p3) }
   0xe   : > { %839 = vmatpush1.bf16.msra.mxu0 %v838_v13  ;;  %913 = vmatpush1.bf16.msra.mxu1 %v838_v13  ;;  %s1443_s9 = smov (!%p214_p4, %s822_s9), 127  ;;  %v852_v32 = vpack.c.bf16 %v330_v30, %v328_v29  ;;  %v332_v35 = vld [vmem:[%s1435_s1 + $0xc8] sm:$0xff]  ;;  %v334_v36 = vld [vmem:[%s1435_s1 + $0xd8] sm:$0xff]  ;;  %v854_v37 = vpack.c.bf16 %v329_v34, %v327_v33  ;;  %v331_v38 = vld [vmem:[%s1435_s1 + $0xc0] sm:$0xff] }
   0xf   : > { %841 = vmatprep.subr.bf16.mxu0 %v840_v14  ;;  %898 = vmatprep.subr.bf16.mxu1 %v840_v14  ;;  %s830_s11 = sshll.u32 %s1443_s9, 4  ;;  %v856_v39 = vpack.c.bf16 %v334_v36, %v332_v35  ;;  %v333_v40 = vld [vmem:[%s1435_s1 + $0xd0] sm:$0xff]  ;;  %v336_v43 = vld [vmem:[%s1435_s1 + $0xe8] sm:$0xff]  ;;  %v338_v44 = vld [vmem:[%s1435_s1 + $0xf8] sm:$0xff] }
  0x10   : > { %s1103_s25 = scalar_lea.vmem %s1434_s0, %s830_s11  ;;  %v858_v45 = vpack.c.bf16 %v333_v40, %v331_v38  ;;  %v860_v46 = vpack.c.bf16 %v338_v44, %v336_v43  ;;  %v335_v47 = vld [vmem:[%s1435_s1 + $0xe0] sm:$0xff]  ;;  %v337_v48 = vld [vmem:[%s1435_s1 + $0xf0] sm:$0xff]  ;;  %v340_v49 = vld [vmem:[%s1435_s1 + $0x108] sm:$0xff]  ;;  %s1295_s12 = scalar_lea.vmem %s1437_s3, %s830_s11 }
  0x11   : > { %v244_v41 = vld [vmem:[%s1103_s25 + $0x8] sm:$0xff]  ;;  %v342_v50 = vld [vmem:[%s1435_s1 + $0x118] sm:$0xff]  ;;  %v862_v51 = vpack.c.bf16 %v337_v48, %v335_v47  ;;  %v339_v53 = vld [vmem:[%s1435_s1 + $0x100] sm:$0xff] }
  0x12   : > { %843 = vmatpush1.bf16.msra.mxu0 %v842_v19  ;;  %914 = vmatpush1.bf16.msra.mxu1 %v842_v19  ;;  %v276_v42 = vld [vmem:[%s1103_s25 + $0x108] sm:$0xff]  ;;  %v864_v52 = vpack.c.bf16 %v342_v50, %v340_v49  ;;  %v341_v54 = vld [vmem:[%s1435_s1 + $0x110] sm:$0xff]  ;;  %v346_v56 = vld [vmem:[%s1435_s1 + $0x138] sm:$0xff] }
  0x13   : > { %845 = vmatprep.subr.bf16.mxu0 %v844_v20  ;;  %899 = vmatprep.subr.bf16.mxu1 %v844_v20  ;;  %v344_v55 = vld [vmem:[%s1435_s1 + $0x128] sm:$0xff]  ;;  %v866_v57 = vpack.c.bf16 %v341_v54, %v339_v53  ;;  %v343_v59 = vld [vmem:[%s1435_s1 + $0x120] sm:$0xff]  ;;  %v345_v60 = vld [vmem:[%s1435_s1 + $0x130] sm:$0xff] }
  0x14   : > { %447 = vmatprep.mubr.f32.mxu0 %v244_v41  ;;  %543 = vmatprep.mubr.f32.mxu1 %v276_v42  ;;  %v868_v58 = vpack.c.bf16 %v346_v56, %v344_v55  ;;  %v348_v61 = vld [vmem:[%s1435_s1 + $0x148] sm:$0xff]  ;;  %v350_v62 = vld [vmem:[%s1435_s1 + $0x158] sm:$0xff]  ;;  %v870_v63 = vpack.c.bf16 %v345_v60, %v343_v59  ;;  %v347_v1 = vld [vmem:[%s1435_s1 + $0x140] sm:$0xff] }
  0x15   : > { %v872_v0 = vpack.c.bf16 %v350_v62, %v348_v61  ;;  %v349_v2 = vld [vmem:[%s1435_s1 + $0x150] sm:$0xff]  ;;  %v352_v3 = vld [vmem:[%s1435_s1 + $0x168] sm:$0xff]  ;;  %v354_v4 = vld [vmem:[%s1435_s1 + $0x178] sm:$0xff] }
  0x16   : > { %847 = vmatpush1.bf16.msra.mxu0 %v846_v25  ;;  %915 = vmatpush1.bf16.msra.mxu1 %v846_v25  ;;  %v874_v5 = vpack.c.bf16 %v349_v2, %v347_v1  ;;  %v876_v6 = vpack.c.bf16 %v354_v4, %v352_v3  ;;  %v351_v7 = vld [vmem:[%s1435_s1 + $0x160] sm:$0xff]  ;;  %v353_v8 = vld [vmem:[%s1435_s1 + $0x170] sm:$0xff]  ;;  %v356_v9 = vld [vmem:[%s1435_s1 + $0x188] sm:$0xff] }
  0x17   : > { %849 = vmatprep.subr.bf16.mxu0 %v848_v26  ;;  %900 = vmatprep.subr.bf16.mxu1 %v848_v26  ;;  %v358_v10 = vld [vmem:[%s1435_s1 + $0x198] sm:$0xff]  ;;  %v878_v11 = vpack.c.bf16 %v353_v8, %v351_v7  ;;  %v355_v13 = vld [vmem:[%s1435_s1 + $0x180] sm:$0xff]  ;;  %v357_v14 = vld [vmem:[%s1435_s1 + $0x190] sm:$0xff] }
  0x18   : > { %v880_v12 = vpack.c.bf16 %v358_v10, %v356_v9  ;;  %v360_v15 = vld [vmem:[%s1435_s1 + $0x1a8] sm:$0xff]  ;;  %v362_v16 = vld [vmem:[%s1435_s1 + $0x1b8] sm:$0xff]  ;;  %v882_v17 = vpack.c.bf16 %v357_v14, %v355_v13  ;;  %v359_v19 = vld [vmem:[%s1435_s1 + $0x1a0] sm:$0xff] }
  0x19   : > { %v884_v18 = vpack.c.bf16 %v362_v16, %v360_v15  ;;  %v361_v20 = vld [vmem:[%s1435_s1 + $0x1b0] sm:$0xff]  ;;  %v364_v21 = vld [vmem:[%s1435_s1 + $0x1c8] sm:$0xff]  ;;  %v366_v22 = vld [vmem:[%s1435_s1 + $0x1d8] sm:$0xff] }
  0x1a   : > { %851 = vmatpush1.bf16.msra.mxu0 %v850_v31  ;;  %916 = vmatpush1.bf16.msra.mxu1 %v850_v31  ;;  %v886_v23 = vpack.c.bf16 %v361_v20, %v359_v19  ;;  %v888_v24 = vpack.c.bf16 %v366_v22, %v364_v21  ;;  %v363_v25 = vld [vmem:[%s1435_s1 + $0x1c0] sm:$0xff]  ;;  %v365_v26 = vld [vmem:[%s1435_s1 + $0x1d0] sm:$0xff]  ;;  %v368_v27 = vld [vmem:[%s1435_s1 + $0x1e8] sm:$0xff] }
  0x1b   : > { %853 = vmatprep.subr.bf16.mxu0 %v852_v32  ;;  %901 = vmatprep.subr.bf16.mxu1 %v852_v32  ;;  %v370_v28 = vld [vmem:[%s1435_s1 + $0x1f8] sm:$0xff]  ;;  %v890_v29 = vpack.c.bf16 %v365_v26, %v363_v25  ;;  %v367_v31 = vld [vmem:[%s1435_s1 + $0x1e0] sm:$0xff]  ;;  %v369_v32 = vld [vmem:[%s1435_s1 + $0x1f0] sm:$0xff] }
  0x1c   : > { %v892_v30 = vpack.c.bf16 %v370_v28, %v368_v27  ;;  %v894_v33 = vpack.c.bf16 %v369_v32, %v367_v31  ;;  %v243_v34 = vld [vmem:[%s1103_s25] sm:$0xff]  ;;  %v246_v36 = vld [vmem:[%s1103_s25 + $0x18] sm:$0xff]  ;;  %v245_v38 = vld [vmem:[%s1103_s25 + $0x10] sm:$0xff]  ;;  %v373_v32 = vlaneseq }
  0x1d   : > { %v275_v35 = vld [vmem:[%s1103_s25 + $0x100] sm:$0xff]  ;;  %v248_v40 = vld [vmem:[%s1103_s25 + $0x28] sm:$0xff]  ;;  %v250_v44 = vld [vmem:[%s1103_s25 + $0x38] sm:$0xff] }
  0x1e   : > { %855 = vmatpush1.bf16.msra.mxu0 %v854_v37  ;;  %917 = vmatpush1.bf16.msra.mxu1 %v854_v37  ;;  %v278_v37 = vld [vmem:[%s1103_s25 + $0x118] sm:$0xff]  ;;  %v280_v41 = vld [vmem:[%s1103_s25 + $0x128] sm:$0xff]  ;;  %v247_v42 = vld [vmem:[%s1103_s25 + $0x20] sm:$0xff] }
  0x1f   : > { %857 = vmatprep.subr.bf16.mxu0 %v856_v39  ;;  %902 = vmatprep.subr.bf16.mxu1 %v856_v39  ;;  %v277_v39 = vld [vmem:[%s1103_s25 + $0x110] sm:$0xff]  ;;  %v279_v43 = vld [vmem:[%s1103_s25 + $0x120] sm:$0xff]  ;;  %v252_v48 = vld [vmem:[%s1103_s25 + $0x48] sm:$0xff] }
  0x20   : > { %v281_v47 = vld [vmem:[%s1103_s25 + $0x130] sm:$0xff]  ;;  %v284_v49 = vld [vmem:[%s1103_s25 + $0x148] sm:$0xff]  ;;  %v251_v50 = vld [vmem:[%s1103_s25 + $0x40] sm:$0xff] }
  0x21   : > { %v286_v53 = vld [vmem:[%s1103_s25 + $0x158] sm:$0xff]  ;;  %v253_v54 = vld [vmem:[%s1103_s25 + $0x50] sm:$0xff]  ;;  %v256_v56 = vld [vmem:[%s1103_s25 + $0x68] sm:$0xff] }
  0x22   : > { %859 = vmatpush1.bf16.msra.mxu0 %v858_v45  ;;  %918 = vmatpush1.bf16.msra.mxu1 %v858_v45  ;;  %v282_v45 = vld [vmem:[%s1103_s25 + $0x138] sm:$0xff]  ;;  %v285_v55 = vld [vmem:[%s1103_s25 + $0x150] sm:$0xff]  ;;  %v287_v59 = vld [vmem:[%s1103_s25 + $0x160] sm:$0xff] }
  0x23   : > { %861 = vmatprep.subr.bf16.mxu0 %v860_v46  ;;  %903 = vmatprep.subr.bf16.mxu1 %v860_v46  ;;  %v249_v46 = vld [vmem:[%s1103_s25 + $0x30] sm:$0xff]  ;;  %v258_v60 = vld [vmem:[%s1103_s25 + $0x78] sm:$0xff]  ;;  %v292_v1 = vld [vmem:[%s1103_s25 + $0x188] sm:$0xff] }
  0x24   : > { %v290_v61 = vld [vmem:[%s1103_s25 + $0x178] sm:$0xff]  ;;  %v257_v62 = vld [vmem:[%s1103_s25 + $0x70] sm:$0xff]  ;;  %v259_v2 = vld [vmem:[%s1103_s25 + $0x80] sm:$0xff] }
  0x25   : > { %v291_v3 = vld [vmem:[%s1103_s25 + $0x180] sm:$0xff]  ;;  %v262_v4 = vld [vmem:[%s1103_s25 + $0x98] sm:$0xff]  ;;  %v293_v7 = vld [vmem:[%s1103_s25 + $0x190] sm:$0xff] }
  0x26   : > { %863 = vmatpush1.bf16.msra.mxu0 %v862_v51  ;;  %919 = vmatpush1.bf16.msra.mxu1 %v862_v51  ;;  %v283_v51 = vld [vmem:[%s1103_s25 + $0x140] sm:$0xff]  ;;  %v264_v8 = vld [vmem:[%s1103_s25 + $0xa8] sm:$0xff]  ;;  %v298_v13 = vld [vmem:[%s1103_s25 + $0x1b8] sm:$0xff] }
  0x27   : > { %865 = vmatprep.subr.bf16.mxu0 %v864_v52  ;;  %904 = vmatprep.subr.bf16.mxu1 %v864_v52  ;;  %v254_v52 = vld [vmem:[%s1103_s25 + $0x58] sm:$0xff]  ;;  %v296_v9 = vld [vmem:[%s1103_s25 + $0x1a8] sm:$0xff]  ;;  %v263_v10 = vld [vmem:[%s1103_s25 + $0xa0] sm:$0xff] }
  0x28   : > { %v265_v14 = vld [vmem:[%s1103_s25 + $0xb0] sm:$0xff]  ;;  %v268_v16 = vld [vmem:[%s1103_s25 + $0xc8] sm:$0xff]  ;;  %v299_v19 = vld [vmem:[%s1103_s25 + $0x1c0] sm:$0xff] }
  0x29   : > { %v297_v15 = vld [vmem:[%s1103_s25 + $0x1b0] sm:$0xff]  ;;  %v270_v20 = vld [vmem:[%s1103_s25 + $0xd8] sm:$0xff]  ;;  %v304_v25 = vld [vmem:[%s1103_s25 + $0x1e8] sm:$0xff] }
  0x2a   : > { %867 = vmatpush1.bf16.msra.mxu0 %v866_v57  ;;  %920 = vmatpush1.bf16.msra.mxu1 %v866_v57  ;;  %v288_v57 = vld [vmem:[%s1103_s25 + $0x168] sm:$0xff]  ;;  %v302_v21 = vld [vmem:[%s1103_s25 + $0x1d8] sm:$0xff]  ;;  %v269_v22 = vld [vmem:[%s1103_s25 + $0xd0] sm:$0xff] }
  0x2b   : > { %869 = vmatprep.subr.bf16.mxu0 %v868_v58  ;;  %905 = vmatprep.subr.bf16.mxu1 %v868_v58  ;;  %v255_v58 = vld [vmem:[%s1103_s25 + $0x60] sm:$0xff]  ;;  %v274_v28 = vld [vmem:[%s1103_s25 + $0xf8] sm:$0xff]  ;;  %v305_v31 = vld [vmem:[%s1103_s25 + $0x1f0] sm:$0xff] }
  0x2c   : > { %v271_v26 = vld [vmem:[%s1103_s25 + $0xe0] sm:$0xff] }
  0x2d   : > { %v303_v27 = vld [vmem:[%s1103_s25 + $0x1e0] sm:$0xff] }
  0x2e   : > { %871 = vmatpush1.bf16.msra.mxu0 %v870_v63  ;;  %921 = vmatpush1.bf16.msra.mxu1 %v870_v63  ;;  %v289_v63 = vld [vmem:[%s1103_s25 + $0x170] sm:$0xff] }
  0x2f   : > { %873 = vmatprep.subr.bf16.mxu0 %v872_v0  ;;  %906 = vmatprep.subr.bf16.mxu1 %v872_v0  ;;  %v260_v0 = vld [vmem:[%s1103_s25 + $0x88] sm:$0xff] }
  0x32   : > { %875 = vmatpush1.bf16.msra.mxu0 %v874_v5  ;;  %922 = vmatpush1.bf16.msra.mxu1 %v874_v5  ;;  %v294_v5 = vld [vmem:[%s1103_s25 + $0x198] sm:$0xff] }
  0x33   : > { %877 = vmatprep.subr.bf16.mxu0 %v876_v6  ;;  %907 = vmatprep.subr.bf16.mxu1 %v876_v6  ;;  %v261_v6 = vld [vmem:[%s1103_s25 + $0x90] sm:$0xff] }
  0x36   : > { %879 = vmatpush1.bf16.msra.mxu0 %v878_v11  ;;  %923 = vmatpush1.bf16.msra.mxu1 %v878_v11  ;;  %v295_v11 = vld [vmem:[%s1103_s25 + $0x1a0] sm:$0xff] }
  0x37   : > { %881 = vmatprep.subr.bf16.mxu0 %v880_v12  ;;  %908 = vmatprep.subr.bf16.mxu1 %v880_v12  ;;  %v266_v12 = vld [vmem:[%s1103_s25 + $0xb8] sm:$0xff] }
  0x3a   : > { %883 = vmatpush1.bf16.msra.mxu0 %v882_v17  ;;  %924 = vmatpush1.bf16.msra.mxu1 %v882_v17  ;;  %v300_v17 = vld [vmem:[%s1103_s25 + $0x1c8] sm:$0xff] }
  0x3b   : > { %885 = vmatprep.subr.bf16.mxu0 %v884_v18  ;;  %909 = vmatprep.subr.bf16.mxu1 %v884_v18  ;;  %v267_v18 = vld [vmem:[%s1103_s25 + $0xc0] sm:$0xff] }
  0x3e   : > { %887 = vmatpush1.bf16.msra.mxu0 %v886_v23  ;;  %925 = vmatpush1.bf16.msra.mxu1 %v886_v23  ;;  %v301_v23 = vld [vmem:[%s1103_s25 + $0x1d0] sm:$0xff] }
  0x3f   : > { %889 = vmatprep.subr.bf16.mxu0 %v888_v24  ;;  %910 = vmatprep.subr.bf16.mxu1 %v888_v24  ;;  %v272_v24 = vld [vmem:[%s1103_s25 + $0xe8] sm:$0xff] }
  0x42   : > { %891 = vmatpush1.bf16.msra.mxu0 %v890_v29  ;;  %926 = vmatpush1.bf16.msra.mxu1 %v890_v29  ;;  %v306_v29 = vld [vmem:[%s1103_s25 + $0x1f8] sm:$0xff] }
  0x43   : > { %893 = vmatprep.subr.bf16.mxu0 %v892_v30  ;;  %911 = vmatprep.subr.bf16.mxu1 %v892_v30  ;;  %v273_v30 = vld [vmem:[%s1103_s25 + $0xf0] sm:$0xff] }
  0x46   : > { %895 = vmatpush1.bf16.msra.mxu0 %v894_v33  ;;  %927 = vmatpush1.bf16.msra.mxu1 %v894_v33  ;;  %v374_v33 = vshrl.u32 %v373_v32, 7 }
  0x49   : > { %448 = vmatmul.mubr.f32.vlgmr.msra.gmra.mrb[0].mxu0 %v243_v34  ;;  %544 = vmatmul.mubr.f32.vlgmr.msra.gmra.mrb[0].mxu1 %v275_v35  ;;  %v375_v34 = vsub.s32 0, %v374_v33  ;;  %v371_v35 = vld [vmem:[%s1436_s2] sm:$0x3] }
  0x4a   : > { %453 = vmatprep.mubr.f32.mxu0 %v246_v36  ;;  %549 = vmatprep.mubr.f32.mxu1 %v278_v37  ;;  %v379_v36 = vsub.s32 1, %v374_v33 }
  0x4b   : > { %v1286_v37 = vrot.slane %v371_v35, %v375_v34 }
  0x4d   : > { %454 = vmatmul.mubr.f32.gmra.mrb[2].mxu0 %v245_v38  ;;  %550 = vmatmul.mubr.f32.gmra.mrb[2].mxu1 %v277_v39  ;;  %v1288_v38 = vrot.slane %v371_v35, %v379_v36 }
  0x4e   : > { %459 = vmatprep.mubr.f32.mxu0 %v248_v40  ;;  %555 = vmatprep.mubr.f32.mxu1 %v280_v41 }
  0x51   : > { %460 = vmatmul.mubr.f32.gmra.mrb[4].mxu0 %v247_v42  ;;  %556 = vmatmul.mubr.f32.gmra.mrb[4].mxu1 %v279_v43 }
  0x52   : > { %465 = vmatprep.mubr.f32.mxu0 %v250_v44  ;;  %561 = vmatprep.mubr.f32.mxu1 %v282_v45 }
  0x55   : > { %466 = vmatmul.mubr.f32.gmra.mrb[6].mxu0 %v249_v46  ;;  %562 = vmatmul.mubr.f32.gmra.mrb[6].mxu1 %v281_v47 }
  0x56   : > { %471 = vmatprep.mubr.f32.mxu0 %v252_v48  ;;  %567 = vmatprep.mubr.f32.mxu1 %v284_v49 }
  0x59   : > { %472 = vmatmul.mubr.f32.gmra.mrb[8].mxu0 %v251_v50  ;;  %568 = vmatmul.mubr.f32.gmra.mrb[8].mxu1 %v283_v51 }
  0x5a   : > { %477 = vmatprep.mubr.f32.mxu0 %v254_v52  ;;  %573 = vmatprep.mubr.f32.mxu1 %v286_v53 }
  0x5d   : > { %478 = vmatmul.mubr.f32.gmra.mrb[10].mxu0 %v253_v54  ;;  %574 = vmatmul.mubr.f32.gmra.mrb[10].mxu1 %v285_v55 }
  0x5e   : > { %483 = vmatprep.mubr.f32.mxu0 %v256_v56  ;;  %579 = vmatprep.mubr.f32.mxu1 %v288_v57 }
  0x61   : > { %484 = vmatmul.mubr.f32.gmra.mrb[12].mxu0 %v255_v58  ;;  %580 = vmatmul.mubr.f32.gmra.mrb[12].mxu1 %v287_v59 }
  0x62   : > { %489 = vmatprep.mubr.f32.mxu0 %v258_v60  ;;  %585 = vmatprep.mubr.f32.mxu1 %v290_v61 }
  0x65   : > { %490 = vmatmul.mubr.f32.gmra.mrb[14].mxu0 %v257_v62  ;;  %586 = vmatmul.mubr.f32.gmra.mrb[14].mxu1 %v289_v63 }
  0x66   : > { %495 = vmatprep.mubr.f32.mxu0 %v260_v0  ;;  %591 = vmatprep.mubr.f32.mxu1 %v292_v1 }
  0x69   : > { %496 = vmatmul.mubr.f32.gmra.mrb[16].mxu0 %v259_v2  ;;  %592 = vmatmul.mubr.f32.gmra.mrb[16].mxu1 %v291_v3 }
  0x6a   : > { %501 = vmatprep.mubr.f32.mxu0 %v262_v4  ;;  %597 = vmatprep.mubr.f32.mxu1 %v294_v5 }
  0x6d   : > { %502 = vmatmul.mubr.f32.gmra.mrb[18].mxu0 %v261_v6  ;;  %598 = vmatmul.mubr.f32.gmra.mrb[18].mxu1 %v293_v7 }
  0x6e   : > { %507 = vmatprep.mubr.f32.mxu0 %v264_v8  ;;  %603 = vmatprep.mubr.f32.mxu1 %v296_v9 }
  0x71   : > { %508 = vmatmul.mubr.f32.gmra.mrb[20].mxu0 %v263_v10  ;;  %604 = vmatmul.mubr.f32.gmra.mrb[20].mxu1 %v295_v11 }
  0x72   : > { %513 = vmatprep.mubr.f32.mxu0 %v266_v12  ;;  %609 = vmatprep.mubr.f32.mxu1 %v298_v13 }
  0x75   : > { %514 = vmatmul.mubr.f32.gmra.mrb[22].mxu0 %v265_v14  ;;  %610 = vmatmul.mubr.f32.gmra.mrb[22].mxu1 %v297_v15 }
  0x76   : > { %519 = vmatprep.mubr.f32.mxu0 %v268_v16  ;;  %615 = vmatprep.mubr.f32.mxu1 %v300_v17 }
  0x79   : > { %520 = vmatmul.mubr.f32.gmra.mrb[24].mxu0 %v267_v18  ;;  %616 = vmatmul.mubr.f32.gmra.mrb[24].mxu1 %v299_v19 }
  0x7a   : > { %525 = vmatprep.mubr.f32.mxu0 %v270_v20  ;;  %621 = vmatprep.mubr.f32.mxu1 %v302_v21 }
  0x7d   : > { %526 = vmatmul.mubr.f32.gmra.mrb[26].mxu0 %v269_v22  ;;  %622 = vmatmul.mubr.f32.gmra.mrb[26].mxu1 %v301_v23 }
  0x7e   : > { %531 = vmatprep.mubr.f32.mxu0 %v272_v24  ;;  %627 = vmatprep.mubr.f32.mxu1 %v304_v25 }
  0x81   : > { %532 = vmatmul.mubr.f32.gmra.mrb[28].mxu0 %v271_v26  ;;  %628 = vmatmul.mubr.f32.gmra.mrb[28].mxu1 %v303_v27 }
  0x82   : > { %537 = vmatprep.mubr.f32.mxu0 %v274_v28  ;;  %633 = vmatprep.mubr.f32.mxu1 %v306_v29 }
  0x85   : > { %538 = vmatmul.mubr.f32.gmra.mrb[30].mxu0 %v273_v30  ;;  %634 = vmatmul.mubr.f32.gmra.mrb[30].mxu1 %v305_v31 }
 0x11c   : > { %v449_v39 = vpop.f32.mrb[0].mxu0  ;;  %v545_v40 = vpop.f32.mrb[0].mxu1 }
 0x11d   : > { %v450_v41 = vadd.f32 %v449_v39, %v1286_v37  ;;  %v546_v42 = vadd.f32 %v545_v40, %v1286_v37  ;;  %v451_v43 = vpop.f32.mrb[1].mxu0  ;;  %v547_v44 = vpop.f32.mrb[1].mxu1 }
 0x11e   : > { %v452_v45 = vadd.f32 %v451_v43, %v1288_v38  ;;  %v548_v46 = vadd.f32 %v547_v44, %v1288_v38 }
 0x11f   : > { %640 = vst [vmem:[%s1295_s12] sm:$0xff] %v450_v41  ;;  %672 = vst [vmem:[%s1295_s12 + $0x100] sm:$0xff] %v546_v42 }
 0x120   : > { %641 = vst [vmem:[%s1295_s12 + $0x8] sm:$0xff] %v452_v45  ;;  %673 = vst [vmem:[%s1295_s12 + $0x108] sm:$0xff] %v548_v46  ;;  %v455_v47 = vpop.f32.mrb[2].mxu0  ;;  %v551_v48 = vpop.f32.mrb[2].mxu1 }
 0x121   : > { %v456_v49 = vadd.f32 %v455_v47, %v1286_v37  ;;  %v552_v50 = vadd.f32 %v551_v48, %v1286_v37  ;;  %v457_v51 = vpop.f32.mrb[3].mxu0  ;;  %v553_v52 = vpop.f32.mrb[3].mxu1 }
 0x122   : > { %v458_v53 = vadd.f32 %v457_v51, %v1288_v38  ;;  %v554_v54 = vadd.f32 %v553_v52, %v1288_v38 }
 0x123   : > { %642 = vst [vmem:[%s1295_s12 + $0x10] sm:$0xff] %v456_v49  ;;  %674 = vst [vmem:[%s1295_s12 + $0x110] sm:$0xff] %v552_v50 }
 0x124   : > { %643 = vst [vmem:[%s1295_s12 + $0x18] sm:$0xff] %v458_v53  ;;  %675 = vst [vmem:[%s1295_s12 + $0x118] sm:$0xff] %v554_v54  ;;  %v461_v55 = vpop.f32.mrb[4].mxu0  ;;  %v557_v56 = vpop.f32.mrb[4].mxu1 }
 0x125   : > { %v462_v57 = vadd.f32 %v461_v55, %v1286_v37  ;;  %v558_v58 = vadd.f32 %v557_v56, %v1286_v37  ;;  %v463_v59 = vpop.f32.mrb[5].mxu0  ;;  %v559_v60 = vpop.f32.mrb[5].mxu1 }
 0x126   : > { %v464_v61 = vadd.f32 %v463_v59, %v1288_v38  ;;  %v560_v62 = vadd.f32 %v559_v60, %v1288_v38 }
 0x127   : > { %644 = vst [vmem:[%s1295_s12 + $0x20] sm:$0xff] %v462_v57  ;;  %676 = vst [vmem:[%s1295_s12 + $0x120] sm:$0xff] %v558_v58 }
 0x128   : > { %645 = vst [vmem:[%s1295_s12 + $0x28] sm:$0xff] %v464_v61  ;;  %677 = vst [vmem:[%s1295_s12 + $0x128] sm:$0xff] %v560_v62  ;;  %v467_v63 = vpop.f32.mrb[6].mxu0  ;;  %v563_v0 = vpop.f32.mrb[6].mxu1 }
 0x129   : > { %v468_v1 = vadd.f32 %v467_v63, %v1286_v37  ;;  %v564_v2 = vadd.f32 %v563_v0, %v1286_v37  ;;  %v469_v3 = vpop.f32.mrb[7].mxu0  ;;  %v565_v4 = vpop.f32.mrb[7].mxu1 }
 0x12a   : > { %v470_v5 = vadd.f32 %v469_v3, %v1288_v38  ;;  %v566_v6 = vadd.f32 %v565_v4, %v1288_v38 }
 0x12b   : > { %646 = vst [vmem:[%s1295_s12 + $0x30] sm:$0xff] %v468_v1  ;;  %678 = vst [vmem:[%s1295_s12 + $0x130] sm:$0xff] %v564_v2 }
 0x12c   : > { %647 = vst [vmem:[%s1295_s12 + $0x38] sm:$0xff] %v470_v5  ;;  %679 = vst [vmem:[%s1295_s12 + $0x138] sm:$0xff] %v566_v6  ;;  %v473_v7 = vpop.f32.mrb[8].mxu0  ;;  %v569_v8 = vpop.f32.mrb[8].mxu1 }
 0x12d   : > { %v474_v9 = vadd.f32 %v473_v7, %v1286_v37  ;;  %v570_v10 = vadd.f32 %v569_v8, %v1286_v37  ;;  %v475_v11 = vpop.f32.mrb[9].mxu0  ;;  %v571_v12 = vpop.f32.mrb[9].mxu1 }
 0x12e   : > { %v476_v13 = vadd.f32 %v475_v11, %v1288_v38  ;;  %v572_v14 = vadd.f32 %v571_v12, %v1288_v38 }
 0x12f   : > { %648 = vst [vmem:[%s1295_s12 + $0x40] sm:$0xff] %v474_v9  ;;  %680 = vst [vmem:[%s1295_s12 + $0x140] sm:$0xff] %v570_v10 }
 0x130   : > { %649 = vst [vmem:[%s1295_s12 + $0x48] sm:$0xff] %v476_v13  ;;  %681 = vst [vmem:[%s1295_s12 + $0x148] sm:$0xff] %v572_v14  ;;  %v479_v15 = vpop.f32.mrb[10].mxu0  ;;  %v575_v16 = vpop.f32.mrb[10].mxu1 }
 0x131   : > { %v480_v17 = vadd.f32 %v479_v15, %v1286_v37  ;;  %v576_v18 = vadd.f32 %v575_v16, %v1286_v37  ;;  %v481_v19 = vpop.f32.mrb[11].mxu0  ;;  %v577_v20 = vpop.f32.mrb[11].mxu1 }
 0x132   : > { %v482_v21 = vadd.f32 %v481_v19, %v1288_v38  ;;  %v578_v22 = vadd.f32 %v577_v20, %v1288_v38 }
 0x133   : > { %650 = vst [vmem:[%s1295_s12 + $0x50] sm:$0xff] %v480_v17  ;;  %682 = vst [vmem:[%s1295_s12 + $0x150] sm:$0xff] %v576_v18 }
 0x134   : > { %651 = vst [vmem:[%s1295_s12 + $0x58] sm:$0xff] %v482_v21  ;;  %683 = vst [vmem:[%s1295_s12 + $0x158] sm:$0xff] %v578_v22  ;;  %v485_v23 = vpop.f32.mrb[12].mxu0  ;;  %v581_v24 = vpop.f32.mrb[12].mxu1 }
 0x135   : > { %v486_v25 = vadd.f32 %v485_v23, %v1286_v37  ;;  %v582_v26 = vadd.f32 %v581_v24, %v1286_v37  ;;  %v487_v27 = vpop.f32.mrb[13].mxu0  ;;  %v583_v28 = vpop.f32.mrb[13].mxu1 }
 0x136   : > { %v488_v29 = vadd.f32 %v487_v27, %v1288_v38  ;;  %v584_v30 = vadd.f32 %v583_v28, %v1288_v38 }
 0x137   : > { %652 = vst [vmem:[%s1295_s12 + $0x60] sm:$0xff] %v486_v25  ;;  %684 = vst [vmem:[%s1295_s12 + $0x160] sm:$0xff] %v582_v26 }
 0x138   : > { %653 = vst [vmem:[%s1295_s12 + $0x68] sm:$0xff] %v488_v29  ;;  %685 = vst [vmem:[%s1295_s12 + $0x168] sm:$0xff] %v584_v30  ;;  %v491_v31 = vpop.f32.mrb[14].mxu0  ;;  %v587_v32 = vpop.f32.mrb[14].mxu1 }
 0x139   : > { %v492_v33 = vadd.f32 %v491_v31, %v1286_v37  ;;  %v588_v34 = vadd.f32 %v587_v32, %v1286_v37  ;;  %v493_v35 = vpop.f32.mrb[15].mxu0  ;;  %v589_v36 = vpop.f32.mrb[15].mxu1 }
 0x13a   : > { %v494_v39 = vadd.f32 %v493_v35, %v1288_v38  ;;  %v590_v40 = vadd.f32 %v589_v36, %v1288_v38 }
 0x13b   : > { %654 = vst [vmem:[%s1295_s12 + $0x70] sm:$0xff] %v492_v33  ;;  %686 = vst [vmem:[%s1295_s12 + $0x170] sm:$0xff] %v588_v34 }
 0x13c   : > { %655 = vst [vmem:[%s1295_s12 + $0x78] sm:$0xff] %v494_v39  ;;  %687 = vst [vmem:[%s1295_s12 + $0x178] sm:$0xff] %v590_v40  ;;  %v497_v41 = vpop.f32.mrb[16].mxu0  ;;  %v593_v42 = vpop.f32.mrb[16].mxu1 }
 0x13d   : > { %v498_v43 = vadd.f32 %v497_v41, %v1286_v37  ;;  %v594_v44 = vadd.f32 %v593_v42, %v1286_v37  ;;  %v499_v45 = vpop.f32.mrb[17].mxu0  ;;  %v595_v46 = vpop.f32.mrb[17].mxu1 }
 0x13e   : > { %v500_v47 = vadd.f32 %v499_v45, %v1288_v38  ;;  %v596_v48 = vadd.f32 %v595_v46, %v1288_v38 }
 0x13f   : > { %656 = vst [vmem:[%s1295_s12 + $0x80] sm:$0xff] %v498_v43  ;;  %688 = vst [vmem:[%s1295_s12 + $0x180] sm:$0xff] %v594_v44 }
 0x140   : > { %657 = vst [vmem:[%s1295_s12 + $0x88] sm:$0xff] %v500_v47  ;;  %689 = vst [vmem:[%s1295_s12 + $0x188] sm:$0xff] %v596_v48  ;;  %v503_v49 = vpop.f32.mrb[18].mxu0  ;;  %v599_v50 = vpop.f32.mrb[18].mxu1 }
 0x141   : > { %v504_v51 = vadd.f32 %v503_v49, %v1286_v37  ;;  %v600_v52 = vadd.f32 %v599_v50, %v1286_v37  ;;  %v505_v53 = vpop.f32.mrb[19].mxu0  ;;  %v601_v54 = vpop.f32.mrb[19].mxu1 }
 0x142   : > { %v506_v55 = vadd.f32 %v505_v53, %v1288_v38  ;;  %v602_v56 = vadd.f32 %v601_v54, %v1288_v38 }
 0x143   : > { %658 = vst [vmem:[%s1295_s12 + $0x90] sm:$0xff] %v504_v51  ;;  %690 = vst [vmem:[%s1295_s12 + $0x190] sm:$0xff] %v600_v52 }
 0x144   : > { %659 = vst [vmem:[%s1295_s12 + $0x98] sm:$0xff] %v506_v55  ;;  %691 = vst [vmem:[%s1295_s12 + $0x198] sm:$0xff] %v602_v56  ;;  %v509_v57 = vpop.f32.mrb[20].mxu0  ;;  %v605_v58 = vpop.f32.mrb[20].mxu1 }
 0x145   : > { %v510_v59 = vadd.f32 %v509_v57, %v1286_v37  ;;  %v606_v60 = vadd.f32 %v605_v58, %v1286_v37  ;;  %v511_v61 = vpop.f32.mrb[21].mxu0  ;;  %v607_v62 = vpop.f32.mrb[21].mxu1 }
 0x146   : > { %v512_v63 = vadd.f32 %v511_v61, %v1288_v38  ;;  %v608_v0 = vadd.f32 %v607_v62, %v1288_v38 }
 0x147   : > { %660 = vst [vmem:[%s1295_s12 + $0xa0] sm:$0xff] %v510_v59  ;;  %692 = vst [vmem:[%s1295_s12 + $0x1a0] sm:$0xff] %v606_v60 }
 0x148   : > { %661 = vst [vmem:[%s1295_s12 + $0xa8] sm:$0xff] %v512_v63  ;;  %693 = vst [vmem:[%s1295_s12 + $0x1a8] sm:$0xff] %v608_v0  ;;  %v515_v1 = vpop.f32.mrb[22].mxu0  ;;  %v611_v2 = vpop.f32.mrb[22].mxu1 }
 0x149   : > { %v516_v3 = vadd.f32 %v515_v1, %v1286_v37  ;;  %v612_v4 = vadd.f32 %v611_v2, %v1286_v37  ;;  %v517_v5 = vpop.f32.mrb[23].mxu0  ;;  %v613_v6 = vpop.f32.mrb[23].mxu1 }
 0x14a   : > { %v518_v7 = vadd.f32 %v517_v5, %v1288_v38  ;;  %v614_v8 = vadd.f32 %v613_v6, %v1288_v38 }
 0x14b   : > { %662 = vst [vmem:[%s1295_s12 + $0xb0] sm:$0xff] %v516_v3  ;;  %694 = vst [vmem:[%s1295_s12 + $0x1b0] sm:$0xff] %v612_v4 }
 0x14c   : > { %663 = vst [vmem:[%s1295_s12 + $0xb8] sm:$0xff] %v518_v7  ;;  %695 = vst [vmem:[%s1295_s12 + $0x1b8] sm:$0xff] %v614_v8  ;;  %v521_v9 = vpop.f32.mrb[24].mxu0  ;;  %v617_v10 = vpop.f32.mrb[24].mxu1 }
 0x14d   : > { %v522_v11 = vadd.f32 %v521_v9, %v1286_v37  ;;  %v618_v12 = vadd.f32 %v617_v10, %v1286_v37  ;;  %v523_v13 = vpop.f32.mrb[25].mxu0  ;;  %v619_v14 = vpop.f32.mrb[25].mxu1 }
 0x14e   : > { %v524_v15 = vadd.f32 %v523_v13, %v1288_v38  ;;  %v620_v16 = vadd.f32 %v619_v14, %v1288_v38 }
 0x14f   : > { %664 = vst [vmem:[%s1295_s12 + $0xc0] sm:$0xff] %v522_v11  ;;  %696 = vst [vmem:[%s1295_s12 + $0x1c0] sm:$0xff] %v618_v12 }
 0x150   : > { %665 = vst [vmem:[%s1295_s12 + $0xc8] sm:$0xff] %v524_v15  ;;  %697 = vst [vmem:[%s1295_s12 + $0x1c8] sm:$0xff] %v620_v16  ;;  %v527_v17 = vpop.f32.mrb[26].mxu0  ;;  %v623_v18 = vpop.f32.mrb[26].mxu1 }
 0x151   : > { %v528_v19 = vadd.f32 %v527_v17, %v1286_v37  ;;  %v624_v20 = vadd.f32 %v623_v18, %v1286_v37  ;;  %v529_v21 = vpop.f32.mrb[27].mxu0  ;;  %v625_v22 = vpop.f32.mrb[27].mxu1 }
 0x152   : > { %v530_v23 = vadd.f32 %v529_v21, %v1288_v38  ;;  %v626_v24 = vadd.f32 %v625_v22, %v1288_v38 }
 0x153   : > { %666 = vst [vmem:[%s1295_s12 + $0xd0] sm:$0xff] %v528_v19  ;;  %698 = vst [vmem:[%s1295_s12 + $0x1d0] sm:$0xff] %v624_v20 }
 0x154   : > { %667 = vst [vmem:[%s1295_s12 + $0xd8] sm:$0xff] %v530_v23  ;;  %699 = vst [vmem:[%s1295_s12 + $0x1d8] sm:$0xff] %v626_v24  ;;  %v533_v25 = vpop.f32.mrb[28].mxu0  ;;  %v629_v26 = vpop.f32.mrb[28].mxu1 }
 0x155   : > { %v534_v27 = vadd.f32 %v533_v25, %v1286_v37  ;;  %v630_v28 = vadd.f32 %v629_v26, %v1286_v37  ;;  %v535_v29 = vpop.f32.mrb[29].mxu0  ;;  %v631_v30 = vpop.f32.mrb[29].mxu1 }
 0x156   : > { %v536_v31 = vadd.f32 %v535_v29, %v1288_v38  ;;  %v632_v32 = vadd.f32 %v631_v30, %v1288_v38 }
 0x157   : > { %668 = vst [vmem:[%s1295_s12 + $0xe0] sm:$0xff] %v534_v27  ;;  %700 = vst [vmem:[%s1295_s12 + $0x1e0] sm:$0xff] %v630_v28 }
 0x158   : > { %669 = vst [vmem:[%s1295_s12 + $0xe8] sm:$0xff] %v536_v31  ;;  %701 = vst [vmem:[%s1295_s12 + $0x1e8] sm:$0xff] %v632_v32  ;;  %v539_v33 = vpop.f32.mrb[30].mxu0  ;;  %v635_v34 = vpop.f32.mrb[30].mxu1 }
 0x159   : > { %v540_v35 = vadd.f32 %v539_v33, %v1286_v37  ;;  %v636_v36 = vadd.f32 %v635_v34, %v1286_v37  ;;  %v541_v39 = vpop.f32.mrb[31].mxu0  ;;  %v637_v40 = vpop.f32.mrb[31].mxu1 }
 0x15a   : > { %v542_v41 = vadd.f32 %v541_v39, %v1288_v38  ;;  %v638_v42 = vadd.f32 %v637_v40, %v1288_v38 }
 0x15b   : > { %670 = vst [vmem:[%s1295_s12 + $0xf0] sm:$0xff] %v540_v35  ;;  %702 = vst [vmem:[%s1295_s12 + $0x1f0] sm:$0xff] %v636_v36 }
 0x15c   : > { %671 = vst [vmem:[%s1295_s12 + $0xf8] sm:$0xff] %v542_v41  ;;  %703 = vst [vmem:[%s1295_s12 + $0x1f8] sm:$0xff] %v638_v42 }
 0x15d PF: > { %s13_s14 = sadd.s32 1, %s974_s14   ;;  %s1438_s12 = smov %s970_s13 }
 0x15e   : > { %p10_p5 = scmp.ge.s32.totalorder %s13_s14, 6   ;;  %s1439_s13 = smov %s1441_s15 }
 0x160   :  { %12 = sbr.rel (!%p10_p5) target bundleno = 2 (0x2), region = 68 }

// kernel: multi_head_attention.9
= control target key start
LH: loop header
LB: loop body
LE: loop exit
PB: predicated region body
PF: predicated region fallthrough
CT: control target
= control target key end

     0   :  { %8 = vsyncpa [#allocation3], 0  ;;  %s1759_s0 = inlined_call_operand.vmem [shape: bf16[1024,256], index: 0, kind: input, shape index: {}]   ;;  %s1760_s1 = inlined_call_operand.vmem [shape: bf16[256,256], index: 1, kind: input, shape index: {}]   ;;  %s1761_s2 = inlined_call_operand.vmem [shape: f32[1,256], index: 2, kind: input, shape index: {}]   ;;  %s1762_s3 = inlined_call_operand.hbm [shape: f32[1024,256], index: 3, kind: output, shape index: {}]  }
   0x1   :  { %10 = vsyncpa [#allocation3 + $0x1], 0  ;;  %s1373_s12 = smov 0   ;;  %s1375_s13 = smov 0  }
   0x2   :  { %s1377_s14 = smov 0   ;;  %s1379_s15 = smov 0  }
   0x3   :  { %s1381_s16 = smov 0   ;;  %s1383_s17 = smov 0  }
   0x4 LB: > { %s1001_s18 = sadd.s32 4294967295, %s1348_s17   ;;  %s1002_s19 = sadd.s32 4294967294, %s1348_s17   ;;  %s1348_s17 = sphi %s1383_s17, %s16_s17   ;;  %s1344_s16 = sphi %s1381_s16, %s1769_s16   ;;  %s1340_s15 = sphi %s1379_s15, %s1768_s15   ;;  %s1336_s14 = sphi %s1377_s14, %s1767_s14   ;;  %s1332_s13 = sphi %s1375_s13, %s1766_s13   ;;  %s1328_s12 = sphi %s1373_s12, %s1765_s12  }
   0x5   : > { %s25_s20 = sadd.s32 1, %s1344_s16  ;;  %s115_s21 = sadd.s32 1, %s1336_s14 }
   0x6   : > { %p26_p0 = scmp.ge.s32.totalorder %s25_s20, 4  ;;  %p125_p1 = scmp.ne.s32.totalorder %s1336_s14, %s1332_s13 }
   0x7   : > { %p126_p2 = scmp.eq.s32.totalorder %s1001_s18, 3  ;;  %p131_p3 = scmp.ne.s32.totalorder %s1332_s13, %s1328_s12 }
   0x8   : > { %s1771_s20 = smov (%p26_p0, %s25_s20), 0  ;;  %p132_p5 = scmp.eq.s32.totalorder %s1002_s19, 3 }
   0x9   : > { %p1413_p4 = por %p126_p2, %p125_p1  ;;  %s110_s23 = ssub.s32 %s1344_s16, %s1771_s20 }
   0xa   : > { %p1007_p6 = scmp.ge.s32.totalorder %s1348_s17, 1  ;;  %p113_p7 = scmp.eq.s32.totalorder %s110_s23, 0 }
   0xb   : > { %p1420_p8 = por %p132_p5, %p131_p3  ;;  %p177_p9 = scmp.lt.s32.totalorder %s1348_s17, 5 }
   0xc   : > { %s1426_s25 = scalar_select %p113_p7, %s1336_s14, %s115_s21  }
   0xd   : > { %p178_p10 = pnand %p1007_p6, %p177_p9 }
   0xe   : > { %v1174_v0 = vld [vmem:[%s1760_s1 + $0x4] ss:$8 sps:$4 sm:$0xff] (!%p178_p10)   ;;  %v1176_v1 = vld [vmem:[%s1760_s1] ss:$8 sps:$4 sm:$0xff] (!%p178_p10)   ;;  %v1177_v2 = vld [vmem:[%s1760_s1 + $0x14] ss:$8 sps:$4 sm:$0xff] (!%p178_p10)  }
   0xf   : > { %181 = sbr.rel (%p178_p10) target bundleno = 367 (0x16f), region = 32  ;;  %627 = vmatprep.subr.bf16.mxu0 (!%p178_p10), %v1174_v0  ;;  %1085 = vmatprep.subr.bf16.mxu1 (!%p178_p10), %v1174_v0  ;;  %v1179_v3 = vld [vmem:[%s1760_s1 + $0x10] ss:$8 sps:$4 sm:$0xff] (!%p178_p10)   ;;  %v1180_v4 = vld [vmem:[%s1760_s1 + $0x24] ss:$8 sps:$4 sm:$0xff] (!%p178_p10)   ;;  %s1009_s9 = sshll.u32 (!%p178_p10), %s1340_s15, 5  ;;  %v297_v0 = vlaneseq (!%p178_p10) }
  0x10   : > { %628 = vmatpush1.bf16.msra.mxu0 (!%p178_p10), %v1176_v1  ;;  %1101 = vmatpush1.bf16.msra.mxu1 (!%p178_p10), %v1176_v1  ;;  %v1182_v5 = vld [vmem:[%s1760_s1 + $0x20] ss:$8 sps:$4 sm:$0xff] (!%p178_p10)   ;;  %v1183_v6 = vld [vmem:[%s1760_s1 + $0x34] ss:$8 sps:$4 sm:$0xff] (!%p178_p10)   ;;  %p212_p11 = scmp.lt.s32.totalorder (!%p178_p10), %s1009_s9, 127  ;;  %s208_s29 = sand.u32 (!%p178_p10), 1, %s1332_s13  }
  0x11   : > { %629 = vmatprep.subr.bf16.mxu0 (!%p178_p10), %v1177_v2  ;;  %1086 = vmatprep.subr.bf16.mxu1 (!%p178_p10), %v1177_v2  ;;  %v1185_v7 = vld [vmem:[%s1760_s1 + $0x30] ss:$8 sps:$4 sm:$0xff] (!%p178_p10)   ;;  %v1186_v8 = vld [vmem:[%s1760_s1 + $0x44] ss:$8 sps:$4 sm:$0xff] (!%p178_p10)   ;;  %v1188_v9 = vld [vmem:[%s1760_s1 + $0x40] ss:$8 sps:$4 sm:$0xff] (!%p178_p10)  }
  0x12   : > { %v1189_v10 = vld [vmem:[%s1760_s1 + $0x54] ss:$8 sps:$4 sm:$0xff] (!%p178_p10)   ;;  %v1191_v11 = vld [vmem:[%s1760_s1 + $0x50] ss:$8 sps:$4 sm:$0xff] (!%p178_p10)   ;;  %v1192_v12 = vld [vmem:[%s1760_s1 + $0x64] ss:$8 sps:$4 sm:$0xff] (!%p178_p10)  }
  0x13   : > { %v1194_v14 = vld [vmem:[%s1760_s1 + $0x60] ss:$8 sps:$4 sm:$0xff] (!%p178_p10)   ;;  %v1195_v16 = vld [vmem:[%s1760_s1 + $0x74] ss:$8 sps:$4 sm:$0xff] (!%p178_p10)   ;;  %v1197_v17 = vld [vmem:[%s1760_s1 + $0x70] ss:$8 sps:$4 sm:$0xff] (!%p178_p10)  }
  0x14   : > { %630 = vmatpush1.bf16.msra.mxu0 (!%p178_p10), %v1179_v3  ;;  %1102 = vmatpush1.bf16.msra.mxu1 (!%p178_p10), %v1179_v3  ;;  %v1198_v18 = vld [vmem:[%s1760_s1 + $0x84] ss:$8 sps:$4 sm:$0xff] (!%p178_p10)   ;;  %v1200_v19 = vld [vmem:[%s1760_s1 + $0x80] ss:$8 sps:$4 sm:$0xff] (!%p178_p10)   ;;  %v1201_v20 = vld [vmem:[%s1760_s1 + $0x94] ss:$8 sps:$4 sm:$0xff] (!%p178_p10)  }
  0x15   : > { %631 = vmatprep.subr.bf16.mxu0 (!%p178_p10), %v1180_v4  ;;  %1087 = vmatprep.subr.bf16.mxu1 (!%p178_p10), %v1180_v4  ;;  %v1203_v21 = vld [vmem:[%s1760_s1 + $0x90] ss:$8 sps:$4 sm:$0xff] (!%p178_p10)   ;;  %v1204_v22 = vld [vmem:[%s1760_s1 + $0xa4] ss:$8 sps:$4 sm:$0xff] (!%p178_p10)   ;;  %v1206_v23 = vld [vmem:[%s1760_s1 + $0xa0] ss:$8 sps:$4 sm:$0xff] (!%p178_p10)  }
  0x16   : > { %s1773_s9 = smov (!%p212_p11, %s1009_s9), 127  ;;  %v1207_v24 = vld [vmem:[%s1760_s1 + $0xb4] ss:$8 sps:$4 sm:$0xff]   ;;  %v1209_v25 = vld [vmem:[%s1760_s1 + $0xb0] ss:$8 sps:$4 sm:$0xff]   ;;  %v298_v1 = vshrl.u32 %v297_v0, 7 }
  0x17   : > { %s1082_s5 = sshll.u32 %s1773_s9, 3  ;;  %v1210_v26 = vld [vmem:[%s1760_s1 + $0xc4] ss:$8 sps:$4 sm:$0xff]   ;;  %v1212_v27 = vld [vmem:[%s1760_s1 + $0xc0] ss:$8 sps:$4 sm:$0xff]   ;;  %s1084_s6 = sshll.u32 %s1340_s15, 13 }
  0x18   : > { %632 = vmatpush1.bf16.msra.mxu0 %v1182_v5  ;;  %1103 = vmatpush1.bf16.msra.mxu1 %v1182_v5  ;;  %s1468_s11 = scalar_lea.vmem %s1759_s0, %s1082_s5  ;;  %v1213_v28 = vld [vmem:[%s1760_s1 + $0xd4] ss:$8 sps:$4 sm:$0xff]   ;;  %v1215_v29 = vld [vmem:[%s1760_s1 + $0xd0] ss:$8 sps:$4 sm:$0xff]   ;;  %v1216_v30 = vld [vmem:[%s1760_s1 + $0xe4] ss:$8 sps:$4 sm:$0xff]   ;;  %s1699_s10 = scalar_lea.hbm %s1762_s3, %s1084_s6 }
  0x19   : > { %633 = vmatprep.subr.bf16.mxu0 %v1183_v6  ;;  %1088 = vmatprep.subr.bf16.mxu1 %v1183_v6  ;;  %v1224_v13 = vld [vmem:[%s1468_s11 + $0x4] ss:$8 sps:$4 sm:$0xff]   ;;  %v1218_v31 = vld [vmem:[%s1760_s1 + $0xe0] ss:$8 sps:$4 sm:$0xff]   ;;  %v1219_v32 = vld [vmem:[%s1760_s1 + $0xf4] ss:$8 sps:$4 sm:$0xff]  }
  0x1a   : > { %v1227_v15 = vld [vmem:[%s1468_s11 + $0x84] ss:$8 sps:$4 sm:$0xff]   ;;  %659 = vmatprep.mubr.bf16.mxu0 %v1224_v13  ;;  %v1221_v33 = vld [vmem:[%s1760_s1 + $0xf0] ss:$8 sps:$4 sm:$0xff]   ;;  %v1222_v34 = vld [vmem:[%s1468_s11] ss:$8 sps:$4 sm:$0xff]  }
  0x1b   : > { %739 = vmatprep.mubr.bf16.mxu1 %v1227_v15  ;;  %v1225_v35 = vld [vmem:[%s1468_s11 + $0x80] ss:$8 sps:$4 sm:$0xff]   ;;  %v1228_v36 = vld [vmem:[%s1468_s11 + $0x14] ss:$8 sps:$4 sm:$0xff]   ;;  %v1232_v38 = vld [vmem:[%s1468_s11 + $0x10] ss:$8 sps:$4 sm:$0xff]  }
  0x1c   : > { %634 = vmatpush1.bf16.msra.mxu0 %v1185_v7  ;;  %1104 = vmatpush1.bf16.msra.mxu1 %v1185_v7  ;;  %v1230_v37 = vld [vmem:[%s1468_s11 + $0x94] ss:$8 sps:$4 sm:$0xff]   ;;  %v1233_v39 = vld [vmem:[%s1468_s11 + $0x90] ss:$8 sps:$4 sm:$0xff]   ;;  %v1234_v40 = vld [vmem:[%s1468_s11 + $0x24] ss:$8 sps:$4 sm:$0xff]  }
  0x1d   : > { %635 = vmatprep.subr.bf16.mxu0 %v1186_v8  ;;  %1089 = vmatprep.subr.bf16.mxu1 %v1186_v8  ;;  %v1236_v41 = vld [vmem:[%s1468_s11 + $0xa4] ss:$8 sps:$4 sm:$0xff]   ;;  %v1238_v42 = vld [vmem:[%s1468_s11 + $0x20] ss:$8 sps:$4 sm:$0xff]   ;;  %v1240_v44 = vld [vmem:[%s1468_s11 + $0x34] ss:$8 sps:$4 sm:$0xff]  }
  0x1e   : > { %v1239_v43 = vld [vmem:[%s1468_s11 + $0xa0] ss:$8 sps:$4 sm:$0xff]   ;;  %v1242_v45 = vld [vmem:[%s1468_s11 + $0xb4] ss:$8 sps:$4 sm:$0xff]   ;;  %v1244_v46 = vld [vmem:[%s1468_s11 + $0x30] ss:$8 sps:$4 sm:$0xff]  }
  0x1f   : > { %v1245_v47 = vld [vmem:[%s1468_s11 + $0xb0] ss:$8 sps:$4 sm:$0xff]   ;;  %v1246_v48 = vld [vmem:[%s1468_s11 + $0x44] ss:$8 sps:$4 sm:$0xff]   ;;  %v1250_v50 = vld [vmem:[%s1468_s11 + $0x40] ss:$8 sps:$4 sm:$0xff]  }
  0x20   : > { %636 = vmatpush1.bf16.msra.mxu0 %v1188_v9  ;;  %1105 = vmatpush1.bf16.msra.mxu1 %v1188_v9  ;;  %v1248_v49 = vld [vmem:[%s1468_s11 + $0xc4] ss:$8 sps:$4 sm:$0xff]   ;;  %v1251_v51 = vld [vmem:[%s1468_s11 + $0xc0] ss:$8 sps:$4 sm:$0xff]   ;;  %v1252_v52 = vld [vmem:[%s1468_s11 + $0x54] ss:$8 sps:$4 sm:$0xff]  }
  0x21   : > { %637 = vmatprep.subr.bf16.mxu0 %v1189_v10  ;;  %1090 = vmatprep.subr.bf16.mxu1 %v1189_v10  ;;  %v1254_v53 = vld [vmem:[%s1468_s11 + $0xd4] ss:$8 sps:$4 sm:$0xff]   ;;  %v1256_v54 = vld [vmem:[%s1468_s11 + $0x50] ss:$8 sps:$4 sm:$0xff]   ;;  %v1258_v56 = vld [vmem:[%s1468_s11 + $0x64] ss:$8 sps:$4 sm:$0xff]  }
  0x22   : > { %v1257_v55 = vld [vmem:[%s1468_s11 + $0xd0] ss:$8 sps:$4 sm:$0xff]   ;;  %v1260_v57 = vld [vmem:[%s1468_s11 + $0xe4] ss:$8 sps:$4 sm:$0xff]   ;;  %v1262_v58 = vld [vmem:[%s1468_s11 + $0x60] ss:$8 sps:$4 sm:$0xff]  }
  0x23   : > { %v1263_v59 = vld [vmem:[%s1468_s11 + $0xe0] ss:$8 sps:$4 sm:$0xff]   ;;  %v1264_v60 = vld [vmem:[%s1468_s11 + $0x74] ss:$8 sps:$4 sm:$0xff]   ;;  %v1268_v62 = vld [vmem:[%s1468_s11 + $0x70] ss:$8 sps:$4 sm:$0xff]  }
  0x24   : > { %638 = vmatpush1.bf16.msra.mxu0 %v1191_v11  ;;  %1106 = vmatpush1.bf16.msra.mxu1 %v1191_v11  ;;  %v1266_v61 = vld [vmem:[%s1468_s11 + $0xf4] ss:$8 sps:$4 sm:$0xff]   ;;  %v1269_v63 = vld [vmem:[%s1468_s11 + $0xf0] ss:$8 sps:$4 sm:$0xff]   ;;  %v299_v2 = vsub.s32 0, %v298_v1  ;;  %v303_v4 = vsub.s32 1, %v298_v1 }
  0x25   : > { %639 = vmatprep.subr.bf16.mxu0 %v1192_v12  ;;  %1091 = vmatprep.subr.bf16.mxu1 %v1192_v12  ;;  %v295_v3 = vld [vmem:[%s1761_s2] sm:$0x3]  ;;  %s1008_s5 = sshll.u32 %s208_s29, 9  ;;  %s1713_s18 = scalar_lea.sflag [#allocation3], %s208_s29 }
  0x26   : > { %v1568_v5 = vrot.slane %v295_v3, %v299_v2  ;;  %v1570_v6 = vrot.slane %v295_v3, %v303_v4  ;;  %s1576_s11 = scalar_lea.vmem [#allocation2], %s1008_s5  ;;  %s1350_s9 = smov [#allocation2]  }
  0x27   : > { %s901_s7 = sshll.u32 %s1576_s11, 4  ;;  %s1274_s21 = sshll.u32 %s1350_s9, 4  ;;  %s1701_s7 = int_to_ptr.vmem [resolvable:$true] %s901_s7  ;;  %s1275_s21 = int_to_ptr.vmem [resolvable:$false] %s1274_s21 }
  0x28   : > { %640 = vmatpush1.bf16.msra.mxu0 %v1194_v14  ;;  %1107 = vmatpush1.bf16.msra.mxu1 %v1194_v14  ;;  %s1270_s19 = scalar_lea.vmem %s1701_s7, 8192  ;;  %s1276_s23 = scalar_lea.vmem %s1275_s21, 16384 }
  0x29   : > { %641 = vmatprep.subr.bf16.mxu0 %v1195_v16  ;;  %1092 = vmatprep.subr.bf16.mxu1 %v1195_v16  ;;  %p1271_p12 = scmp.ne.s32.totalorder %s1701_s7, %s1270_s19  ;;  %p1277_p1 = scmp.lt.s32.totalorder %s1701_s7, %s1275_s21 }
  0x2a   : > { %p1278_p2 = scmp.lt.s32.totalorder %s1276_s23, %s1270_s19 }
  0x2b   : > { %p1272_p13 = pnand %p1271_p12, %p1413_p4 }
  0x2c   : > { %642 = vmatpush1.bf16.msra.mxu0 %v1197_v17  ;;  %1108 = vmatpush1.bf16.msra.mxu1 %v1197_v17  ;;  %p1279_p3 = por %p1278_p2, %p1277_p1 }
  0x2d   : > { %643 = vmatprep.subr.bf16.mxu0 %v1198_v18  ;;  %1093 = vmatprep.subr.bf16.mxu1 %v1198_v18  ;;  %p1273_p0 = pneg %p1272_p13 }
  0x2f   : > { %p1280_p5 = pnand %p1279_p3, %p1273_p0 }
  0x30   : > { %644 = vmatpush1.bf16.msra.mxu0 %v1200_v19  ;;  %1109 = vmatpush1.bf16.msra.mxu1 %v1200_v19 }
  0x31   : > { %645 = vmatprep.subr.bf16.mxu0 %v1201_v20  ;;  %1094 = vmatprep.subr.bf16.mxu1 %v1201_v20 }
  0x34   : > { %646 = vmatpush1.bf16.msra.mxu0 %v1203_v21  ;;  %1110 = vmatpush1.bf16.msra.mxu1 %v1203_v21 }
  0x35   : > { %647 = vmatprep.subr.bf16.mxu0 %v1204_v22  ;;  %1095 = vmatprep.subr.bf16.mxu1 %v1204_v22 }
  0x38   : > { %648 = vmatpush1.bf16.msra.mxu0 %v1206_v23  ;;  %1111 = vmatpush1.bf16.msra.mxu1 %v1206_v23 }
  0x39   : > { %649 = vmatprep.subr.bf16.mxu0 %v1207_v24  ;;  %1096 = vmatprep.subr.bf16.mxu1 %v1207_v24 }
  0x3c   : > { %650 = vmatpush1.bf16.msra.mxu0 %v1209_v25  ;;  %1112 = vmatpush1.bf16.msra.mxu1 %v1209_v25 }
  0x3d   : > { %651 = vmatprep.subr.bf16.mxu0 %v1210_v26  ;;  %1097 = vmatprep.subr.bf16.mxu1 %v1210_v26 }
  0x40   : > { %652 = vmatpush1.bf16.msra.mxu0 %v1212_v27  ;;  %1113 = vmatpush1.bf16.msra.mxu1 %v1212_v27 }
  0x41   : > { %653 = vmatprep.subr.bf16.mxu0 %v1213_v28  ;;  %1098 = vmatprep.subr.bf16.mxu1 %v1213_v28 }
  0x44   : > { %654 = vmatpush1.bf16.msra.mxu0 %v1215_v29  ;;  %1114 = vmatpush1.bf16.msra.mxu1 %v1215_v29 }
  0x45   : > { %655 = vmatprep.subr.bf16.mxu0 %v1216_v30  ;;  %1099 = vmatprep.subr.bf16.mxu1 %v1216_v30 }
  0x48   : > { %656 = vmatpush1.bf16.msra.mxu0 %v1218_v31  ;;  %1115 = vmatpush1.bf16.msra.mxu1 %v1218_v31 }
  0x49   : > { %657 = vmatprep.subr.bf16.mxu0 %v1219_v32  ;;  %1100 = vmatprep.subr.bf16.mxu1 %v1219_v32 }
  0x4c   : > { %658 = vmatpush1.bf16.msra.mxu0 %v1221_v33  ;;  %1116 = vmatpush1.bf16.msra.mxu1 %v1221_v33 }
  0x4f   : > { %660 = vmatmul.mubr.bf16.vlgmr.msra.gmra.mrb[0].mxu0 %v1222_v34  ;;  %740 = vmatmul.mubr.bf16.vlgmr.msra.gmra.mrb[0].mxu1 %v1225_v35 }
  0x50   : > { %669 = vmatprep.mubr.bf16.mxu0 %v1228_v36  ;;  %749 = vmatprep.mubr.bf16.mxu1 %v1230_v37 }
  0x57   : > { %670 = vmatmul.mubr.bf16.gmra.mrb[4].mxu0 %v1232_v38  ;;  %750 = vmatmul.mubr.bf16.gmra.mrb[4].mxu1 %v1233_v39 }
  0x58   : > { %679 = vmatprep.mubr.bf16.mxu0 %v1234_v40  ;;  %759 = vmatprep.mubr.bf16.mxu1 %v1236_v41 }
  0x5f   : > { %680 = vmatmul.mubr.bf16.gmra.mrb[8].mxu0 %v1238_v42  ;;  %760 = vmatmul.mubr.bf16.gmra.mrb[8].mxu1 %v1239_v43 }
  0x60   : > { %689 = vmatprep.mubr.bf16.mxu0 %v1240_v44  ;;  %769 = vmatprep.mubr.bf16.mxu1 %v1242_v45 }
  0x67   : > { %690 = vmatmul.mubr.bf16.gmra.mrb[12].mxu0 %v1244_v46  ;;  %770 = vmatmul.mubr.bf16.gmra.mrb[12].mxu1 %v1245_v47 }
  0x68   : > { %699 = vmatprep.mubr.bf16.mxu0 %v1246_v48  ;;  %779 = vmatprep.mubr.bf16.mxu1 %v1248_v49 }
  0x6f   : > { %700 = vmatmul.mubr.bf16.gmra.mrb[16].mxu0 %v1250_v50  ;;  %780 = vmatmul.mubr.bf16.gmra.mrb[16].mxu1 %v1251_v51 }
  0x70   : > { %709 = vmatprep.mubr.bf16.mxu0 %v1252_v52  ;;  %789 = vmatprep.mubr.bf16.mxu1 %v1254_v53 }
  0x77   : > { %710 = vmatmul.mubr.bf16.gmra.mrb[20].mxu0 %v1256_v54  ;;  %790 = vmatmul.mubr.bf16.gmra.mrb[20].mxu1 %v1257_v55 }
  0x78   : > { %719 = vmatprep.mubr.bf16.mxu0 %v1258_v56  ;;  %799 = vmatprep.mubr.bf16.mxu1 %v1260_v57 }
  0x7f   : > { %720 = vmatmul.mubr.bf16.gmra.mrb[24].mxu0 %v1262_v58  ;;  %800 = vmatmul.mubr.bf16.gmra.mrb[24].mxu1 %v1263_v59 }
  0x80   : > { %729 = vmatprep.mubr.bf16.mxu0 %v1264_v60  ;;  %809 = vmatprep.mubr.bf16.mxu1 %v1266_v61 }
  0x87   : > { %730 = vmatmul.mubr.bf16.gmra.mrb[28].mxu0 %v1268_v62  ;;  %810 = vmatmul.mubr.bf16.gmra.mrb[28].mxu1 %v1269_v63 }
 0x122   : > { %v661_v7 = vpop.f32.mrb[0].mxu0  ;;  %v741_v8 = vpop.f32.mrb[0].mxu1 }
 0x123   : > { %v662_v9 = vadd.f32 %v661_v7, %v1568_v5  ;;  %v742_v10 = vadd.f32 %v741_v8, %v1568_v5  ;;  %v663_v11 = vpop.f32.mrb[1].mxu0  ;;  %v743_v12 = vpop.f32.mrb[1].mxu1 }
 0x124   : > { %v664_v13 = vadd.f32 %v663_v11, %v1570_v6  ;;  %v744_v14 = vadd.f32 %v743_v12, %v1570_v6  ;;  %v665_v15 = vpop.f32.mrb[2].mxu0  ;;  %v745_v16 = vpop.f32.mrb[2].mxu1 }
 0x125   : > { %820 = vst [vmem:[%s1576_s11] sm:$0xff] %v662_v9  ;;  %852 = vst [vmem:[%s1576_s11 + $0x100] sm:$0xff] %v742_v10  ;;  %v666_v17 = vadd.f32 %v665_v15, %v1568_v5  ;;  %v746_v18 = vadd.f32 %v745_v16, %v1568_v5  ;;  %v667_v19 = vpop.f32.mrb[3].mxu0  ;;  %v747_v20 = vpop.f32.mrb[3].mxu1 }
 0x126   : > { %821 = vst [vmem:[%s1576_s11 + $0x8] sm:$0xff] %v664_v13  ;;  %853 = vst [vmem:[%s1576_s11 + $0x108] sm:$0xff] %v744_v14  ;;  %v668_v21 = vadd.f32 %v667_v19, %v1570_v6  ;;  %v748_v22 = vadd.f32 %v747_v20, %v1570_v6 }
 0x127   : > { %822 = vst [vmem:[%s1576_s11 + $0x10] sm:$0xff] %v666_v17  ;;  %854 = vst [vmem:[%s1576_s11 + $0x110] sm:$0xff] %v746_v18 }
 0x128   : > { %823 = vst [vmem:[%s1576_s11 + $0x18] sm:$0xff] %v668_v21  ;;  %855 = vst [vmem:[%s1576_s11 + $0x118] sm:$0xff] %v748_v22 }
 0x12a   : > { %v671_v23 = vpop.f32.mrb[4].mxu0  ;;  %v751_v24 = vpop.f32.mrb[4].mxu1 }
 0x12b   : > { %v672_v25 = vadd.f32 %v671_v23, %v1568_v5  ;;  %v752_v26 = vadd.f32 %v751_v24, %v1568_v5  ;;  %v673_v27 = vpop.f32.mrb[5].mxu0  ;;  %v753_v28 = vpop.f32.mrb[5].mxu1 }
 0x12c   : > { %v674_v29 = vadd.f32 %v673_v27, %v1570_v6  ;;  %v754_v30 = vadd.f32 %v753_v28, %v1570_v6  ;;  %v675_v31 = vpop.f32.mrb[6].mxu0  ;;  %v755_v32 = vpop.f32.mrb[6].mxu1 }
 0x12d   : > { %824 = vst [vmem:[%s1576_s11 + $0x20] sm:$0xff] %v672_v25  ;;  %856 = vst [vmem:[%s1576_s11 + $0x120] sm:$0xff] %v752_v26  ;;  %v676_v33 = vadd.f32 %v675_v31, %v1568_v5  ;;  %v756_v34 = vadd.f32 %v755_v32, %v1568_v5  ;;  %v677_v35 = vpop.f32.mrb[7].mxu0  ;;  %v757_v36 = vpop.f32.mrb[7].mxu1 }
 0x12e   : > { %825 = vst [vmem:[%s1576_s11 + $0x28] sm:$0xff] %v674_v29  ;;  %857 = vst [vmem:[%s1576_s11 + $0x128] sm:$0xff] %v754_v30  ;;  %v678_v37 = vadd.f32 %v677_v35, %v1570_v6  ;;  %v758_v38 = vadd.f32 %v757_v36, %v1570_v6 }
 0x12f   : > { %826 = vst [vmem:[%s1576_s11 + $0x30] sm:$0xff] %v676_v33  ;;  %858 = vst [vmem:[%s1576_s11 + $0x130] sm:$0xff] %v756_v34 }
 0x130   : > { %827 = vst [vmem:[%s1576_s11 + $0x38] sm:$0xff] %v678_v37  ;;  %859 = vst [vmem:[%s1576_s11 + $0x138] sm:$0xff] %v758_v38 }
 0x132   : > { %v681_v39 = vpop.f32.mrb[8].mxu0  ;;  %v761_v40 = vpop.f32.mrb[8].mxu1 }
 0x133   : > { %v682_v41 = vadd.f32 %v681_v39, %v1568_v5  ;;  %v762_v42 = vadd.f32 %v761_v40, %v1568_v5  ;;  %v683_v43 = vpop.f32.mrb[9].mxu0  ;;  %v763_v44 = vpop.f32.mrb[9].mxu1 }
 0x134   : > { %v684_v45 = vadd.f32 %v683_v43, %v1570_v6  ;;  %v764_v46 = vadd.f32 %v763_v44, %v1570_v6  ;;  %v685_v47 = vpop.f32.mrb[10].mxu0  ;;  %v765_v48 = vpop.f32.mrb[10].mxu1 }
 0x135   : > { %828 = vst [vmem:[%s1576_s11 + $0x40] sm:$0xff] %v682_v41  ;;  %860 = vst [vmem:[%s1576_s11 + $0x140] sm:$0xff] %v762_v42  ;;  %v686_v49 = vadd.f32 %v685_v47, %v1568_v5  ;;  %v766_v50 = vadd.f32 %v765_v48, %v1568_v5  ;;  %v687_v51 = vpop.f32.mrb[11].mxu0  ;;  %v767_v52 = vpop.f32.mrb[11].mxu1 }
 0x136   : > { %829 = vst [vmem:[%s1576_s11 + $0x48] sm:$0xff] %v684_v45  ;;  %861 = vst [vmem:[%s1576_s11 + $0x148] sm:$0xff] %v764_v46  ;;  %v688_v53 = vadd.f32 %v687_v51, %v1570_v6  ;;  %v768_v54 = vadd.f32 %v767_v52, %v1570_v6 }
 0x137   : > { %830 = vst [vmem:[%s1576_s11 + $0x50] sm:$0xff] %v686_v49  ;;  %862 = vst [vmem:[%s1576_s11 + $0x150] sm:$0xff] %v766_v50 }
 0x138   : > { %831 = vst [vmem:[%s1576_s11 + $0x58] sm:$0xff] %v688_v53  ;;  %863 = vst [vmem:[%s1576_s11 + $0x158] sm:$0xff] %v768_v54 }
 0x13a   : > { %v691_v55 = vpop.f32.mrb[12].mxu0  ;;  %v771_v56 = vpop.f32.mrb[12].mxu1 }
 0x13b   : > { %v692_v57 = vadd.f32 %v691_v55, %v1568_v5  ;;  %v772_v58 = vadd.f32 %v771_v56, %v1568_v5  ;;  %v693_v59 = vpop.f32.mrb[13].mxu0  ;;  %v773_v60 = vpop.f32.mrb[13].mxu1 }
 0x13c   : > { %v694_v61 = vadd.f32 %v693_v59, %v1570_v6  ;;  %v774_v62 = vadd.f32 %v773_v60, %v1570_v6  ;;  %v695_v63 = vpop.f32.mrb[14].mxu0  ;;  %v775_v0 = vpop.f32.mrb[14].mxu1 }
 0x13d   : > { %832 = vst [vmem:[%s1576_s11 + $0x60] sm:$0xff] %v692_v57  ;;  %864 = vst [vmem:[%s1576_s11 + $0x160] sm:$0xff] %v772_v58  ;;  %v696_v1 = vadd.f32 %v695_v63, %v1568_v5  ;;  %v776_v2 = vadd.f32 %v775_v0, %v1568_v5  ;;  %v697_v3 = vpop.f32.mrb[15].mxu0  ;;  %v777_v4 = vpop.f32.mrb[15].mxu1 }
 0x13e   : > { %833 = vst [vmem:[%s1576_s11 + $0x68] sm:$0xff] %v694_v61  ;;  %865 = vst [vmem:[%s1576_s11 + $0x168] sm:$0xff] %v774_v62  ;;  %v698_v7 = vadd.f32 %v697_v3, %v1570_v6  ;;  %v778_v8 = vadd.f32 %v777_v4, %v1570_v6 }
 0x13f   : > { %834 = vst [vmem:[%s1576_s11 + $0x70] sm:$0xff] %v696_v1  ;;  %866 = vst [vmem:[%s1576_s11 + $0x170] sm:$0xff] %v776_v2 }
 0x140   : > { %835 = vst [vmem:[%s1576_s11 + $0x78] sm:$0xff] %v698_v7  ;;  %867 = vst [vmem:[%s1576_s11 + $0x178] sm:$0xff] %v778_v8 }
 0x142   : > { %v701_v9 = vpop.f32.mrb[16].mxu0  ;;  %v781_v10 = vpop.f32.mrb[16].mxu1 }
 0x143   : > { %v702_v11 = vadd.f32 %v701_v9, %v1568_v5  ;;  %v782_v12 = vadd.f32 %v781_v10, %v1568_v5  ;;  %v703_v13 = vpop.f32.mrb[17].mxu0  ;;  %v783_v14 = vpop.f32.mrb[17].mxu1 }
 0x144   : > { %v704_v15 = vadd.f32 %v703_v13, %v1570_v6  ;;  %v784_v16 = vadd.f32 %v783_v14, %v1570_v6  ;;  %v705_v17 = vpop.f32.mrb[18].mxu0  ;;  %v785_v18 = vpop.f32.mrb[18].mxu1 }
 0x145   : > { %836 = vst [vmem:[%s1576_s11 + $0x80] sm:$0xff] %v702_v11  ;;  %868 = vst [vmem:[%s1576_s11 + $0x180] sm:$0xff] %v782_v12  ;;  %v706_v19 = vadd.f32 %v705_v17, %v1568_v5  ;;  %v786_v20 = vadd.f32 %v785_v18, %v1568_v5  ;;  %v707_v21 = vpop.f32.mrb[19].mxu0  ;;  %v787_v22 = vpop.f32.mrb[19].mxu1 }
 0x146   : > { %837 = vst [vmem:[%s1576_s11 + $0x88] sm:$0xff] %v704_v15  ;;  %869 = vst [vmem:[%s1576_s11 + $0x188] sm:$0xff] %v784_v16  ;;  %v708_v23 = vadd.f32 %v707_v21, %v1570_v6  ;;  %v788_v24 = vadd.f32 %v787_v22, %v1570_v6 }
 0x147   : > { %838 = vst [vmem:[%s1576_s11 + $0x90] sm:$0xff] %v706_v19  ;;  %870 = vst [vmem:[%s1576_s11 + $0x190] sm:$0xff] %v786_v20 }
 0x148   : > { %839 = vst [vmem:[%s1576_s11 + $0x98] sm:$0xff] %v708_v23  ;;  %871 = vst [vmem:[%s1576_s11 + $0x198] sm:$0xff] %v788_v24 }
 0x14a   : > { %v711_v25 = vpop.f32.mrb[20].mxu0  ;;  %v791_v26 = vpop.f32.mrb[20].mxu1 }
 0x14b   : > { %v712_v27 = vadd.f32 %v711_v25, %v1568_v5  ;;  %v792_v28 = vadd.f32 %v791_v26, %v1568_v5  ;;  %v713_v29 = vpop.f32.mrb[21].mxu0  ;;  %v793_v30 = vpop.f32.mrb[21].mxu1 }
 0x14c   : > { %v714_v31 = vadd.f32 %v713_v29, %v1570_v6  ;;  %v794_v32 = vadd.f32 %v793_v30, %v1570_v6  ;;  %v715_v33 = vpop.f32.mrb[22].mxu0  ;;  %v795_v34 = vpop.f32.mrb[22].mxu1 }
 0x14d   : > { %840 = vst [vmem:[%s1576_s11 + $0xa0] sm:$0xff] %v712_v27  ;;  %872 = vst [vmem:[%s1576_s11 + $0x1a0] sm:$0xff] %v792_v28  ;;  %v716_v35 = vadd.f32 %v715_v33, %v1568_v5  ;;  %v796_v36 = vadd.f32 %v795_v34, %v1568_v5  ;;  %v717_v37 = vpop.f32.mrb[23].mxu0  ;;  %v797_v38 = vpop.f32.mrb[23].mxu1 }
 0x14e   : > { %841 = vst [vmem:[%s1576_s11 + $0xa8] sm:$0xff] %v714_v31  ;;  %873 = vst [vmem:[%s1576_s11 + $0x1a8] sm:$0xff] %v794_v32  ;;  %v718_v39 = vadd.f32 %v717_v37, %v1570_v6  ;;  %v798_v40 = vadd.f32 %v797_v38, %v1570_v6 }
 0x14f   : > { %842 = vst [vmem:[%s1576_s11 + $0xb0] sm:$0xff] %v716_v35  ;;  %874 = vst [vmem:[%s1576_s11 + $0x1b0] sm:$0xff] %v796_v36 }
 0x150   : > { %843 = vst [vmem:[%s1576_s11 + $0xb8] sm:$0xff] %v718_v39  ;;  %875 = vst [vmem:[%s1576_s11 + $0x1b8] sm:$0xff] %v798_v40 }
 0x152   : > { %v721_v41 = vpop.f32.mrb[24].mxu0  ;;  %v801_v42 = vpop.f32.mrb[24].mxu1 }
 0x153   : > { %v722_v43 = vadd.f32 %v721_v41, %v1568_v5  ;;  %v802_v44 = vadd.f32 %v801_v42, %v1568_v5  ;;  %v723_v45 = vpop.f32.mrb[25].mxu0  ;;  %v803_v46 = vpop.f32.mrb[25].mxu1 }
 0x154   : > { %v724_v47 = vadd.f32 %v723_v45, %v1570_v6  ;;  %v804_v48 = vadd.f32 %v803_v46, %v1570_v6  ;;  %v725_v49 = vpop.f32.mrb[26].mxu0  ;;  %v805_v50 = vpop.f32.mrb[26].mxu1 }
 0x155   : > { %844 = vst [vmem:[%s1576_s11 + $0xc0] sm:$0xff] %v722_v43  ;;  %876 = vst [vmem:[%s1576_s11 + $0x1c0] sm:$0xff] %v802_v44  ;;  %v726_v51 = vadd.f32 %v725_v49, %v1568_v5  ;;  %v806_v52 = vadd.f32 %v805_v50, %v1568_v5  ;;  %v727_v53 = vpop.f32.mrb[27].mxu0  ;;  %v807_v54 = vpop.f32.mrb[27].mxu1 }
 0x156   : > { %845 = vst [vmem:[%s1576_s11 + $0xc8] sm:$0xff] %v724_v47  ;;  %877 = vst [vmem:[%s1576_s11 + $0x1c8] sm:$0xff] %v804_v48  ;;  %v728_v55 = vadd.f32 %v727_v53, %v1570_v6  ;;  %v808_v56 = vadd.f32 %v807_v54, %v1570_v6 }
 0x157   : > { %846 = vst [vmem:[%s1576_s11 + $0xd0] sm:$0xff] %v726_v51  ;;  %878 = vst [vmem:[%s1576_s11 + $0x1d0] sm:$0xff] %v806_v52 }
 0x158   : > { %847 = vst [vmem:[%s1576_s11 + $0xd8] sm:$0xff] %v728_v55  ;;  %879 = vst [vmem:[%s1576_s11 + $0x1d8] sm:$0xff] %v808_v56 }
 0x15a   : > { %v731_v57 = vpop.f32.mrb[28].mxu0  ;;  %v811_v58 = vpop.f32.mrb[28].mxu1 }
 0x15b   : > { %v732_v59 = vadd.f32 %v731_v57, %v1568_v5  ;;  %v812_v60 = vadd.f32 %v811_v58, %v1568_v5  ;;  %v733_v61 = vpop.f32.mrb[29].mxu0  ;;  %v813_v62 = vpop.f32.mrb[29].mxu1 }
 0x15c   : > { %v734_v63 = vadd.f32 %v733_v61, %v1570_v6  ;;  %v814_v0 = vadd.f32 %v813_v62, %v1570_v6  ;;  %v735_v1 = vpop.f32.mrb[30].mxu0  ;;  %v815_v2 = vpop.f32.mrb[30].mxu1 }
 0x15d   : > { %848 = vst [vmem:[%s1576_s11 + $0xe0] sm:$0xff] %v732_v59  ;;  %880 = vst [vmem:[%s1576_s11 + $0x1e0] sm:$0xff] %v812_v60  ;;  %v736_v3 = vadd.f32 %v735_v1, %v1568_v5  ;;  %v816_v4 = vadd.f32 %v815_v2, %v1568_v5  ;;  %v737_v7 = vpop.f32.mrb[31].mxu0  ;;  %v817_v8 = vpop.f32.mrb[31].mxu1 }
 0x15e   : > { %849 = vst [vmem:[%s1576_s11 + $0xe8] sm:$0xff] %v734_v63  ;;  %881 = vst [vmem:[%s1576_s11 + $0x1e8] sm:$0xff] %v814_v0  ;;  %v738_v9 = vadd.f32 %v737_v7, %v1570_v6  ;;  %v818_v10 = vadd.f32 %v817_v8, %v1570_v6 }
 0x15f   : > { %850 = vst [vmem:[%s1576_s11 + $0xf0] sm:$0xff] %v736_v3  ;;  %882 = vst [vmem:[%s1576_s11 + $0x1f0] sm:$0xff] %v816_v4 }
 0x160   : > { %851 = vst [vmem:[%s1576_s11 + $0xf8] sm:$0xff] %v738_v9  ;;  %883 = vst [vmem:[%s1576_s11 + $0x1f8] sm:$0xff] %v818_v10 }
 0x161   : > { %1283 = shalt.err (!%p1280_p5)
}
 0x162   : > { %s1284_s26 = scalar_lea.hbm %s1699_s10, 8192  ;;  %s1288_s29 = scalar_lea.hbm %s1762_s3, 32768 }
 0x163   : > { %p1285_p6 = scmp.ne.s32.totalorder %s1699_s10, %s1284_s26  ;;  %p1289_p10 = scmp.lt.u32.totalorder %s1699_s10, %s1762_s3 }
 0x164   : > { %p1290_p11 = scmp.lt.u32.totalorder %s1288_s29, %s1284_s26  ;;  %p1292_p13 = scmp.lt.u32.totalorder %s1284_s26, %s1699_s10 }
 0x165   : > { %p1286_p7 = pnand %p1285_p6, %p1413_p4 }
 0x166   : > { %p1291_p12 = por %p1290_p11, %p1289_p10 }
 0x167   : > { %p1287_p9 = pneg %p1286_p7 }
 0x168   : > { %p1293_p0 = por %p1292_p13, %p1291_p12 }
 0x16a   : > { %p1294_p1 = pnand %p1293_p0, %p1287_p9 }
 0x16c   : > { %1297 = shalt.err (!%p1294_p1)
}
 0x16d   : > { %s1351_s5 = smov 256   ;;  %s1352_s11 = smov 16  }
 0x16e   : > { %1117 = dma.vmem_to_hbm [thread:$0]  (%p1413_p4), %s1701_s7, 8192, %s1699_s10, %s1713_s18, %s1351_s5, %s1351_s5, %s1352_s11  }
 0x16f PF: > { %p1123_p2 = scmp.ge.s32.totalorder %s1348_s17, 2  ;;  %s916_s6 = sand.u32 1, %s1328_s12  }
 0x170   : > { %s917_s15 = scalar_lea.sflag [#allocation3], %s916_s6 }
 0x171   : > { %p1120_p3 = pnand %p1123_p2, %p1420_p8 }
 0x173   : > { %1323 = dma.done.wait (!%p1120_p3), %s917_s15, 8192  }
 0x174   : > { %1325 = vsyncadd (!%p1120_p3), %s917_s15, 4294959104  ;;  %s16_s17 = sadd.s32 1, %s1348_s17   ;;  %s1765_s12 = smov %s1332_s13 }
 0x175   : > { %p13_p5 = scmp.ge.s32.totalorder %s16_s17, 6   ;;  %s1766_s13 = smov %s1336_s14 }
 0x176   : > { %s1767_s14 = smov %s1426_s25  ;;  %s1768_s15 = smov %s1344_s16 }
 0x177   : > { %s1769_s16 = smov %s1771_s20  ;;  %15 = sbr.rel (!%p13_p5) target bundleno = 4 (0x4), region = 73 }
 0x17e   :  { %922 = vsyncpa [#allocation3], 1 }
 0x17f   :  { %924 = vsyncpa [#allocation3 + $0x1], 1 }

// kernel: multi_head_attention.8
= control target key start
LH: loop header
LB: loop body
LE: loop exit
PB: predicated region body
PF: predicated region fallthrough
CT: control target
= control target key end

     0   :  { %s6414_s0 = inlined_call_operand.vmem [shape: f32[2,512,256], index: 0, kind: input, shape index: {}]   ;;  %s6415_s1 = inlined_call_operand.vmem [shape: f32[2,512,256], index: 1, kind: input, shape index: {}]   ;;  %s6416_s2 = inlined_call_operand.vmem [shape: bf16[2,512,256], index: 2, kind: input, shape index: {}]   ;;  %s6417_s3 = inlined_call_operand.vmem [shape: bf16[2,512,256], index: 3, kind: output, shape index: {}]  }
   0x1   :  { %6575 = sst [smem:[#allocation86_spill]] %s6417_s3 }
   0x2   :  { %s4497_s12 = smov 0   ;;  %s4499_s13 = smov 0  }
   0x3   :  { %s4501_s14 = smov 0   ;;  %s4503_s15 = smov 0  }
   0x4   :  { %s4505_s16 = smov 0   ;;  %s4507_s17 = smov 0  }
   0x5   :  { %s4509_s18 = smov 0   ;;  %s4511_s19 = smov 0  }
   0x6   :  { %s4513_s20 = smov 0   ;;  %s4515_s21 = smov 0  }
   0x7   :  { %s4517_s22 = smov 0   ;;  %s4519_s23 = smov 0  }
   0x8   :  { %s4521_s24 = smov 0  }
   0x9 LB: > { %6576 = sst [smem:[#allocation9_spill]] %s4439_s16  ;;  %s28_s25 = sadd.s32 1, %s4455_s20  ;;  %s4471_s24 = sphi %s4521_s24, %s13_s24   ;;  %s4467_s23 = sphi %s4519_s23, %s6883_s23   ;;  %s4463_s22 = sphi %s4517_s22, %s6882_s22   ;;  %s4459_s21 = sphi %s4515_s21, %s6881_s21   ;;  %s4455_s20 = sphi %s4513_s20, %s6880_s20   ;;  %s4451_s19 = sphi %s4511_s19, %s6879_s19   ;;  %s4447_s18 = sphi %s4509_s18, %s6878_s18   ;;  %s4443_s17 = sphi %s4507_s17, %s6877_s17   ;;  %s4439_s16 = sphi %s4505_s16, %s6876_s16   ;;  %s4435_s15 = sphi %s4503_s15, %s6875_s15   ;;  %s4431_s14 = sphi %s4501_s14, %s6874_s14   ;;  %s4427_s13 = sphi %s4499_s13, %s6873_s13   ;;  %s4423_s12 = sphi %s4497_s12, %s6872_s12  }
   0xa   : > { %6577 = sst [smem:[#allocation10_spill]] %s4443_s17  ;;  %p29_p0 = scmp.ge.s32.totalorder %s28_s25, 2 }
   0xb   : > { %6578 = sst [smem:[#allocation11_spill]] %s4447_s18  ;;  %s31_s26 = sadd.s32 1, %s4459_s21 }
   0xc   : > { %6579 = sst [smem:[#allocation12_spill]] %s4451_s19  ;;  %s3533_s27 = sadd.s32 4294967295, %s4471_s24  }
   0xd   : > { %s6885_s26 = smov (!%p29_p0, %s31_s26), %s4459_s21  ;;  %s35_s28 = sadd.s32 1, %s4463_s22 }
   0xe   : > { %p57_p1 = scmp.ne.s32.totalorder %s4435_s15, %s4431_s14  ;;  %p33_p2 = scmp.ge.s32.totalorder %s6885_s26, 2 }
   0xf   : > { %p58_p3 = scmp.eq.s32.totalorder %s4471_s24, 0  ;;  %s6887_s25 = smov (%p29_p0, %s28_s25), 0 }
  0x10   : > { %s6889_s26 = smov (%p33_p2, %s6885_s26), 0  ;;  %s6891_s28 = smov (!%p33_p2, %s35_s28), %s4463_s22 }
  0x11   : > { %s39_s29 = sadd.s32 1, %s4467_s23  ;;  %p4579_p4 = por %p58_p3, %p57_p1 }
  0x12   : > { %p37_p5 = scmp.ge.s32.totalorder %s6891_s28, 2  ;;  %p87_p6 = scmp.ne.s32.totalorder %s4427_s13, %s4423_s12 }
  0x13   : > { %p151_p7 = scmp.eq.s32.totalorder %s3533_s27, 15  ;;  %s44_s6 = ssub.s32 %s4459_s21, %s6889_s26 }
  0x14   : > { %s6893_s28 = smov (%p37_p5, %s6891_s28), 0  ;;  %s6895_s29 = smov (!%p37_p5, %s39_s29), %s4467_s23 }
  0x15   : > { %p4588_p8 = por %p87_p6, %p58_p3  ;;  %p41_p9 = scmp.ge.s32.totalorder %s6895_s29, 2 }
  0x16   : > { %p4595_p10 = por %p151_p7, %p57_p1  ;;  %s74_s7 = ssub.s32 %s4455_s20, %s6887_s25 }
  0x17   : > { %s6897_s29 = smov (%p41_p9, %s6895_s29), 0  ;;  %s46_s8 = ssub.s32 %s4463_s22, %s6893_s28 }
  0x18   : > { %s50_s9 = sadd.s32 1, %s4435_s15  ;;  %s43_s10 = ssub.s32 %s4467_s23, %s6897_s29 }
  0x19   : > { %s80_s11 = sadd.s32 1, %s4427_s13  ;;  %s45_s27 = sor.u32 %s44_s6, %s43_s10 }
  0x1a   : > { %s75_s3 = sor.u32 %s74_s7, %s43_s10  ;;  %s47_s18 = sor.u32 %s46_s8, %s45_s27 }
  0x1b   : > { %s77_s19 = sor.u32 %s75_s3, %s46_s8  ;;  %p48_p11 = scmp.eq.s32.totalorder %s47_s18, 0 }
  0x1c   : > { %p78_p12 = scmp.eq.s32.totalorder %s77_s19, 0  ;;  %p3536_p13 = scmp.ge.s32.totalorder %s4471_s24, 16 }
  0x1d   : > { %s4612_s17 = scalar_select %p48_p11, %s4435_s15, %s50_s9  }
  0x1e   : > { %s4615_s16 = scalar_select %p78_p12, %s4427_s13, %s80_s11  }
  0x1f   : > { %173 = sbr.rel (%p3536_p13) target bundleno = 112 (0x70), region = 16 }
  0x26   : > { %176 = sbr.rel (!%p4579_p4) target bundleno = 61 (0x3d), region = 20  ;;  %s178_s6 = sand.u32 (%p4579_p4), 1, %s4435_s15  }
  0x27   : > { %s3614_s7 = sshll.u32 (%p4579_p4), %s4459_s21, 6  ;;  %s3537_s10 = sshll.u32 (%p4579_p4), %s178_s6, 8 }
  0x28   : > { %s183_s3 = sadd.s32 (%p4579_p4), %s4463_s22, %s3614_s7  ;;  %s3540_s18 = sshll.u32 (%p4579_p4), %s4467_s23, 7 }
  0x29   : > { %s185_s19 = sadd.s32 (%p4579_p4), %s3540_s18, %s183_s3  ;;  %s4632_s30 = scalar_lea.vmem (%p4579_p4), [#allocation5], %s3537_s10 }
  0x2a   : > { %s3541_s8 = sshll.u32 (%p4579_p4), %s185_s19, 3 }
  0x2b   : > { %s4627_s27 = scalar_lea.vmem (%p4579_p4), %s6414_s0, %s3541_s8 }
  0x2c   : > { %v277_v0 = vld [vmem:[%s4627_s27] sm:$0xff] (%p4579_p4)  ;;  %v279_v1 = vld [vmem:[%s4627_s27 + $0x10] sm:$0xff] (%p4579_p4) }
  0x2d   : > { %v281_v2 = vld [vmem:[%s4627_s27 + $0x20] sm:$0xff]  ;;  %278 = vst [vmem:[%s4632_s30] sm:$0xff] %v277_v0  ;;  %280 = vst [vmem:[%s4632_s30 + $0x8] sm:$0xff] %v279_v1  ;;  %v283_v3 = vld [vmem:[%s4627_s27 + $0x30] sm:$0xff] }
  0x2e   : > { %282 = vst [vmem:[%s4632_s30 + $0x10] sm:$0xff] %v281_v2  ;;  %v285_v4 = vld [vmem:[%s4627_s27 + $0x40] sm:$0xff]  ;;  %v287_v5 = vld [vmem:[%s4627_s27 + $0x50] sm:$0xff]  ;;  %284 = vst [vmem:[%s4632_s30 + $0x18] sm:$0xff] %v283_v3 }
  0x2f   : > { %286 = vst [vmem:[%s4632_s30 + $0x20] sm:$0xff] %v285_v4  ;;  %288 = vst [vmem:[%s4632_s30 + $0x28] sm:$0xff] %v287_v5  ;;  %v289_v6 = vld [vmem:[%s4627_s27 + $0x60] sm:$0xff]  ;;  %v291_v7 = vld [vmem:[%s4627_s27 + $0x70] sm:$0xff] }
  0x30   : > { %v293_v8 = vld [vmem:[%s4627_s27 + $0x80] sm:$0xff]  ;;  %290 = vst [vmem:[%s4632_s30 + $0x30] sm:$0xff] %v289_v6  ;;  %292 = vst [vmem:[%s4632_s30 + $0x38] sm:$0xff] %v291_v7  ;;  %v295_v9 = vld [vmem:[%s4627_s27 + $0x90] sm:$0xff] }
  0x31   : > { %294 = vst [vmem:[%s4632_s30 + $0x40] sm:$0xff] %v293_v8  ;;  %v297_v10 = vld [vmem:[%s4627_s27 + $0xa0] sm:$0xff]  ;;  %v299_v11 = vld [vmem:[%s4627_s27 + $0xb0] sm:$0xff]  ;;  %296 = vst [vmem:[%s4632_s30 + $0x48] sm:$0xff] %v295_v9 }
  0x32   : > { %298 = vst [vmem:[%s4632_s30 + $0x50] sm:$0xff] %v297_v10  ;;  %300 = vst [vmem:[%s4632_s30 + $0x58] sm:$0xff] %v299_v11  ;;  %v301_v12 = vld [vmem:[%s4627_s27 + $0xc0] sm:$0xff]  ;;  %v303_v13 = vld [vmem:[%s4627_s27 + $0xd0] sm:$0xff] }
  0x33   : > { %v305_v14 = vld [vmem:[%s4627_s27 + $0xe0] sm:$0xff]  ;;  %302 = vst [vmem:[%s4632_s30 + $0x60] sm:$0xff] %v301_v12  ;;  %304 = vst [vmem:[%s4632_s30 + $0x68] sm:$0xff] %v303_v13  ;;  %v307_v15 = vld [vmem:[%s4627_s27 + $0xf0] sm:$0xff] }
  0x34   : > { %306 = vst [vmem:[%s4632_s30 + $0x70] sm:$0xff] %v305_v14  ;;  %v309_v16 = vld [vmem:[%s4627_s27 + $0x100] sm:$0xff]  ;;  %v311_v17 = vld [vmem:[%s4627_s27 + $0x110] sm:$0xff]  ;;  %308 = vst [vmem:[%s4632_s30 + $0x78] sm:$0xff] %v307_v15 }
  0x35   : > { %310 = vst [vmem:[%s4632_s30 + $0x80] sm:$0xff] %v309_v16  ;;  %312 = vst [vmem:[%s4632_s30 + $0x88] sm:$0xff] %v311_v17  ;;  %v313_v18 = vld [vmem:[%s4627_s27 + $0x120] sm:$0xff]  ;;  %v315_v19 = vld [vmem:[%s4627_s27 + $0x130] sm:$0xff] }
  0x36   : > { %v317_v20 = vld [vmem:[%s4627_s27 + $0x140] sm:$0xff]  ;;  %314 = vst [vmem:[%s4632_s30 + $0x90] sm:$0xff] %v313_v18  ;;  %316 = vst [vmem:[%s4632_s30 + $0x98] sm:$0xff] %v315_v19  ;;  %v319_v21 = vld [vmem:[%s4627_s27 + $0x150] sm:$0xff] }
  0x37   : > { %318 = vst [vmem:[%s4632_s30 + $0xa0] sm:$0xff] %v317_v20  ;;  %v321_v22 = vld [vmem:[%s4627_s27 + $0x160] sm:$0xff]  ;;  %v323_v23 = vld [vmem:[%s4627_s27 + $0x170] sm:$0xff]  ;;  %320 = vst [vmem:[%s4632_s30 + $0xa8] sm:$0xff] %v319_v21 }
  0x38   : > { %322 = vst [vmem:[%s4632_s30 + $0xb0] sm:$0xff] %v321_v22  ;;  %324 = vst [vmem:[%s4632_s30 + $0xb8] sm:$0xff] %v323_v23  ;;  %v325_v24 = vld [vmem:[%s4627_s27 + $0x180] sm:$0xff]  ;;  %v327_v25 = vld [vmem:[%s4627_s27 + $0x190] sm:$0xff] }
  0x39   : > { %v329_v26 = vld [vmem:[%s4627_s27 + $0x1a0] sm:$0xff]  ;;  %326 = vst [vmem:[%s4632_s30 + $0xc0] sm:$0xff] %v325_v24  ;;  %328 = vst [vmem:[%s4632_s30 + $0xc8] sm:$0xff] %v327_v25  ;;  %v331_v27 = vld [vmem:[%s4627_s27 + $0x1b0] sm:$0xff] }
  0x3a   : > { %330 = vst [vmem:[%s4632_s30 + $0xd0] sm:$0xff] %v329_v26  ;;  %v333_v28 = vld [vmem:[%s4627_s27 + $0x1c0] sm:$0xff]  ;;  %v335_v29 = vld [vmem:[%s4627_s27 + $0x1d0] sm:$0xff]  ;;  %332 = vst [vmem:[%s4632_s30 + $0xd8] sm:$0xff] %v331_v27 }
  0x3b   : > { %334 = vst [vmem:[%s4632_s30 + $0xe0] sm:$0xff] %v333_v28  ;;  %336 = vst [vmem:[%s4632_s30 + $0xe8] sm:$0xff] %v335_v29  ;;  %v337_v30 = vld [vmem:[%s4627_s27 + $0x1e0] sm:$0xff]  ;;  %v339_v31 = vld [vmem:[%s4627_s27 + $0x1f0] sm:$0xff] }
  0x3c   : > { %338 = vst [vmem:[%s4632_s30 + $0xf0] sm:$0xff] %v337_v30  ;;  %340 = vst [vmem:[%s4632_s30 + $0xf8] sm:$0xff] %v339_v31 }
  0x3d PF: > { %346 = sbr.rel (!%p4588_p8) target bundleno = 84 (0x54), region = 58  ;;  %s348_s6 = sand.u32 (%p4588_p8), 1, %s4427_s13  }
  0x3e   : > { %s3615_s7 = sshll.u32 (%p4588_p8), %s4455_s20, 6  ;;  %s3542_s10 = sshll.u32 (%p4588_p8), %s348_s6, 8 }
  0x3f   : > { %s353_s3 = sadd.s32 (%p4588_p8), %s4463_s22, %s3615_s7  ;;  %s3545_s18 = sshll.u32 (%p4588_p8), %s4467_s23, 7 }
  0x40   : > { %s355_s19 = sadd.s32 (%p4588_p8), %s3545_s18, %s353_s3  ;;  %s4709_s30 = scalar_lea.vmem (%p4588_p8), [#allocation6], %s3542_s10 }
  0x41   : > { %s3546_s8 = sshll.u32 (%p4588_p8), %s355_s19, 3 }
  0x42   : > { %s4704_s27 = scalar_lea.vmem (%p4588_p8), %s6415_s1, %s3546_s8 }
  0x43   : > { %v447_v32 = vld [vmem:[%s4704_s27] sm:$0xff] (%p4588_p8)  ;;  %v449_v33 = vld [vmem:[%s4704_s27 + $0x10] sm:$0xff] (%p4588_p8) }
  0x44   : > { %v451_v34 = vld [vmem:[%s4704_s27 + $0x20] sm:$0xff]  ;;  %448 = vst [vmem:[%s4709_s30] sm:$0xff] %v447_v32  ;;  %450 = vst [vmem:[%s4709_s30 + $0x8] sm:$0xff] %v449_v33  ;;  %v453_v35 = vld [vmem:[%s4704_s27 + $0x30] sm:$0xff] }
  0x45   : > { %452 = vst [vmem:[%s4709_s30 + $0x10] sm:$0xff] %v451_v34  ;;  %v455_v36 = vld [vmem:[%s4704_s27 + $0x40] sm:$0xff]  ;;  %v457_v37 = vld [vmem:[%s4704_s27 + $0x50] sm:$0xff]  ;;  %454 = vst [vmem:[%s4709_s30 + $0x18] sm:$0xff] %v453_v35 }
  0x46   : > { %456 = vst [vmem:[%s4709_s30 + $0x20] sm:$0xff] %v455_v36  ;;  %458 = vst [vmem:[%s4709_s30 + $0x28] sm:$0xff] %v457_v37  ;;  %v459_v38 = vld [vmem:[%s4704_s27 + $0x60] sm:$0xff]  ;;  %v461_v39 = vld [vmem:[%s4704_s27 + $0x70] sm:$0xff] }
  0x47   : > { %v463_v40 = vld [vmem:[%s4704_s27 + $0x80] sm:$0xff]  ;;  %460 = vst [vmem:[%s4709_s30 + $0x30] sm:$0xff] %v459_v38  ;;  %462 = vst [vmem:[%s4709_s30 + $0x38] sm:$0xff] %v461_v39  ;;  %v465_v41 = vld [vmem:[%s4704_s27 + $0x90] sm:$0xff] }
  0x48   : > { %464 = vst [vmem:[%s4709_s30 + $0x40] sm:$0xff] %v463_v40  ;;  %v467_v42 = vld [vmem:[%s4704_s27 + $0xa0] sm:$0xff]  ;;  %v469_v43 = vld [vmem:[%s4704_s27 + $0xb0] sm:$0xff]  ;;  %466 = vst [vmem:[%s4709_s30 + $0x48] sm:$0xff] %v465_v41 }
  0x49   : > { %468 = vst [vmem:[%s4709_s30 + $0x50] sm:$0xff] %v467_v42  ;;  %470 = vst [vmem:[%s4709_s30 + $0x58] sm:$0xff] %v469_v43  ;;  %v471_v44 = vld [vmem:[%s4704_s27 + $0xc0] sm:$0xff]  ;;  %v473_v45 = vld [vmem:[%s4704_s27 + $0xd0] sm:$0xff] }
  0x4a   : > { %v475_v46 = vld [vmem:[%s4704_s27 + $0xe0] sm:$0xff]  ;;  %472 = vst [vmem:[%s4709_s30 + $0x60] sm:$0xff] %v471_v44  ;;  %474 = vst [vmem:[%s4709_s30 + $0x68] sm:$0xff] %v473_v45  ;;  %v477_v47 = vld [vmem:[%s4704_s27 + $0xf0] sm:$0xff] }
  0x4b   : > { %476 = vst [vmem:[%s4709_s30 + $0x70] sm:$0xff] %v475_v46  ;;  %v479_v48 = vld [vmem:[%s4704_s27 + $0x100] sm:$0xff]  ;;  %v481_v49 = vld [vmem:[%s4704_s27 + $0x110] sm:$0xff]  ;;  %478 = vst [vmem:[%s4709_s30 + $0x78] sm:$0xff] %v477_v47 }
  0x4c   : > { %480 = vst [vmem:[%s4709_s30 + $0x80] sm:$0xff] %v479_v48  ;;  %482 = vst [vmem:[%s4709_s30 + $0x88] sm:$0xff] %v481_v49  ;;  %v483_v50 = vld [vmem:[%s4704_s27 + $0x120] sm:$0xff]  ;;  %v485_v51 = vld [vmem:[%s4704_s27 + $0x130] sm:$0xff] }
  0x4d   : > { %v487_v52 = vld [vmem:[%s4704_s27 + $0x140] sm:$0xff]  ;;  %484 = vst [vmem:[%s4709_s30 + $0x90] sm:$0xff] %v483_v50  ;;  %486 = vst [vmem:[%s4709_s30 + $0x98] sm:$0xff] %v485_v51  ;;  %v489_v53 = vld [vmem:[%s4704_s27 + $0x150] sm:$0xff] }
  0x4e   : > { %488 = vst [vmem:[%s4709_s30 + $0xa0] sm:$0xff] %v487_v52  ;;  %v491_v54 = vld [vmem:[%s4704_s27 + $0x160] sm:$0xff]  ;;  %v493_v55 = vld [vmem:[%s4704_s27 + $0x170] sm:$0xff]  ;;  %490 = vst [vmem:[%s4709_s30 + $0xa8] sm:$0xff] %v489_v53 }
  0x4f   : > { %492 = vst [vmem:[%s4709_s30 + $0xb0] sm:$0xff] %v491_v54  ;;  %494 = vst [vmem:[%s4709_s30 + $0xb8] sm:$0xff] %v493_v55  ;;  %v495_v56 = vld [vmem:[%s4704_s27 + $0x180] sm:$0xff]  ;;  %v497_v57 = vld [vmem:[%s4704_s27 + $0x190] sm:$0xff] }
  0x50   : > { %v499_v58 = vld [vmem:[%s4704_s27 + $0x1a0] sm:$0xff]  ;;  %496 = vst [vmem:[%s4709_s30 + $0xc0] sm:$0xff] %v495_v56  ;;  %498 = vst [vmem:[%s4709_s30 + $0xc8] sm:$0xff] %v497_v57  ;;  %v501_v59 = vld [vmem:[%s4704_s27 + $0x1b0] sm:$0xff] }
  0x51   : > { %500 = vst [vmem:[%s4709_s30 + $0xd0] sm:$0xff] %v499_v58  ;;  %v503_v60 = vld [vmem:[%s4704_s27 + $0x1c0] sm:$0xff]  ;;  %v505_v61 = vld [vmem:[%s4704_s27 + $0x1d0] sm:$0xff]  ;;  %502 = vst [vmem:[%s4709_s30 + $0xd8] sm:$0xff] %v501_v59 }
  0x52   : > { %504 = vst [vmem:[%s4709_s30 + $0xe0] sm:$0xff] %v503_v60  ;;  %506 = vst [vmem:[%s4709_s30 + $0xe8] sm:$0xff] %v505_v61  ;;  %v507_v62 = vld [vmem:[%s4704_s27 + $0x1e0] sm:$0xff]  ;;  %v509_v63 = vld [vmem:[%s4704_s27 + $0x1f0] sm:$0xff] }
  0x53   : > { %508 = vst [vmem:[%s4709_s30 + $0xf0] sm:$0xff] %v507_v62  ;;  %510 = vst [vmem:[%s4709_s30 + $0xf8] sm:$0xff] %v509_v63 }
  0x54 PF: > { %516 = sbr.rel (!%p4588_p8) target bundleno = 112 (0x70), region = 96  ;;  %s518_s6 = sand.u32 (%p4588_p8), 1, %s4427_s13  }
  0x55   : > { %s3616_s7 = sshll.u32 (%p4588_p8), %s4455_s20, 6  ;;  %s3547_s10 = sshll.u32 (%p4588_p8), %s518_s6, 7 }
  0x56   : > { %s523_s3 = sadd.s32 (%p4588_p8), %s4463_s22, %s3616_s7  ;;  %s3550_s18 = sshll.u32 (%p4588_p8), %s4467_s23, 7 }
  0x57   : > { %s525_s19 = sadd.s32 (%p4588_p8), %s3550_s18, %s523_s3  ;;  %s4786_s4 = scalar_lea.vmem (%p4588_p8), [#allocation7], %s3547_s10 }
  0x58   : > { %s3551_s8 = sshll.u32 (%p4588_p8), %s525_s19, 2 }
  0x59   : > { %s4781_s27 = scalar_lea.vmem (%p4588_p8), %s6416_s2, %s3551_s8 }
  0x5a   : > { %v543_v0 = vld [vmem:[%s4781_s27] sm:$0xf] (%p4588_p8)  ;;  %v545_v1 = vld [vmem:[%s4781_s27 + $0x8] sm:$0xf] (%p4588_p8)  ;;  %v547_v2 = vld [vmem:[%s4781_s27 + $0x10] sm:$0xf] (%p4588_p8) }
  0x5b   : > { %544 = vst [vmem:[%s4786_s4] sm:$0xf] %v543_v0  ;;  %546 = vst [vmem:[%s4786_s4 + $0x4] sm:$0xf] %v545_v1  ;;  %v549_v3 = vld [vmem:[%s4781_s27 + $0x18] sm:$0xf] }
  0x5c   : > { %548 = vst [vmem:[%s4786_s4 + $0x8] sm:$0xf] %v547_v2  ;;  %v551_v4 = vld [vmem:[%s4781_s27 + $0x20] sm:$0xf]  ;;  %v553_v5 = vld [vmem:[%s4781_s27 + $0x28] sm:$0xf] }
  0x5d   : > { %550 = vst [vmem:[%s4786_s4 + $0xc] sm:$0xf] %v549_v3  ;;  %552 = vst [vmem:[%s4786_s4 + $0x10] sm:$0xf] %v551_v4  ;;  %v555_v6 = vld [vmem:[%s4781_s27 + $0x30] sm:$0xf] }
  0x5e   : > { %554 = vst [vmem:[%s4786_s4 + $0x14] sm:$0xf] %v553_v5  ;;  %v557_v7 = vld [vmem:[%s4781_s27 + $0x38] sm:$0xf]  ;;  %v559_v8 = vld [vmem:[%s4781_s27 + $0x40] sm:$0xf] }
  0x5f   : > { %556 = vst [vmem:[%s4786_s4 + $0x18] sm:$0xf] %v555_v6  ;;  %558 = vst [vmem:[%s4786_s4 + $0x1c] sm:$0xf] %v557_v7  ;;  %v561_v9 = vld [vmem:[%s4781_s27 + $0x48] sm:$0xf] }
  0x60   : > { %560 = vst [vmem:[%s4786_s4 + $0x20] sm:$0xf] %v559_v8  ;;  %v563_v10 = vld [vmem:[%s4781_s27 + $0x50] sm:$0xf]  ;;  %v565_v11 = vld [vmem:[%s4781_s27 + $0x58] sm:$0xf] }
  0x61   : > { %562 = vst [vmem:[%s4786_s4 + $0x24] sm:$0xf] %v561_v9  ;;  %564 = vst [vmem:[%s4786_s4 + $0x28] sm:$0xf] %v563_v10  ;;  %v567_v12 = vld [vmem:[%s4781_s27 + $0x60] sm:$0xf] }
  0x62   : > { %566 = vst [vmem:[%s4786_s4 + $0x2c] sm:$0xf] %v565_v11  ;;  %v569_v13 = vld [vmem:[%s4781_s27 + $0x68] sm:$0xf]  ;;  %v571_v14 = vld [vmem:[%s4781_s27 + $0x70] sm:$0xf] }
  0x63   : > { %568 = vst [vmem:[%s4786_s4 + $0x30] sm:$0xf] %v567_v12  ;;  %570 = vst [vmem:[%s4786_s4 + $0x34] sm:$0xf] %v569_v13  ;;  %v573_v15 = vld [vmem:[%s4781_s27 + $0x78] sm:$0xf] }
  0x64   : > { %572 = vst [vmem:[%s4786_s4 + $0x38] sm:$0xf] %v571_v14  ;;  %v575_v16 = vld [vmem:[%s4781_s27 + $0x80] sm:$0xf]  ;;  %v577_v17 = vld [vmem:[%s4781_s27 + $0x88] sm:$0xf] }
  0x65   : > { %574 = vst [vmem:[%s4786_s4 + $0x3c] sm:$0xf] %v573_v15  ;;  %576 = vst [vmem:[%s4786_s4 + $0x40] sm:$0xf] %v575_v16  ;;  %v579_v18 = vld [vmem:[%s4781_s27 + $0x90] sm:$0xf] }
  0x66   : > { %578 = vst [vmem:[%s4786_s4 + $0x44] sm:$0xf] %v577_v17  ;;  %v581_v19 = vld [vmem:[%s4781_s27 + $0x98] sm:$0xf]  ;;  %v583_v20 = vld [vmem:[%s4781_s27 + $0xa0] sm:$0xf] }
  0x67   : > { %580 = vst [vmem:[%s4786_s4 + $0x48] sm:$0xf] %v579_v18  ;;  %582 = vst [vmem:[%s4786_s4 + $0x4c] sm:$0xf] %v581_v19  ;;  %v585_v21 = vld [vmem:[%s4781_s27 + $0xa8] sm:$0xf] }
  0x68   : > { %584 = vst [vmem:[%s4786_s4 + $0x50] sm:$0xf] %v583_v20  ;;  %v587_v22 = vld [vmem:[%s4781_s27 + $0xb0] sm:$0xf]  ;;  %v589_v23 = vld [vmem:[%s4781_s27 + $0xb8] sm:$0xf] }
  0x69   : > { %586 = vst [vmem:[%s4786_s4 + $0x54] sm:$0xf] %v585_v21  ;;  %588 = vst [vmem:[%s4786_s4 + $0x58] sm:$0xf] %v587_v22  ;;  %v591_v24 = vld [vmem:[%s4781_s27 + $0xc0] sm:$0xf] }
  0x6a   : > { %590 = vst [vmem:[%s4786_s4 + $0x5c] sm:$0xf] %v589_v23  ;;  %v593_v25 = vld [vmem:[%s4781_s27 + $0xc8] sm:$0xf]  ;;  %v595_v26 = vld [vmem:[%s4781_s27 + $0xd0] sm:$0xf] }
  0x6b   : > { %592 = vst [vmem:[%s4786_s4 + $0x60] sm:$0xf] %v591_v24  ;;  %594 = vst [vmem:[%s4786_s4 + $0x64] sm:$0xf] %v593_v25  ;;  %v597_v27 = vld [vmem:[%s4781_s27 + $0xd8] sm:$0xf] }
  0x6c   : > { %596 = vst [vmem:[%s4786_s4 + $0x68] sm:$0xf] %v595_v26  ;;  %v599_v28 = vld [vmem:[%s4781_s27 + $0xe0] sm:$0xf]  ;;  %v601_v29 = vld [vmem:[%s4781_s27 + $0xe8] sm:$0xf] }
  0x6d   : > { %598 = vst [vmem:[%s4786_s4 + $0x6c] sm:$0xf] %v597_v27  ;;  %600 = vst [vmem:[%s4786_s4 + $0x70] sm:$0xf] %v599_v28  ;;  %v603_v30 = vld [vmem:[%s4781_s27 + $0xf0] sm:$0xf] }
  0x6e   : > { %602 = vst [vmem:[%s4786_s4 + $0x74] sm:$0xf] %v601_v29  ;;  %v605_v31 = vld [vmem:[%s4781_s27 + $0xf8] sm:$0xf]  ;;  %604 = vst [vmem:[%s4786_s4 + $0x78] sm:$0xf] %v603_v30 }
  0x6f   : > { %606 = vst [vmem:[%s4786_s4 + $0x7c] sm:$0xf] %v605_v31 }
  0x70 PF: > { %p3552_p0 = scmp.ge.s32.totalorder %s4471_s24, 1  ;;  %p692_p1 = scmp.lt.s32.totalorder %s4471_s24, 17 }
  0x72   : > { %p693_p2 = pnand %p3552_p0, %p692_p1 }
  0x74   : > { %696 = sbr.rel (%p693_p2) target bundleno = 1376 (0x560), region = 137 }
  0x7b   : > { %s699_s30 = sand.u32 1, %s4431_s14   ;;  %s706_s6 = sand.u32 1, %s4423_s12  }
  0x7c   : > { %s3553_s7 = sshll.u32 %s699_s30, 8  ;;  %s3554_s10 = sshll.u32 %s706_s6, 8 }
  0x7d   : > { %s3555_s3 = sshll.u32 %s706_s6, 7  ;;  %s3556_s18 = sshll.u32 %s699_s30, 7 }
  0x7e   : > { %s4853_s19 = scalar_lea.vmem [#allocation5], %s3553_s7  ;;  %s4855_s8 = scalar_lea.vmem [#allocation6], %s3554_s10 }
  0x7f   : > { %s4857_s9 = scalar_lea.vmem [#allocation7], %s3555_s3  ;;  %s4859_s11 = scalar_lea.vmem [#allocation8], %s3556_s18 }
  0x80   : > { %s6583_s27 = sld [smem:[#allocation9_spill]] }
  0x86   : > { %p3557_p3 = scmp.ne.s32.totalorder %s6583_s27, 0 }
  0x87   : > { %vm752_vm0 = vcmask (!%p3557_p3), 7168   ;;  %v4473_v32 = vmov (!%p3557_p3), -inf   ;;  %v4474_v33 = vmov (!%p3557_p3), 0.0  }
  0x88   : > { %751 = sbr.rel (%p3557_p3) target bundleno = 184 (0xb8), region = 153  ;;  %753 = vst.msk [vmem:[#allocation2] sm:$0xff] (!%p3557_p3), %vm752_vm0, %v4473_v32  ;;  %754 = vst.msk [vmem:[#allocation2 + $0x8] sm:$0xff] (!%p3557_p3), %vm752_vm0, %v4473_v32 }
  0x89   : > { %755 = vst.msk [vmem:[#allocation2 + $0x10] sm:$0xff] (!%p3557_p3), %vm752_vm0, %v4473_v32  ;;  %756 = vst.msk [vmem:[#allocation2 + $0x18] sm:$0xff] (!%p3557_p3), %vm752_vm0, %v4473_v32 }
  0x8a   : > { %757 = vst.msk [vmem:[#allocation2 + $0x20] sm:$0xff] (!%p3557_p3), %vm752_vm0, %v4473_v32  ;;  %758 = vst.msk [vmem:[#allocation2 + $0x28] sm:$0xff] (!%p3557_p3), %vm752_vm0, %v4473_v32 }
  0x8b   : > { %759 = vst.msk [vmem:[#allocation2 + $0x30] sm:$0xff] (!%p3557_p3), %vm752_vm0, %v4473_v32  ;;  %760 = vst.msk [vmem:[#allocation2 + $0x38] sm:$0xff] (!%p3557_p3), %vm752_vm0, %v4473_v32 }
  0x8c   : > { %761 = vst.msk [vmem:[#allocation2 + $0x40] sm:$0xff] (!%p3557_p3), %vm752_vm0, %v4473_v32  ;;  %762 = vst.msk [vmem:[#allocation2 + $0x48] sm:$0xff] (!%p3557_p3), %vm752_vm0, %v4473_v32 }
  0x8d   : > { %763 = vst.msk [vmem:[#allocation2 + $0x50] sm:$0xff] (!%p3557_p3), %vm752_vm0, %v4473_v32  ;;  %764 = vst.msk [vmem:[#allocation2 + $0x58] sm:$0xff] (!%p3557_p3), %vm752_vm0, %v4473_v32 }
  0x8e   : > { %765 = vst.msk [vmem:[#allocation2 + $0x60] sm:$0xff] (!%p3557_p3), %vm752_vm0, %v4473_v32  ;;  %766 = vst.msk [vmem:[#allocation2 + $0x68] sm:$0xff] (!%p3557_p3), %vm752_vm0, %v4473_v32 }
  0x8f   : > { %767 = vst.msk [vmem:[#allocation2 + $0x70] sm:$0xff] %vm752_vm0, %v4473_v32  ;;  %768 = vst.msk [vmem:[#allocation2 + $0x78] sm:$0xff] %vm752_vm0, %v4473_v32 }
  0x90   : > { %769 = vst.msk [vmem:[#allocation2 + $0x80] sm:$0xff] %vm752_vm0, %v4473_v32  ;;  %770 = vst.msk [vmem:[#allocation2 + $0x88] sm:$0xff] %vm752_vm0, %v4473_v32 }
  0x91   : > { %771 = vst.msk [vmem:[#allocation2 + $0x90] sm:$0xff] %vm752_vm0, %v4473_v32  ;;  %772 = vst.msk [vmem:[#allocation2 + $0x98] sm:$0xff] %vm752_vm0, %v4473_v32 }
  0x92   : > { %773 = vst.msk [vmem:[#allocation2 + $0xa0] sm:$0xff] %vm752_vm0, %v4473_v32  ;;  %774 = vst.msk [vmem:[#allocation2 + $0xa8] sm:$0xff] %vm752_vm0, %v4473_v32 }
  0x93   : > { %775 = vst.msk [vmem:[#allocation2 + $0xb0] sm:$0xff] %vm752_vm0, %v4473_v32  ;;  %776 = vst.msk [vmem:[#allocation2 + $0xb8] sm:$0xff] %vm752_vm0, %v4473_v32 }
  0x94   : > { %777 = vst.msk [vmem:[#allocation2 + $0xc0] sm:$0xff] %vm752_vm0, %v4473_v32  ;;  %778 = vst.msk [vmem:[#allocation2 + $0xc8] sm:$0xff] %vm752_vm0, %v4473_v32 }
  0x95   : > { %779 = vst.msk [vmem:[#allocation2 + $0xd0] sm:$0xff] %vm752_vm0, %v4473_v32  ;;  %780 = vst.msk [vmem:[#allocation2 + $0xd8] sm:$0xff] %vm752_vm0, %v4473_v32 }
  0x96   : > { %781 = vst.msk [vmem:[#allocation2 + $0xe0] sm:$0xff] %vm752_vm0, %v4473_v32  ;;  %782 = vst.msk [vmem:[#allocation2 + $0xe8] sm:$0xff] %vm752_vm0, %v4473_v32 }
  0x97   : > { %783 = vst.msk [vmem:[#allocation2 + $0xf0] sm:$0xff] %vm752_vm0, %v4473_v32  ;;  %784 = vst.msk [vmem:[#allocation2 + $0xf8] sm:$0xff] %vm752_vm0, %v4473_v32 }
  0x98   : > { %785 = vst.msk [vmem:[#allocation3] sm:$0xff] %vm752_vm0, %v4474_v33  ;;  %786 = vst.msk [vmem:[#allocation3 + $0x8] sm:$0xff] %vm752_vm0, %v4474_v33 }
  0x99   : > { %787 = vst.msk [vmem:[#allocation3 + $0x10] sm:$0xff] %vm752_vm0, %v4474_v33  ;;  %788 = vst.msk [vmem:[#allocation3 + $0x18] sm:$0xff] %vm752_vm0, %v4474_v33 }
  0x9a   : > { %789 = vst.msk [vmem:[#allocation3 + $0x20] sm:$0xff] %vm752_vm0, %v4474_v33  ;;  %790 = vst.msk [vmem:[#allocation3 + $0x28] sm:$0xff] %vm752_vm0, %v4474_v33 }
  0x9b   : > { %791 = vst.msk [vmem:[#allocation3 + $0x30] sm:$0xff] %vm752_vm0, %v4474_v33  ;;  %792 = vst.msk [vmem:[#allocation3 + $0x38] sm:$0xff] %vm752_vm0, %v4474_v33 }
  0x9c   : > { %793 = vst.msk [vmem:[#allocation3 + $0x40] sm:$0xff] %vm752_vm0, %v4474_v33  ;;  %794 = vst.msk [vmem:[#allocation3 + $0x48] sm:$0xff] %vm752_vm0, %v4474_v33 }
  0x9d   : > { %795 = vst.msk [vmem:[#allocation3 + $0x50] sm:$0xff] %vm752_vm0, %v4474_v33  ;;  %796 = vst.msk [vmem:[#allocation3 + $0x58] sm:$0xff] %vm752_vm0, %v4474_v33 }
  0x9e   : > { %797 = vst.msk [vmem:[#allocation3 + $0x60] sm:$0xff] %vm752_vm0, %v4474_v33  ;;  %798 = vst.msk [vmem:[#allocation3 + $0x68] sm:$0xff] %vm752_vm0, %v4474_v33 }
  0x9f   : > { %799 = vst.msk [vmem:[#allocation3 + $0x70] sm:$0xff] %vm752_vm0, %v4474_v33  ;;  %800 = vst.msk [vmem:[#allocation3 + $0x78] sm:$0xff] %vm752_vm0, %v4474_v33 }
  0xa0   : > { %801 = vst.msk [vmem:[#allocation3 + $0x80] sm:$0xff] %vm752_vm0, %v4474_v33  ;;  %802 = vst.msk [vmem:[#allocation3 + $0x88] sm:$0xff] %vm752_vm0, %v4474_v33 }
  0xa1   : > { %803 = vst.msk [vmem:[#allocation3 + $0x90] sm:$0xff] %vm752_vm0, %v4474_v33  ;;  %804 = vst.msk [vmem:[#allocation3 + $0x98] sm:$0xff] %vm752_vm0, %v4474_v33 }
  0xa2   : > { %805 = vst.msk [vmem:[#allocation3 + $0xa0] sm:$0xff] %vm752_vm0, %v4474_v33  ;;  %806 = vst.msk [vmem:[#allocation3 + $0xa8] sm:$0xff] %vm752_vm0, %v4474_v33 }
  0xa3   : > { %807 = vst.msk [vmem:[#allocation3 + $0xb0] sm:$0xff] %vm752_vm0, %v4474_v33  ;;  %808 = vst.msk [vmem:[#allocation3 + $0xb8] sm:$0xff] %vm752_vm0, %v4474_v33 }
  0xa4   : > { %809 = vst.msk [vmem:[#allocation3 + $0xc0] sm:$0xff] %vm752_vm0, %v4474_v33  ;;  %810 = vst.msk [vmem:[#allocation3 + $0xc8] sm:$0xff] %vm752_vm0, %v4474_v33 }
  0xa5   : > { %811 = vst.msk [vmem:[#allocation3 + $0xd0] sm:$0xff] %vm752_vm0, %v4474_v33  ;;  %812 = vst.msk [vmem:[#allocation3 + $0xd8] sm:$0xff] %vm752_vm0, %v4474_v33 }
  0xa6   : > { %813 = vst.msk [vmem:[#allocation3 + $0xe0] sm:$0xff] %vm752_vm0, %v4474_v33  ;;  %814 = vst.msk [vmem:[#allocation3 + $0xe8] sm:$0xff] %vm752_vm0, %v4474_v33 }
  0xa7   : > { %815 = vst.msk [vmem:[#allocation3 + $0xf0] sm:$0xff] %vm752_vm0, %v4474_v33  ;;  %816 = vst.msk [vmem:[#allocation3 + $0xf8] sm:$0xff] %vm752_vm0, %v4474_v33 }
  0xa8   : > { %817 = vst [vmem:[#allocation4] sm:$0xff] %v4474_v33  ;;  %818 = vst [vmem:[#allocation4 + $0x8] sm:$0xff] %v4474_v33 }
  0xa9   : > { %819 = vst [vmem:[#allocation4 + $0x10] sm:$0xff] %v4474_v33  ;;  %820 = vst [vmem:[#allocation4 + $0x18] sm:$0xff] %v4474_v33 }
  0xaa   : > { %821 = vst [vmem:[#allocation4 + $0x20] sm:$0xff] %v4474_v33  ;;  %822 = vst [vmem:[#allocation4 + $0x28] sm:$0xff] %v4474_v33 }
  0xab   : > { %823 = vst [vmem:[#allocation4 + $0x30] sm:$0xff] %v4474_v33  ;;  %824 = vst [vmem:[#allocation4 + $0x38] sm:$0xff] %v4474_v33 }
  0xac   : > { %825 = vst [vmem:[#allocation4 + $0x40] sm:$0xff] %v4474_v33  ;;  %826 = vst [vmem:[#allocation4 + $0x48] sm:$0xff] %v4474_v33 }
  0xad   : > { %827 = vst [vmem:[#allocation4 + $0x50] sm:$0xff] %v4474_v33  ;;  %828 = vst [vmem:[#allocation4 + $0x58] sm:$0xff] %v4474_v33 }
  0xae   : > { %829 = vst [vmem:[#allocation4 + $0x60] sm:$0xff] %v4474_v33  ;;  %830 = vst [vmem:[#allocation4 + $0x68] sm:$0xff] %v4474_v33 }
  0xaf   : > { %831 = vst [vmem:[#allocation4 + $0x70] sm:$0xff] %v4474_v33  ;;  %832 = vst [vmem:[#allocation4 + $0x78] sm:$0xff] %v4474_v33 }
  0xb0   : > { %833 = vst [vmem:[#allocation4 + $0x80] sm:$0xff] %v4474_v33  ;;  %834 = vst [vmem:[#allocation4 + $0x88] sm:$0xff] %v4474_v33 }
  0xb1   : > { %835 = vst [vmem:[#allocation4 + $0x90] sm:$0xff] %v4474_v33  ;;  %836 = vst [vmem:[#allocation4 + $0x98] sm:$0xff] %v4474_v33 }
  0xb2   : > { %837 = vst [vmem:[#allocation4 + $0xa0] sm:$0xff] %v4474_v33  ;;  %838 = vst [vmem:[#allocation4 + $0xa8] sm:$0xff] %v4474_v33 }
  0xb3   : > { %839 = vst [vmem:[#allocation4 + $0xb0] sm:$0xff] %v4474_v33  ;;  %840 = vst [vmem:[#allocation4 + $0xb8] sm:$0xff] %v4474_v33 }
  0xb4   : > { %841 = vst [vmem:[#allocation4 + $0xc0] sm:$0xff] %v4474_v33  ;;  %842 = vst [vmem:[#allocation4 + $0xc8] sm:$0xff] %v4474_v33 }
  0xb5   : > { %843 = vst [vmem:[#allocation4 + $0xd0] sm:$0xff] %v4474_v33  ;;  %844 = vst [vmem:[#allocation4 + $0xd8] sm:$0xff] %v4474_v33 }
  0xb6   : > { %845 = vst [vmem:[#allocation4 + $0xe0] sm:$0xff] %v4474_v33  ;;  %846 = vst [vmem:[#allocation4 + $0xe8] sm:$0xff] %v4474_v33 }
  0xb7   : > { %847 = vst [vmem:[#allocation4 + $0xf0] sm:$0xff] %v4474_v33  ;;  %848 = vst [vmem:[#allocation4 + $0xf8] sm:$0xff] %v4474_v33 }
  0xb8 PF: > { %v897_v34 = vld [vmem:[%s4855_s8 + $0x80] sm:$0xff]  ;;  %v898_v35 = vld [vmem:[%s4855_s8 + $0x88] sm:$0xff]  ;;  %v899_v39 = vld [vmem:[%s4855_s8 + $0x90] sm:$0xff]  ;;  %vm2130_vm1 = vcmask 7168   ;;  %s6866_s12 = sld [smem:[#allocation9_spill]] }
  0xb9   : > { %v881_v36 = vld [vmem:[%s4855_s8] sm:$0xff]  ;;  %v3953_v37 = vpack.c.bf16 %v898_v35, %v897_v34  ;;  %v882_v38 = vld [vmem:[%s4855_s8 + $0x8] sm:$0xff]  ;;  %v900_v40 = vld [vmem:[%s4855_s8 + $0x98] sm:$0xff] }
  0xba   : > { %v3955_v41 = vpack.c.bf16 %v882_v38, %v881_v36  ;;  %v3957_v42 = vpack.c.bf16 %v900_v40, %v899_v39  ;;  %v883_v43 = vld [vmem:[%s4855_s8 + $0x10] sm:$0xff]  ;;  %v884_v44 = vld [vmem:[%s4855_s8 + $0x18] sm:$0xff]  ;;  %v901_v45 = vld [vmem:[%s4855_s8 + $0xa0] sm:$0xff] }
  0xbb   : > { %3954 = vmatprep.subr.bf16.mxu0 %v3953_v37  ;;  %v902_v46 = vld [vmem:[%s4855_s8 + $0xa8] sm:$0xff]  ;;  %v3959_v47 = vpack.c.bf16 %v884_v44, %v883_v43  ;;  %v849_v49 = vld [vmem:[%s4853_s19] sm:$0xff]  ;;  %v903_v52 = vld [vmem:[%s4855_s8 + $0xb0] sm:$0xff] }
  0xbc   : > { %3956 = vmatpush3.bf16.xpose.msra.mxu0 %v3955_v41  ;;  %v3961_v48 = vpack.c.bf16 %v902_v46, %v901_v45  ;;  %3777 = vmatprep.mubr.f32.mxu0 %v849_v49  ;;  %v885_v50 = vld [vmem:[%s4855_s8 + $0x20] sm:$0xff]  ;;  %v886_v51 = vld [vmem:[%s4855_s8 + $0x28] sm:$0xff]  ;;  %v904_v53 = vld [vmem:[%s4855_s8 + $0xb8] sm:$0xff] }
  0xbd   : > { %3958 = vmatprep.subr.bf16.mxu0 %v3957_v42  ;;  %v3963_v54 = vpack.c.bf16 %v886_v51, %v885_v50  ;;  %v3965_v55 = vpack.c.bf16 %v904_v53, %v903_v52  ;;  %v887_v56 = vld [vmem:[%s4855_s8 + $0x30] sm:$0xff]  ;;  %v888_v57 = vld [vmem:[%s4855_s8 + $0x38] sm:$0xff]  ;;  %v905_v58 = vld [vmem:[%s4855_s8 + $0xc0] sm:$0xff] }
  0xbe   : > { %v906_v59 = vld [vmem:[%s4855_s8 + $0xc8] sm:$0xff]  ;;  %v3967_v60 = vpack.c.bf16 %v888_v57, %v887_v56  ;;  %v889_v62 = vld [vmem:[%s4855_s8 + $0x40] sm:$0xff]  ;;  %v907_v0 = vld [vmem:[%s4855_s8 + $0xd0] sm:$0xff]  ;;  %p3574_p4 = scmp.ne.s32.totalorder %s6866_s12, 1 }
  0xbf   : > { %v3969_v61 = vpack.c.bf16 %v906_v59, %v905_v58  ;;  %v890_v63 = vld [vmem:[%s4855_s8 + $0x48] sm:$0xff]  ;;  %v908_v1 = vld [vmem:[%s4855_s8 + $0xd8] sm:$0xff]  ;;  %v891_v4 = vld [vmem:[%s4855_s8 + $0x50] sm:$0xff] }
  0xc0   : > { %v3971_v2 = vpack.c.bf16 %v890_v63, %v889_v62  ;;  %v3973_v3 = vpack.c.bf16 %v908_v1, %v907_v0  ;;  %v892_v5 = vld [vmem:[%s4855_s8 + $0x58] sm:$0xff]  ;;  %v909_v6 = vld [vmem:[%s4855_s8 + $0xe0] sm:$0xff]  ;;  %v910_v7 = vld [vmem:[%s4855_s8 + $0xe8] sm:$0xff] }
  0xc1   : > { %v3975_v8 = vpack.c.bf16 %v892_v5, %v891_v4  ;;  %v3977_v9 = vpack.c.bf16 %v910_v7, %v909_v6  ;;  %v893_v10 = vld [vmem:[%s4855_s8 + $0x60] sm:$0xff]  ;;  %v894_v11 = vld [vmem:[%s4855_s8 + $0x68] sm:$0xff]  ;;  %v911_v12 = vld [vmem:[%s4855_s8 + $0xf0] sm:$0xff] }
  0xc2   : > { %v912_v13 = vld [vmem:[%s4855_s8 + $0xf8] sm:$0xff]  ;;  %v3979_v14 = vpack.c.bf16 %v894_v11, %v893_v10  ;;  %v895_v16 = vld [vmem:[%s4855_s8 + $0x70] sm:$0xff]  ;;  %v850_v19 = vld [vmem:[%s4853_s19 + $0x8] sm:$0xff] }
  0xc3   : > { %v3981_v15 = vpack.c.bf16 %v912_v13, %v911_v12  ;;  %v896_v17 = vld [vmem:[%s4855_s8 + $0x78] sm:$0xff]  ;;  %v851_v20 = vld [vmem:[%s4853_s19 + $0x10] sm:$0xff]  ;;  %v853_v22 = vld [vmem:[%s4853_s19 + $0x20] sm:$0xff] }
  0xc4   : > { %3960 = vmatpush3.bf16.xpose.msra.mxu0 %v3959_v47  ;;  %v3983_v18 = vpack.c.bf16 %v896_v17, %v895_v16  ;;  %v852_v21 = vld [vmem:[%s4853_s19 + $0x18] sm:$0xff]  ;;  %v854_v23 = vld [vmem:[%s4853_s19 + $0x28] sm:$0xff]  ;;  %v855_v24 = vld [vmem:[%s4853_s19 + $0x30] sm:$0xff] }
  0xc5   : > { %3962 = vmatprep.subr.bf16.mxu0 %v3961_v48  ;;  %v856_v25 = vld [vmem:[%s4853_s19 + $0x38] sm:$0xff]  ;;  %v857_v26 = vld [vmem:[%s4853_s19 + $0x40] sm:$0xff]  ;;  %v858_v27 = vld [vmem:[%s4853_s19 + $0x48] sm:$0xff] }
  0xc6   : > { %v859_v28 = vld [vmem:[%s4853_s19 + $0x50] sm:$0xff]  ;;  %v860_v29 = vld [vmem:[%s4853_s19 + $0x58] sm:$0xff]  ;;  %v861_v30 = vld [vmem:[%s4853_s19 + $0x60] sm:$0xff] }
  0xc7   : > { %v862_v31 = vld [vmem:[%s4853_s19 + $0x68] sm:$0xff]  ;;  %v863_v32 = vld [vmem:[%s4853_s19 + $0x70] sm:$0xff]  ;;  %v864_v33 = vld [vmem:[%s4853_s19 + $0x78] sm:$0xff] }
  0xc8   : > { %v865_v34 = vld [vmem:[%s4853_s19 + $0x80] sm:$0xff]  ;;  %v866_v35 = vld [vmem:[%s4853_s19 + $0x88] sm:$0xff]  ;;  %v867_v36 = vld [vmem:[%s4853_s19 + $0x90] sm:$0xff] }
  0xc9   : > { %v868_v37 = vld [vmem:[%s4853_s19 + $0x98] sm:$0xff]  ;;  %v869_v38 = vld [vmem:[%s4853_s19 + $0xa0] sm:$0xff]  ;;  %v870_v39 = vld [vmem:[%s4853_s19 + $0xa8] sm:$0xff] }
  0xca   : > { %v871_v40 = vld [vmem:[%s4853_s19 + $0xb0] sm:$0xff]  ;;  %v872_v41 = vld [vmem:[%s4853_s19 + $0xb8] sm:$0xff]  ;;  %v873_v42 = vld [vmem:[%s4853_s19 + $0xc0] sm:$0xff] }
  0xcb   : > { %v874_v43 = vld [vmem:[%s4853_s19 + $0xc8] sm:$0xff]  ;;  %v875_v44 = vld [vmem:[%s4853_s19 + $0xd0] sm:$0xff]  ;;  %v876_v45 = vld [vmem:[%s4853_s19 + $0xd8] sm:$0xff] }
  0xcc   : > { %3964 = vmatpush3.bf16.xpose.msra.mxu0 %v3963_v54  ;;  %v877_v46 = vld [vmem:[%s4853_s19 + $0xe0] sm:$0xff]  ;;  %v878_v47 = vld [vmem:[%s4853_s19 + $0xe8] sm:$0xff]  ;;  %v879_v48 = vld [vmem:[%s4853_s19 + $0xf0] sm:$0xff] }
  0xcd   : > { %3966 = vmatprep.subr.bf16.mxu0 %v3965_v55 }
  0xd4   : > { %3968 = vmatpush3.bf16.xpose.msra.mxu0 %v3967_v60 }
  0xd5   : > { %3970 = vmatprep.subr.bf16.mxu0 %v3969_v61 }
  0xdc   : > { %3972 = vmatpush3.bf16.xpose.msra.mxu0 %v3971_v2 }
  0xdd   : > { %3974 = vmatprep.subr.bf16.mxu0 %v3973_v3 }
  0xe4   : > { %3976 = vmatpush3.bf16.xpose.msra.mxu0 %v3975_v8 }
  0xe5   : > { %3978 = vmatprep.subr.bf16.mxu0 %v3977_v9 }
  0xec   : > { %3980 = vmatpush3.bf16.xpose.msra.mxu0 %v3979_v14 }
  0xed   : > { %3982 = vmatprep.subr.bf16.mxu0 %v3981_v15 }
  0xf4   : > { %3984 = vmatpush3.bf16.xpose.msra.mxu0 %v3983_v18 }
  0xfb   : > { %3778 = vmatmul.mubr.f32.vlgmr.msra.gmra.mrb[0].mxu0 %v849_v49  ;;  %v880_v49 = vld [vmem:[%s4853_s19 + $0xf8] sm:$0xff] }
  0xfc   : > { %3779 = vmatprep.mubr.f32.mxu0 %v850_v19 }
  0xff   : > { %3780 = vmatmul.mubr.f32.gmra.mrb[2].mxu0 %v850_v19 }
 0x100   : > { %3781 = vmatprep.mubr.f32.mxu0 %v851_v20 }
 0x103   : > { %3782 = vmatmul.mubr.f32.gmra.mrb[4].mxu0 %v851_v20 }
 0x104   : > { %3783 = vmatprep.mubr.f32.mxu0 %v852_v21 }
 0x107   : > { %3784 = vmatmul.mubr.f32.gmra.mrb[6].mxu0 %v852_v21 }
 0x108   : > { %3785 = vmatprep.mubr.f32.mxu0 %v853_v22 }
 0x10b   : > { %3786 = vmatmul.mubr.f32.gmra.mrb[8].mxu0 %v853_v22 }
 0x10c   : > { %3787 = vmatprep.mubr.f32.mxu0 %v854_v23 }
 0x10f   : > { %3788 = vmatmul.mubr.f32.gmra.mrb[10].mxu0 %v854_v23 }
 0x110   : > { %3789 = vmatprep.mubr.f32.mxu0 %v855_v24 }
 0x113   : > { %3790 = vmatmul.mubr.f32.gmra.mrb[12].mxu0 %v855_v24 }
 0x114   : > { %3791 = vmatprep.mubr.f32.mxu0 %v856_v25 }
 0x117   : > { %3792 = vmatmul.mubr.f32.gmra.mrb[14].mxu0 %v856_v25 }
 0x118   : > { %3793 = vmatprep.mubr.f32.mxu0 %v857_v26 }
 0x11b   : > { %3794 = vmatmul.mubr.f32.gmra.mrb[16].mxu0 %v857_v26  ;;  %v4475_v26 = vmov 0  }
 0x11c   : > { %3795 = vmatprep.mubr.f32.mxu0 %v858_v27  ;;  %4093 = vset.pattern.permute.xlu0 %v4475_v26 }
 0x11d   : > { %4094 = vset.pattern.permute.xlu1 %v4475_v26 }
 0x11f   : > { %3796 = vmatmul.mubr.f32.gmra.mrb[18].mxu0 %v858_v27 }
 0x120   : > { %3797 = vmatprep.mubr.f32.mxu0 %v859_v28 }
 0x123   : > { %3798 = vmatmul.mubr.f32.gmra.mrb[20].mxu0 %v859_v28 }
 0x124   : > { %3799 = vmatprep.mubr.f32.mxu0 %v860_v29 }
 0x127   : > { %3800 = vmatmul.mubr.f32.gmra.mrb[22].mxu0 %v860_v29 }
 0x128   : > { %3801 = vmatprep.mubr.f32.mxu0 %v861_v30 }
 0x12b   : > { %3802 = vmatmul.mubr.f32.gmra.mrb[24].mxu0 %v861_v30 }
 0x12c   : > { %3803 = vmatprep.mubr.f32.mxu0 %v862_v31 }
 0x12f   : > { %3804 = vmatmul.mubr.f32.gmra.mrb[26].mxu0 %v862_v31 }
 0x130   : > { %3805 = vmatprep.mubr.f32.mxu0 %v863_v32 }
 0x133   : > { %3806 = vmatmul.mubr.f32.gmra.mrb[28].mxu0 %v863_v32 }
 0x134   : > { %3807 = vmatprep.mubr.f32.mxu0 %v864_v33 }
 0x137   : > { %3808 = vmatmul.mubr.f32.gmra.mrb[30].mxu0 %v864_v33 }
 0x138   : > { %3809 = vmatprep.mubr.f32.mxu0 %v865_v34 }
 0x13b   : > { %3810 = vmatmul.mubr.f32.gmra.mrb[32].mxu0 %v865_v34 }
 0x13c   : > { %3811 = vmatprep.mubr.f32.mxu0 %v866_v35 }
 0x13f   : > { %3812 = vmatmul.mubr.f32.gmra.mrb[34].mxu0 %v866_v35 }
 0x140   : > { %3813 = vmatprep.mubr.f32.mxu0 %v867_v36 }
 0x143   : > { %3814 = vmatmul.mubr.f32.gmra.mrb[36].mxu0 %v867_v36 }
 0x144   : > { %3815 = vmatprep.mubr.f32.mxu0 %v868_v37 }
 0x147   : > { %3816 = vmatmul.mubr.f32.gmra.mrb[38].mxu0 %v868_v37 }
 0x148   : > { %3817 = vmatprep.mubr.f32.mxu0 %v869_v38 }
 0x14b   : > { %3818 = vmatmul.mubr.f32.gmra.mrb[40].mxu0 %v869_v38 }
 0x14c   : > { %3819 = vmatprep.mubr.f32.mxu0 %v870_v39 }
 0x14f   : > { %3820 = vmatmul.mubr.f32.gmra.mrb[42].mxu0 %v870_v39 }
 0x150   : > { %3821 = vmatprep.mubr.f32.mxu0 %v871_v40 }
 0x153   : > { %3822 = vmatmul.mubr.f32.gmra.mrb[44].mxu0 %v871_v40 }
 0x154   : > { %3823 = vmatprep.mubr.f32.mxu0 %v872_v41 }
 0x157   : > { %3824 = vmatmul.mubr.f32.gmra.mrb[46].mxu0 %v872_v41 }
 0x158   : > { %3825 = vmatprep.mubr.f32.mxu0 %v873_v42 }
 0x15b   : > { %3826 = vmatmul.mubr.f32.gmra.mrb[48].mxu0 %v873_v42 }
 0x15c   : > { %3827 = vmatprep.mubr.f32.mxu0 %v874_v43 }
 0x15f   : > { %3828 = vmatmul.mubr.f32.gmra.mrb[50].mxu0 %v874_v43 }
 0x160   : > { %3829 = vmatprep.mubr.f32.mxu0 %v875_v44 }
 0x163   : > { %3830 = vmatmul.mubr.f32.gmra.mrb[52].mxu0 %v875_v44 }
 0x164   : > { %3831 = vmatprep.mubr.f32.mxu0 %v876_v45 }
 0x167   : > { %3832 = vmatmul.mubr.f32.gmra.mrb[54].mxu0 %v876_v45 }
 0x168   : > { %3833 = vmatprep.mubr.f32.mxu0 %v877_v46 }
 0x16b   : > { %3834 = vmatmul.mubr.f32.gmra.mrb[56].mxu0 %v877_v46 }
 0x16c   : > { %3835 = vmatprep.mubr.f32.mxu0 %v878_v47 }
 0x16f   : > { %3836 = vmatmul.mubr.f32.gmra.mrb[58].mxu0 %v878_v47 }
 0x170   : > { %3837 = vmatprep.mubr.f32.mxu0 %v879_v48 }
 0x173   : > { %3838 = vmatmul.mubr.f32.gmra.mrb[60].mxu0 %v879_v48 }
 0x174   : > { %3839 = vmatprep.mubr.f32.mxu0 %v880_v49 }
 0x177   : > { %3840 = vmatmul.mubr.f32.gmra.mrb[62].mxu0 %v880_v49 }
 0x1ce   : > { %v1011_v50 = vpop.f32.mrb[0].mxu0 }
 0x1cf   : > { %v5054_v51 = vmul.f32 0.088388346, %v1011_v50  ;;  %v1013_v52 = vpop.f32.mrb[1].mxu0 }
 0x1d0   : > { %v5056_v53 = vmul.f32 0.088388346, %v1013_v52 }
 0x1d1   : > { %v6467_v54 = vfloor.f32 %v5054_v51 }
 0x1d2   : > { %v6464_v55 = vfloor.f32 %v5056_v53  ;;  %v1017_v56 = vpop.f32.mrb[2].mxu0 }
 0x1d3   : > { %v5060_v57 = vmul.f32 0.088388346, %v1017_v56  ;;  %v1019_v58 = vpop.f32.mrb[3].mxu0 }
 0x1d4   : > { %v5062_v59 = vmul.f32 0.088388346, %v1019_v58  ;;  %v1362_v60 = vmax.f32 %v6467_v54, %v6464_v55 }
 0x1d5   : > { %v6463_v61 = vfloor.f32 %v5060_v57 }
 0x1d6   : > { %v6460_v62 = vfloor.f32 %v5062_v59  ;;  %1363 = vmax.xlane.f32.xlu0 %v1362_v60  ;;  %v1023_v63 = vpop.f32.mrb[4].mxu0 }
 0x1d7   : > { %v5070_v0 = vmul.f32 0.088388346, %v1023_v63  ;;  %v1025_v1 = vpop.f32.mrb[5].mxu0 }
 0x1d8   : > { %v5072_v2 = vmul.f32 0.088388346, %v1025_v1  ;;  %v1365_v3 = vmax.f32 %v6463_v61, %v6460_v62 }
 0x1d9   : > { %v6459_v4 = vfloor.f32 %v5070_v0 }
 0x1da   : > { %v6456_v5 = vfloor.f32 %v5072_v2  ;;  %1366 = vmax.xlane.f32.xlu0 %v1365_v3  ;;  %v1029_v6 = vpop.f32.mrb[6].mxu0 }
 0x1db   : > { %v5080_v7 = vmul.f32 0.088388346, %v1029_v6  ;;  %v1031_v8 = vpop.f32.mrb[7].mxu0 }
 0x1dc   : > { %v5082_v9 = vmul.f32 0.088388346, %v1031_v8  ;;  %v1368_v10 = vmax.f32 %v6459_v4, %v6456_v5 }
 0x1dd   : > { %v6455_v11 = vfloor.f32 %v5080_v7 }
 0x1de   : > { %v6452_v12 = vfloor.f32 %v5082_v9  ;;  %1369 = vmax.xlane.f32.xlu1 %v1368_v10  ;;  %v1035_v13 = vpop.f32.mrb[8].mxu0 }
 0x1df   : > { %v5090_v14 = vmul.f32 0.088388346, %v1035_v13  ;;  %v1037_v15 = vpop.f32.mrb[9].mxu0 }
 0x1e0   : > { %v5092_v16 = vmul.f32 0.088388346, %v1037_v15  ;;  %v1371_v17 = vmax.f32 %v6455_v11, %v6452_v12 }
 0x1e1   : > { %v6451_v18 = vfloor.f32 %v5090_v14 }
 0x1e2   : > { %v6448_v19 = vfloor.f32 %v5092_v16  ;;  %1372 = vmax.xlane.f32.xlu1 %v1371_v17  ;;  %v1041_v20 = vpop.f32.mrb[10].mxu0 }
 0x1e3   : > { %v5100_v21 = vmul.f32 0.088388346, %v1041_v20  ;;  %v1043_v22 = vpop.f32.mrb[11].mxu0 }
 0x1e4   : > { %v5102_v23 = vmul.f32 0.088388346, %v1043_v22  ;;  %v1374_v24 = vmax.f32 %v6451_v18, %v6448_v19 }
 0x1e5   : > { %v6447_v25 = vfloor.f32 %v5100_v21 }
 0x1e6   : > { %v6444_v27 = vfloor.f32 %v5102_v23  ;;  %1375 = vmax.xlane.f32.xlu0 %v1374_v24  ;;  %v1047_v28 = vpop.f32.mrb[12].mxu0 }
 0x1e7   : > { %v5110_v29 = vmul.f32 0.088388346, %v1047_v28  ;;  %v1049_v30 = vpop.f32.mrb[13].mxu0 }
 0x1e8   : > { %v5112_v31 = vmul.f32 0.088388346, %v1049_v30  ;;  %v1377_v32 = vmax.f32 %v6447_v25, %v6444_v27 }
 0x1e9   : > { %v6443_v33 = vfloor.f32 %v5110_v29 }
 0x1ea   : > { %v6440_v34 = vfloor.f32 %v5112_v31  ;;  %1378 = vmax.xlane.f32.xlu1 %v1377_v32  ;;  %v1053_v35 = vpop.f32.mrb[14].mxu0 }
 0x1eb   : > { %v5120_v36 = vmul.f32 0.088388346, %v1053_v35  ;;  %v1055_v37 = vpop.f32.mrb[15].mxu0 }
 0x1ec   : > { %v5122_v38 = vmul.f32 0.088388346, %v1055_v37  ;;  %v1380_v39 = vmax.f32 %v6443_v33, %v6440_v34 }
 0x1ed   : > { %v6439_v40 = vfloor.f32 %v5120_v36 }
 0x1ee   : > { %v6436_v41 = vfloor.f32 %v5122_v38  ;;  %1381 = vmax.xlane.f32.xlu0 %v1380_v39  ;;  %v1059_v42 = vpop.f32.mrb[16].mxu0 }
 0x1ef   : > { %v5130_v43 = vmul.f32 0.088388346, %v1059_v42  ;;  %v1061_v44 = vpop.f32.mrb[17].mxu0 }
 0x1f0   : > { %v5132_v45 = vmul.f32 0.088388346, %v1061_v44  ;;  %v1383_v46 = vmax.f32 %v6439_v40, %v6436_v41 }
 0x1f1   : > { %v6435_v47 = vfloor.f32 %v5130_v43 }
 0x1f2   : > { %v6432_v48 = vfloor.f32 %v5132_v45  ;;  %1384 = vmax.xlane.f32.xlu1 %v1383_v46  ;;  %v1065_v49 = vpop.f32.mrb[18].mxu0 }
 0x1f3   : > { %v5140_v50 = vmul.f32 0.088388346, %v1065_v49  ;;  %v1067_v52 = vpop.f32.mrb[19].mxu0 }
 0x1f4   : > { %v5142_v56 = vmul.f32 0.088388346, %v1067_v52  ;;  %v1386_v58 = vmax.f32 %v6435_v47, %v6432_v48 }
 0x1f5   : > { %v6431_v60 = vfloor.f32 %v5140_v50 }
 0x1f6   : > { %v6428_v63 = vfloor.f32 %v5142_v56  ;;  %1387 = vmax.xlane.f32.xlu0 %v1386_v58  ;;  %v1071_v1 = vpop.f32.mrb[20].mxu0 }
 0x1f7   : > { %v5150_v3 = vmul.f32 0.088388346, %v1071_v1  ;;  %v1073_v6 = vpop.f32.mrb[21].mxu0 }
 0x1f8   : > { %v5152_v8 = vmul.f32 0.088388346, %v1073_v6  ;;  %v1389_v10 = vmax.f32 %v6431_v60, %v6428_v63 }
 0x1f9   : > { %v6427_v13 = vfloor.f32 %v5150_v3 }
 0x1fa   : > { %v6424_v15 = vfloor.f32 %v5152_v8  ;;  %1390 = vmax.xlane.f32.xlu1 %v1389_v10  ;;  %v1077_v17 = vpop.f32.mrb[22].mxu0 }
 0x1fb   : > { %v5160_v20 = vmul.f32 0.088388346, %v1077_v17  ;;  %v1079_v22 = vpop.f32.mrb[23].mxu0 }
 0x1fc   : > { %v5162_v24 = vmul.f32 0.088388346, %v1079_v22  ;;  %v1392_v26 = vmax.f32 %v6427_v13, %v6424_v15 }
 0x1fd   : > { %v6423_v28 = vfloor.f32 %v5160_v20 }
 0x1fe   : > { %v6420_v30 = vfloor.f32 %v5162_v24  ;;  %1393 = vmax.xlane.f32.xlu0 %v1392_v26  ;;  %v1083_v32 = vpop.f32.mrb[24].mxu0 }
 0x1ff   : > { %v5170_v35 = vmul.f32 0.088388346, %v1083_v32  ;;  %v1085_v37 = vpop.f32.mrb[25].mxu0 }
 0x200   : > { %v1395_v39 = vmax.f32 %v6423_v28, %v6420_v30  ;;  %v5176_v42 = vmul.f32 0.088388346, %v1085_v37 }
 0x201   : > { %6584 = vst [vmem:[#allocation13_spill] sm:$0xff] %v5170_v35  ;;  %v6419_v44 = vfloor.f32 %v5170_v35 }
 0x202   : > { %6585 = vst [vmem:[#allocation14_spill] sm:$0xff] %v5176_v42  ;;  %1396 = vmax.xlane.f32.xlu1 %v1395_v39  ;;  %v6418_v46 = vfloor.f32 %v5176_v42  ;;  %v1089_v49 = vpop.f32.mrb[26].mxu0 }
 0x203   : > { %v5180_v52 = vmul.f32 0.088388346, %v1089_v49  ;;  %v1091_v58 = vpop.f32.mrb[27].mxu0 }
 0x204   : > { %v5182_v1 = vmul.f32 0.088388346, %v1091_v58  ;;  %v1398_v6 = vmax.f32 %v6419_v44, %v6418_v46 }
 0x205   : > { %6586 = vst [vmem:[#allocation15_spill] sm:$0xff] %v5180_v52  ;;  %v6422_v10 = vfloor.f32 %v5180_v52 }
 0x206   : > { %6587 = vst [vmem:[#allocation16_spill] sm:$0xff] %v5182_v1  ;;  %v6421_v17 = vfloor.f32 %v5182_v1  ;;  %1399 = vmax.xlane.f32.xlu0 %v1398_v6  ;;  %v1095_v22 = vpop.f32.mrb[28].mxu0 }
 0x207   : > { %v5190_v26 = vmul.f32 0.088388346, %v1095_v22  ;;  %v1097_v32 = vpop.f32.mrb[29].mxu0 }
 0x208   : > { %v5192_v37 = vmul.f32 0.088388346, %v1097_v32  ;;  %v1401_v39 = vmax.f32 %v6422_v10, %v6421_v17 }
 0x209   : > { %6588 = vst [vmem:[#allocation17_spill] sm:$0xff] %v5190_v26  ;;  %v6426_v49 = vfloor.f32 %v5190_v26  ;;  %v5512_v26 = vld [vmem:[#allocation2 + $0x70] sm:$0xff] }
 0x20a   : > { %6589 = vst [vmem:[#allocation18_spill] sm:$0xff] %v5192_v37  ;;  %v6425_v58 = vfloor.f32 %v5192_v37  ;;  %v1101_v46 = vpop.f32.mrb[30].mxu0  ;;  %1402 = vmax.xlane.f32.xlu1 %v1401_v39  ;;  %6626 = vst [vmem:[#allocation55_spill] sm:$0xff] %v5512_v26 }
 0x20b   : > { %v5200_v44 = vmul.f32 0.088388346, %v1101_v46  ;;  %v1103_v6 = vpop.f32.mrb[31].mxu0 }
 0x20c   : > { %v5202_v30 = vmul.f32 0.088388346, %v1103_v6  ;;  %v1404_v22 = vmax.f32 %v6426_v49, %v6425_v58 }
 0x20d   : > { %6590 = vst [vmem:[#allocation19_spill] sm:$0xff] %v5200_v44  ;;  %v6430_v32 = vfloor.f32 %v5200_v44  ;;  %v5493_v44 = vld [vmem:[#allocation2 + $0x60] sm:$0xff] }
 0x20e   : > { %6591 = vst [vmem:[#allocation20_spill] sm:$0xff] %v5202_v30  ;;  %v6429_v17 = vfloor.f32 %v5202_v30  ;;  %v1107_v10 = vpop.f32.mrb[32].mxu0  ;;  %1405 = vmax.xlane.f32.xlu0 %v1404_v22  ;;  %6624 = vst [vmem:[#allocation53_spill] sm:$0xff] %v5493_v44 }
 0x20f   : > { %v5210_v28 = vmul.f32 0.088388346, %v1107_v10  ;;  %v1109_v15 = vpop.f32.mrb[33].mxu0 }
 0x210   : > { %v5212_v39 = vmul.f32 0.088388346, %v1109_v15  ;;  %v1407_v46 = vmax.f32 %v6430_v32, %v6429_v17 }
 0x211   : > { %6592 = vst [vmem:[#allocation21_spill] sm:$0xff] %v5210_v28  ;;  %v6434_v6 = vfloor.f32 %v5210_v28  ;;  %v5503_v28 = vld [vmem:[#allocation2 + $0x68] sm:$0xff] }
 0x212   : > { %6593 = vst [vmem:[#allocation22_spill] sm:$0xff] %v5212_v39  ;;  %v6433_v58 = vfloor.f32 %v5212_v39  ;;  %v1113_v49 = vpop.f32.mrb[34].mxu0  ;;  %1408 = vmax.xlane.f32.xlu1 %v1407_v46  ;;  %6625 = vst [vmem:[#allocation54_spill] sm:$0xff] %v5503_v28 }
 0x213   : > { %v5220_v13 = vmul.f32 0.088388346, %v1113_v49  ;;  %v1115_v63 = vpop.f32.mrb[35].mxu0 }
 0x214   : > { %v5222_v22 = vmul.f32 0.088388346, %v1115_v63  ;;  %v1410_v15 = vmax.f32 %v6434_v6, %v6433_v58 }
 0x215   : > { %6594 = vst [vmem:[#allocation23_spill] sm:$0xff] %v5220_v13  ;;  %v6438_v10 = vfloor.f32 %v5220_v13  ;;  %v5473_v13 = vld [vmem:[#allocation2 + $0x50] sm:$0xff] }
 0x216   : > { %6595 = vst [vmem:[#allocation24_spill] sm:$0xff] %v5222_v22  ;;  %v6437_v17 = vfloor.f32 %v5222_v22  ;;  %v1119_v32 = vpop.f32.mrb[36].mxu0  ;;  %1411 = vmax.xlane.f32.xlu0 %v1410_v15  ;;  %6620 = vst [vmem:[#allocation49_spill] sm:$0xff] %v5473_v13 }
 0x217   : > { %v5230_v60 = vmul.f32 0.088388346, %v1119_v32  ;;  %v1121_v48 = vpop.f32.mrb[37].mxu0 }
 0x218   : > { %v5232_v46 = vmul.f32 0.088388346, %v1121_v48  ;;  %v1413_v63 = vmax.f32 %v6438_v10, %v6437_v17 }
 0x219   : > { %6596 = vst [vmem:[#allocation25_spill] sm:$0xff] %v5230_v60  ;;  %v6442_v49 = vfloor.f32 %v5230_v60  ;;  %v5443_v60 = vld [vmem:[#allocation2 + $0x38] sm:$0xff] }
 0x21a   : > { %6597 = vst [vmem:[#allocation26_spill] sm:$0xff] %v5232_v46  ;;  %v6441_v58 = vfloor.f32 %v5232_v46  ;;  %v1125_v6 = vpop.f32.mrb[38].mxu0  ;;  %1414 = vmax.xlane.f32.xlu1 %v1413_v63  ;;  %v5433_v46 = vld [vmem:[#allocation2 + $0x30] sm:$0xff] }
 0x21b   : > { %v5240_v47 = vmul.f32 0.088388346, %v1125_v6  ;;  %v1127_v41 = vpop.f32.mrb[39].mxu0 }
 0x21c   : > { %v5242_v15 = vmul.f32 0.088388346, %v1127_v41  ;;  %v1416_v48 = vmax.f32 %v6442_v49, %v6441_v58 }
 0x21d   : > { %6598 = vst [vmem:[#allocation27_spill] sm:$0xff] %v5240_v47  ;;  %v6446_v32 = vfloor.f32 %v5240_v47  ;;  %v4108_v47 = vld [vmem:[%s4857_s9 + $0x30] sm:$0xff]  }
 0x21e   : > { %6599 = vst [vmem:[#allocation28_spill] sm:$0xff] %v5242_v15  ;;  %v6445_v17 = vfloor.f32 %v5242_v15  ;;  %v1131_v10 = vpop.f32.mrb[40].mxu0  ;;  %1417 = vmax.xlane.f32.xlu0 %v1416_v48  ;;  %v5409_v15 = vld [vmem:[#allocation2 + $0x20] sm:$0xff] }
 0x21f   : > { %v5250_v40 = vmul.f32 0.088388346, %v1131_v10  ;;  %v1133_v34 = vpop.f32.mrb[41].mxu0 }
 0x220   : > { %v5252_v63 = vmul.f32 0.088388346, %v1133_v34  ;;  %v1419_v41 = vmax.f32 %v6446_v32, %v6445_v17 }
 0x221   : > { %6600 = vst [vmem:[#allocation29_spill] sm:$0xff] %v5250_v40  ;;  %v6450_v6 = vfloor.f32 %v5250_v40  ;;  %v4104_v40 = vld [vmem:[%s4857_s9 + $0x20] sm:$0xff]  }
 0x222   : > { %6601 = vst [vmem:[#allocation30_spill] sm:$0xff] %v5252_v63  ;;  %v6449_v58 = vfloor.f32 %v5252_v63  ;;  %v1137_v49 = vpop.f32.mrb[42].mxu0  ;;  %1420 = vmax.xlane.f32.xlu1 %v1419_v41  ;;  %v4103_v63 = vld [vmem:[%s4857_s9 + $0x60] sm:$0xff]  }
 0x223   : > { %v5260_v33 = vmul.f32 0.088388346, %v1137_v49  ;;  %v1139_v27 = vpop.f32.mrb[43].mxu0 }
 0x224   : > { %v5262_v48 = vmul.f32 0.088388346, %v1139_v27  ;;  %v1422_v34 = vmax.f32 %v6450_v6, %v6449_v58 }
 0x225   : > { %6602 = vst [vmem:[#allocation31_spill] sm:$0xff] %v5260_v33  ;;  %v6454_v10 = vfloor.f32 %v5260_v33  ;;  %v5483_v33 = vld [vmem:[#allocation2 + $0x58] sm:$0xff] }
 0x226   : > { %6603 = vst [vmem:[#allocation32_spill] sm:$0xff] %v5262_v48  ;;  %v6453_v17 = vfloor.f32 %v5262_v48  ;;  %v1143_v32 = vpop.f32.mrb[44].mxu0  ;;  %1423 = vmax.xlane.f32.xlu1 %v1422_v34  ;;  %6622 = vst [vmem:[#allocation51_spill] sm:$0xff] %v5483_v33 }
 0x227   : > { %v5270_v25 = vmul.f32 0.088388346, %v1143_v32  ;;  %v1145_v19 = vpop.f32.mrb[45].mxu0 }
 0x228   : > { %v5272_v41 = vmul.f32 0.088388346, %v1145_v19  ;;  %v1425_v27 = vmax.f32 %v6454_v10, %v6453_v17 }
 0x229   : > { %6604 = vst [vmem:[#allocation33_spill] sm:$0xff] %v5270_v25  ;;  %v6458_v49 = vfloor.f32 %v5270_v25  ;;  %v5366_v25 = vld [vmem:[#allocation2] sm:$0xff] }
 0x22a   : > { %6605 = vst [vmem:[#allocation34_spill] sm:$0xff] %v5272_v41  ;;  %v6457_v58 = vfloor.f32 %v5272_v41  ;;  %v1149_v6 = vpop.f32.mrb[46].mxu0  ;;  %1426 = vmax.xlane.f32.xlu0 %v1425_v27 }
 0x22b   : > { %v5280_v18 = vmul.f32 0.088388346, %v1149_v6  ;;  %v1151_v12 = vpop.f32.mrb[47].mxu0 }
 0x22c   : > { %v5282_v34 = vmul.f32 0.088388346, %v1151_v12  ;;  %v1428_v19 = vmax.f32 %v6458_v49, %v6457_v58 }
 0x22d   : > { %6606 = vst [vmem:[#allocation35_spill] sm:$0xff] %v5280_v18  ;;  %v6462_v32 = vfloor.f32 %v5280_v18  ;;  %v5463_v18 = vld [vmem:[#allocation2 + $0x48] sm:$0xff] }
 0x22e   : > { %6607 = vst [vmem:[#allocation36_spill] sm:$0xff] %v5282_v34  ;;  %v6461_v17 = vfloor.f32 %v5282_v34  ;;  %v1155_v10 = vpop.f32.mrb[48].mxu0  ;;  %1429 = vmax.xlane.f32.xlu1 %v1428_v19  ;;  %v5453_v34 = vld [vmem:[#allocation2 + $0x40] sm:$0xff] }
 0x22f   : > { %v5290_v11 = vmul.f32 0.088388346, %v1155_v10  ;;  %v1157_v5 = vpop.f32.mrb[49].mxu0 }
 0x230   : > { %v5292_v27 = vmul.f32 0.088388346, %v1157_v5  ;;  %v1431_v12 = vmax.f32 %v6462_v32, %v6461_v17 }
 0x231   : > { %6608 = vst [vmem:[#allocation37_spill] sm:$0xff] %v5290_v11  ;;  %v6466_v6 = vfloor.f32 %v5290_v11 }
 0x232   : > { %6609 = vst [vmem:[#allocation38_spill] sm:$0xff] %v5292_v27  ;;  %v6465_v58 = vfloor.f32 %v5292_v27  ;;  %v1161_v49 = vpop.f32.mrb[50].mxu0  ;;  %1432 = vmax.xlane.f32.xlu0 %v1431_v12 }
 0x233   : > { %v5300_v4 = vmul.f32 0.088388346, %v1161_v49  ;;  %v1163_v62 = vpop.f32.mrb[51].mxu0 }
 0x234   : > { %v5302_v19 = vmul.f32 0.088388346, %v1163_v62  ;;  %v1434_v5 = vmax.f32 %v6466_v6, %v6465_v58 }
 0x235   : > { %6610 = vst [vmem:[#allocation39_spill] sm:$0xff] %v5300_v4  ;;  %v6470_v10 = vfloor.f32 %v5300_v4 }
 0x236   : > { %6611 = vst [vmem:[#allocation40_spill] sm:$0xff] %v5302_v19  ;;  %v6469_v17 = vfloor.f32 %v5302_v19  ;;  %v1167_v32 = vpop.f32.mrb[52].mxu0  ;;  %1435 = vmax.xlane.f32.xlu0 %v1434_v5  ;;  %v5421_v19 = vld [vmem:[#allocation2 + $0x28] sm:$0xff] }
 0x237   : > { %v5310_v61 = vmul.f32 0.088388346, %v1167_v32  ;;  %v1169_v55 = vpop.f32.mrb[53].mxu0 }
 0x238   : > { %v5312_v12 = vmul.f32 0.088388346, %v1169_v55  ;;  %v1437_v62 = vmax.f32 %v6470_v10, %v6469_v17 }
 0x239   : > { %6612 = vst [vmem:[#allocation41_spill] sm:$0xff] %v5310_v61  ;;  %v6474_v49 = vfloor.f32 %v5310_v61 }
 0x23a   : > { %6613 = vst [vmem:[#allocation42_spill] sm:$0xff] %v5312_v12  ;;  %v6473_v58 = vfloor.f32 %v5312_v12  ;;  %v1173_v6 = vpop.f32.mrb[54].mxu0  ;;  %1438 = vmax.xlane.f32.xlu1 %v1437_v62 }
 0x23b   : > { %v5320_v54 = vmul.f32 0.088388346, %v1173_v6  ;;  %v1175_v27 = vpop.f32.mrb[55].mxu0 }
 0x23c   : > { %v5322_v5 = vmul.f32 0.088388346, %v1175_v27  ;;  %v1440_v55 = vmax.f32 %v6474_v49, %v6473_v58 }
 0x23d   : > { %6614 = vst [vmem:[#allocation43_spill] sm:$0xff] %v5320_v54  ;;  %v6477_v32 = vfloor.f32 %v5320_v54  ;;  %v4106_v54 = vld [vmem:[%s4857_s9 + $0x28] sm:$0xff]  }
 0x23e   : > { %6615 = vst [vmem:[#allocation44_spill] sm:$0xff] %v5322_v5  ;;  %v6476_v17 = vfloor.f32 %v5322_v5  ;;  %v1179_v10 = vpop.f32.mrb[56].mxu0  ;;  %1441 = vmax.xlane.f32.xlu1 %v1440_v55  ;;  %v5397_v5 = vld [vmem:[#allocation2 + $0x18] sm:$0xff] }
 0x23f   : > { %v5330_v11 = vmul.f32 0.088388346, %v1179_v10  ;;  %v1181_v41 = vpop.f32.mrb[57].mxu0 }
 0x240   : > { %v5332_v62 = vmul.f32 0.088388346, %v1181_v41  ;;  %v1443_v27 = vmax.f32 %v6477_v32, %v6476_v17 }
 0x241   : > { %6616 = vst [vmem:[#allocation45_spill] sm:$0xff] %v5330_v11  ;;  %v6480_v6 = vfloor.f32 %v5330_v11  ;;  %v4098_v11 = vld [vmem:[%s4857_s9 + $0x8] sm:$0xff]  }
 0x242   : > { %6617 = vst [vmem:[#allocation46_spill] sm:$0xff] %v5332_v62  ;;  %v6479_v58 = vfloor.f32 %v5332_v62  ;;  %v1185_v49 = vpop.f32.mrb[58].mxu0  ;;  %1444 = vmax.xlane.f32.xlu0 %v1443_v27  ;;  %v4096_v62 = vld [vmem:[%s4857_s9] sm:$0xff]  }
 0x243   : > { %v5340_v12 = vmul.f32 0.088388346, %v1185_v49  ;;  %v1187_v10 = vpop.f32.mrb[59].mxu0 }
 0x244   : > { %v5342_v55 = vmul.f32 0.088388346, %v1187_v10  ;;  %v1446_v41 = vmax.f32 %v6480_v6, %v6479_v58  ;;  %v4095_v6 = vld [vmem:[%s4857_s9 + $0x40] sm:$0xff]  }
 0x245   : > { %6618 = vst [vmem:[#allocation47_spill] sm:$0xff] %v5340_v12  ;;  %v6486_v17 = vfloor.f32 %v5340_v12  ;;  %3841 = vmatprep.subr.bf16.mxu1 %v4095_v6  ;;  %v5373_v12 = vld [vmem:[#allocation2 + $0x8] sm:$0xff]  ;;  %v4101_v6 = vld [vmem:[%s4857_s9 + $0x58] sm:$0xff]  }
 0x246   : > { %6619 = vst [vmem:[#allocation48_spill] sm:$0xff] %v5342_v55  ;;  %v6485_v32 = vfloor.f32 %v5342_v55  ;;  %1447 = vmax.xlane.f32.xlu0 %v1446_v41  ;;  %v5350_v61 = vpop.f32.mrb[60].mxu0  ;;  %3842 = vmatpush3.bf16.msra.mxu1 %v4096_v62  ;;  %v4097_v41 = vld [vmem:[%s4857_s9 + $0x48] sm:$0xff]   ;;  %v4099_v55 = vld [vmem:[%s4857_s9 + $0x50] sm:$0xff]  }
 0x247   : > { %v5352_v49 = vpop.f32.mrb[61].mxu0  ;;  %3843 = vmatprep.subr.bf16.mxu1 %v4097_v41 }
 0x248   : > { %v1449_v27 = vmax.f32 %v6486_v17, %v6485_v32 }
 0x24a   : > { %1450 = vmax.xlane.f32.xlu1 %v1449_v27  ;;  %v5358_v10 = vpop.f32.mrb[62].mxu0  ;;  %3844 = vmatpush3.bf16.msra.mxu1 %v4098_v11  ;;  %v4100_v27 = vld [vmem:[%s4857_s9 + $0x10] sm:$0xff]  }
 0x24b   : > { %v5360_v58 = vpop.f32.mrb[63].mxu0  ;;  %3845 = vmatprep.subr.bf16.mxu1 %v4099_v55  ;;  %v5385_v55 = vld [vmem:[#allocation2 + $0x10] sm:$0xff] }
 0x24c   : > { %v5525_v42 = vmul.f32 0.088388346, %v5360_v58 }
 0x24e   : > { %3846 = vmatpush3.bf16.msra.mxu1 %v4100_v27  ;;  %v4105_v27 = vld [vmem:[%s4857_s9 + $0x68] sm:$0xff]   ;;  %6628 = vst [vmem:[#allocation57_spill] sm:$0xff] %v5525_v42 }
 0x24f   : > { %3847 = vmatprep.subr.bf16.mxu1 %v4101_v6  ;;  %v4107_v6 = vld [vmem:[%s4857_s9 + $0x70] sm:$0xff]  }
 0x263   : > { %v1364_v32 = vpop.xlane.xlu0 %1363 }
 0x264   : > { %v5371_v17 = vmax.f32 %v5366_v25, %v1364_v32  ;;  %v4102_v32 = vld [vmem:[%s4857_s9 + $0x18] sm:$0xff]  }
 0x265   : > { %3848 = vmatpush3.bf16.msra.mxu1 %v4102_v32 }
 0x266   : > { %2740 = vst.msk [vmem:[#allocation2] sm:$0xff] %vm2130_vm1, %v5371_v17  ;;  %1588 = vperm.xlu0 %4093, %v5371_v17   ;;  %3849 = vmatprep.subr.bf16.mxu1 %v4103_v63 }
 0x267   : > { %v1367_v11 = vpop.xlane.xlu0 %1366 }
 0x268   : > { %v5382_v41 = vmax.f32 %v5373_v12, %v1367_v11 }
 0x269   : > { %3850 = vmatpush3.bf16.msra.mxu1 %v4104_v40 }
 0x26a   : > { %2741 = vst.msk [vmem:[#allocation2 + $0x8] sm:$0xff] %vm2130_vm1, %v5382_v41  ;;  %1593 = vperm.xlu1 %4094, %v5382_v41   ;;  %3851 = vmatprep.subr.bf16.mxu1 %v4105_v27 }
 0x26b   : > { %v1370_v62 = vpop.xlane.xlu1 %1369 }
 0x26c   : > { %v5394_v11 = vmax.f32 %v5385_v55, %v1370_v62 }
 0x26d   : > { %3852 = vmatpush3.bf16.msra.mxu1 %v4106_v54  ;;  %v4109_v54 = vld [vmem:[%s4857_s9 + $0x78] sm:$0xff]  }
 0x26e   : > { %2742 = vst.msk [vmem:[#allocation2 + $0x10] sm:$0xff] %vm2130_vm1, %v5394_v11  ;;  %1598 = vperm.xlu1 %4094, %v5394_v11   ;;  %3853 = vmatprep.subr.bf16.mxu1 %v4107_v6 }
 0x26f   : > { %v1373_v32 = vpop.xlane.xlu1 %1372 }
 0x270   : > { %v5406_v62 = vmax.f32 %v5397_v5, %v1373_v32 }
 0x271   : > { %3854 = vmatpush3.bf16.msra.mxu1 %v4108_v47 }
 0x272   : > { %2743 = vst.msk [vmem:[#allocation2 + $0x18] sm:$0xff] %vm2130_vm1, %v5406_v62  ;;  %1603 = vperm.xlu1 %4094, %v5406_v62   ;;  %3855 = vmatprep.subr.bf16.mxu1 %v4109_v54 }
 0x273   : > { %v1376_v40 = vpop.xlane.xlu0 %1375 }
 0x274   : > { %v5418_v32 = vmax.f32 %v5409_v15, %v1376_v40  ;;  %v4110_v40 = vld [vmem:[%s4857_s9 + $0x38] sm:$0xff]  }
 0x275   : > { %3856 = vmatpush3.bf16.msra.mxu1 %v4110_v40 }
 0x276   : > { %2744 = vst.msk [vmem:[#allocation2 + $0x20] sm:$0xff] %vm2130_vm1, %v5418_v32  ;;  %1608 = vperm.xlu0 %4093, %v5418_v32  }
 0x277   : > { %v1379_v63 = vpop.xlane.xlu1 %1378 }
 0x278   : > { %v5430_v4 = vmax.f32 %v5421_v19, %v1379_v63 }
 0x27a   : > { %2745 = vst.msk [vmem:[#allocation2 + $0x28] sm:$0xff] %vm2130_vm1, %v5430_v4  ;;  %1613 = vperm.xlu0 %4093, %v5430_v4  }
 0x27b   : > { %v1382_v27 = vpop.xlane.xlu0 %1381 }
 0x27c   : > { %v5441_v47 = vmax.f32 %v5433_v46, %v1382_v27 }
 0x27e   : > { %2746 = vst.msk [vmem:[#allocation2 + $0x30] sm:$0xff] %vm2130_vm1, %v5441_v47  ;;  %1618 = vperm.xlu1 %4094, %v5441_v47  }
 0x27f   : > { %v1385_v54 = vpop.xlane.xlu1 %1384 }
 0x280   : > { %v5451_v6 = vmax.f32 %v5443_v60, %v1385_v54 }
 0x282   : > { %2747 = vst.msk [vmem:[#allocation2 + $0x38] sm:$0xff] %vm2130_vm1, %v5451_v6  ;;  %1623 = vperm.xlu1 %4094, %v5451_v6  }
 0x283   : > { %v1388_v40 = vpop.xlane.xlu0 %1387 }
 0x284   : > { %v5461_v63 = vmax.f32 %v5453_v34, %v1388_v40 }
 0x286   : > { %2748 = vst.msk [vmem:[#allocation2 + $0x40] sm:$0xff] %vm2130_vm1, %v5461_v63  ;;  %1628 = vperm.xlu0 %4093, %v5461_v63  }
 0x287   : > { %v1391_v27 = vpop.xlane.xlu1 %1390 }
 0x288   : > { %v5471_v22 = vmax.f32 %v5463_v18, %v1391_v27 }
 0x28a   : > { %2749 = vst.msk [vmem:[#allocation2 + $0x48] sm:$0xff] %vm2130_vm1, %v5471_v22  ;;  %1633 = vperm.xlu0 %4093, %v5471_v22  }
 0x28b   : > { %v1394_v54 = vpop.xlane.xlu0 %1393 }
 0x28c   : > { %v5481_v48 = vmax.f32 %v5473_v13, %v1394_v54  ;;  %v5599_v13 = vld [vmem:[#allocation2 + $0xa8] sm:$0xff] }
 0x28d   : > { %6641 = vst [vmem:[#allocation70_spill] sm:$0xff] %v5599_v13 }
 0x28e   : > { %6621 = vst [vmem:[#allocation50_spill] sm:$0xff] %v5481_v48  ;;  %2750 = vst.msk [vmem:[#allocation2 + $0x50] sm:$0xff] %vm2130_vm1, %v5481_v48  ;;  %1638 = vperm.xlu1 %4094, %v5481_v48  }
 0x28f   : > { %v1397_v40 = vpop.xlane.xlu1 %1396 }
 0x290   : > { %v5491_v30 = vmax.f32 %v5483_v33, %v1397_v40  ;;  %v5522_v40 = vmul.f32 0.088388346, %v5358_v10  ;;  %v6521_v10 = vfloor.f32 %v5525_v42  ;;  %v5570_v33 = vmul.f32 0.088388346, %v5352_v49  ;;  %v5586_v49 = vld [vmem:[#allocation2 + $0xa0] sm:$0xff] }
 0x291   : > { %6639 = vst [vmem:[#allocation68_spill] sm:$0xff] %v5586_v49 }
 0x292   : > { %6623 = vst [vmem:[#allocation52_spill] sm:$0xff] %v5491_v30  ;;  %2751 = vst.msk [vmem:[#allocation2 + $0x58] sm:$0xff] %vm2130_vm1, %v5491_v30  ;;  %1643 = vperm.xlu1 %4094, %v5491_v30   ;;  %v5551_v30 = vld [vmem:[#allocation2 + $0x88] sm:$0xff] }
 0x293   : > { %v1400_v27 = vpop.xlane.xlu0 %1399  ;;  %6627 = vst [vmem:[#allocation56_spill] sm:$0xff] %v5522_v40  ;;  %6632 = vst [vmem:[#allocation61_spill] sm:$0xff] %v5551_v30 }
 0x294   : > { %v5501_v39 = vmax.f32 %v5493_v44, %v1400_v27  ;;  %v5538_v44 = vld [vmem:[#allocation2 + $0x80] sm:$0xff]  ;;  %6635 = vst [vmem:[#allocation64_spill] sm:$0xff] %v5570_v33 }
 0x295   : > { %6630 = vst [vmem:[#allocation59_spill] sm:$0xff] %v5538_v44 }
 0x296   : > { %2752 = vst.msk [vmem:[#allocation2 + $0x60] sm:$0xff] %vm2130_vm1, %v5501_v39 }
 0x297   : > { %v1403_v37 = vpop.xlane.xlu1 %1402 }
 0x298   : > { %v5510_v54 = vmax.f32 %v5503_v28, %v1403_v37  ;;  %v5527_v37 = vld [vmem:[#allocation2 + $0x78] sm:$0xff] }
 0x299   : > { %6629 = vst [vmem:[#allocation58_spill] sm:$0xff] %v5527_v37 }
 0x29a   : > { %2753 = vst.msk [vmem:[#allocation2 + $0x68] sm:$0xff] %vm2130_vm1, %v5510_v54 }
 0x29b   : > { %v1406_v27 = vpop.xlane.xlu0 %1405 }
 0x29c   : > { %v5519_v52 = vmax.f32 %v5512_v26, %v1406_v27  ;;  %v6522_v27 = vfloor.f32 %v5522_v40 }
 0x29e   : > { %2754 = vst.msk [vmem:[#allocation2 + $0x70] sm:$0xff] %vm2130_vm1, %v5519_v52 }
 0x29f   : > { %v1409_v1 = vpop.xlane.xlu1 %1408 }
 0x2a0   : > { %v5534_v28 = vmax.f32 %v5527_v37, %v1409_v1  ;;  %v1455_v1 = vmax.f32 %v6522_v27, %v6521_v10  ;;  %v5567_v27 = vmul.f32 0.088388346, %v5350_v61  ;;  %v6531_v61 = vfloor.f32 %v5570_v33  ;;  %v5608_v33 = vld [vmem:[#allocation2 + $0xb0] sm:$0xff] }
 0x2a1   : > { %6643 = vst [vmem:[#allocation72_spill] sm:$0xff] %v5608_v33 }
 0x2a2   : > { %2755 = vst.msk [vmem:[#allocation2 + $0x78] sm:$0xff] %vm2130_vm1, %v5534_v28  ;;  %6634 = vst [vmem:[#allocation63_spill] sm:$0xff] %v5567_v27 }
 0x2a3   : > { %v1412_v35 = vpop.xlane.xlu0 %1411 }
 0x2a4   : > { %v5545_v26 = vmax.f32 %v5538_v44, %v1412_v35  ;;  %v5560_v35 = vld [vmem:[#allocation2 + $0x90] sm:$0xff] }
 0x2a5   : > { %6633 = vst [vmem:[#allocation62_spill] sm:$0xff] %v5560_v35 }
 0x2a6   : > { %6631 = vst [vmem:[#allocation60_spill] sm:$0xff] %v5545_v26  ;;  %2756 = vst.msk [vmem:[#allocation2 + $0x80] sm:$0xff] %vm2130_vm1, %v5545_v26 }
 0x2a7   : > { %v1415_v58 = vpop.xlane.xlu1 %1414 }
 0x2a8   : > { %v5558_v37 = vmax.f32 %v5551_v30, %v1415_v58  ;;  %v5575_v58 = vld [vmem:[#allocation2 + $0x98] sm:$0xff]  ;;  %v6532_v30 = vfloor.f32 %v5567_v27  ;;  %v5627_v27 = vld [vmem:[#allocation2 + $0xc0] sm:$0xff] }
 0x2a9   : > { %1456 = vmax.xlane.f32.xlu0 %v1455_v1  ;;  %6637 = vst [vmem:[#allocation66_spill] sm:$0xff] %v5575_v58  ;;  %6647 = vst [vmem:[#allocation76_spill] sm:$0xff] %v5627_v27 }
 0x2aa   : > { %2757 = vst.msk [vmem:[#allocation2 + $0x88] sm:$0xff] %vm2130_vm1, %v5558_v37 }
 0x2ab   : > { %v1418_v10 = vpop.xlane.xlu0 %1417 }
 0x2ac   : > { %v5573_v40 = vmax.f32 %v5560_v35, %v1418_v10  ;;  %v1452_v35 = vmax.f32 %v6532_v30, %v6531_v61  ;;  %v5617_v30 = vld [vmem:[#allocation2 + $0xb8] sm:$0xff] }
 0x2ad   : > { %6645 = vst [vmem:[#allocation74_spill] sm:$0xff] %v5617_v30 }
 0x2ae   : > { %6636 = vst [vmem:[#allocation65_spill] sm:$0xff] %v5573_v40  ;;  %2758 = vst.msk [vmem:[#allocation2 + $0x90] sm:$0xff] %vm2130_vm1, %v5573_v40 }
 0x2af   : > { %v1421_v42 = vpop.xlane.xlu1 %1420 }
 0x2b0   : > { %v5584_v44 = vmax.f32 %v5575_v58, %v1421_v42 }
 0x2b2   : > { %6638 = vst [vmem:[#allocation67_spill] sm:$0xff] %v5584_v44  ;;  %2759 = vst.msk [vmem:[#allocation2 + $0x98] sm:$0xff] %vm2130_vm1, %v5584_v44 }
 0x2b3   : > { %v1424_v1 = vpop.xlane.xlu1 %1423 }
 0x2b4   : > { %v5597_v48 = vmax.f32 %v5586_v49, %v1424_v1  ;;  %v5648_v49 = vld [vmem:[#allocation2 + $0xd0] sm:$0xff] }
 0x2b5   : > { %6651 = vst [vmem:[#allocation80_spill] sm:$0xff] %v5648_v49 }
 0x2b6   : > { %6640 = vst [vmem:[#allocation69_spill] sm:$0xff] %v5597_v48  ;;  %1453 = vmax.xlane.f32.xlu1 %v1452_v35  ;;  %2760 = vst.msk [vmem:[#allocation2 + $0xa0] sm:$0xff] %vm2130_vm1, %v5597_v48 }
 0x2b7   : > { %v1427_v10 = vpop.xlane.xlu0 %1426 }
 0x2b8   : > { %v5606_v58 = vmax.f32 %v5599_v13, %v1427_v10  ;;  %v5637_v13 = vld [vmem:[#allocation2 + $0xc8] sm:$0xff] }
 0x2b9   : > { %6649 = vst [vmem:[#allocation78_spill] sm:$0xff] %v5637_v13 }
 0x2ba   : > { %6642 = vst [vmem:[#allocation71_spill] sm:$0xff] %v5606_v58  ;;  %2761 = vst.msk [vmem:[#allocation2 + $0xa8] sm:$0xff] %vm2130_vm1, %v5606_v58 }
 0x2bb   : > { %v1430_v1 = vpop.xlane.xlu1 %1429 }
 0x2bc   : > { %v5615_v35 = vmax.f32 %v5608_v33, %v1430_v1 }
 0x2be   : > { %6644 = vst [vmem:[#allocation73_spill] sm:$0xff] %v5615_v35  ;;  %2762 = vst.msk [vmem:[#allocation2 + $0xb0] sm:$0xff] %vm2130_vm1, %v5615_v35 }
 0x2bf   : > { %1648 = vperm.xlu0 %4093, %v5501_v39   ;;  %v1433_v10 = vpop.xlane.xlu0 %1432 }
 0x2c0   : > { %v5625_v61 = vmax.f32 %v5617_v30, %v1433_v10 }
 0x2c2   : > { %6646 = vst [vmem:[#allocation75_spill] sm:$0xff] %v5625_v61  ;;  %2763 = vst.msk [vmem:[#allocation2 + $0xb8] sm:$0xff] %vm2130_vm1, %v5625_v61 }
 0x2c3   : > { %1653 = vperm.xlu0 %4093, %v5510_v54   ;;  %v1436_v42 = vpop.xlane.xlu0 %1435 }
 0x2c4   : > { %v5635_v33 = vmax.f32 %v5627_v27, %v1436_v42 }
 0x2c6   : > { %6648 = vst [vmem:[#allocation77_spill] sm:$0xff] %v5635_v33  ;;  %2764 = vst.msk [vmem:[#allocation2 + $0xc0] sm:$0xff] %vm2130_vm1, %v5635_v33 }
 0x2c7   : > { %1668 = vperm.xlu1 %4094, %v5545_v26   ;;  %1658 = vperm.xlu0 %4093, %v5519_v52   ;;  %v1439_v1 = vpop.xlane.xlu1 %1438  ;;  %v5659_v26 = vld [vmem:[#allocation2 + $0xd8] sm:$0xff] }
 0x2c8   : > { %v5646_v30 = vmax.f32 %v5637_v13, %v1439_v1  ;;  %6652 = vst [vmem:[#allocation81_spill] sm:$0xff] %v5659_v26 }
 0x2ca   : > { %6650 = vst [vmem:[#allocation79_spill] sm:$0xff] %v5646_v30  ;;  %2765 = vst.msk [vmem:[#allocation2 + $0xc8] sm:$0xff] %vm2130_vm1, %v5646_v30 }
 0x2cb   : > { %1693 = vperm.xlu1 %4094, %v5606_v58   ;;  %1663 = vperm.xlu0 %4093, %v5534_v28   ;;  %v1442_v10 = vpop.xlane.xlu1 %1441  ;;  %v5670_v58 = vld [vmem:[#allocation2 + $0xe0] sm:$0xff] }
 0x2cc   : > { %v5657_v27 = vmax.f32 %v5648_v49, %v1442_v10  ;;  %6654 = vst [vmem:[#allocation83_spill] sm:$0xff] %v5670_v58 }
 0x2ce   : > { %2766 = vst.msk [vmem:[#allocation2 + $0xd0] sm:$0xff] %vm2130_vm1, %v5657_v27 }
 0x2cf   : > { %1703 = vperm.xlu1 %4094, %v5625_v61   ;;  %1673 = vperm.xlu0 %4093, %v5558_v37   ;;  %v1445_v42 = vpop.xlane.xlu0 %1444  ;;  %v5681_v61 = vld [vmem:[#allocation2 + $0xe8] sm:$0xff] }
 0x2d0   : > { %v5668_v13 = vmax.f32 %v5659_v26, %v1445_v42  ;;  %6655 = vst [vmem:[#allocation84_spill] sm:$0xff] %v5681_v61 }
 0x2d2   : > { %6653 = vst [vmem:[#allocation82_spill] sm:$0xff] %v5668_v13  ;;  %2767 = vst.msk [vmem:[#allocation2 + $0xd8] sm:$0xff] %vm2130_vm1, %v5668_v13 }
 0x2d3   : > { %1713 = vperm.xlu1 %4094, %v5646_v30   ;;  %1678 = vperm.xlu0 %4093, %v5573_v40   ;;  %v1448_v1 = vpop.xlane.xlu0 %1447 }
 0x2d4   : > { %v5679_v49 = vmax.f32 %v5670_v58, %v1448_v1  ;;  %v6657_v58 = vfloor.f32 %v5054_v51 }
 0x2d6   : > { %2768 = vst.msk [vmem:[#allocation2 + $0xe0] sm:$0xff] %vm2130_vm1, %v5679_v49 }
 0x2d7   : > { %1723 = vperm.xlu1 %4094, %v5668_v13   ;;  %1683 = vperm.xlu0 %4093, %v5584_v44   ;;  %v1451_v10 = vpop.xlane.xlu1 %1450 }
 0x2d8   : > { %v5690_v26 = vmax.f32 %v5681_v61, %v1451_v10  ;;  %v6658_v10 = vfloor.f32 %v5056_v53  ;;  %v6661_v53 = vfloor.f32 %v5070_v0 }
 0x2da   : > { %6656 = vst [vmem:[#allocation85_spill] sm:$0xff] %v5690_v26  ;;  %2769 = vst.msk [vmem:[#allocation2 + $0xe8] sm:$0xff] %vm2130_vm1, %v5690_v26 }
 0x2db   : > { %1733 = vperm.xlu1 %4094, %v5690_v26   ;;  %1688 = vperm.xlu0 %4093, %v5597_v48   ;;  %v6659_v26 = vfloor.f32 %v5060_v57 }
 0x2df   : > { %1698 = vperm.xlu0 %4093, %v5615_v35   ;;  %v6660_v35 = vfloor.f32 %v5062_v59  ;;  %v6663_v59 = vfloor.f32 %v5080_v7 }
 0x2e3   : > { %1708 = vperm.xlu0 %4093, %v5635_v33  }
 0x2e5   : > { %v1589_v42 = vpop.permute.xlu0 %1588 }
 0x2e6   : > { %v1746_v13 = vsub.f32 %v6657_v58, %v1589_v42  ;;  %v1747_v30 = vsub.f32 %v6658_v10, %v1589_v42 }
 0x2e7   : > { %1718 = vperm.xlu0 %4093, %v5657_v27  }
 0x2e8   : > { %v1810_v1 = vmul.f32 1.442695, %v1746_v13  ;;  %v1812_v61 = vmul.f32 1.442695, %v1747_v30  ;;  %v6662_v13 = vfloor.f32 %v5072_v2  ;;  %v6665_v2 = vfloor.f32 %v5090_v14 }
 0x2e9   : > { %v1594_v44 = vpop.permute.xlu1 %1593 }
 0x2ea   : > { %4111 = vpow2.f32 %v1810_v1  ;;  %v1748_v48 = vsub.f32 %v6659_v26, %v1594_v44  ;;  %v1749_v40 = vsub.f32 %v6660_v35, %v1594_v44 }
 0x2eb   : > { %4113 = vpow2.f32 %v1812_v61  ;;  %1728 = vperm.xlu0 %4093, %v5679_v49   ;;  %v6664_v61 = vfloor.f32 %v5082_v9 }
 0x2ec   : > { %v1814_v51 = vmul.f32 1.442695, %v1748_v48  ;;  %v1816_v58 = vmul.f32 1.442695, %v1749_v40 }
 0x2ed   : > { %v1599_v33 = vpop.permute.xlu1 %1598 }
 0x2ee   : > { %4115 = vpow2.f32 %v1814_v51  ;;  %v1750_v42 = vsub.f32 %v6661_v53, %v1599_v33  ;;  %v1751_v30 = vsub.f32 %v6662_v13, %v1599_v33 }
 0x2ef   : > { %4117 = vpow2.f32 %v1816_v58  ;;  %v6666_v58 = vfloor.f32 %v5092_v16 }
 0x2f0   : > { %v1818_v1 = vmul.f32 1.442695, %v1750_v42  ;;  %v1820_v57 = vmul.f32 1.442695, %v1751_v30 }
 0x2f1   : > { %v1604_v26 = vpop.permute.xlu1 %1603 }
 0x2f2   : > { %4119 = vpow2.f32 %v1818_v1  ;;  %v1752_v44 = vsub.f32 %v6663_v59, %v1604_v26  ;;  %v1753_v48 = vsub.f32 %v6664_v61, %v1604_v26  ;;  %v6667_v26 = vfloor.f32 %v5100_v21 }
 0x2f3   : > { %4121 = vpow2.f32 %v1820_v57  ;;  %v6670_v21 = vfloor.f32 %v5112_v31 }
 0x2f4   : > { %v4112_v40 = vpop.eup %4111  ;;  %v1822_v35 = vmul.f32 1.442695, %v1752_v44  ;;  %v1824_v10 = vmul.f32 1.442695, %v1753_v48  ;;  %v6668_v44 = vfloor.f32 %v5102_v23 }
 0x2f5   : > { %v4114_v0 = vpop.eup %4113  ;;  %v1609_v51 = vpop.permute.xlu0 %1608 }
 0x2f6   : > { %4123 = vpow2.f32 %v1822_v35  ;;  %v1754_v33 = vsub.f32 %v6665_v2, %v1609_v51  ;;  %v1755_v53 = vsub.f32 %v6666_v58, %v1609_v51  ;;  %v5722_v42 = vadd.f32 %v4114_v0, %v4112_v40 }
 0x2f7   : > { %4125 = vpow2.f32 %v1824_v10 }
 0x2f8   : > { %v4116_v7 = vpop.eup %4115  ;;  %v1826_v13 = vmul.f32 1.442695, %v1754_v33  ;;  %v1828_v9 = vmul.f32 1.442695, %v1755_v53 }
 0x2f9   : > { %v4118_v30 = vpop.eup %4117  ;;  %v1614_v1 = vpop.permute.xlu0 %1613  ;;  %v2387_v57 = vpack.c.bf16 %v4116_v7, %v4112_v40  ;;  %v6669_v40 = vfloor.f32 %v5110_v29 }
 0x2fa   : > { %4127 = vpow2.f32 %v1826_v13  ;;  %v1756_v59 = vsub.f32 %v6667_v26, %v1614_v1  ;;  %v1757_v14 = vsub.f32 %v6668_v44, %v1614_v1  ;;  %v2388_v61 = vpack.c.bf16 %v4118_v30, %v4114_v0 }
 0x2fb   : > { %4129 = vpow2.f32 %v1828_v9  ;;  %v5728_v16 = vadd.f32 %v4118_v30, %v4116_v7  ;;  %v6671_v1 = vfloor.f32 %v5120_v36  ;;  %v6672_v26 = vfloor.f32 %v5122_v38 }
 0x2fc   : > { %v4120_v48 = vpop.eup %4119  ;;  %v1830_v35 = vmul.f32 1.442695, %v1756_v59  ;;  %v1832_v10 = vmul.f32 1.442695, %v1757_v14  ;;  %2547 = vmatprep.mubr.bf16.mxu1 %v2388_v61  ;;  %v6674_v36 = vfloor.f32 %v5132_v45 }
 0x2fd   : > { %v4122_v51 = vpop.eup %4121  ;;  %2548 = vmatmul.mubr.bf16.vlgmr.msra.gmra.mrb[0].mxu1 %v2387_v57  ;;  %v1619_v2 = vpop.permute.xlu1 %1618 }
 0x2fe   : > { %4131 = vpow2.f32 %v1830_v35  ;;  %v1758_v33 = vsub.f32 %v6669_v40, %v1619_v2  ;;  %v1759_v58 = vsub.f32 %v6670_v21, %v1619_v2  ;;  %v5734_v23 = vadd.f32 %v4122_v51, %v4120_v48 }
 0x2ff   : > { %4133 = vpow2.f32 %v1832_v10 }
 0x300   : > { %v4124_v0 = vpop.eup %4123  ;;  %v1834_v53 = vmul.f32 1.442695, %v1758_v33  ;;  %v1836_v7 = vmul.f32 1.442695, %v1759_v58 }
 0x301   : > { %v4126_v13 = vpop.eup %4125  ;;  %v1624_v9 = vpop.permute.xlu1 %1623  ;;  %v2389_v30 = vpack.c.bf16 %v4124_v0, %v4120_v48  ;;  %v6673_v48 = vfloor.f32 %v5130_v43 }
 0x302   : > { %4135 = vpow2.f32 %v1834_v53  ;;  %v1760_v57 = vsub.f32 %v6671_v1, %v1624_v9  ;;  %v1761_v29 = vsub.f32 %v6672_v26, %v1624_v9  ;;  %v2390_v59 = vpack.c.bf16 %v4126_v13, %v4122_v51 }
 0x303   : > { %4137 = vpow2.f32 %v1836_v7  ;;  %v5740_v31 = vadd.f32 %v4126_v13, %v4124_v0  ;;  %v6675_v7 = vfloor.f32 %v5140_v50  ;;  %v6676_v9 = vfloor.f32 %v5142_v56 }
 0x304   : > { %v4128_v44 = vpop.eup %4127  ;;  %v1838_v14 = vmul.f32 1.442695, %v1760_v57  ;;  %v1840_v61 = vmul.f32 1.442695, %v1761_v29  ;;  %2555 = vmatprep.mubr.bf16.mxu1 %v2390_v59  ;;  %v6678_v50 = vfloor.f32 %v5152_v8 }
 0x305   : > { %v4130_v35 = vpop.eup %4129  ;;  %2556 = vmatmul.mubr.bf16.gmra.mrb[4].mxu1 %v2389_v30  ;;  %v1629_v10 = vpop.permute.xlu0 %1628 }
 0x306   : > { %4139 = vpow2.f32 %v1838_v14  ;;  %v1762_v2 = vsub.f32 %v6673_v48, %v1629_v10  ;;  %v1763_v40 = vsub.f32 %v6674_v36, %v1629_v10  ;;  %v5746_v38 = vadd.f32 %v4130_v35, %v4128_v44 }
 0x307   : > { %4141 = vpow2.f32 %v1840_v61 }
 0x308   : > { %v4132_v51 = vpop.eup %4131  ;;  %v1842_v33 = vmul.f32 1.442695, %v1762_v2  ;;  %v1844_v21 = vmul.f32 1.442695, %v1763_v40 }
 0x309   : > { %v4134_v58 = vpop.eup %4133  ;;  %v1634_v0 = vpop.permute.xlu0 %1633  ;;  %v2391_v53 = vpack.c.bf16 %v4132_v51, %v4128_v44  ;;  %v6677_v44 = vfloor.f32 %v5150_v3 }
 0x30a   : > { %4143 = vpow2.f32 %v1842_v33  ;;  %v1764_v13 = vsub.f32 %v6675_v7, %v1634_v0  ;;  %v1765_v43 = vsub.f32 %v6676_v9, %v1634_v0  ;;  %v2392_v30 = vpack.c.bf16 %v4134_v58, %v4130_v35 }
 0x30b   : > { %4145 = vpow2.f32 %v1844_v21  ;;  %v5752_v45 = vadd.f32 %v4134_v58, %v4132_v51  ;;  %v6679_v51 = vfloor.f32 %v5160_v20  ;;  %v6680_v21 = vfloor.f32 %v5162_v24 }
 0x30c   : > { %v4136_v1 = vpop.eup %4135  ;;  %v1846_v57 = vmul.f32 1.442695, %v1764_v13  ;;  %v1848_v26 = vmul.f32 1.442695, %v1765_v43  ;;  %2563 = vmatprep.mubr.bf16.mxu1 %v2392_v30 }
 0x30d   : > { %v4138_v29 = vpop.eup %4137  ;;  %2564 = vmatmul.mubr.bf16.gmra.mrb[8].mxu1 %v2391_v53  ;;  %v1639_v59 = vpop.permute.xlu1 %1638 }
 0x30e   : > { %4147 = vpow2.f32 %v1846_v57  ;;  %v1766_v14 = vsub.f32 %v6677_v44, %v1639_v59  ;;  %v1767_v61 = vsub.f32 %v6678_v50, %v1639_v59  ;;  %v5758_v56 = vadd.f32 %v4138_v29, %v4136_v1 }
 0x30f   : > { %4149 = vpow2.f32 %v1848_v26 }
 0x310   : > { %v4140_v35 = vpop.eup %4139  ;;  %v1850_v10 = vmul.f32 1.442695, %v1766_v14  ;;  %v1852_v48 = vmul.f32 1.442695, %v1767_v61 }
 0x311   : > { %v4142_v2 = vpop.eup %4141  ;;  %v1644_v36 = vpop.permute.xlu1 %1643  ;;  %v2393_v40 = vpack.c.bf16 %v4140_v35, %v4136_v1 }
 0x312   : > { %4151 = vpow2.f32 %v1850_v10  ;;  %v1768_v33 = vsub.f32 %v6679_v51, %v1644_v36  ;;  %v1769_v3 = vsub.f32 %v6680_v21, %v1644_v36  ;;  %v2394_v58 = vpack.c.bf16 %v4142_v2, %v4138_v29 }
 0x313   : > { %4153 = vpow2.f32 %v1852_v48  ;;  %v5764_v8 = vadd.f32 %v4142_v2, %v4140_v35  ;;  %v6681_v35 = vsub.f32 %v5366_v25, %v5371_v17  ;;  %v6682_v48 = vsub.f32 %v5373_v12, %v5382_v41 }
 0x314   : > { %v4144_v0 = vpop.eup %4143  ;;  %v1854_v53 = vmul.f32 1.442695, %v1768_v33  ;;  %v1856_v7 = vmul.f32 1.442695, %v1769_v3  ;;  %2571 = vmatprep.mubr.bf16.mxu1 %v2394_v58  ;;  %v6683_v36 = vsub.f32 %v5385_v55, %v5394_v11  ;;  %v6684_v51 = vsub.f32 %v5397_v5, %v5406_v62  ;;  %v6691_v62 = vld [vmem:[#allocation49_spill] sm:$0xff]  ;;  %v5807_v58 = vld [vmem:[#allocation2 + $0xf8] sm:$0xff] }
 0x315   : > { %v4146_v13 = vpop.eup %4145  ;;  %2572 = vmatmul.mubr.bf16.gmra.mrb[12].mxu1 %v2393_v40  ;;  %v1522_v10 = vmul.f32 1.442695, %v6681_v35  ;;  %v1524_v2 = vmul.f32 1.442695, %v6682_v48  ;;  %v6685_v21 = vsub.f32 %v5409_v15, %v5418_v32  ;;  %v6686_v25 = vsub.f32 %v5421_v19, %v5430_v4  ;;  %v6692_v32 = vld [vmem:[#allocation50_spill] sm:$0xff]  ;;  %v6709_v35 = vld [vmem:[#allocation60_spill] sm:$0xff] }
 0x316   : > { %4155 = vpow2.f32 %v1854_v53  ;;  %v5766_v9 = vadd.f32 %v4146_v13, %v4144_v0  ;;  %v1526_v40 = vmul.f32 1.442695, %v6683_v36  ;;  %v1528_v33 = vmul.f32 1.442695, %v6684_v51 }
 0x317   : > { %4157 = vpow2.f32 %v1856_v7  ;;  %v1530_v3 = vmul.f32 1.442695, %v6685_v21  ;;  %v1532_v17 = vmul.f32 1.442695, %v6686_v25  ;;  %v6687_v12 = vsub.f32 %v5433_v46, %v5441_v47  ;;  %v6716_v21 = vld [vmem:[#allocation65_spill] sm:$0xff] }
 0x318   : > { %v4148_v43 = vpop.eup %4147  ;;  %4159 = vpow2.f32 %v1522_v10  ;;  %v6688_v5 = vsub.f32 %v5443_v60, %v5451_v6  ;;  %v6689_v15 = vsub.f32 %v5453_v34, %v5461_v63  ;;  %v6690_v4 = vsub.f32 %v5463_v18, %v5471_v22  ;;  %v6694_v60 = vld [vmem:[#allocation51_spill] sm:$0xff]  ;;  %v6695_v6 = vld [vmem:[#allocation52_spill] sm:$0xff]  ;;  %v6697_v34 = vld [vmem:[#allocation53_spill] sm:$0xff] }
 0x319   : > { %v4150_v20 = vpop.eup %4149  ;;  %v2395_v30 = vpack.c.bf16 %v4148_v43, %v4144_v0  ;;  %4161 = vpow2.f32 %v1524_v2  ;;  %v1534_v41 = vmul.f32 1.442695, %v6687_v12  ;;  %v6693_v46 = vsub.f32 %v6691_v62, %v6692_v32  ;;  %v6699_v18 = vld [vmem:[#allocation54_spill] sm:$0xff] }
 0x31a   : > { %v2396_v1 = vpack.c.bf16 %v4150_v20, %v4146_v13  ;;  %v5768_v24 = vadd.f32 %v4150_v20, %v4148_v43  ;;  %4163 = vpow2.f32 %v1526_v40  ;;  %v1536_v55 = vmul.f32 1.442695, %v6688_v5  ;;  %v6719_v12 = vld [vmem:[#allocation66_spill] sm:$0xff] }
 0x31b   : > { %4165 = vpow2.f32 %v1528_v33  ;;  %v1538_v11 = vmul.f32 1.442695, %v6689_v15  ;;  %v1540_v19 = vmul.f32 1.442695, %v6690_v4  ;;  %v1542_v47 = vmul.f32 1.442695, %v6693_v46 }
 0x31c   : > { %v4152_v57 = vpop.eup %4151  ;;  %2579 = vmatprep.mubr.bf16.mxu1 %v2396_v1  ;;  %4167 = vpow2.f32 %v1530_v3  ;;  %v6696_v0 = vsub.f32 %v6694_v60, %v6695_v6  ;;  %v6698_v63 = vsub.f32 %v6697_v34, %v5501_v39  ;;  %v6700_v22 = vsub.f32 %v6699_v18, %v5510_v54  ;;  %v6702_v1 = vld [vmem:[#allocation55_spill] sm:$0xff]  ;;  %v6705_v39 = vld [vmem:[#allocation58_spill] sm:$0xff]  ;;  %v6727_v46 = vld [vmem:[#allocation13_spill] sm:$0xff] }
 0x31d   : > { %v4154_v26 = vpop.eup %4153  ;;  %2580 = vmatmul.mubr.bf16.gmra.mrb[16].mxu1 %v2395_v30  ;;  %4169 = vpow2.f32 %v1532_v17  ;;  %v6715_v33 = vld [vmem:[#allocation62_spill] sm:$0xff] }
 0x31e   : > { %v5770_v29 = vadd.f32 %v4154_v26, %v4152_v57  ;;  %4171 = vpow2.f32 %v1534_v41  ;;  %v1544_v53 = vmul.f32 1.442695, %v6696_v0  ;;  %v1546_v7 = vmul.f32 1.442695, %v6698_v63  ;;  %v6720_v41 = vld [vmem:[#allocation67_spill] sm:$0xff]  ;;  %v6729_v6 = vld [vmem:[#allocation14_spill] sm:$0xff] }
 0x31f   : > { %4173 = vpow2.f32 %v1536_v55  ;;  %v1548_v43 = vmul.f32 1.442695, %v6700_v22  ;;  %v6717_v3 = vsub.f32 %v6715_v33, %v6716_v21  ;;  %v6721_v5 = vsub.f32 %v6719_v12, %v6720_v41  ;;  %v6732_v63 = vld [vmem:[#allocation70_spill] sm:$0xff] }
 0x320   : > { %v4156_v59 = vpop.eup %4155  ;;  %4175 = vpow2.f32 %v1538_v11  ;;  %v6724_v11 = vld [vmem:[#allocation69_spill] sm:$0xff]  ;;  %v6730_v0 = vfloor.f32 %v6729_v6 }
 0x321   : > { %v4158_v44 = vpop.eup %4157  ;;  %v2397_v14 = vpack.c.bf16 %v4156_v59, %v4152_v57  ;;  %4177 = vpow2.f32 %v1540_v19  ;;  %v6703_v57 = vsub.f32 %v6702_v1, %v5519_v52  ;;  %v6708_v52 = vld [vmem:[#allocation59_spill] sm:$0xff]  ;;  %v1558_v25 = vmul.f32 1.442695, %v6717_v3 }
 0x322   : > { %v2398_v50 = vpack.c.bf16 %v4158_v44, %v4154_v26  ;;  %v5772_v61 = vadd.f32 %v4158_v44, %v4156_v59  ;;  %v5821_v30 = vpop.eup %4159  ;;  %4179 = vpow2.f32 %v1542_v47  ;;  %v6706_v44 = vsub.f32 %v6705_v39, %v5534_v28  ;;  %v6712_v28 = vld [vmem:[#allocation61_spill] sm:$0xff]  ;;  %v6737_v39 = vld [vmem:[#allocation72_spill] sm:$0xff] }
 0x323   : > { %6701 = vst [vmem:[#allocation49_spill] sm:$0xff] %v5821_v30  ;;  %v1550_v26 = vmul.f32 1.442695, %v6703_v57  ;;  %v5826_v59 = vpop.eup %4161  ;;  %4181 = vpow2.f32 %v1544_v53  ;;  %v6710_v10 = vsub.f32 %v6708_v52, %v6709_v35  ;;  %v6713_v36 = vsub.f32 %v6712_v28, %v5558_v37  ;;  %v6723_v37 = vld [vmem:[#allocation68_spill] sm:$0xff]  ;;  %v5876_v57 = vld [vmem:[#allocation2 + $0xf0] sm:$0xff] }
 0x324   : > { %2587 = vmatprep.mubr.bf16.mxu1 %v2398_v50  ;;  %6704 = vst [vmem:[#allocation50_spill] sm:$0xff] %v5826_v59  ;;  %v5836_v50 = vpop.eup %4163  ;;  %4183 = vpow2.f32 %v1546_v7  ;;  %v1560_v55 = vmul.f32 1.442695, %v6721_v5  ;;  %v6725_v4 = vsub.f32 %v6723_v37, %v6724_v11  ;;  %v6728_v47 = vfloor.f32 %v6727_v46  ;;  %v6733_v7 = vld [vmem:[#allocation71_spill] sm:$0xff]  ;;  %v6747_v5 = vld [vmem:[#allocation74_spill] sm:$0xff]  ;;  %v6751_v46 = vld [vmem:[#allocation76_spill] sm:$0xff] }
 0x325   : > { %2588 = vmatmul.mubr.bf16.gmra.mrb[20].mxu1 %v2397_v14  ;;  %v1552_v14 = vmul.f32 1.442695, %v6706_v44  ;;  %6707 = vst [vmem:[#allocation51_spill] sm:$0xff] %v5836_v50  ;;  %v1554_v48 = vmul.f32 1.442695, %v6710_v10  ;;  %v5841_v2 = vpop.eup %4165  ;;  %4185 = vpow2.f32 %v1548_v43  ;;  %v6738_v44 = vld [vmem:[#allocation73_spill] sm:$0xff] }
 0x326   : > { %6711 = vst [vmem:[#allocation52_spill] sm:$0xff] %v5841_v2  ;;  %v1556_v40 = vmul.f32 1.442695, %v6713_v36  ;;  %v5846_v51 = vpop.eup %4167  ;;  %4187 = vpow2.f32 %v1550_v26  ;;  %v1562_v19 = vmul.f32 1.442695, %v6725_v4 }
 0x327   : > { %6714 = vst [vmem:[#allocation53_spill] sm:$0xff] %v5846_v51  ;;  %v5851_v17 = vpop.eup %4169  ;;  %4189 = vpow2.f32 %v1552_v14  ;;  %v6739_v14 = vsub.f32 %v6737_v39, %v6738_v44 }
 0x328   : > { %6718 = vst [vmem:[#allocation54_spill] sm:$0xff] %v5851_v17  ;;  %v5857_v15 = vpop.eup %4171  ;;  %4191 = vpow2.f32 %v1554_v48  ;;  %v6741_v48 = vld [vmem:[#allocation15_spill] sm:$0xff] }
 0x329   : > { %6722 = vst [vmem:[#allocation55_spill] sm:$0xff] %v5857_v15  ;;  %v5862_v32 = vpop.eup %4173  ;;  %4193 = vpow2.f32 %v1556_v40  ;;  %v1566_v52 = vmul.f32 1.442695, %v6739_v14  ;;  %v6742_v28 = vfloor.f32 %v6741_v48  ;;  %v6743_v40 = vld [vmem:[#allocation16_spill] sm:$0xff] }
 0x32a   : > { %6726 = vst [vmem:[#allocation58_spill] sm:$0xff] %v5862_v32  ;;  %v5868_v34 = vpop.eup %4175  ;;  %4195 = vpow2.f32 %v1558_v25  ;;  %v6744_v33 = vfloor.f32 %v6743_v40 }
 0x32b   : > { %6731 = vst [vmem:[#allocation59_spill] sm:$0xff] %v5868_v34  ;;  %v5873_v22 = vpop.eup %4177  ;;  %4197 = vpow2.f32 %v1560_v55  ;;  %v6748_v55 = vld [vmem:[#allocation75_spill] sm:$0xff] }
 0x32c   : > { %6735 = vst [vmem:[#allocation60_spill] sm:$0xff] %v5873_v22  ;;  %v5878_v26 = vpop.eup %4179  ;;  %4199 = vpow2.f32 %v1562_v19  ;;  %v6749_v37 = vsub.f32 %v6747_v5, %v6748_v55 }
 0x32d   : > { %6736 = vst [vmem:[#allocation61_spill] sm:$0xff] %v5878_v26  ;;  %v5883_v10 = vpop.eup %4181 }
 0x32e   : > { %6740 = vst [vmem:[#allocation62_spill] sm:$0xff] %v5883_v10  ;;  %v5889_v25 = vpop.eup %4183  ;;  %v1568_v11 = vmul.f32 1.442695, %v6749_v37 }
 0x32f   : > { %6745 = vst [vmem:[#allocation65_spill] sm:$0xff] %v5889_v25  ;;  %v5894_v41 = vpop.eup %4185 }
 0x330   : > { %6746 = vst [vmem:[#allocation66_spill] sm:$0xff] %v5894_v41 }
 0x336   : > { %v1457_v13 = vpop.xlane.xlu0 %1456 }
 0x337   : > { %v5819_v20 = vmax.f32 %v5807_v58, %v1457_v13  ;;  %v6734_v13 = vsub.f32 %v6732_v63, %v6733_v7  ;;  %v6755_v7 = vld [vmem:[#allocation17_spill] sm:$0xff] }
 0x339   : > { %2771 = vst.msk [vmem:[#allocation2 + $0xf8] sm:$0xff] %vm2130_vm1, %v5819_v20  ;;  %1743 = vperm.xlu1 %4094, %v5819_v20   ;;  %v1564_v18 = vmul.f32 1.442695, %v6734_v13  ;;  %v6756_v13 = vfloor.f32 %v6755_v7 }
 0x33d   : > { %2197 = vperm.xlu1 %4094, %v5821_v30  }
 0x33e   : > { %v1649_v62 = vpop.permute.xlu0 %1648 }
 0x33f   : > { %v1770_v60 = vsub.f32 %v6728_v47, %v1649_v62  ;;  %v1771_v53 = vsub.f32 %v6730_v0, %v1649_v62  ;;  %v5900_v62 = vpop.eup %4187  ;;  %v6752_v47 = vld [vmem:[#allocation77_spill] sm:$0xff] }
 0x340   : > { %6750 = vst [vmem:[#allocation67_spill] sm:$0xff] %v5900_v62  ;;  %v5910_v63 = vpop.eup %4189 }
 0x341   : > { %v1858_v43 = vmul.f32 1.442695, %v1770_v60  ;;  %v1860_v1 = vmul.f32 1.442695, %v1771_v53  ;;  %2207 = vperm.xlu1 %4094, %v5836_v50   ;;  %v6753_v60 = vsub.f32 %v6751_v46, %v6752_v47  ;;  %6754 = vst [vmem:[#allocation68_spill] sm:$0xff] %v5910_v63  ;;  %v5916_v14 = vpop.eup %4191  ;;  %v6766_v46 = vld [vmem:[#allocation19_spill] sm:$0xff] }
 0x342   : > { %v1654_v35 = vpop.permute.xlu0 %1653  ;;  %6759 = vst [vmem:[#allocation69_spill] sm:$0xff] %v5916_v14  ;;  %v6767_v47 = vfloor.f32 %v6766_v46  ;;  %v6775_v46 = vld [vmem:[#allocation23_spill] sm:$0xff] }
 0x343   : > { %4201 = vpow2.f32 %v1858_v43  ;;  %v1772_v36 = vsub.f32 %v6742_v28, %v1654_v35  ;;  %v1773_v21 = vsub.f32 %v6744_v33, %v1654_v35  ;;  %v1454_v3 = vpop.xlane.xlu1 %1453  ;;  %v1570_v6 = vmul.f32 1.442695, %v6753_v60  ;;  %v6757_v43 = vld [vmem:[#allocation18_spill] sm:$0xff]  ;;  %v5922_v33 = vpop.eup %4193 }
 0x344   : > { %4203 = vpow2.f32 %v1860_v1  ;;  %v5892_v12 = vmax.f32 %v5876_v57, %v1454_v3  ;;  %v6758_v1 = vfloor.f32 %v6757_v43  ;;  %v6762_v28 = vld [vmem:[#allocation22_spill] sm:$0xff]  ;;  %6764 = vst [vmem:[#allocation13_spill] sm:$0xff] %v5922_v33  ;;  %v5925_v5 = vpop.eup %4195  ;;  %v6770_v43 = vld [vmem:[#allocation31_spill] sm:$0xff] }
 0x345   : > { %4205 = vpow2.f32 %v1564_v18  ;;  %v1862_v4 = vmul.f32 1.442695, %v1772_v36  ;;  %v1864_v19 = vmul.f32 1.442695, %v1773_v21  ;;  %2212 = vperm.xlu1 %4094, %v5841_v2   ;;  %v6763_v36 = vfloor.f32 %v6762_v28 }
 0x346   : > { %4207 = vpow2.f32 %v1566_v52  ;;  %2770 = vst.msk [vmem:[#allocation2 + $0xf0] sm:$0xff] %vm2130_vm1, %v5892_v12  ;;  %1738 = vperm.xlu0 %4093, %v5892_v12   ;;  %v1659_v53 = vpop.permute.xlu0 %1658  ;;  %v6760_v52 = vld [vmem:[#allocation21_spill] sm:$0xff] }
 0x347   : > { %4209 = vpow2.f32 %v1862_v4  ;;  %v1774_v18 = vsub.f32 %v6756_v13, %v1659_v53  ;;  %v1775_v39 = vsub.f32 %v6758_v1, %v1659_v53  ;;  %v1669_v44 = vpop.permute.xlu1 %1668  ;;  %v6761_v35 = vfloor.f32 %v6760_v52  ;;  %v6768_v53 = vld [vmem:[#allocation20_spill] sm:$0xff] }
 0x348   : > { %4211 = vpow2.f32 %v1864_v19  ;;  %v1779_v40 = vsub.f32 %v6763_v36, %v1669_v44  ;;  %v5928_v19 = vpop.eup %4197 }
 0x349   : > { %v1778_v48 = vsub.f32 %v6761_v35, %v1669_v44  ;;  %4213 = vpow2.f32 %v1568_v11  ;;  %v1866_v21 = vmul.f32 1.442695, %v1774_v18  ;;  %v1868_v3 = vmul.f32 1.442695, %v1775_v39  ;;  %2222 = vperm.xlu1 %4094, %v5851_v17   ;;  %6765 = vst [vmem:[#allocation14_spill] sm:$0xff] %v5928_v19  ;;  %v5934_v18 = vpop.eup %4199  ;;  %v6772_v39 = vld [vmem:[#allocation32_spill] sm:$0xff] }
 0x34a   : > { %4215 = vpow2.f32 %v1570_v6  ;;  %v1876_v37 = vmul.f32 1.442695, %v1779_v40  ;;  %2202 = vperm.xlu0 %4093, %v5826_v59   ;;  %v1664_v4 = vpop.permute.xlu0 %1663  ;;  %v6769_v11 = vfloor.f32 %v6768_v53  ;;  %v6771_v6 = vfloor.f32 %v6770_v43 }
 0x34b   : > { %v1874_v55 = vmul.f32 1.442695, %v1778_v48  ;;  %4217 = vpow2.f32 %v1866_v21  ;;  %v1776_v60 = vsub.f32 %v6767_v47, %v1664_v4  ;;  %v1694_v13 = vpop.permute.xlu1 %1693  ;;  %v6773_v44 = vfloor.f32 %v6772_v39  ;;  %v6781_v39 = vld [vmem:[#allocation36_spill] sm:$0xff] }
 0x34c   : > { %v1777_v7 = vsub.f32 %v6769_v11, %v1664_v4  ;;  %4219 = vpow2.f32 %v1868_v3  ;;  %v1788_v1 = vsub.f32 %v6771_v6, %v1694_v13  ;;  %v6776_v47 = vfloor.f32 %v6775_v46  ;;  %v6777_v11 = vld [vmem:[#allocation24_spill] sm:$0xff] }
 0x34d   : > { %v1789_v52 = vsub.f32 %v6773_v44, %v1694_v13  ;;  %v4202_v35 = vpop.eup %4201  ;;  %4221 = vpow2.f32 %v1874_v55  ;;  %v1870_v48 = vmul.f32 1.442695, %v1776_v60  ;;  %2232 = vperm.xlu1 %4094, %v5862_v32   ;;  %v6778_v13 = vfloor.f32 %v6777_v11  ;;  %v6789_v32 = vld [vmem:[#allocation40_spill] sm:$0xff] }
 0x34e   : > { %v1872_v28 = vmul.f32 1.442695, %v1777_v7  ;;  %v4204_v36 = vpop.eup %4203  ;;  %4223 = vpow2.f32 %v1876_v37  ;;  %v1894_v40 = vmul.f32 1.442695, %v1788_v1  ;;  %2217 = vperm.xlu0 %4093, %v5846_v51   ;;  %v1674_v4 = vpop.permute.xlu0 %1673  ;;  %v6779_v37 = vld [vmem:[#allocation35_spill] sm:$0xff]  ;;  %v6782_v44 = vfloor.f32 %v6781_v39  ;;  %v6785_v39 = vld [vmem:[#allocation26_spill] sm:$0xff] }
 0x34f   : > { %v1896_v21 = vmul.f32 1.442695, %v1789_v52  ;;  %v5942_v3 = vpop.eup %4205  ;;  %4225 = vpow2.f32 %v1870_v48  ;;  %v1780_v53 = vsub.f32 %v6776_v47, %v1674_v4  ;;  %v1781_v55 = vsub.f32 %v6778_v13, %v1674_v4  ;;  %v1704_v60 = vpop.permute.xlu1 %1703 }
 0x350   : > { %6774 = vst [vmem:[#allocation70_spill] sm:$0xff] %v5942_v3  ;;  %v5948_v7 = vadd.f32 %v4204_v36, %v4202_v35  ;;  %v5950_v43 = vpop.eup %4207  ;;  %4227 = vpow2.f32 %v1872_v28  ;;  %v6780_v6 = vfloor.f32 %v6779_v37  ;;  %v1793_v52 = vsub.f32 %v6782_v44, %v1704_v60  ;;  %v6783_v37 = vld [vmem:[#allocation25_spill] sm:$0xff] }
 0x351   : > { %v4210_v0 = vpop.eup %4209  ;;  %4229 = vpow2.f32 %v1894_v40  ;;  %v1878_v48 = vmul.f32 1.442695, %v1780_v53  ;;  %v1880_v46 = vmul.f32 1.442695, %v1781_v55  ;;  %2242 = vperm.xlu1 %4094, %v5873_v22   ;;  %v6786_v40 = vfloor.f32 %v6785_v39 }
 0x352   : > { %v1792_v1 = vsub.f32 %v6780_v6, %v1704_v60  ;;  %v4212_v47 = vpop.eup %4211  ;;  %4231 = vpow2.f32 %v1896_v21  ;;  %v1904_v11 = vmul.f32 1.442695, %v1793_v52  ;;  %2227 = vperm.xlu0 %4093, %v5857_v15   ;;  %v1679_v13 = vpop.permute.xlu0 %1678  ;;  %v2399_v28 = vpack.c.bf16 %v4210_v0, %v4202_v35  ;;  %v6787_v21 = vld [vmem:[#allocation39_spill] sm:$0xff] }
 0x353   : > { %v5958_v54 = vpop.eup %4213  ;;  %4233 = vpow2.f32 %v1878_v48  ;;  %v6784_v6 = vfloor.f32 %v6783_v37  ;;  %v1783_v53 = vsub.f32 %v6786_v40, %v1679_v13  ;;  %v1714_v55 = vpop.permute.xlu1 %1713  ;;  %v2400_v44 = vpack.c.bf16 %v4212_v47, %v4204_v36 }
 0x354   : > { %v1902_v4 = vmul.f32 1.442695, %v1792_v1  ;;  %v5964_v22 = vpop.eup %4215  ;;  %4235 = vpow2.f32 %v1880_v46  ;;  %v6788_v1 = vfloor.f32 %v6787_v21  ;;  %v6790_v17 = vfloor.f32 %v6789_v32 }
 0x355   : > { %v1782_v60 = vsub.f32 %v6784_v6, %v1679_v13  ;;  %v5970_v2 = vadd.f32 %v4212_v47, %v4210_v0  ;;  %v4218_v48 = vpop.eup %4217  ;;  %v1884_v6 = vmul.f32 1.442695, %v1783_v53  ;;  %2595 = vmatprep.mubr.bf16.mxu1 %v2400_v44  ;;  %2252 = vperm.xlu1 %4094, %v5883_v10   ;;  %v6793_v47 = vld [vmem:[#allocation28_spill] sm:$0xff] }
 0x356   : > { %v1796_v52 = vsub.f32 %v6788_v1, %v1714_v55  ;;  %v1797_v35 = vsub.f32 %v6790_v17, %v1714_v55  ;;  %4237 = vpow2.f32 %v1902_v4  ;;  %v4220_v13 = vpop.eup %4219  ;;  %2596 = vmatmul.mubr.bf16.gmra.mrb[24].mxu1 %v2399_v28  ;;  %2237 = vperm.xlu0 %4093, %v5868_v34   ;;  %v1684_v46 = vpop.permute.xlu0 %1683  ;;  %v6791_v17 = vld [vmem:[#allocation27_spill] sm:$0xff]  ;;  %v6794_v4 = vfloor.f32 %v6793_v47  ;;  %v6797_v1 = vld [vmem:[#allocation44_spill] sm:$0xff] }
 0x357   : > { %v1882_v37 = vmul.f32 1.442695, %v1782_v60  ;;  %4239 = vpow2.f32 %v1904_v11  ;;  %v5974_v40 = vpop.eup %4221  ;;  %v6792_v32 = vfloor.f32 %v6791_v17  ;;  %v1724_v53 = vpop.permute.xlu1 %1723  ;;  %v5980_v55 = vadd.f32 %v4220_v13, %v4218_v48  ;;  %v6795_v11 = vld [vmem:[#allocation43_spill] sm:$0xff] }
 0x358   : > { %v1910_v36 = vmul.f32 1.442695, %v1796_v52  ;;  %v1912_v39 = vmul.f32 1.442695, %v1797_v35  ;;  %v1785_v60 = vsub.f32 %v6794_v4, %v1684_v46  ;;  %v4224_v44 = vpop.eup %4223  ;;  %v6796_v21 = vfloor.f32 %v6795_v11 }
 0x359   : > { %4241 = vpow2.f32 %v1882_v37  ;;  %v1784_v0 = vsub.f32 %v6792_v32, %v1684_v46  ;;  %v6798_v52 = vfloor.f32 %v6797_v1  ;;  %v4226_v10 = vpop.eup %4225  ;;  %2262 = vperm.xlu1 %4094, %v5894_v41   ;;  %v5988_v17 = vadd.f32 %v4224_v44, %v5974_v40 }
 0x35a   : > { %4243 = vpow2.f32 %v1884_v6  ;;  %v1800_v28 = vsub.f32 %v6796_v21, %v1724_v53  ;;  %v1888_v34 = vmul.f32 1.442695, %v1785_v60  ;;  %v4228_v46 = vpop.eup %4227  ;;  %2247 = vperm.xlu0 %4093, %v5878_v26   ;;  %v1689_v6 = vpop.permute.xlu0 %1688  ;;  %v2401_v4 = vpack.c.bf16 %v4226_v10, %v4218_v48  ;;  %v6801_v60 = vld [vmem:[#allocation30_spill] sm:$0xff]  ;;  %v6805_v26 = vld [vmem:[#allocation48_spill] sm:$0xff] }
 0x35b   : > { %v1801_v35 = vsub.f32 %v6798_v52, %v1724_v53  ;;  %4245 = vpow2.f32 %v1910_v36  ;;  %v1886_v37 = vmul.f32 1.442695, %v1784_v0  ;;  %v5991_v11 = vpop.eup %4229  ;;  %v6799_v53 = vld [vmem:[#allocation29_spill] sm:$0xff]  ;;  %v6802_v21 = vfloor.f32 %v6801_v60  ;;  %v1734_v52 = vpop.permute.xlu1 %1733 }
 0x35c   : > { %4247 = vpow2.f32 %v1912_v39  ;;  %v1918_v32 = vmul.f32 1.442695, %v1800_v28  ;;  %v6800_v36 = vfloor.f32 %v6799_v53  ;;  %v2402_v41 = vpack.c.bf16 %v4228_v46, %v4220_v13  ;;  %v5997_v15 = vpop.eup %4231  ;;  %v6803_v39 = vld [vmem:[#allocation47_spill] sm:$0xff] }
 0x35d   : > { %v1920_v47 = vmul.f32 1.442695, %v1801_v35  ;;  %4249 = vpow2.f32 %v1886_v37  ;;  %v1787_v1 = vsub.f32 %v6802_v21, %v1689_v6  ;;  %v6804_v28 = vfloor.f32 %v6803_v39  ;;  %v4234_v37 = vpop.eup %4233  ;;  %2272 = vperm.xlu1 %4094, %v5910_v63  }
 0x35e   : > { %v1786_v0 = vsub.f32 %v6800_v36, %v1689_v6  ;;  %4251 = vpow2.f32 %v1888_v34  ;;  %v6806_v50 = vfloor.f32 %v6805_v26  ;;  %v6003_v51 = vadd.f32 %v4228_v46, %v4226_v10  ;;  %2603 = vmatprep.mubr.bf16.mxu1 %v2402_v41  ;;  %v4236_v34 = vpop.eup %4235  ;;  %2257 = vperm.xlu0 %4093, %v5889_v25   ;;  %v6807_v10 = vld [vmem:[#allocation33_spill] sm:$0xff] }
 0x35f   : > { %v1804_v35 = vsub.f32 %v6804_v28, %v1734_v52  ;;  %4253 = vpow2.f32 %v1918_v32  ;;  %v1892_v36 = vmul.f32 1.442695, %v1787_v1  ;;  %v6008_v13 = vadd.f32 %v5997_v15, %v5991_v11  ;;  %2604 = vmatmul.mubr.bf16.gmra.mrb[28].mxu1 %v2401_v4  ;;  %v6809_v32 = vld [vmem:[#allocation34_spill] sm:$0xff] }
 0x360   : > { %v1805_v48 = vsub.f32 %v6806_v50, %v1734_v52  ;;  %v1890_v53 = vmul.f32 1.442695, %v1786_v0  ;;  %4255 = vpow2.f32 %v1920_v47  ;;  %v1699_v50 = vpop.permute.xlu0 %1698  ;;  %v6011_v26 = vpop.eup %4237  ;;  %v6808_v46 = vfloor.f32 %v6807_v10 }
 0x361   : > { %v1926_v6 = vmul.f32 1.442695, %v1804_v35  ;;  %v6810_v0 = vfloor.f32 %v6809_v32  ;;  %v2404_v1 = vpack.c.bf16 %v4236_v34, %v4224_v44  ;;  %v6017_v52 = vpop.eup %4239  ;;  %v6019_v47 = vadd.f32 %v4236_v34, %v4234_v37  ;;  %2282 = vperm.xlu1 %4094, %v5922_v33   ;;  %v6812_v44 = vld [vmem:[#allocation79_spill] sm:$0xff]  ;;  %v6816_v32 = vld [vmem:[#allocation38_spill] sm:$0xff] }
 0x362   : > { %v1928_v60 = vmul.f32 1.442695, %v1805_v48  ;;  %4257 = vpow2.f32 %v1890_v53  ;;  %v1790_v41 = vsub.f32 %v6808_v46, %v1699_v50  ;;  %v6026_v35 = vadd.f32 %v6017_v52, %v6011_v26  ;;  %v6811_v53 = vld [vmem:[#allocation78_spill] sm:$0xff]  ;;  %2267 = vperm.xlu0 %4093, %v5900_v62  }
 0x363   : > { %v1791_v21 = vsub.f32 %v6810_v0, %v1699_v50  ;;  %4259 = vpow2.f32 %v1892_v36  ;;  %v6021_v39 = vpop.eup %4241  ;;  %2611 = vmatprep.mubr.bf16.mxu1 %v2404_v1  ;;  %v6813_v50 = vsub.f32 %v6811_v53, %v6812_v44  ;;  %v6817_v0 = vfloor.f32 %v6816_v32  ;;  %v6818_v44 = vld [vmem:[#allocation80_spill] sm:$0xff]  ;;  %v6821_v32 = vld [vmem:[#allocation82_spill] sm:$0xff] }
 0x364   : > { %4261 = vpow2.f32 %v1926_v6  ;;  %v1898_v4 = vmul.f32 1.442695, %v1790_v41  ;;  %v4244_v48 = vpop.eup %4243  ;;  %v1709_v36 = vpop.permute.xlu0 %1708  ;;  %v6814_v6 = vld [vmem:[#allocation37_spill] sm:$0xff] }
 0x365   : > { %v1900_v28 = vmul.f32 1.442695, %v1791_v21  ;;  %v1572_v10 = vmul.f32 1.442695, %v6813_v50  ;;  %4263 = vpow2.f32 %v1928_v60  ;;  %v6032_v34 = vpop.eup %4245  ;;  %v6815_v46 = vfloor.f32 %v6814_v6  ;;  %2292 = vperm.xlu1 %4094, %v5928_v19  }
 0x366   : > { %4265 = vpow2.f32 %v1898_v4  ;;  %v1795_v21 = vsub.f32 %v6817_v0, %v1709_v36  ;;  %v6039_v1 = vadd.f32 %v4244_v48, %v6021_v39  ;;  %v6041_v33 = vpop.eup %4247  ;;  %v2403_v60 = vpack.c.bf16 %v4234_v37, %v5974_v40  ;;  %2277 = vperm.xlu0 %4093, %v5916_v14   ;;  %v6823_v37 = vld [vmem:[#allocation41_spill] sm:$0xff] }
 0x367   : > { %v1794_v41 = vsub.f32 %v6815_v46, %v1709_v36  ;;  %4267 = vpow2.f32 %v1900_v28  ;;  %v4250_v53 = vpop.eup %4249  ;;  %v6819_v50 = vsub.f32 %v6818_v44, %v5657_v27  ;;  %v6050_v36 = vadd.f32 %v6041_v33, %v6032_v34  ;;  %v6820_v46 = vld [vmem:[#allocation81_spill] sm:$0xff]  ;;  %v6825_v44 = vld [vmem:[#allocation42_spill] sm:$0xff] }
 0x368   : > { %v1908_v62 = vmul.f32 1.442695, %v1795_v21  ;;  %v4252_v6 = vpop.eup %4251  ;;  %4269 = vpow2.f32 %v1572_v10  ;;  %v6822_v28 = vsub.f32 %v6820_v46, %v6821_v32  ;;  %2612 = vmatmul.mubr.bf16.gmra.mrb[32].mxu1 %v2403_v60  ;;  %v1719_v40 = vpop.permute.xlu0 %1718  ;;  %v2405_v14 = vpack.c.bf16 %v4250_v53, %v6021_v39 }
 0x369   : > { %v1574_v63 = vmul.f32 1.442695, %v6819_v50  ;;  %v1906_v4 = vmul.f32 1.442695, %v1794_v41  ;;  %v6056_v27 = vpop.eup %4253  ;;  %v6824_v41 = vfloor.f32 %v6823_v37  ;;  %v6826_v50 = vfloor.f32 %v6825_v44  ;;  %2302 = vperm.xlu1 %4094, %v5942_v3  }
 0x36a   : > { %v1576_v0 = vmul.f32 1.442695, %v6822_v28  ;;  %v2406_v25 = vpack.c.bf16 %v4252_v6, %v4244_v48  ;;  %v6062_v30 = vpop.eup %4255  ;;  %v6064_v10 = vadd.f32 %v4252_v6, %v4250_v53  ;;  %v6828_v48 = vld [vmem:[#allocation85_spill] sm:$0xff]  ;;  %2287 = vperm.xlu0 %4093, %v5925_v5  }
 0x36b   : > { %4271 = vpow2.f32 %v1906_v4  ;;  %v1798_v21 = vsub.f32 %v6824_v41, %v1719_v40  ;;  %v1799_v19 = vsub.f32 %v6826_v50, %v1719_v40  ;;  %v6069_v4 = vadd.f32 %v6062_v30, %v6056_v27  ;;  %v6827_v40 = vld [vmem:[#allocation84_spill] sm:$0xff] }
 0x36c   : > { %4273 = vpow2.f32 %v1908_v62  ;;  %v4258_v46 = vpop.eup %4257  ;;  %2619 = vmatprep.mubr.bf16.mxu1 %v2406_v25  ;;  %v6829_v37 = vsub.f32 %v6827_v40, %v6828_v48  ;;  %v1729_v62 = vpop.permute.xlu0 %1728 }
 0x36d   : > { %4275 = vpow2.f32 %v1574_v63  ;;  %v1914_v60 = vmul.f32 1.442695, %v1798_v21  ;;  %v1916_v32 = vmul.f32 1.442695, %v1799_v19  ;;  %v4260_v28 = vpop.eup %4259  ;;  %v6830_v63 = vld [vmem:[#allocation45_spill] sm:$0xff]  ;;  %v6832_v21 = vld [vmem:[#allocation46_spill] sm:$0xff]  ;;  %2312 = vperm.xlu1 %4094, %v5958_v54  }
 0x36e   : > { %4277 = vpow2.f32 %v1576_v0  ;;  %v1580_v41 = vmul.f32 1.442695, %v6829_v37  ;;  %v4262_v6 = vpop.eup %4261  ;;  %v6831_v19 = vfloor.f32 %v6830_v63  ;;  %v6833_v44 = vfloor.f32 %v6832_v21  ;;  %2297 = vperm.xlu0 %4093, %v5934_v18  }
 0x36f   : > { %4279 = vpow2.f32 %v1914_v60  ;;  %v4264_v3 = vpop.eup %4263  ;;  %v6080_v0 = vadd.f32 %v4260_v28, %v4258_v46  ;;  %v2408_v37 = vpack.c.bf16 %v5997_v15, %v4260_v28 }
 0x370   : > { %v1802_v25 = vsub.f32 %v6831_v19, %v1729_v62  ;;  %v1803_v50 = vsub.f32 %v6833_v44, %v1729_v62  ;;  %4281 = vpow2.f32 %v1916_v32  ;;  %v4266_v59 = vpop.eup %4265  ;;  %v6084_v60 = vadd.f32 %v4264_v3, %v4262_v6  ;;  %2620 = vmatmul.mubr.bf16.gmra.mrb[36].mxu1 %v2405_v14  ;;  %v6834_v62 = vld [vmem:[#allocation83_spill] sm:$0xff] }
 0x371   : > { %v4268_v63 = vpop.eup %4267  ;;  %4283 = vpow2.f32 %v1580_v41  ;;  %v6835_v32 = vsub.f32 %v6834_v62, %v5679_v49  ;;  %2627 = vmatprep.mubr.bf16.mxu1 %v2408_v37  ;;  %v2407_v41 = vpack.c.bf16 %v5991_v11, %v4258_v46  ;;  %v2409_v46 = vpack.c.bf16 %v6011_v26, %v4266_v59 }
 0x372   : > { %v1922_v40 = vmul.f32 1.442695, %v1802_v25  ;;  %v1924_v48 = vmul.f32 1.442695, %v1803_v50  ;;  %v6090_v53 = vadd.f32 %v4268_v63, %v4266_v59  ;;  %v6092_v19 = vpop.eup %4269  ;;  %2307 = vperm.xlu0 %4093, %v5950_v43   ;;  %v2410_v44 = vpack.c.bf16 %v6017_v52, %v4268_v63 }
 0x373   : > { %v1578_v39 = vmul.f32 1.442695, %v6835_v32  ;;  %2322 = vperm.xlu1 %4094, %v6092_v19  }
 0x374   : > { %4285 = vpow2.f32 %v1922_v40 }
 0x375   : > { %4287 = vpow2.f32 %v1924_v48  ;;  %v4272_v25 = vpop.eup %4271 }
 0x376   : > { %v4274_v15 = vpop.eup %4273  ;;  %4289 = vpow2.f32 %v1578_v39  ;;  %2317 = vperm.xlu0 %4093, %v5964_v22   ;;  %v2411_v63 = vpack.c.bf16 %v6032_v34, %v4272_v25 }
 0x377   : > { %v6096_v14 = vpop.eup %4275  ;;  %v6098_v28 = vadd.f32 %v4274_v15, %v4272_v25  ;;  %v2412_v52 = vpack.c.bf16 %v6041_v33, %v4274_v15 }
 0x378   : > { %v6100_v49 = vpop.eup %4277  ;;  %2628 = vmatmul.mubr.bf16.gmra.mrb[40].mxu1 %v2407_v41 }
 0x379   : > { %v4280_v21 = vpop.eup %4279  ;;  %2332 = vperm.xlu1 %4094, %v6100_v49   ;;  %2635 = vmatprep.mubr.bf16.mxu1 %v2410_v44 }
 0x37a   : > { %v4282_v50 = vpop.eup %4281  ;;  %2327 = vperm.xlu0 %4093, %v6096_v14   ;;  %v2413_v41 = vpack.c.bf16 %v6056_v27, %v4280_v21 }
 0x37b   : > { %v2080_v40 = vadd.f32 %v4282_v50, %v4280_v21  ;;  %v6106_v48 = vpop.eup %4283  ;;  %v2414_v39 = vpack.c.bf16 %v6062_v30, %v4282_v50 }
 0x37d   : > { %2342 = vperm.xlu1 %4094, %v6106_v48  }
 0x37e   : > { %v4286_v37 = vpop.eup %4285 }
 0x37f   : > { %v4288_v62 = vpop.eup %4287  ;;  %v2415_v59 = vpack.c.bf16 %v4262_v6, %v4286_v37 }
 0x380   : > { %v6110_v11 = vadd.f32 %v4288_v62, %v4286_v37  ;;  %v6113_v32 = vpop.eup %4289  ;;  %2636 = vmatmul.mubr.bf16.gmra.mrb[44].mxu1 %v2409_v46  ;;  %v2416_v44 = vpack.c.bf16 %v4264_v3, %v4288_v62 }
 0x381   : > { %2337 = vperm.xlu0 %4093, %v6113_v32   ;;  %2643 = vmatprep.mubr.bf16.mxu1 %v2412_v52 }
 0x388   : > { %2644 = vmatmul.mubr.bf16.gmra.mrb[48].mxu1 %v2411_v63  ;;  %v2166_v63 = vld [vmem:[#allocation4 + $0x18] sm:$0xff] }
 0x389   : > { %2651 = vmatprep.mubr.bf16.mxu1 %v2414_v39 }
 0x390   : > { %2652 = vmatmul.mubr.bf16.gmra.mrb[52].mxu1 %v2413_v41  ;;  %v6844_v41 = vsub.f32 %v5807_v58, %v5819_v20 }
 0x391   : > { %2659 = vmatprep.mubr.bf16.mxu1 %v2416_v44 }
 0x398   : > { %2660 = vmatmul.mubr.bf16.gmra.mrb[56].mxu1 %v2415_v59 }
 0x3a0   : > { %2003 = vadd.xlane.f32.xlu0 %v5722_v42 }
 0x3a1   : > { %2006 = vadd.xlane.f32.xlu1 %v5728_v16  ;;  %v6836_v16 = vld [vmem:[#allocation56_spill] sm:$0xff] }
 0x3a4   : > { %2009 = vadd.xlane.f32.xlu0 %v5734_v23  ;;  %v6837_v23 = vfloor.f32 %v6836_v16 }
 0x3a5   : > { %2015 = vadd.xlane.f32.xlu1 %v5746_v38  ;;  %v6838_v38 = vld [vmem:[#allocation57_spill] sm:$0xff] }
 0x3a8   : > { %2012 = vadd.xlane.f32.xlu0 %v5740_v31 }
 0x3a9   : > { %2021 = vadd.xlane.f32.xlu1 %v5758_v56 }
 0x3ac   : > { %2018 = vadd.xlane.f32.xlu0 %v5752_v45  ;;  %v6839_v45 = vfloor.f32 %v6838_v38 }
 0x3ad   : > { %2027 = vadd.xlane.f32.xlu1 %v5766_v9 }
 0x3b0   : > { %2024 = vadd.xlane.f32.xlu0 %v5764_v8 }
 0x3b1   : > { %2033 = vadd.xlane.f32.xlu1 %v5770_v29  ;;  %v6840_v29 = vld [vmem:[#allocation63_spill] sm:$0xff] }
 0x3b4   : > { %2030 = vadd.xlane.f32.xlu0 %v5768_v24 }
 0x3b5   : > { %2039 = vadd.xlane.f32.xlu1 %v5948_v7 }
 0x3b8   : > { %2036 = vadd.xlane.f32.xlu0 %v5772_v61  ;;  %v1744_v42 = vpop.permute.xlu1 %1743  ;;  %v6841_v61 = vfloor.f32 %v6840_v29  ;;  %v2168_v29 = vld [vmem:[#allocation4 + $0x28] sm:$0xff] }
 0x3b9   : > { %2045 = vadd.xlane.f32.xlu1 %v5980_v55  ;;  %v1808_v31 = vsub.f32 %v6837_v23, %v1744_v42  ;;  %v1809_v56 = vsub.f32 %v6839_v45, %v1744_v42 }
 0x3bb   : > { %v1934_v8 = vmul.f32 1.442695, %v1808_v31  ;;  %v1936_v9 = vmul.f32 1.442695, %v1809_v56 }
 0x3bc   : > { %2042 = vadd.xlane.f32.xlu0 %v5970_v2  ;;  %v6842_v2 = vld [vmem:[#allocation64_spill] sm:$0xff]  ;;  %v2198_v55 = vpop.permute.xlu1 %2197 }
 0x3bd   : > { %2051 = vadd.xlane.f32.xlu1 %v5988_v17  ;;  %4291 = vpow2.f32 %v1934_v8  ;;  %v2163_v17 = vld [vmem:[#allocation4] sm:$0xff] }
 0x3be   : > { %4293 = vpow2.f32 %v1936_v9  ;;  %v2167_v9 = vld [vmem:[#allocation4 + $0x20] sm:$0xff] }
 0x3c0   : > { %2048 = vadd.xlane.f32.xlu0 %v6003_v51  ;;  %v6843_v51 = vfloor.f32 %v6842_v2 }
 0x3c1   : > { %2057 = vadd.xlane.f32.xlu1 %v6039_v1 }
 0x3c4   : > { %2054 = vadd.xlane.f32.xlu0 %v6019_v47  ;;  %v2164_v47 = vld [vmem:[#allocation4 + $0x8] sm:$0xff] }
 0x3c5   : > { %2063 = vadd.xlane.f32.xlu1 %v6080_v0  ;;  %v1739_v24 = vpop.permute.xlu0 %1738 }
 0x3c6   : > { %v1806_v30 = vsub.f32 %v6841_v61, %v1739_v24  ;;  %v1807_v33 = vsub.f32 %v6843_v51, %v1739_v24  ;;  %v6845_v51 = vsub.f32 %v5876_v57, %v5892_v12 }
 0x3c7   : > { %v4292_v27 = vpop.eup %4291 }
 0x3c8   : > { %2060 = vadd.xlane.f32.xlu0 %v6064_v10  ;;  %v1930_v3 = vmul.f32 1.442695, %v1806_v30  ;;  %v1932_v7 = vmul.f32 1.442695, %v1807_v33  ;;  %v2355_v10 = vmul.f32 %v2198_v55, %v2163_v17  ;;  %v1582_v33 = vmul.f32 1.442695, %v6845_v51 }
 0x3c9   : > { %2069 = vadd.xlane.f32.xlu1 %v6090_v53  ;;  %v2203_v34 = vpop.permute.xlu0 %2202  ;;  %v4294_v53 = vpop.eup %4293 }
 0x3ca   : > { %4295 = vpow2.f32 %v1930_v3  ;;  %v2095_v23 = vadd.f32 %v4294_v53, %v4292_v27 }
 0x3cb   : > { %4297 = vpow2.f32 %v1932_v7 }
 0x3cc   : > { %2066 = vadd.xlane.f32.xlu0 %v6008_v13  ;;  %v2208_v13 = vpop.permute.xlu1 %2207 }
 0x3cd   : > { %2075 = vadd.xlane.f32.xlu1 %v6098_v28  ;;  %v2356_v28 = vmul.f32 %v2203_v34, %v2164_v47  ;;  %v2218_v24 = vpop.permute.xlu0 %2217  ;;  %v2169_v34 = vld [vmem:[#allocation4 + $0x30] sm:$0xff] }
 0x3ce   : > { %v2359_v20 = vmul.f32 %v2218_v24, %v2167_v9 }
 0x3d0   : > { %2072 = vadd.xlane.f32.xlu0 %v6026_v35  ;;  %v3857_v26 = vpop.f32.mrb[0].mxu1  ;;  %v2213_v46 = vpop.permute.xlu1 %2212 }
 0x3d1   : > { %2081 = vadd.xlane.f32.xlu1 %v2080_v40  ;;  %v3858_v1 = vpop.f32.mrb[1].mxu1  ;;  %v2358_v31 = vmul.f32 %v2213_v46, %v2166_v63 }
 0x3d2   : > { %v3859_v6 = vadd.f32 %v3858_v1, %v3857_v26  ;;  %v3860_v0 = vpop.f32.mrb[2].mxu1  ;;  %v2228_v26 = vpop.permute.xlu0 %2227 }
 0x3d3   : > { %v3861_v25 = vpop.f32.mrb[3].mxu1  ;;  %v2361_v57 = vmul.f32 %v2228_v26, %v2169_v34 }
 0x3d4   : > { %2078 = vadd.xlane.f32.xlu0 %v6050_v36  ;;  %v4296_v15 = vpop.eup %4295  ;;  %v2676_v35 = vadd.f32 %v3859_v6, %v2355_v10  ;;  %v3862_v21 = vadd.f32 %v3861_v25, %v3860_v0  ;;  %v2223_v56 = vpop.permute.xlu1 %2222  ;;  %v2170_v10 = vld [vmem:[#allocation4 + $0x38] sm:$0xff] }
 0x3d5   : > { %2087 = vadd.xlane.f32.xlu1 %v6110_v11  ;;  %v4298_v50 = vpop.eup %4297  ;;  %v2417_v40 = vpack.c.bf16 %v4292_v27, %v4296_v15  ;;  %v2165_v11 = vld [vmem:[#allocation4 + $0x10] sm:$0xff]  ;;  %v2360_v3 = vmul.f32 %v2223_v56, %v2168_v29 }
 0x3d6   : > { %2708 = vst [vmem:[#allocation4] sm:$0xff] %v2676_v35  ;;  %v2677_v37 = vadd.f32 %v3862_v21, %v2356_v28  ;;  %v2418_v36 = vpack.c.bf16 %v4294_v53, %v4298_v50  ;;  %v2092_v62 = vadd.f32 %v4298_v50, %v4296_v15  ;;  %v2357_v44 = vmul.f32 %v2208_v13, %v2165_v11  ;;  %v2238_v53 = vpop.permute.xlu0 %2237  ;;  %v2171_v50 = vld [vmem:[#allocation4 + $0x40] sm:$0xff] }
 0x3d8   : > { %2084 = vadd.xlane.f32.xlu0 %v6069_v4  ;;  %2709 = vst [vmem:[#allocation4 + $0x8] sm:$0xff] %v2677_v37  ;;  %v3863_v52 = vpop.f32.mrb[4].mxu1  ;;  %2667 = vmatprep.mubr.bf16.mxu1 %v2418_v36  ;;  %v1584_v4 = vmul.f32 1.442695, %v6844_v41  ;;  %v2233_v7 = vpop.permute.xlu1 %2232  ;;  %v2172_v36 = vld [vmem:[#allocation4 + $0x48] sm:$0xff] }
 0x3d9   : > { %2093 = vadd.xlane.f32.xlu1 %v2092_v62  ;;  %v3864_v39 = vpop.f32.mrb[5].mxu1  ;;  %2668 = vmatmul.mubr.bf16.gmra.mrb[60].mxu1 %v2417_v40  ;;  %v2362_v15 = vmul.f32 %v2233_v7, %v2170_v10 }
 0x3da   : > { %v3865_v59 = vadd.f32 %v3864_v39, %v3863_v52  ;;  %v3866_v42 = vpop.f32.mrb[6].mxu1  ;;  %4299 = vpow2.f32 %v1584_v4  ;;  %v2248_v62 = vpop.permute.xlu0 %2247  ;;  %v2363_v52 = vmul.f32 %v2238_v53, %v2171_v50  ;;  %v2175_v53 = vld [vmem:[#allocation4 + $0x60] sm:$0xff] }
 0x3db   : > { %v3867_v16 = vpop.f32.mrb[7].mxu1  ;;  %4301 = vpow2.f32 %v1582_v33 }
 0x3dc   : > { %2090 = vadd.xlane.f32.xlu0 %v6084_v60  ;;  %v2678_v38 = vadd.f32 %v3865_v59, %v2357_v44  ;;  %v3868_v45 = vadd.f32 %v3867_v16, %v3866_v42  ;;  %v2243_v6 = vpop.permute.xlu1 %2242 }
 0x3dd   : > { %v2364_v4 = vmul.f32 %v2243_v6, %v2172_v36  ;;  %v1942_v36 = vld [vmem:[#allocation3 + $0x20] sm:$0xff] }
 0x3de   : > { %2710 = vst [vmem:[#allocation4 + $0x10] sm:$0xff] %v2678_v38  ;;  %v2679_v8 = vadd.f32 %v3868_v45, %v2358_v31  ;;  %v2258_v31 = vpop.permute.xlu0 %2257  ;;  %v2174_v45 = vld [vmem:[#allocation4 + $0x58] sm:$0xff] }
 0x3e0   : > { %2096 = vadd.xlane.f32.xlu0 %v2095_v23  ;;  %2711 = vst [vmem:[#allocation4 + $0x18] sm:$0xff] %v2679_v8  ;;  %v3869_v60 = vpop.f32.mrb[8].mxu1  ;;  %v2253_v40 = vpop.permute.xlu1 %2252  ;;  %v2173_v23 = vld [vmem:[#allocation4 + $0x50] sm:$0xff] }
 0x3e1   : > { %v3870_v58 = vpop.f32.mrb[9].mxu1  ;;  %v2365_v8 = vmul.f32 %v2248_v62, %v2173_v23  ;;  %v2366_v29 = vmul.f32 %v2253_v40, %v2174_v45  ;;  %v6847_v40 = vld [vmem:[#allocation49_spill] sm:$0xff]  ;;  %v2367_v62 = vmul.f32 %v2258_v31, %v2175_v53  ;;  %v1944_v31 = vld [vmem:[#allocation3 + $0x30] sm:$0xff]  ;;  %v2178_v53 = vld [vmem:[#allocation4 + $0x78] sm:$0xff] }
 0x3e2   : > { %v3871_v61 = vadd.f32 %v3870_v58, %v3869_v60  ;;  %v3872_v30 = vpop.f32.mrb[10].mxu1 }
 0x3e3   : > { %v3873_v2 = vpop.f32.mrb[11].mxu1 }
 0x3e4   : > { %v2680_v55 = vadd.f32 %v3871_v61, %v2359_v20  ;;  %v3874_v17 = vadd.f32 %v3873_v2, %v3872_v30  ;;  %v6163_v1 = vpop.eup %4299  ;;  %v2263_v42 = vpop.permute.xlu1 %2262 }
 0x3e5   : > { %v6166_v46 = vpop.eup %4301  ;;  %v2268_v30 = vpop.permute.xlu0 %2267 }
 0x3e6   : > { %2712 = vst [vmem:[#allocation4 + $0x20] sm:$0xff] %v2680_v55  ;;  %v2681_v47 = vadd.f32 %v3874_v17, %v2360_v3 }
 0x3e8   : > { %2713 = vst [vmem:[#allocation4 + $0x28] sm:$0xff] %v2681_v47  ;;  %v3875_v27 = vpop.f32.mrb[12].mxu1  ;;  %v6169_v58 = vpop.permute.xlu1 %2272 }
 0x3e9   : > { %v3876_v13 = vpop.f32.mrb[13].mxu1  ;;  %v6173_v33 = vpop.permute.xlu0 %2277 }
 0x3ea   : > { %2352 = vperm.xlu1 %4094, %v6163_v1   ;;  %v3877_v12 = vadd.f32 %v3876_v13, %v3875_v27  ;;  %v3878_v0 = vpop.f32.mrb[14].mxu1 }
 0x3eb   : > { %v3879_v25 = vpop.f32.mrb[15].mxu1 }
 0x3ec   : > { %v2682_v28 = vadd.f32 %v3877_v12, %v2361_v57  ;;  %v3880_v35 = vadd.f32 %v3879_v25, %v3878_v0  ;;  %v6171_v51 = vpop.permute.xlu1 %2282  ;;  %v1939_v57 = vld [vmem:[#allocation3 + $0x8] sm:$0xff]  ;;  %v1938_v0 = vld [vmem:[#allocation3] sm:$0xff] }
 0x3ed   : > { %v6177_v7 = vpop.permute.xlu0 %2287 }
 0x3ee   : > { %2714 = vst [vmem:[#allocation4 + $0x30] sm:$0xff] %v2682_v28  ;;  %v2683_v21 = vadd.f32 %v3880_v35, %v2362_v15  ;;  %v6846_v15 = vld [vmem:[#allocation50_spill] sm:$0xff] }
 0x3ef   : > { %v1971_v28 = vmul.f32 %v6846_v15, %v1939_v57  ;;  %v2176_v35 = vld [vmem:[#allocation4 + $0x68] sm:$0xff]  ;;  %v6850_v57 = vld [vmem:[#allocation55_spill] sm:$0xff] }
 0x3f0   : > { %2715 = vst [vmem:[#allocation4 + $0x38] sm:$0xff] %v2683_v21  ;;  %v3881_v37 = vpop.f32.mrb[16].mxu1  ;;  %v6175_v3 = vpop.permute.xlu1 %2292 }
 0x3f1   : > { %v3882_v11 = vpop.f32.mrb[17].mxu1  ;;  %v6181_v17 = vpop.permute.xlu0 %2297 }
 0x3f2   : > { %v3883_v63 = vadd.f32 %v3882_v11, %v3881_v37  ;;  %v3884_v39 = vpop.f32.mrb[18].mxu1  ;;  %v1970_v37 = vmul.f32 %v6847_v40, %v1938_v0  ;;  %v1976_v0 = vmul.f32 %v6850_v57, %v1944_v31  ;;  %v2179_v31 = vld [vmem:[#allocation4 + $0x80] sm:$0xff] }
 0x3f3   : > { %v3885_v41 = vpop.f32.mrb[19].mxu1 }
 0x3f4   : > { %v2684_v44 = vadd.f32 %v3883_v63, %v2363_v52  ;;  %v3886_v59 = vadd.f32 %v3885_v41, %v3884_v39  ;;  %v6179_v55 = vpop.permute.xlu1 %2302  ;;  %v1940_v41 = vld [vmem:[#allocation3 + $0x10] sm:$0xff] }
 0x3f5   : > { %v6185_v47 = vpop.permute.xlu0 %2307 }
 0x3f6   : > { %2347 = vperm.xlu0 %4093, %v6166_v46   ;;  %2716 = vst [vmem:[#allocation4 + $0x40] sm:$0xff] %v2684_v44  ;;  %v2685_v16 = vadd.f32 %v3886_v59, %v2364_v4  ;;  %v2368_v59 = vmul.f32 %v2263_v42, %v2176_v35 }
 0x3f8   : > { %2717 = vst [vmem:[#allocation4 + $0x48] sm:$0xff] %v2685_v16  ;;  %v3887_v38 = vpop.f32.mrb[20].mxu1  ;;  %v6183_v26 = vpop.permute.xlu1 %2312 }
 0x3f9   : > { %v3888_v56 = vpop.f32.mrb[21].mxu1  ;;  %v6189_v27 = vpop.permute.xlu0 %2317 }
 0x3fa   : > { %v3889_v9 = vadd.f32 %v3888_v56, %v3887_v38  ;;  %v3890_v24 = vpop.f32.mrb[22].mxu1  ;;  %v6848_v38 = vld [vmem:[#allocation53_spill] sm:$0xff] }
 0x3fb   : > { %v3891_v60 = vpop.f32.mrb[23].mxu1  ;;  %v1974_v45 = vmul.f32 %v6848_v38, %v1942_v36  ;;  %v1948_v38 = vld [vmem:[#allocation3 + $0x50] sm:$0xff] }
 0x3fc   : > { %v2686_v20 = vadd.f32 %v3889_v9, %v2365_v8  ;;  %v3892_v61 = vadd.f32 %v3891_v60, %v3890_v24  ;;  %v6187_v34 = vpop.permute.xlu1 %2322  ;;  %v6849_v8 = vld [vmem:[#allocation51_spill] sm:$0xff] }
 0x3fd   : > { %v6193_v13 = vpop.permute.xlu0 %2327  ;;  %v1972_v9 = vmul.f32 %v6849_v8, %v1940_v41 }
 0x3fe   : > { %2718 = vst [vmem:[#allocation4 + $0x50] sm:$0xff] %v2686_v20  ;;  %v2687_v2 = vadd.f32 %v3892_v61, %v2366_v29  ;;  %v1941_v20 = vld [vmem:[#allocation3 + $0x18] sm:$0xff]  ;;  %v2177_v61 = vld [vmem:[#allocation4 + $0x70] sm:$0xff] }
 0x400   : > { %2719 = vst [vmem:[#allocation4 + $0x58] sm:$0xff] %v2687_v2  ;;  %v6191_v10 = vpop.permute.xlu1 %2332 }
 0x401   : > { %v6197_v12 = vpop.permute.xlu0 %2337 }
 0x404   : > { %v6195_v6 = vpop.permute.xlu1 %2342 }
 0x429   : > { %v3893_v25 = vpop.f32.mrb[24].mxu1 }
 0x42a   : > { %v3894_v21 = vpop.f32.mrb[25].mxu1 }
 0x42b   : > { %v3895_v11 = vadd.f32 %v3894_v21, %v3893_v25  ;;  %v3896_v63 = vpop.f32.mrb[26].mxu1  ;;  %v1946_v21 = vld [vmem:[#allocation3 + $0x40] sm:$0xff] }
 0x42c   : > { %v3897_v44 = vpop.f32.mrb[27].mxu1 }
 0x42d   : > { %v2004_v39 = vpop.xlane.xlu0 %2003  ;;  %v2688_v16 = vadd.f32 %v3895_v11, %v2367_v62  ;;  %v3898_v23 = vadd.f32 %v3897_v44, %v3896_v63  ;;  %v1943_v11 = vld [vmem:[#allocation3 + $0x28] sm:$0xff]  ;;  %v6852_v44 = vld [vmem:[#allocation59_spill] sm:$0xff] }
 0x42e   : > { %v2007_v50 = vpop.xlane.xlu1 %2006  ;;  %v2098_v4 = vadd.f32 %v2004_v39, %v1970_v37  ;;  %v2370_v39 = vmul.f32 %v6169_v58, %v2178_v53  ;;  %v2371_v53 = vmul.f32 %v6173_v33, %v2179_v31  ;;  %v6859_v31 = vld [vmem:[#allocation62_spill] sm:$0xff] }
 0x42f   : > { %v2099_v52 = vadd.f32 %v2007_v50, %v1971_v28  ;;  %2720 = vst [vmem:[#allocation4 + $0x60] sm:$0xff] %v2688_v16  ;;  %v2689_v24 = vadd.f32 %v3898_v23, %v2368_v59  ;;  %v6851_v28 = vld [vmem:[#allocation52_spill] sm:$0xff]  ;;  %v2369_v50 = vmul.f32 %v2268_v30, %v2177_v61  ;;  %v1978_v59 = vmul.f32 %v6852_v44, %v1946_v21  ;;  %v6853_v23 = vld [vmem:[#allocation54_spill] sm:$0xff] }
 0x430   : > { %2131 = vst.msk [vmem:[#allocation3] sm:$0xff] %vm2130_vm1, %v2098_v4  ;;  %v1973_v35 = vmul.f32 %v6851_v28, %v1941_v20  ;;  %v1975_v30 = vmul.f32 %v6853_v23, %v1943_v11  ;;  %v2180_v20 = vld [vmem:[#allocation4 + $0x88] sm:$0xff]  ;;  %v6856_v11 = vld [vmem:[#allocation65_spill] sm:$0xff]  ;;  %v2181_v23 = vld [vmem:[#allocation4 + $0x90] sm:$0xff] }
 0x431   : > { %2132 = vst.msk [vmem:[#allocation3 + $0x8] sm:$0xff] %vm2130_vm1, %v2099_v52  ;;  %v2010_v29 = vpop.xlane.xlu0 %2009  ;;  %2721 = vst [vmem:[#allocation4 + $0x68] sm:$0xff] %v2689_v24  ;;  %v1947_v21 = vld [vmem:[#allocation3 + $0x48] sm:$0xff] }
 0x432   : > { %v2016_v56 = vpop.xlane.xlu1 %2015  ;;  %v2100_v2 = vadd.f32 %v2010_v29, %v1972_v9  ;;  %v3899_v42 = vpop.f32.mrb[28].mxu1  ;;  %v1945_v9 = vld [vmem:[#allocation3 + $0x38] sm:$0xff] }
 0x433   : > { %v2102_v60 = vadd.f32 %v2016_v56, %v1974_v45  ;;  %v3900_v25 = vpop.f32.mrb[29].mxu1 }
 0x434   : > { %2133 = vst.msk [vmem:[#allocation3 + $0x10] sm:$0xff] %vm2130_vm1, %v2100_v2  ;;  %v3901_v40 = vadd.f32 %v3900_v25, %v3899_v42  ;;  %v3902_v36 = vpop.f32.mrb[30].mxu1  ;;  %v6855_v42 = vld [vmem:[#allocation58_spill] sm:$0xff] }
 0x435   : > { %2135 = vst.msk [vmem:[#allocation3 + $0x20] sm:$0xff] %vm2130_vm1, %v2102_v60  ;;  %v2013_v62 = vpop.xlane.xlu0 %2012  ;;  %v3903_v63 = vpop.f32.mrb[31].mxu1  ;;  %v6854_v60 = vld [vmem:[#allocation61_spill] sm:$0xff]  ;;  %v1977_v57 = vmul.f32 %v6855_v42, %v1945_v9  ;;  %v1951_v42 = vld [vmem:[#allocation3 + $0x68] sm:$0xff] }
 0x436   : > { %v2022_v15 = vpop.xlane.xlu1 %2021  ;;  %v2101_v52 = vadd.f32 %v2013_v62, %v1973_v35  ;;  %v2690_v41 = vadd.f32 %v3901_v40, %v2369_v50  ;;  %v3904_v4 = vadd.f32 %v3903_v63, %v3902_v36  ;;  %v1980_v29 = vmul.f32 %v6854_v60, %v1948_v38  ;;  %v6858_v38 = vld [vmem:[#allocation67_spill] sm:$0xff] }
 0x437   : > { %v2104_v37 = vadd.f32 %v2022_v15, %v1976_v0  ;;  %v1950_v0 = vld [vmem:[#allocation3 + $0x60] sm:$0xff]  ;;  %v2373_v60 = vmul.f32 %v6177_v7, %v2181_v23 }
 0x438   : > { %2134 = vst.msk [vmem:[#allocation3 + $0x18] sm:$0xff] %vm2130_vm1, %v2101_v52  ;;  %2722 = vst [vmem:[#allocation4 + $0x70] sm:$0xff] %v2690_v41  ;;  %v2691_v45 = vadd.f32 %v3904_v4, %v2370_v39  ;;  %v1982_v52 = vmul.f32 %v6856_v11, %v1950_v0  ;;  %v6857_v39 = vld [vmem:[#allocation60_spill] sm:$0xff]  ;;  %v1952_v41 = vld [vmem:[#allocation3 + $0x70] sm:$0xff] }
 0x439   : > { %2137 = vst.msk [vmem:[#allocation3 + $0x30] sm:$0xff] %vm2130_vm1, %v2104_v37  ;;  %v2019_v8 = vpop.xlane.xlu0 %2018  ;;  %v2372_v37 = vmul.f32 %v6171_v51, %v2180_v20  ;;  %v1979_v33 = vmul.f32 %v6857_v39, %v1947_v21  ;;  %v1953_v11 = vld [vmem:[#allocation3 + $0x78] sm:$0xff] }
 0x43a   : > { %v2028_v16 = vpop.xlane.xlu1 %2027  ;;  %v2103_v24 = vadd.f32 %v2019_v8, %v1975_v30  ;;  %2723 = vst [vmem:[#allocation4 + $0x78] sm:$0xff] %v2691_v45  ;;  %v1984_v45 = vmul.f32 %v6858_v38, %v1952_v41 }
 0x43b   : > { %v2106_v56 = vadd.f32 %v2028_v16, %v1978_v59  ;;  %v3905_v58 = vpop.f32.mrb[32].mxu1  ;;  %v1949_v16 = vld [vmem:[#allocation3 + $0x58] sm:$0xff] }
 0x43c   : > { %2136 = vst.msk [vmem:[#allocation3 + $0x28] sm:$0xff] %vm2130_vm1, %v2103_v24  ;;  %v3906_v61 = vpop.f32.mrb[33].mxu1  ;;  %v1981_v24 = vmul.f32 %v6859_v31, %v1949_v16  ;;  %v1958_v16 = vld [vmem:[#allocation3 + $0xa0] sm:$0xff] }
 0x43d   : > { %2139 = vst.msk [vmem:[#allocation3 + $0x40] sm:$0xff] %vm2130_vm1, %v2106_v56  ;;  %v3907_v25 = vadd.f32 %v3906_v61, %v3905_v58  ;;  %v3908_v28 = vpop.f32.mrb[34].mxu1  ;;  %v2025_v35 = vpop.xlane.xlu0 %2024  ;;  %v2182_v56 = vld [vmem:[#allocation4 + $0x98] sm:$0xff]  ;;  %v1954_v58 = vld [vmem:[#allocation3 + $0x80] sm:$0xff] }
 0x43e   : > { %v2034_v2 = vpop.xlane.xlu1 %2033  ;;  %v2105_v50 = vadd.f32 %v2025_v35, %v1977_v57  ;;  %v3909_v40 = vpop.f32.mrb[35].mxu1 }
 0x43f   : > { %v2108_v15 = vadd.f32 %v2034_v2, %v1980_v29  ;;  %v2692_v36 = vadd.f32 %v3907_v25, %v2371_v53  ;;  %v3910_v62 = vadd.f32 %v3909_v40, %v3908_v28  ;;  %v2374_v53 = vmul.f32 %v6175_v3, %v2182_v56  ;;  %v6860_v28 = vld [vmem:[#allocation69_spill] sm:$0xff]  ;;  %v1956_v40 = vld [vmem:[#allocation3 + $0x90] sm:$0xff]  ;;  %v1955_v56 = vld [vmem:[#allocation3 + $0x88] sm:$0xff] }
 0x440   : > { %2138 = vst.msk [vmem:[#allocation3 + $0x38] sm:$0xff] %vm2130_vm1, %v2105_v50  ;;  %v1986_v35 = vmul.f32 %v6860_v28, %v1954_v58  ;;  %v6861_v50 = vld [vmem:[#allocation66_spill] sm:$0xff]  ;;  %v1988_v39 = vmul.f32 %v5925_v5, %v1956_v40  ;;  %v1990_v58 = vmul.f32 %v5934_v18, %v1958_v16  ;;  %v2186_v18 = vld [vmem:[#allocation4 + $0xb8] sm:$0xff] }
 0x441   : > { %2141 = vst.msk [vmem:[#allocation3 + $0x50] sm:$0xff] %vm2130_vm1, %v2108_v15  ;;  %2724 = vst [vmem:[#allocation4 + $0x80] sm:$0xff] %v2692_v36  ;;  %v2693_v4 = vadd.f32 %v3910_v62, %v2372_v37  ;;  %v2031_v59 = vpop.xlane.xlu0 %2030  ;;  %v1983_v7 = vmul.f32 %v6861_v50, %v1951_v42  ;;  %v1962_v50 = vld [vmem:[#allocation3 + $0xc0] sm:$0xff] }
 0x442   : > { %v2040_v63 = vpop.xlane.xlu1 %2039  ;;  %v2107_v30 = vadd.f32 %v2031_v59, %v1979_v33  ;;  %v2184_v33 = vld [vmem:[#allocation4 + $0xa8] sm:$0xff] }
 0x443   : > { %v2110_v44 = vadd.f32 %v2040_v63, %v1982_v52  ;;  %2725 = vst [vmem:[#allocation4 + $0x88] sm:$0xff] %v2693_v4  ;;  %v3911_v51 = vpop.f32.mrb[36].mxu1  ;;  %v2183_v52 = vld [vmem:[#allocation4 + $0xa0] sm:$0xff]  ;;  %v2376_v31 = vmul.f32 %v6179_v55, %v2184_v33  ;;  %v1994_v33 = vmul.f32 %v5964_v22, %v1962_v50  ;;  %v2188_v22 = vld [vmem:[#allocation4 + $0xc8] sm:$0xff] }
 0x444   : > { %2140 = vst.msk [vmem:[#allocation3 + $0x48] sm:$0xff] %vm2130_vm1, %v2107_v30  ;;  %v3912_v8 = vpop.f32.mrb[37].mxu1  ;;  %v2375_v23 = vmul.f32 %v6181_v17, %v2183_v52 }
 0x445   : > { %2143 = vst.msk [vmem:[#allocation3 + $0x60] sm:$0xff] %vm2130_vm1, %v2110_v44  ;;  %v3913_v29 = vadd.f32 %v3912_v8, %v3911_v51  ;;  %v3914_v61 = vpop.f32.mrb[38].mxu1  ;;  %v2037_v2 = vpop.xlane.xlu0 %2036  ;;  %v6862_v44 = vld [vmem:[#allocation68_spill] sm:$0xff] }
 0x446   : > { %v2046_v9 = vpop.xlane.xlu1 %2045  ;;  %v2109_v57 = vadd.f32 %v2037_v2, %v1981_v24  ;;  %v3915_v0 = vpop.f32.mrb[39].mxu1  ;;  %v1985_v59 = vmul.f32 %v6862_v44, %v1953_v11  ;;  %v1959_v11 = vld [vmem:[#allocation3 + $0xa8] sm:$0xff]  ;;  %v1964_v44 = vld [vmem:[#allocation3 + $0xd0] sm:$0xff] }
 0x447   : > { %v2112_v20 = vadd.f32 %v2046_v9, %v1984_v45  ;;  %v2694_v25 = vadd.f32 %v3913_v29, %v2373_v60  ;;  %v3916_v15 = vadd.f32 %v3915_v0, %v3914_v61  ;;  %v6863_v29 = vld [vmem:[#allocation13_spill] sm:$0xff]  ;;  %v2185_v0 = vld [vmem:[#allocation4 + $0xb0] sm:$0xff] }
 0x448   : > { %2142 = vst.msk [vmem:[#allocation3 + $0x58] sm:$0xff] %vm2130_vm1, %v2109_v57  ;;  %v1987_v17 = vmul.f32 %v6863_v29, %v1955_v56  ;;  %v1957_v57 = vld [vmem:[#allocation3 + $0x98] sm:$0xff] }
 0x449   : > { %2145 = vst.msk [vmem:[#allocation3 + $0x70] sm:$0xff] %vm2130_vm1, %v2112_v20  ;;  %2726 = vst [vmem:[#allocation4 + $0x90] sm:$0xff] %v2694_v25  ;;  %v2695_v37 = vadd.f32 %v3916_v15, %v2374_v53  ;;  %v2043_v62 = vpop.xlane.xlu0 %2042  ;;  %v1960_v20 = vld [vmem:[#allocation3 + $0xb0] sm:$0xff] }
 0x44a   : > { %v2052_v21 = vpop.xlane.xlu1 %2051  ;;  %v2111_v63 = vadd.f32 %v2043_v62, %v1983_v7  ;;  %v1992_v25 = vmul.f32 %v5950_v43, %v1960_v20  ;;  %v2377_v7 = vmul.f32 %v6185_v47, %v2185_v0 }
 0x44b   : > { %v2114_v36 = vadd.f32 %v2052_v21, %v1986_v35  ;;  %2727 = vst [vmem:[#allocation4 + $0x98] sm:$0xff] %v2695_v37  ;;  %v3917_v3 = vpop.f32.mrb[40].mxu1  ;;  %v6864_v35 = vld [vmem:[#allocation14_spill] sm:$0xff] }
 0x44c   : > { %2144 = vst.msk [vmem:[#allocation3 + $0x68] sm:$0xff] %vm2130_vm1, %v2111_v63  ;;  %v3918_v41 = vpop.f32.mrb[41].mxu1  ;;  %v1989_v21 = vmul.f32 %v6864_v35, %v1957_v57  ;;  %v2190_v35 = vld [vmem:[#allocation4 + $0xd8] sm:$0xff] }
 0x44d   : > { %2147 = vst.msk [vmem:[#allocation3 + $0x80] sm:$0xff] %vm2130_vm1, %v2114_v36  ;;  %v3919_v30 = vadd.f32 %v3918_v41, %v3917_v3  ;;  %v3920_v38 = vpop.f32.mrb[42].mxu1  ;;  %v2049_v45 = vpop.xlane.xlu0 %2048  ;;  %v2378_v3 = vmul.f32 %v6183_v26, %v2186_v18  ;;  %v2189_v18 = vld [vmem:[#allocation4 + $0xd0] sm:$0xff] }
 0x44e   : > { %v2058_v4 = vpop.xlane.xlu1 %2057  ;;  %v2113_v8 = vadd.f32 %v2049_v45, %v1985_v59  ;;  %v3921_v9 = vpop.f32.mrb[43].mxu1  ;;  %v1996_v45 = vmul.f32 %v6096_v14, %v1964_v44  ;;  %v2192_v44 = vld [vmem:[#allocation4 + $0xe8] sm:$0xff] }
 0x44f   : > { %v2116_v51 = vadd.f32 %v2058_v4, %v1988_v39  ;;  %v2696_v5 = vadd.f32 %v3919_v30, %v2375_v23  ;;  %v3922_v24 = vadd.f32 %v3921_v9, %v3920_v38  ;;  %v6865_v4 = vld [vmem:[#allocation70_spill] sm:$0xff]  ;;  %v1961_v30 = vld [vmem:[#allocation3 + $0xb8] sm:$0xff] }
 0x450   : > { %2146 = vst.msk [vmem:[#allocation3 + $0x78] sm:$0xff] %vm2130_vm1, %v2113_v8  ;;  %v1991_v47 = vmul.f32 %v6865_v4, %v1959_v11  ;;  %v1993_v9 = vmul.f32 %v5958_v54, %v1961_v30  ;;  %v2191_v4 = vld [vmem:[#allocation4 + $0xe0] sm:$0xff] }
 0x451   : > { %2149 = vst.msk [vmem:[#allocation3 + $0x90] sm:$0xff] %vm2130_vm1, %v2116_v51  ;;  %2728 = vst [vmem:[#allocation4 + $0xa0] sm:$0xff] %v2696_v5  ;;  %v2697_v61 = vadd.f32 %v3922_v24, %v2376_v31  ;;  %v2055_v42 = vpop.xlane.xlu0 %2054  ;;  %v2187_v51 = vld [vmem:[#allocation4 + $0xc0] sm:$0xff] }
 0x452   : > { %v2064_v60 = vpop.xlane.xlu1 %2063  ;;  %v2115_v53 = vadd.f32 %v2055_v42, %v1987_v17  ;;  %v1966_v31 = vld [vmem:[#allocation3 + $0xe0] sm:$0xff]  ;;  %v2379_v5 = vmul.f32 %v6189_v27, %v2187_v51  ;;  %v1963_v17 = vld [vmem:[#allocation3 + $0xc8] sm:$0xff] }
 0x453   : > { %v2118_v2 = vadd.f32 %v2064_v60, %v1990_v58  ;;  %2729 = vst [vmem:[#allocation4 + $0xa8] sm:$0xff] %v2697_v61  ;;  %v3923_v55 = vpop.f32.mrb[44].mxu1  ;;  %v1998_v57 = vmul.f32 %v6113_v32, %v1966_v31  ;;  %v1995_v27 = vmul.f32 %v6092_v19, %v1963_v17  ;;  %v2381_v19 = vmul.f32 %v6193_v13, %v2189_v18 }
 0x454   : > { %2148 = vst.msk [vmem:[#allocation3 + $0x88] sm:$0xff] %vm2130_vm1, %v2115_v53  ;;  %v3924_v15 = vpop.f32.mrb[45].mxu1 }
 0x455   : > { %2151 = vst.msk [vmem:[#allocation3 + $0xa0] sm:$0xff] %vm2130_vm1, %v2118_v2  ;;  %v3925_v40 = vadd.f32 %v3924_v15, %v3923_v55  ;;  %v3926_v37 = vpop.f32.mrb[46].mxu1  ;;  %v2061_v62 = vpop.xlane.xlu0 %2060  ;;  %v2380_v2 = vmul.f32 %v6187_v34, %v2188_v22 }
 0x456   : > { %v2070_v28 = vpop.xlane.xlu1 %2069  ;;  %v2117_v52 = vadd.f32 %v2061_v62, %v1989_v21  ;;  %v3927_v63 = vpop.f32.mrb[47].mxu1 }
 0x457   : > { %v2120_v36 = vadd.f32 %v2070_v28, %v1992_v25  ;;  %v2698_v43 = vadd.f32 %v3925_v40, %v2377_v7  ;;  %v3928_v39 = vadd.f32 %v3927_v63, %v3926_v37  ;;  %v1965_v25 = vld [vmem:[#allocation3 + $0xd8] sm:$0xff]  ;;  %v1968_v28 = vld [vmem:[#allocation3 + $0xf0] sm:$0xff]  ;;  %v1967_v37 = vld [vmem:[#allocation3 + $0xe8] sm:$0xff] }
 0x458   : > { %2150 = vst.msk [vmem:[#allocation3 + $0x98] sm:$0xff] %vm2130_vm1, %v2117_v52  ;;  %v1997_v21 = vmul.f32 %v6100_v49, %v1965_v25  ;;  %v2000_v11 = vmul.f32 %v6166_v46, %v1968_v28  ;;  %v2382_v52 = vmul.f32 %v6191_v10, %v2190_v35  ;;  %v1999_v49 = vmul.f32 %v6106_v48, %v1967_v37  ;;  %v2784_v28 = vld [vmem:[#allocation3 + $0x40] sm:$0xff] (!%p3574_p4) }
 0x459   : > { %2153 = vst.msk [vmem:[#allocation3 + $0xb0] sm:$0xff] %vm2130_vm1, %v2120_v36  ;;  %2730 = vst [vmem:[#allocation4 + $0xb0] sm:$0xff] %v2698_v43  ;;  %v2699_v59 = vadd.f32 %v3928_v39, %v2378_v3  ;;  %v2067_v23 = vpop.xlane.xlu0 %2066  ;;  %v2788_v37 = vld [vmem:[#allocation3 + $0x60] sm:$0xff] (!%p3574_p4) }
 0x45a   : > { %v2076_v41 = vpop.xlane.xlu1 %2075  ;;  %v2119_v38 = vadd.f32 %v2067_v23, %v1991_v47 }
 0x45b   : > { %v2122_v16 = vadd.f32 %v2076_v41, %v1994_v33  ;;  %2731 = vst [vmem:[#allocation4 + $0xb8] sm:$0xff] %v2699_v59  ;;  %v3929_v26 = vpop.f32.mrb[48].mxu1  ;;  %v1969_v41 = vld [vmem:[#allocation3 + $0xf8] sm:$0xff] }
 0x45c   : > { %2152 = vst.msk [vmem:[#allocation3 + $0xa8] sm:$0xff] %vm2130_vm1, %v2119_v38  ;;  %v3930_v56 = vpop.f32.mrb[49].mxu1  ;;  %v2001_v59 = vmul.f32 %v6163_v1, %v1969_v41  ;;  %v2194_v1 = vld [vmem:[#allocation4 + $0xf8] sm:$0xff]  ;;  %v2794_v41 = vld [vmem:[#allocation3 + $0x90] sm:$0xff] (!%p3574_p4) }
 0x45d   : > { %2155 = vst.msk [vmem:[#allocation3 + $0xc0] sm:$0xff] %vm2130_vm1, %v2122_v16  ;;  %v3931_v24 = vadd.f32 %v3930_v56, %v3929_v26  ;;  %v3932_v58 = vpop.f32.mrb[50].mxu1  ;;  %v2073_v29 = vpop.xlane.xlu0 %2072  ;;  %v2383_v16 = vmul.f32 %v6197_v12, %v2191_v4  ;;  %v2384_v26 = vmul.f32 %v6195_v6, %v2192_v44  ;;  %v2796_v44 = vld [vmem:[#allocation3 + $0xa0] sm:$0xff] (!%p3574_p4) }
 0x45e   : > { %v2082_v8 = vpop.xlane.xlu1 %2081  ;;  %v2121_v20 = vadd.f32 %v2073_v29, %v1993_v9  ;;  %v3933_v61 = vpop.f32.mrb[51].mxu1 }
 0x45f   : > { %v2124_v60 = vadd.f32 %v2082_v8, %v1996_v45  ;;  %v2700_v14 = vadd.f32 %v3931_v24, %v2379_v5  ;;  %v3934_v42 = vadd.f32 %v3933_v61, %v3932_v58  ;;  %v2193_v8 = vld [vmem:[#allocation4 + $0xf0] sm:$0xff] }
 0x460   : > { %2154 = vst.msk [vmem:[#allocation3 + $0xb8] sm:$0xff] %vm2130_vm1, %v2121_v20 }
 0x461   : > { %2157 = vst.msk [vmem:[#allocation3 + $0xd0] sm:$0xff] %vm2130_vm1, %v2124_v60  ;;  %2732 = vst [vmem:[#allocation4 + $0xc0] sm:$0xff] %v2700_v14  ;;  %v2701_v0 = vadd.f32 %v3934_v42, %v2380_v2  ;;  %v2079_v55 = vpop.xlane.xlu0 %2078  ;;  %v2778_v2 = vld [vmem:[#allocation3 + $0x10] sm:$0xff] (!%p3574_p4)  ;;  %v2776_v14 = vld [vmem:[#allocation3] sm:$0xff] (!%p3574_p4) }
 0x462   : > { %v2088_v54 = vpop.xlane.xlu1 %2087  ;;  %v2123_v15 = vadd.f32 %v2079_v55, %v1995_v27  ;;  %v2779_v42 = vld [vmem:[#allocation3 + $0x18] sm:$0xff] (!%p3574_p4)  ;;  %4305 = vrcp.f32 (!%p3574_p4), %v2778_v2  ;;  %v2781_v27 = vld [vmem:[#allocation3 + $0x28] sm:$0xff] (!%p3574_p4)  ;;  %v2782_v55 = vld [vmem:[#allocation3 + $0x30] sm:$0xff] (!%p3574_p4) }
 0x463   : > { %v2126_v53 = vadd.f32 %v2088_v54, %v1998_v57  ;;  %2733 = vst [vmem:[#allocation4 + $0xc8] sm:$0xff] %v2701_v0  ;;  %v3935_v34 = vpop.f32.mrb[52].mxu1  ;;  %v4476_v57 = vmov (!%p3574_p4), 0   ;;  %v2777_v54 = vld [vmem:[#allocation3 + $0x8] sm:$0xff] (!%p3574_p4)  ;;  %4307 = vrcp.f32 (!%p3574_p4), %v2776_v14  ;;  %v2780_v0 = vld [vmem:[#allocation3 + $0x20] sm:$0xff] (!%p3574_p4) }
 0x464   : > { %2156 = vst.msk [vmem:[#allocation3 + $0xc8] sm:$0xff] %vm2130_vm1, %v2123_v15  ;;  %v3936_v32 = vpop.f32.mrb[53].mxu1  ;;  %4304 = vset.pattern.permute.xlu1 (!%p3574_p4), %v4476_v57  ;;  %4303 = vset.pattern.permute.xlu0 (!%p3574_p4), %v4476_v57  ;;  %4309 = vrcp.f32 (!%p3574_p4), %v2779_v42  ;;  %v2785_v15 = vld [vmem:[#allocation3 + $0x48] sm:$0xff] (!%p3574_p4)  ;;  %v2842_v57 = vld [vmem:[#allocation4 + $0x10] sm:$0xff] (!%p3574_p4) }
 0x465   : > { %2159 = vst.msk [vmem:[#allocation3 + $0xe0] sm:$0xff] %vm2130_vm1, %v2126_v53  ;;  %v3937_v50 = vadd.f32 %v3936_v32, %v3935_v34  ;;  %v3938_v7 = vpop.f32.mrb[54].mxu1  ;;  %v2085_v40 = vpop.xlane.xlu0 %2084  ;;  %4311 = vrcp.f32 (!%p3574_p4), %v2777_v54  ;;  %v2783_v53 = vld [vmem:[#allocation3 + $0x38] sm:$0xff] (!%p3574_p4) }
 0x466   : > { %v2125_v36 = vadd.f32 %v2085_v40, %v1997_v21  ;;  %v3939_v62 = vpop.f32.mrb[55].mxu1  ;;  %v2094_v43 = vpop.xlane.xlu1 %2093  ;;  %4313 = vrcp.f32 (!%p3574_p4), %v2781_v27  ;;  %v2787_v32 = vld [vmem:[#allocation3 + $0x58] sm:$0xff] (!%p3574_p4)  ;;  %v2840_v27 = vld [vmem:[#allocation4] sm:$0xff] (!%p3574_p4) }
 0x467   : > { %v2702_v63 = vadd.f32 %v3937_v50, %v2381_v19  ;;  %v3940_v3 = vadd.f32 %v3939_v62, %v3938_v7  ;;  %v2128_v39 = vadd.f32 %v2094_v43, %v2000_v11  ;;  %4315 = vrcp.f32 (!%p3574_p4), %v2780_v0  ;;  %v2786_v19 = vld [vmem:[#allocation3 + $0x50] sm:$0xff] (!%p3574_p4)  ;;  %v2789_v7 = vld [vmem:[#allocation3 + $0x68] sm:$0xff] (!%p3574_p4)  ;;  %v2791_v62 = vld [vmem:[#allocation3 + $0x78] sm:$0xff] (!%p3574_p4) }
 0x468   : > { %2158 = vst.msk [vmem:[#allocation3 + $0xd8] sm:$0xff] %vm2130_vm1, %v2125_v36  ;;  %4317 = vrcp.f32 (!%p3574_p4), %v2783_v53  ;;  %v2843_v54 = vld [vmem:[#allocation4 + $0x18] sm:$0xff] (!%p3574_p4)  ;;  %v2841_v0 = vld [vmem:[#allocation4 + $0x8] sm:$0xff] (!%p3574_p4) }
 0x469   : > { %2734 = vst [vmem:[#allocation4 + $0xd0] sm:$0xff] %v2702_v63  ;;  %v2703_v13 = vadd.f32 %v3940_v3, %v2382_v52  ;;  %v2091_v33 = vpop.xlane.xlu0 %2090  ;;  %2161 = vst.msk [vmem:[#allocation3 + $0xf0] sm:$0xff] %vm2130_vm1, %v2128_v39  ;;  %4319 = vrcp.f32 (!%p3574_p4), %v2782_v55  ;;  %v2790_v52 = vld [vmem:[#allocation3 + $0x70] sm:$0xff] (!%p3574_p4)  ;;  %v2793_v3 = vld [vmem:[#allocation3 + $0x88] sm:$0xff] (!%p3574_p4) }
 0x46a   : > { %v2127_v47 = vadd.f32 %v2091_v33, %v1999_v49  ;;  %v2353_v5 = vpop.permute.xlu1 %2352  ;;  %4321 = vrcp.f32 (!%p3574_p4), %v2785_v15  ;;  %v2792_v39 = vld [vmem:[#allocation3 + $0x80] sm:$0xff] (!%p3574_p4) }
 0x46b   : > { %2735 = vst [vmem:[#allocation4 + $0xd8] sm:$0xff] %v2703_v13  ;;  %v3941_v46 = vpop.f32.mrb[56].mxu1  ;;  %v2386_v17 = vmul.f32 %v2353_v5, %v2194_v1  ;;  %4323 = vrcp.f32 (!%p3574_p4), %v2784_v28  ;;  %v2795_v13 = vld [vmem:[#allocation3 + $0x98] sm:$0xff] (!%p3574_p4)  ;;  %v2845_v28 = vld [vmem:[#allocation4 + $0x28] sm:$0xff] (!%p3574_p4) }
 0x46c   : > { %2160 = vst.msk [vmem:[#allocation3 + $0xe8] sm:$0xff] %vm2130_vm1, %v2127_v47  ;;  %v3942_v10 = vpop.f32.mrb[57].mxu1  ;;  %v4306_v25 = vpop.eup (!%p3574_p4), %4305  ;;  %4325 = vrcp.f32 (!%p3574_p4), %v2787_v32  ;;  %v2797_v47 = vld [vmem:[#allocation3 + $0xa8] sm:$0xff] (!%p3574_p4)  ;;  %v2804_v1 = vld [vmem:[#allocation3 + $0xe0] sm:$0xff] (!%p3574_p4) }
 0x46d   : > { %v3943_v23 = vadd.f32 %v3942_v10, %v3941_v46  ;;  %v3944_v48 = vpop.f32.mrb[58].mxu1  ;;  %v2097_v30 = vpop.xlane.xlu0 %2096  ;;  %2884 = vperm.xlu1 (!%p3574_p4), %4304, %v4306_v25   ;;  %4327 = vrcp.f32 (!%p3574_p4), %v2786_v19  ;;  %v2844_v32 = vld [vmem:[#allocation4 + $0x20] sm:$0xff] (!%p3574_p4) }
 0x46e   : > { %v2129_v51 = vadd.f32 %v2097_v30, %v2001_v59  ;;  %v3945_v38 = vpop.f32.mrb[59].mxu1  ;;  %v4308_v18 = vpop.eup (!%p3574_p4), %4307  ;;  %4329 = vrcp.f32 (!%p3574_p4), %v2789_v7  ;;  %v2799_v59 = vld [vmem:[#allocation3 + $0xb8] sm:$0xff] (!%p3574_p4)  ;;  %v2801_v30 = vld [vmem:[#allocation3 + $0xc8] sm:$0xff] (!%p3574_p4) }
 0x46f   : > { %v2704_v45 = vadd.f32 %v3943_v23, %v2383_v16  ;;  %v3946_v22 = vadd.f32 %v3945_v38, %v3944_v48  ;;  %v4310_v34 = vpop.eup (!%p3574_p4), %4309  ;;  %2874 = vperm.xlu0 (!%p3574_p4), %4303, %v4308_v18   ;;  %4331 = vrcp.f32 (!%p3574_p4), %v2788_v37  ;;  %v2798_v23 = vld [vmem:[#allocation3 + $0xb0] sm:$0xff] (!%p3574_p4)  ;;  %v2800_v38 = vld [vmem:[#allocation3 + $0xc0] sm:$0xff] (!%p3574_p4)  ;;  %v2847_v37 = vld [vmem:[#allocation4 + $0x38] sm:$0xff] (!%p3574_p4) }
 0x470   : > { %2162 = vst.msk [vmem:[#allocation3 + $0xf8] sm:$0xff] %vm2130_vm1, %v2129_v51  ;;  %v4312_v35 = vpop.eup (!%p3574_p4), %4311  ;;  %4333 = vrcp.f32 (!%p3574_p4), %v2791_v62 }
 0x471   : > { %2736 = vst [vmem:[#allocation4 + $0xe0] sm:$0xff] %v2704_v45  ;;  %v2705_v56 = vadd.f32 %v3946_v22, %v2384_v26  ;;  %2889 = vperm.xlu1 (!%p3574_p4), %4304, %v4310_v34   ;;  %v4314_v21 = vpop.eup (!%p3574_p4), %4313  ;;  %4335 = vrcp.f32 (!%p3574_p4), %v2790_v52  ;;  %v2803_v45 = vld [vmem:[#allocation3 + $0xd8] sm:$0xff] (!%p3574_p4) }
 0x472   : > { %v4316_v50 = vpop.eup (!%p3574_p4), %4315  ;;  %4337 = vrcp.f32 (!%p3574_p4), %v2793_v3 }
 0x473   : > { %2737 = vst [vmem:[#allocation4 + $0xe8] sm:$0xff] %v2705_v56  ;;  %2879 = vperm.xlu0 (!%p3574_p4), %4303, %v4312_v35   ;;  %v4318_v40 = vpop.eup (!%p3574_p4), %4317  ;;  %4339 = vrcp.f32 (!%p3574_p4), %v2792_v39  ;;  %v2802_v56 = vld [vmem:[#allocation3 + $0xd0] sm:$0xff] (!%p3574_p4)  ;;  %v2848_v39 = vld [vmem:[#allocation4 + $0x40] sm:$0xff] (!%p3574_p4) }
 0x474   : > { %v4320_v36 = vpop.eup (!%p3574_p4), %4319  ;;  %4341 = vrcp.f32 (!%p3574_p4), %v2795_v13 }
 0x475   : > { %v2348_v9 = vpop.permute.xlu0 %2347  ;;  %2899 = vperm.xlu1 (!%p3574_p4), %4304, %v4314_v21   ;;  %v4322_v11 = vpop.eup (!%p3574_p4), %4321  ;;  %4343 = vrcp.f32 (!%p3574_p4), %v2794_v41 }
 0x476   : > { %v2385_v24 = vmul.f32 %v2348_v9, %v2193_v8  ;;  %v4324_v63 = vpop.eup (!%p3574_p4), %4323  ;;  %4345 = vrcp.f32 (!%p3574_p4), %v2797_v47  ;;  %v2805_v9 = vld [vmem:[#allocation3 + $0xe8] sm:$0xff] (!%p3574_p4)  ;;  %v2851_v47 = vld [vmem:[#allocation4 + $0x58] sm:$0xff] (!%p3574_p4) }
 0x477   : > { %2894 = vperm.xlu0 (!%p3574_p4), %4303, %v4316_v50   ;;  %v4326_v43 = vpop.eup (!%p3574_p4), %4325  ;;  %4347 = vrcp.f32 (!%p3574_p4), %v2796_v44 }
 0x478   : > { %v4328_v49 = vpop.eup (!%p3574_p4), %4327  ;;  %4349 = vrcp.f32 (!%p3574_p4), %v2799_v59 }
 0x479   : > { %2909 = vperm.xlu1 (!%p3574_p4), %4304, %v4318_v40   ;;  %v4330_v33 = vpop.eup (!%p3574_p4), %4329  ;;  %4351 = vrcp.f32 (!%p3574_p4), %v2798_v23 }
 0x47a   : > { %v4332_v4 = vpop.eup (!%p3574_p4), %4331  ;;  %4353 = vrcp.f32 (!%p3574_p4), %v2801_v30  ;;  %v2852_v30 = vld [vmem:[#allocation4 + $0x60] sm:$0xff] (!%p3574_p4) }
 0x47b   : > { %2904 = vperm.xlu0 (!%p3574_p4), %4303, %v4320_v36   ;;  %v4334_v46 = vpop.eup (!%p3574_p4), %4333  ;;  %4355 = vrcp.f32 (!%p3574_p4), %v2800_v38  ;;  %v2846_v36 = vld [vmem:[#allocation4 + $0x30] sm:$0xff] (!%p3574_p4) }
 0x47c   : > { %v4336_v10 = vpop.eup (!%p3574_p4), %4335  ;;  %4357 = vrcp.f32 (!%p3574_p4), %v2803_v45 }
 0x47d   : > { %2919 = vperm.xlu1 (!%p3574_p4), %4304, %v4322_v11   ;;  %v4338_v16 = vpop.eup (!%p3574_p4), %4337  ;;  %4359 = vrcp.f32 (!%p3574_p4), %v2802_v56  ;;  %v2855_v56 = vld [vmem:[#allocation4 + $0x78] sm:$0xff] (!%p3574_p4) }
 0x47e   : > { %v4340_v48 = vpop.eup (!%p3574_p4), %4339  ;;  %4361 = vrcp.f32 (!%p3574_p4), %v2805_v9 }
 0x47f   : > { %2914 = vperm.xlu0 (!%p3574_p4), %4303, %v4324_v63   ;;  %v4342_v51 = vpop.eup (!%p3574_p4), %4341  ;;  %4363 = vrcp.f32 (!%p3574_p4), %v2804_v1 }
 0x480   : > { %v4344_v26 = vpop.eup (!%p3574_p4), %4343 }
 0x481   : > { %2929 = vperm.xlu1 (!%p3574_p4), %4304, %v4326_v43   ;;  %v4346_v22 = vpop.eup (!%p3574_p4), %4345  ;;  %v2849_v43 = vld [vmem:[#allocation4 + $0x48] sm:$0xff] (!%p3574_p4) }
 0x482   : > { %v4348_v8 = vpop.eup (!%p3574_p4), %4347 }
 0x483   : > { %2924 = vperm.xlu0 (!%p3574_p4), %4303, %v4328_v49  }
 0x485   : > { %2939 = vperm.xlu1 (!%p3574_p4), %4304, %v4330_v33  }
 0x487   : > { %2934 = vperm.xlu0 (!%p3574_p4), %4303, %v4332_v4  }
 0x489   : > { %2949 = vperm.xlu1 (!%p3574_p4), %4304, %v4334_v46   ;;  %v2850_v46 = vld [vmem:[#allocation4 + $0x50] sm:$0xff] (!%p3574_p4) }
 0x48b   : > { %2944 = vperm.xlu0 (!%p3574_p4), %4303, %v4336_v10  }
 0x48d   : > { %2959 = vperm.xlu1 (!%p3574_p4), %4304, %v4338_v16  }
 0x48f   : > { %2954 = vperm.xlu0 (!%p3574_p4), %4303, %v4340_v48   ;;  %v2853_v48 = vld [vmem:[#allocation4 + $0x68] sm:$0xff] (!%p3574_p4) }
 0x491   : > { %2969 = vperm.xlu1 (!%p3574_p4), %4304, %v4342_v51  }
 0x493   : > { %2964 = vperm.xlu0 (!%p3574_p4), %4303, %v4344_v26  }
 0x495   : > { %2979 = vperm.xlu1 (!%p3574_p4), %4304, %v4346_v22  }
 0x497   : > { %2974 = vperm.xlu0 (!%p3574_p4), %4303, %v4348_v8   ;;  %v2854_v8 = vld [vmem:[#allocation4 + $0x70] sm:$0xff] (!%p3574_p4) }
 0x4ac   : > { %v3947_v31 = vpop.f32.mrb[60].mxu1 }
 0x4ad   : > { %v3948_v12 = vpop.f32.mrb[61].mxu1 }
 0x4ae   : > { %v3949_v58 = vadd.f32 %v3948_v12, %v3947_v31  ;;  %v3950_v60 = vpop.f32.mrb[62].mxu1  ;;  %2775 = sbr.rel (%p3574_p4) target bundleno = 1349 (0x545), region = 157  ;;  %v4350_v31 = vpop.eup (!%p3574_p4), %4349  ;;  %v2807_v12 = vld [vmem:[#allocation3 + $0xf8] sm:$0xff] (!%p3574_p4) }
 0x4af   : > { %v3951_v29 = vpop.f32.mrb[63].mxu1  ;;  %v4352_v5 = vpop.eup (!%p3574_p4), %4351  ;;  %2989 = vperm.xlu1 (!%p3574_p4), %4304, %v4350_v31   ;;  %4365 = vrcp.f32 (!%p3574_p4), %v2807_v12 }
 0x4b0   : > { %v2706_v20 = vadd.f32 %v3949_v58, %v2385_v24  ;;  %v3952_v6 = vadd.f32 %v3951_v29, %v3950_v60  ;;  %v4354_v24 = vpop.eup (!%p3574_p4), %4353  ;;  %2984 = vperm.xlu0 (!%p3574_p4), %4303, %v4352_v5   ;;  %v2806_v58 = vld [vmem:[#allocation3 + $0xf0] sm:$0xff] (!%p3574_p4) }
 0x4b1   : > { %v4356_v60 = vpop.eup (!%p3574_p4), %4355  ;;  %4367 = vrcp.f32 (!%p3574_p4), %v2806_v58  ;;  %v2856_v58 = vld [vmem:[#allocation4 + $0x80] sm:$0xff] (!%p3574_p4) }
 0x4b2   : > { %2738 = vst [vmem:[#allocation4 + $0xf0] sm:$0xff] %v2706_v20  ;;  %v2707_v61 = vadd.f32 %v3952_v6, %v2386_v17  ;;  %v4358_v29 = vpop.eup (!%p3574_p4), %4357 }
 0x4b3   : > { %2999 = vperm.xlu1 (!%p3574_p4), %4304, %v4354_v24   ;;  %v4360_v17 = vpop.eup (!%p3574_p4), %4359  ;;  %v2857_v24 = vld [vmem:[#allocation4 + $0x88] sm:$0xff] (!%p3574_p4) }
 0x4b4   : > { %2739 = vst [vmem:[#allocation4 + $0xf8] sm:$0xff] %v2707_v61  ;;  %2994 = vperm.xlu0 (!%p3574_p4), %4303, %v4356_v60   ;;  %v4362_v20 = vpop.eup (!%p3574_p4), %4361 }
 0x4b5   : > { %v4364_v6 = vpop.eup %4363 }
 0x4b7   : > { %3009 = vperm.xlu1 %4304, %v4358_v29  }
 0x4b8   : > { %3004 = vperm.xlu0 %4303, %v4360_v17  }
 0x4b9   : > { %v4366_v61 = vpop.eup %4365 }
 0x4bb   : > { %3019 = vperm.xlu1 %4304, %v4362_v20   ;;  %v4368_v2 = vpop.eup %4367 }
 0x4bc   : > { %3014 = vperm.xlu0 %4303, %v4364_v6  }
 0x4bf   : > { %3029 = vperm.xlu1 %4304, %v4366_v61   ;;  %v2859_v61 = vld [vmem:[#allocation4 + $0x98] sm:$0xff] }
 0x4c0   : > { %3024 = vperm.xlu0 %4303, %v4368_v2   ;;  %v2858_v2 = vld [vmem:[#allocation4 + $0x90] sm:$0xff] }
 0x4ec   : > { %v2885_v14 = vpop.permute.xlu1 %2884 }
 0x4ed   : > { %v3034_v55 = vmul.f32 %v2885_v14, %v2842_v57 }
 0x4ee   : > { %v2875_v42 = vpop.permute.xlu0 %2874 }
 0x4ef   : > { %v3032_v15 = vmul.f32 %v2875_v42, %v2840_v27 }
 0x4f0   : > { %v2890_v53 = vpop.permute.xlu1 %2889 }
 0x4f1   : > { %v3035_v25 = vmul.f32 %v2890_v53, %v2843_v54  ;;  %v2860_v53 = vld [vmem:[#allocation4 + $0xa0] sm:$0xff] }
 0x4f2   : > { %v2880_v18 = vpop.permute.xlu0 %2879 }
 0x4f3   : > { %v3033_v34 = vmul.f32 %v2880_v18, %v2841_v0  ;;  %v3658_v35 = vpack.c.bf16 %v3035_v25, %v3034_v55  ;;  %v2861_v0 = vld [vmem:[#allocation4 + $0xa8] sm:$0xff] }
 0x4f4   : > { %v2900_v19 = vpop.permute.xlu1 %2899 }
 0x4f5   : > { %v3653_v21 = vpack.c.bf16 %v3033_v34, %v3032_v15  ;;  %3730 = vst [vmem:[%s4859_s11 + $0x8] sm:$0xff] %v3658_v35   ;;  %v3037_v50 = vmul.f32 %v2900_v19, %v2845_v28  ;;  %v2863_v28 = vld [vmem:[#allocation4 + $0xb8] sm:$0xff]  ;;  %v2862_v35 = vld [vmem:[#allocation4 + $0xb0] sm:$0xff] }
 0x4f6   : > { %v2895_v7 = vpop.permute.xlu0 %2894 }
 0x4f7   : > { %3654 = vst [vmem:[%s4859_s11] sm:$0xff] %v3653_v21   ;;  %v3036_v40 = vmul.f32 %v2895_v7, %v2844_v32 }
 0x4f8   : > { %v2910_v11 = vpop.permute.xlu1 %2909 }
 0x4f9   : > { %v3663_v62 = vpack.c.bf16 %v3037_v50, %v3036_v40  ;;  %v3039_v52 = vmul.f32 %v2910_v11, %v2847_v37  ;;  %v2865_v40 = vld [vmem:[#allocation4 + $0xc8] sm:$0xff]  ;;  %v2864_v37 = vld [vmem:[#allocation4 + $0xc0] sm:$0xff] }
 0x4fa   : > { %v2905_v63 = vpop.permute.xlu0 %2904 }
 0x4fb   : > { %3731 = vst [vmem:[%s4859_s11 + $0x10] sm:$0xff] %v3663_v62   ;;  %v3038_v3 = vmul.f32 %v2905_v63, %v2846_v36 }
 0x4fc   : > { %v2920_v13 = vpop.permute.xlu1 %2919 }
 0x4fd   : > { %v3668_v49 = vpack.c.bf16 %v3039_v52, %v3038_v3  ;;  %v3041_v33 = vmul.f32 %v2920_v13, %v2849_v43  ;;  %v2867_v3 = vld [vmem:[#allocation4 + $0xd8] sm:$0xff]  ;;  %v2866_v43 = vld [vmem:[#allocation4 + $0xd0] sm:$0xff] }
 0x4fe   : > { %v2915_v41 = vpop.permute.xlu0 %2914 }
 0x4ff   : > { %3732 = vst [vmem:[%s4859_s11 + $0x18] sm:$0xff] %v3668_v49   ;;  %v3040_v4 = vmul.f32 %v2915_v41, %v2848_v39 }
 0x500   : > { %v2930_v10 = vpop.permute.xlu1 %2929 }
 0x501   : > { %v3673_v44 = vpack.c.bf16 %v3041_v33, %v3040_v4  ;;  %v3043_v59 = vmul.f32 %v2930_v10, %v2851_v47  ;;  %v2869_v4 = vld [vmem:[#allocation4 + $0xe8] sm:$0xff]  ;;  %v2868_v47 = vld [vmem:[#allocation4 + $0xe0] sm:$0xff] }
 0x502   : > { %v2925_v16 = vpop.permute.xlu0 %2924 }
 0x503   : > { %3733 = vst [vmem:[%s4859_s11 + $0x20] sm:$0xff] %v3673_v44   ;;  %v3042_v23 = vmul.f32 %v2925_v16, %v2850_v46 }
 0x504   : > { %v2940_v38 = vpop.permute.xlu1 %2939 }
 0x505   : > { %v3678_v51 = vpack.c.bf16 %v3043_v59, %v3042_v23  ;;  %v3045_v26 = vmul.f32 %v2940_v38, %v2853_v48  ;;  %v2871_v23 = vld [vmem:[#allocation4 + $0xf8] sm:$0xff]  ;;  %v2870_v48 = vld [vmem:[#allocation4 + $0xf0] sm:$0xff] }
 0x506   : > { %v2935_v45 = vpop.permute.xlu0 %2934 }
 0x507   : > { %3734 = vst [vmem:[%s4859_s11 + $0x28] sm:$0xff] %v3678_v51   ;;  %v3044_v22 = vmul.f32 %v2935_v45, %v2852_v30 }
 0x508   : > { %v2950_v31 = vpop.permute.xlu1 %2949 }
 0x509   : > { %v3683_v9 = vpack.c.bf16 %v3045_v26, %v3044_v22  ;;  %v3047_v1 = vmul.f32 %v2950_v31, %v2855_v56 }
 0x50a   : > { %v2945_v5 = vpop.permute.xlu0 %2944 }
 0x50b   : > { %3735 = vst [vmem:[%s4859_s11 + $0x30] sm:$0xff] %v3683_v9   ;;  %v3046_v12 = vmul.f32 %v2945_v5, %v2854_v8 }
 0x50c   : > { %v2960_v29 = vpop.permute.xlu1 %2959 }
 0x50d   : > { %v3688_v60 = vpack.c.bf16 %v3047_v1, %v3046_v12  ;;  %v3049_v17 = vmul.f32 %v2960_v29, %v2857_v24 }
 0x50e   : > { %v2955_v20 = vpop.permute.xlu0 %2954 }
 0x50f   : > { %3736 = vst [vmem:[%s4859_s11 + $0x38] sm:$0xff] %v3688_v60   ;;  %v3048_v6 = vmul.f32 %v2955_v20, %v2856_v58 }
 0x510   : > { %v2970_v42 = vpop.permute.xlu1 %2969 }
 0x511   : > { %v3693_v14 = vpack.c.bf16 %v3049_v17, %v3048_v6  ;;  %v3051_v57 = vmul.f32 %v2970_v42, %v2859_v61 }
 0x512   : > { %v2965_v54 = vpop.permute.xlu0 %2964 }
 0x513   : > { %3737 = vst [vmem:[%s4859_s11 + $0x40] sm:$0xff] %v3693_v14   ;;  %v3050_v27 = vmul.f32 %v2965_v54, %v2858_v2 }
 0x514   : > { %v2980_v25 = vpop.permute.xlu1 %2979 }
 0x515   : > { %v3698_v55 = vpack.c.bf16 %v3051_v57, %v3050_v27  ;;  %v3053_v18 = vmul.f32 %v2980_v25, %v2861_v0 }
 0x516   : > { %v2975_v15 = vpop.permute.xlu0 %2974 }
 0x517   : > { %3738 = vst [vmem:[%s4859_s11 + $0x48] sm:$0xff] %v3698_v55   ;;  %v3052_v34 = vmul.f32 %v2975_v15, %v2860_v53 }
 0x519   : > { %v3703_v32 = vpack.c.bf16 %v3053_v18, %v3052_v34 }
 0x51b   : > { %3739 = vst [vmem:[%s4859_s11 + $0x50] sm:$0xff] %v3703_v32  }
 0x52e   : > { %v2990_v21 = vpop.permute.xlu1 %2989 }
 0x52f   : > { %v3055_v19 = vmul.f32 %v2990_v21, %v2863_v28  ;;  %v2985_v50 = vpop.permute.xlu0 %2984 }
 0x530   : > { %v3054_v7 = vmul.f32 %v2985_v50, %v2862_v35 }
 0x532   : > { %v3708_v36 = vpack.c.bf16 %v3055_v19, %v3054_v7  ;;  %v3000_v62 = vpop.permute.xlu1 %2999 }
 0x533   : > { %v3057_v11 = vmul.f32 %v3000_v62, %v2865_v40  ;;  %v2995_v52 = vpop.permute.xlu0 %2994 }
 0x534   : > { %3740 = vst [vmem:[%s4859_s11 + $0x58] sm:$0xff] %v3708_v36   ;;  %v3056_v63 = vmul.f32 %v2995_v52, %v2864_v37 }
 0x536   : > { %v3713_v39 = vpack.c.bf16 %v3057_v11, %v3056_v63  ;;  %v3010_v49 = vpop.permute.xlu1 %3009 }
 0x537   : > { %v3059_v13 = vmul.f32 %v3010_v49, %v2867_v3  ;;  %v3005_v33 = vpop.permute.xlu0 %3004 }
 0x538   : > { %3741 = vst [vmem:[%s4859_s11 + $0x60] sm:$0xff] %v3713_v39   ;;  %v3058_v41 = vmul.f32 %v3005_v33, %v2866_v43 }
 0x53a   : > { %v3718_v46 = vpack.c.bf16 %v3059_v13, %v3058_v41  ;;  %v3020_v44 = vpop.permute.xlu1 %3019 }
 0x53b   : > { %v3061_v10 = vmul.f32 %v3020_v44, %v2869_v4  ;;  %v3015_v59 = vpop.permute.xlu0 %3014 }
 0x53c   : > { %3742 = vst [vmem:[%s4859_s11 + $0x68] sm:$0xff] %v3718_v46   ;;  %v3060_v16 = vmul.f32 %v3015_v59, %v2868_v47 }
 0x53e   : > { %v3723_v30 = vpack.c.bf16 %v3061_v10, %v3060_v16  ;;  %v3030_v51 = vpop.permute.xlu1 %3029 }
 0x53f   : > { %v3063_v38 = vmul.f32 %v3030_v51, %v2871_v23  ;;  %v3025_v26 = vpop.permute.xlu0 %3024 }
 0x540   : > { %3743 = vst [vmem:[%s4859_s11 + $0x70] sm:$0xff] %v3723_v30   ;;  %v3062_v45 = vmul.f32 %v3025_v26, %v2870_v48 }
 0x542   : > { %v3728_v22 = vpack.c.bf16 %v3063_v38, %v3062_v45 }
 0x544   : > { %3744 = vst [vmem:[%s4859_s11 + $0x78] sm:$0xff] %v3728_v22  }
 0x545 PF: > { %3230 = sbr.rel (!%p4595_p10) target bundleno = 1376 (0x560), region = 161  ;;  %s6867_s14 = sld [smem:[#allocation10_spill]] (%p4595_p10)  ;;  %v3253_v56 = vld [vmem:[%s4859_s11] sm:$0xf] (%p4595_p10)  ;;  %v3255_v8 = vld [vmem:[%s4859_s11 + $0x4] sm:$0xf] (%p4595_p10) }
 0x546   : > { %s6868_s4 = sld [smem:[#allocation12_spill]] (%p4595_p10)  ;;  %s6869_s30 = sld [smem:[#allocation11_spill]] (%p4595_p10)  ;;  %v3257_v9 = vld [vmem:[%s4859_s11 + $0x8] sm:$0xf] (%p4595_p10)  ;;  %v3259_v31 = vld [vmem:[%s4859_s11 + $0xc] sm:$0xf] (%p4595_p10) }
 0x547   : > { %v3261_v1 = vld [vmem:[%s4859_s11 + $0x10] sm:$0xf] (%p4595_p10)  ;;  %v3263_v5 = vld [vmem:[%s4859_s11 + $0x14] sm:$0xf] (%p4595_p10)  ;;  %v3265_v12 = vld [vmem:[%s4859_s11 + $0x18] sm:$0xf] (%p4595_p10) }
 0x548   : > { %v3267_v24 = vld [vmem:[%s4859_s11 + $0x1c] sm:$0xf] (%p4595_p10)  ;;  %v3269_v58 = vld [vmem:[%s4859_s11 + $0x20] sm:$0xf] (%p4595_p10)  ;;  %v3271_v60 = vld [vmem:[%s4859_s11 + $0x24] sm:$0xf] (%p4595_p10) }
 0x549   : > { %s6870_s8 = sld [smem:[#allocation86_spill]] (%p4595_p10)  ;;  %v3273_v29 = vld [vmem:[%s4859_s11 + $0x28] sm:$0xf] (%p4595_p10)  ;;  %v3275_v17 = vld [vmem:[%s4859_s11 + $0x2c] sm:$0xf] (%p4595_p10) }
 0x54a   : > { %v3277_v20 = vld [vmem:[%s4859_s11 + $0x30] sm:$0xf] (%p4595_p10)  ;;  %v3279_v6 = vld [vmem:[%s4859_s11 + $0x34] sm:$0xf] (%p4595_p10)  ;;  %v3281_v61 = vld [vmem:[%s4859_s11 + $0x38] sm:$0xf] (%p4595_p10) }
 0x54b   : > { %s3649_s6 = sshll.u32 (%p4595_p10), %s6867_s14, 6  ;;  %v3283_v2 = vld [vmem:[%s4859_s11 + $0x3c] sm:$0xf] (%p4595_p10)  ;;  %v3285_v14 = vld [vmem:[%s4859_s11 + $0x40] sm:$0xf] (%p4595_p10) }
 0x54c   : > { %s3610_s7 = sshll.u32 %s6868_s4, 7  ;;  %s3233_s5 = sadd.s32 %s6869_s30, %s3649_s6  ;;  %v3287_v42 = vld [vmem:[%s4859_s11 + $0x44] sm:$0xf]  ;;  %v3289_v57 = vld [vmem:[%s4859_s11 + $0x48] sm:$0xf] }
 0x54d   : > { %s3235_s10 = sadd.s32 %s3610_s7, %s3233_s5  ;;  %v3291_v54 = vld [vmem:[%s4859_s11 + $0x4c] sm:$0xf]  ;;  %v3293_v27 = vld [vmem:[%s4859_s11 + $0x50] sm:$0xf]  ;;  %v3295_v0 = vld [vmem:[%s4859_s11 + $0x54] sm:$0xf] }
 0x54e   : > { %s3611_s3 = sshll.u32 %s3235_s10, 2  ;;  %v3297_v53 = vld [vmem:[%s4859_s11 + $0x58] sm:$0xf]  ;;  %v3299_v55 = vld [vmem:[%s4859_s11 + $0x5c] sm:$0xf] }
 0x54f   : > { %s6313_s9 = scalar_lea.vmem %s6870_s8, %s3611_s3  ;;  %v3301_v25 = vld [vmem:[%s4859_s11 + $0x60] sm:$0xf]  ;;  %v3303_v18 = vld [vmem:[%s4859_s11 + $0x64] sm:$0xf]  ;;  %v3305_v15 = vld [vmem:[%s4859_s11 + $0x68] sm:$0xf] }
 0x550   : > { %3254 = vst [vmem:[%s6313_s9] sm:$0xf] %v3253_v56  ;;  %3256 = vst [vmem:[%s6313_s9 + $0x8] sm:$0xf] %v3255_v8  ;;  %v3307_v34 = vld [vmem:[%s4859_s11 + $0x6c] sm:$0xf] }
 0x551   : > { %3258 = vst [vmem:[%s6313_s9 + $0x10] sm:$0xf] %v3257_v9  ;;  %3260 = vst [vmem:[%s6313_s9 + $0x18] sm:$0xf] %v3259_v31  ;;  %v3309_v28 = vld [vmem:[%s4859_s11 + $0x70] sm:$0xf] }
 0x552   : > { %3262 = vst [vmem:[%s6313_s9 + $0x20] sm:$0xf] %v3261_v1  ;;  %3264 = vst [vmem:[%s6313_s9 + $0x28] sm:$0xf] %v3263_v5  ;;  %v3311_v35 = vld [vmem:[%s4859_s11 + $0x74] sm:$0xf] }
 0x553   : > { %3266 = vst [vmem:[%s6313_s9 + $0x30] sm:$0xf] %v3265_v12  ;;  %3268 = vst [vmem:[%s6313_s9 + $0x38] sm:$0xf] %v3267_v24  ;;  %v3313_v32 = vld [vmem:[%s4859_s11 + $0x78] sm:$0xf] }
 0x554   : > { %3270 = vst [vmem:[%s6313_s9 + $0x40] sm:$0xf] %v3269_v58  ;;  %3272 = vst [vmem:[%s6313_s9 + $0x48] sm:$0xf] %v3271_v60  ;;  %v3315_v21 = vld [vmem:[%s4859_s11 + $0x7c] sm:$0xf] }
 0x555   : > { %3274 = vst [vmem:[%s6313_s9 + $0x50] sm:$0xf] %v3273_v29  ;;  %3276 = vst [vmem:[%s6313_s9 + $0x58] sm:$0xf] %v3275_v17 }
 0x556   : > { %3278 = vst [vmem:[%s6313_s9 + $0x60] sm:$0xf] %v3277_v20  ;;  %3280 = vst [vmem:[%s6313_s9 + $0x68] sm:$0xf] %v3279_v6 }
 0x557   : > { %3282 = vst [vmem:[%s6313_s9 + $0x70] sm:$0xf] %v3281_v61  ;;  %3284 = vst [vmem:[%s6313_s9 + $0x78] sm:$0xf] %v3283_v2 }
 0x558   : > { %3286 = vst [vmem:[%s6313_s9 + $0x80] sm:$0xf] %v3285_v14  ;;  %3288 = vst [vmem:[%s6313_s9 + $0x88] sm:$0xf] %v3287_v42 }
 0x559   : > { %3290 = vst [vmem:[%s6313_s9 + $0x90] sm:$0xf] %v3289_v57  ;;  %3292 = vst [vmem:[%s6313_s9 + $0x98] sm:$0xf] %v3291_v54 }
 0x55a   : > { %3294 = vst [vmem:[%s6313_s9 + $0xa0] sm:$0xf] %v3293_v27  ;;  %3296 = vst [vmem:[%s6313_s9 + $0xa8] sm:$0xf] %v3295_v0 }
 0x55b   : > { %3298 = vst [vmem:[%s6313_s9 + $0xb0] sm:$0xf] %v3297_v53  ;;  %3300 = vst [vmem:[%s6313_s9 + $0xb8] sm:$0xf] %v3299_v55 }
 0x55c   : > { %3302 = vst [vmem:[%s6313_s9 + $0xc0] sm:$0xf] %v3301_v25  ;;  %3304 = vst [vmem:[%s6313_s9 + $0xc8] sm:$0xf] %v3303_v18 }
 0x55d   : > { %3306 = vst [vmem:[%s6313_s9 + $0xd0] sm:$0xf] %v3305_v15  ;;  %3308 = vst [vmem:[%s6313_s9 + $0xd8] sm:$0xf] %v3307_v34 }
 0x55e   : > { %3310 = vst [vmem:[%s6313_s9 + $0xe0] sm:$0xf] %v3309_v28  ;;  %3312 = vst [vmem:[%s6313_s9 + $0xe8] sm:$0xf] %v3311_v35 }
 0x55f   : > { %3314 = vst [vmem:[%s6313_s9 + $0xf0] sm:$0xf] %v3313_v32  ;;  %3316 = vst [vmem:[%s6313_s9 + $0xf8] sm:$0xf] %v3315_v21 }
 0x560 PF: > { %s13_s24 = sadd.s32 1, %s4471_s24   ;;  %s6872_s12 = smov %s4427_s13 }
 0x561   : > { %p6370_p5 = scmp.ge.s32.totalorder %s13_s24, 18   ;;  %s6873_s13 = smov %s4615_s16 }
 0x562   : > { %s6874_s14 = smov %s4435_s15  ;;  %s6875_s15 = smov %s4612_s17 }
 0x563   : > { %s6876_s16 = smov %s4455_s20  ;;  %s6877_s17 = smov %s4459_s21 }
 0x564   : > { %s6878_s18 = smov %s4463_s22  ;;  %s6879_s19 = smov %s4467_s23 }
 0x565   : > { %s6880_s20 = smov %s6887_s25  ;;  %s6881_s21 = smov %s6889_s26 }
 0x566   : > { %s6882_s22 = smov %s6893_s28  ;;  %s6883_s23 = smov %s6897_s29 }
 0x567   :  { %12 = sbr.rel (!%p6370_p5) target bundleno = 9 (0x9), region = 249 }

</bundles_post_ra>
